<compile_context>
chip_gen: v5e
topology: v5e:2x2
jax: 0.10.0
libtpu: 0.0.40
codegen_flags: <defaults>
</compile_context>

<pallas_src>
import math

import jax
import jax.numpy as jnp
from jax.experimental import pallas as pl
from jax.experimental.pallas import tpu as pltpu

D = 2            # data dim
K = 1            # split point
HIDDEN = 32      # MLP hidden width
N_LAYERS = 4     # number of stacked bijectors
LEAKY_SLOPE = 0.01
LOG_2PI = math.log(2.0 * math.pi)


def stacked_nvp_kernel(xt_ref, w1b1_ref, w2blk_ref, b2_ref, out_ref):
    """One lane-tile of the full flow.

    xt_ref   : (2, TN)       x^T tile, batch on the lane axis.
    w1b1_ref : (2*L*H, 2)    col 0 = W1, col 1 = b1; per layer [sig rows; mu rows].
    w2blk_ref: (2*L, 2*H)    block-diagonal second linear [W2_sig 0; 0 W2_mu] per layer.
    b2_ref   : (2*L, 1)      second-linear biases [b2_sig; b2_mu] per layer.
    out_ref  : (4, TN)       rows = z0, z1, log_pz, log_jacob.
    """
    a = xt_ref[0:1, :].astype(jnp.float32)            # (1, TN) component 0
    b = xt_ref[1:2, :].astype(jnp.float32)            # (1, TN) component 1
    ones = jnp.ones_like(a)                           # hoisted: reused by every layer
    lj = jnp.zeros_like(a)                            # running log|det J|

    # N_LAYERS is a small static constant: unroll the bijector stack in-kernel.
    for i in range(N_LAYERS):
        flip = bool(i % 2)
        xin = b if flip else a                        # net input / passthrough component
        xo = a if flip else b                         # component being transformed

        r0 = i * 2 * HIDDEN

        # First Linear(1 -> H) + bias for BOTH nets on the MXU:
        #   (2H, 2) [W1 | b1] @ (2, TN) [xin ; 1]  ->  (2H, TN)
        xi1 = jnp.concatenate([xin, ones], axis=0)    # (2, TN)
        h = jnp.dot(w1b1_ref[r0:r0 + 2 * HIDDEN, :], xi1,
                    preferred_element_type=jnp.float32)
        # LeakyReLU as mul+max (2 VALU ops) instead of cmp+mul+select (3 ops).
        h = jnp.maximum(h, LEAKY_SLOPE * h)

        # Second Linear(H -> 1) for both nets fused on the MXU:
        # (2, 2H) block-diagonal @ (2H, TN) -> (2, TN) = [sig; mu].
        sm = jnp.dot(w2blk_ref[2 * i:2 * i + 2, :], h,
                     preferred_element_type=jnp.float32)
        sm = sm + b2_ref[2 * i:2 * i + 2, :]
        sig = sm[0:1, :]
        mu = sm[1:2, :]

        z2 = xo * jnp.exp(sig) + mu                   # affine coupling (exp on the EUP)
        if flip:
            a = z2
        else:
            b = z2
        lj = lj + sig                                 # (d - k) == 1 -> sum(-1) is identity

    # log N(z; 0, I_2) = -0.5 * ||z||^2 - log(2*pi)
    logpz = -0.5 * (a * a + b * b) - LOG_2PI

    # Single packed, lane-dense output: rows z0, z1, log_pz, log_jacob.
    out_ref[0:2, :] = jnp.concatenate([a, b], axis=0)
    out_ref[2:3, :] = logpz
    out_ref[3:4, :] = lj


def _tensorcores_per_chip():
    """Best-effort TC count per device (perf-only grid-policy heuristic)."""
    try:
        kind = jax.devices()[0].device_kind.lower()
    except Exception:
        return 1
    # v4 / v5p (megacore) and v7x expose 2 TensorCores per device; v5e/v6e have 1.
    if ("v4" in kind) or ("v5p" in kind) or ("7" in kind):
        return 2
    return 1


def stacked_nvp_forward(x, packed, *, tile_n=8192):
    """x: (N, 2) float32.  Returns (z_hat (N, 2), log_pz (N,), log_jacob (N,))."""
    n = x.shape[0]
    w1b1, w2blk, b2p = packed

    multi_tc = _tensorcores_per_chip() >= 2

    # Lane tile: multiple of 128, no larger than the rounded-up batch.  Large
    # tiles amortize the ~0.35 us per-grid-step pipeline overhead; VMEM is not
    # the constraint (the (2H, TN) hidden temp is only 2 MiB at TN=8192).
    tile_n = max(128, (tile_n // 128) * 128)
    tile_n = min(tile_n, pl.cdiv(n, 128) * 128)
    if multi_tc:
        # Only multi-TC chips benefit from splitting the "parallel" grid axis;
        # aim for >= 4 programs so a padded tail tile stays load-balanced.
        if n >= 4 * 512:
            tile_n = min(tile_n, pl.cdiv(pl.cdiv(n, 4), 128) * 128)
        elif n > 256:
            tile_n = min(tile_n, pl.cdiv(pl.cdiv(n, 2), 128) * 128)

    n_pad = pl.cdiv(n, tile_n) * tile_n
    xt = jnp.asarray(x, jnp.float32).T                # (2, N), batch on lanes
    if n_pad != n:
        xt = jnp.pad(xt, ((0, 0), (0, n_pad - n)))    # padded lanes discarded below

    out = pl.pallas_call(
        stacked_nvp_kernel,
        out_shape=jax.ShapeDtypeStruct((4, n_pad), jnp.float32),
        grid=(n_pad // tile_n,),
        in_specs=[
            pl.BlockSpec((D, tile_n), lambda i: (0, i)),
            pl.BlockSpec(w1b1.shape, lambda i: (0, 0)),
            pl.BlockSpec(w2blk.shape, lambda i: (0, 0)),
            pl.BlockSpec(b2p.shape, lambda i: (0, 0)),
        ],
        out_specs=pl.BlockSpec((4, tile_n), lambda i: (0, i)),
        compiler_params=pltpu.CompilerParams(
            dimension_semantics=("parallel",),
            vmem_limit_bytes=32 * 1024 * 1024),
    )(xt, w1b1, w2blk, b2p)

    # NOTE: the transpose back to PyTorch's (N, 2) is an extra HBM round-trip on
    # the z output; consumers that can take the (2, N) lane-major layout should
    # read out[0:2] directly (negligible at N=3000, relevant for huge batches).
    z_hat = out[0:2, :n].T
    log_pz = out[2, :n]
    log_jacob = out[3, :n]
    return z_hat, log_pz, log_jacob


def init_params(key):
    """PyTorch nn.Linear-style init. Returns (per_layer dicts, packed kernel arrays)."""
    per_layer = []
    for _ in range(N_LAYERS):
        layer = {}
        for net in ("sig", "mu"):
            key, k1, k2, k3, k4 = jax.random.split(key, 5)
            b_in = 1.0 / math.sqrt(K)
            b_hid = 1.0 / math.sqrt(HIDDEN)
            layer[net] = dict(
                W1=jax.random.uniform(k1, (HIDDEN, K), jnp.float32, -b_in, b_in),
                b1=jax.random.uniform(k2, (HIDDEN,), jnp.float32, -b_in, b_in),
                W2=jax.random.uniform(k3, (D - K, HIDDEN), jnp.float32, -b_hid, b_hid),
                b2=jax.random.uniform(k4, (D - K,), jnp.float32, -b_hid, b_hid),
            )
        per_layer.append(layer)

    # Pack into 3 lane-friendly arrays (fused sig/mu per layer):
    #   w1b1  (2*L*H, 2): col0 = W1, col1 = b1; per layer sig's H rows then mu's.
    #   w2blk (2*L, 2*H): block-diagonal [W2_sig 0; 0 W2_mu] per layer.
    #   b2p   (2*L, 1)  : [b2_sig; b2_mu] per layer.
    zeros_h = jnp.zeros((1, HIDDEN), jnp.float32)
    w1_cols, b1_cols, w2_rows, b2_rows = [], [], [], []
    for l in per_layer:
        for net, blk in (("sig", 0), ("mu", 1)):
            w1_cols.append(l[net]["W1"])                      # (H, 1)
            b1_cols.append(l[net]["b1"][:, None])             # (H, 1)
            row = [zeros_h, zeros_h]
            row[blk] = l[net]["W2"]                           # (1, H)
            w2_rows.append(jnp.concatenate(row, axis=1))      # (1, 2H)
            b2_rows.append(l[net]["b2"][:, None])             # (1, 1)
    w1b1 = jnp.concatenate(
        [jnp.concatenate(w1_cols, axis=0), jnp.concatenate(b1_cols, axis=0)], axis=1)
    w2blk = jnp.concatenate(w2_rows, axis=0)
    b2p = jnp.concatenate(b2_rows, axis=0)
    return per_layer, (w1b1, w2blk, b2p)


def reference_forward(x, per_layer):
    """Pure-JAX port of the stacked R_NVP forward for verification."""
    leaky = lambda v: jnp.where(v > 0, v, LEAKY_SLOPE * v)
    lj = jnp.zeros((x.shape[0],), jnp.float32)
    for i in range(N_LAYERS):
        flip = bool(i % 2)
        x1, x2 = x[:, :K], x[:, K:]
        if flip:
            x1, x2 = x2, x1
        p = per_layer[i]
        sig = leaky(x1 @ p["sig"]["W1"].T + p["sig"]["b1"]) @ p["sig"]["W2"].T + p["sig"]["b2"]
        mu = leaky(x1 @ p["mu"]["W1"].T + p["mu"]["b1"]) @ p["mu"]["W2"].T + p["mu"]["b2"]
        z1, z2 = x1, x2 * jnp.exp(sig) + mu
        if flip:
            z1, z2 = z2, z1
        x = jnp.concatenate([z1, z2], axis=-1)
        lj = lj + jnp.sum(sig, axis=-1)
    logpz = -0.5 * jnp.sum(x * x, axis=-1) - LOG_2PI
    return x, logpz, lj


if __name__ == "__main__":
    key = jax.random.PRNGKey(0)
    k_param, k_x = jax.random.split(key)
    per_layer, packed = init_params(k_param)

    N = 3000  # matches sample_shape in the reference; NOT a multiple of the tile
    x = jax.random.normal(k_x, (N, D), jnp.float32)   # stand-in for base_dist.rsample

    z_hat, log_pz, log_jacob = stacked_nvp_forward(x, packed)
    jax.block_until_ready((z_hat, log_pz, log_jacob))

    z_ref, lp_ref, lj_ref = reference_forward(x, per_layer)
    assert jnp.allclose(z_hat, z_ref, rtol=1e-5, atol=1e-5)
    assert jnp.allclose(log_pz, lp_ref, rtol=1e-5, atol=1e-5)
    assert jnp.allclose(log_jacob, lj_ref, rtol=1e-5, atol=1e-5)

    print("KERNEL_OK")
</pallas_src>

<mosaic_0001>
module attributes {stable_mosaic.version = 11 : i64} {
  func.func @stacked_nvp_kernel(%arg0: i32, %arg1: memref<2x3072xf32, #tpu.memory_space<vmem>>, %arg2: memref<256x2xf32, #tpu.memory_space<vmem>>, %arg3: memref<8x64xf32, #tpu.memory_space<vmem>>, %arg4: memref<8x1xf32, #tpu.memory_space<vmem>>, %arg5: memref<4x3072xf32, #tpu.memory_space<vmem>>) attributes {dimension_semantics = [#tpu.dimension_semantics<parallel>], iteration_bounds = array<i64: 1>, scalar_prefetch = 0 : i64, scratch_operands = 0 : i64, tpu.core_type = #tpu.core_type<tc>, window_params = [{transform_indices = @transform_0, window_bounds = array<i64: 2, 3072>}, {pipeline_mode = #tpu.pipeline_mode<synchronous>, transform_indices = @transform_1, window_bounds = array<i64: 256, 2>}, {pipeline_mode = #tpu.pipeline_mode<synchronous>, transform_indices = @transform_2, window_bounds = array<i64: 8, 64>}, {pipeline_mode = #tpu.pipeline_mode<synchronous>, transform_indices = @transform_3, window_bounds = array<i64: 8, 1>}, {transform_indices = @transform_4, window_bounds = array<i64: 4, 3072>}]} {
    %c0 = arith.constant 0 : index
    %c0_0 = arith.constant 0 : index
    %0 = vector.load %arg1[%c0, %c0_0] : memref<2x3072xf32, #tpu.memory_space<vmem>>, vector<1x3072xf32>
    %c1 = arith.constant 1 : index
    %c0_1 = arith.constant 0 : index
    %1 = vector.load %arg1[%c1, %c0_1] : memref<2x3072xf32, #tpu.memory_space<vmem>>, vector<1x3072xf32>
    %cst = arith.constant 1.000000e+00 : f32
    %2 = vector.broadcast %cst : f32 to vector<1x3072xf32>
    %cst_2 = arith.constant 0.000000e+00 : f32
    %3 = vector.broadcast %cst_2 : f32 to vector<1x3072xf32>
    %4 = tpu.concatenate %0, %2 in 0 : vector<1x3072xf32>, vector<1x3072xf32> -> vector<2x3072xf32>
    %c0_3 = arith.constant 0 : index
    %c0_4 = arith.constant 0 : index
    %5 = vector.load %arg2[%c0_3, %c0_4] : memref<256x2xf32, #tpu.memory_space<vmem>>, vector<64x2xf32>
    %cst_5 = arith.constant dense<0.000000e+00> : vector<64x3072xf32>
    %6 = tpu.matmul %5, %4, %cst_5 {dimension_numbers = #tpu.dot_dimension_numbers<[1], [0], [0], [1], [0, 0, 1, 1], [], []>} : vector<64x2xf32>, vector<2x3072xf32>, vector<64x3072xf32> -> vector<64x3072xf32>
    %cst_6 = arith.constant 0.00999999977 : f32
    %7 = vector.broadcast %cst_6 : f32 to vector<64x3072xf32>
    %8 = arith.mulf %7, %6 : vector<64x3072xf32>
    %9 = arith.maximumf %6, %8 : vector<64x3072xf32>
    %c0_7 = arith.constant 0 : index
    %c0_8 = arith.constant 0 : index
    %10 = vector.load %arg3[%c0_7, %c0_8] : memref<8x64xf32, #tpu.memory_space<vmem>>, vector<2x64xf32>
    %cst_9 = arith.constant dense<0.000000e+00> : vector<2x3072xf32>
    %11 = tpu.matmul %10, %9, %cst_9 {dimension_numbers = #tpu.dot_dimension_numbers<[1], [0], [0], [1], [0, 0, 1, 1], [], []>} : vector<2x64xf32>, vector<64x3072xf32>, vector<2x3072xf32> -> vector<2x3072xf32>
    %c0_10 = arith.constant 0 : index
    %c0_11 = arith.constant 0 : index
    %12 = vector.load %arg4[%c0_10, %c0_11] : memref<8x1xf32, #tpu.memory_space<vmem>>, vector<2x1xf32>
    %13 = vector.broadcast %12 : vector<2x1xf32> to vector<2x3072xf32>
    %14 = arith.addf %11, %13 : vector<2x3072xf32>
    %15 = vector.extract_strided_slice %14 {offsets = [0, 0], sizes = [1, 3072], strides = [1, 1]} : vector<2x3072xf32> to vector<1x3072xf32>
    %16 = vector.extract_strided_slice %14 {offsets = [1, 0], sizes = [1, 3072], strides = [1, 1]} : vector<2x3072xf32> to vector<1x3072xf32>
    %17 = math.exp %15 : vector<1x3072xf32>
    %18 = arith.mulf %1, %17 : vector<1x3072xf32>
    %19 = arith.addf %18, %16 : vector<1x3072xf32>
    %20 = arith.addf %3, %15 : vector<1x3072xf32>
    %21 = tpu.concatenate %19, %2 in 0 : vector<1x3072xf32>, vector<1x3072xf32> -> vector<2x3072xf32>
    %c64 = arith.constant 64 : index
    %c0_12 = arith.constant 0 : index
    %22 = vector.load %arg2[%c64, %c0_12] : memref<256x2xf32, #tpu.memory_space<vmem>>, vector<64x2xf32>
    %cst_13 = arith.constant dense<0.000000e+00> : vector<64x3072xf32>
    %23 = tpu.matmul %22, %21, %cst_13 {dimension_numbers = #tpu.dot_dimension_numbers<[1], [0], [0], [1], [0, 0, 1, 1], [], []>} : vector<64x2xf32>, vector<2x3072xf32>, vector<64x3072xf32> -> vector<64x3072xf32>
    %cst_14 = arith.constant 0.00999999977 : f32
    %24 = vector.broadcast %cst_14 : f32 to vector<64x3072xf32>
    %25 = arith.mulf %24, %23 : vector<64x3072xf32>
    %26 = arith.maximumf %23, %25 : vector<64x3072xf32>
    %c2 = arith.constant 2 : index
    %c0_15 = arith.constant 0 : index
    %27 = vector.load %arg3[%c2, %c0_15] : memref<8x64xf32, #tpu.memory_space<vmem>>, vector<2x64xf32>
    %cst_16 = arith.constant dense<0.000000e+00> : vector<2x3072xf32>
    %28 = tpu.matmul %27, %26, %cst_16 {dimension_numbers = #tpu.dot_dimension_numbers<[1], [0], [0], [1], [0, 0, 1, 1], [], []>} : vector<2x64xf32>, vector<64x3072xf32>, vector<2x3072xf32> -> vector<2x3072xf32>
    %c2_17 = arith.constant 2 : index
    %c0_18 = arith.constant 0 : index
    %29 = vector.load %arg4[%c2_17, %c0_18] : memref<8x1xf32, #tpu.memory_space<vmem>>, vector<2x1xf32>
    %30 = vector.broadcast %29 : vector<2x1xf32> to vector<2x3072xf32>
    %31 = arith.addf %28, %30 : vector<2x3072xf32>
    %32 = vector.extract_strided_slice %31 {offsets = [0, 0], sizes = [1, 3072], strides = [1, 1]} : vector<2x3072xf32> to vector<1x3072xf32>
    %33 = vector.extract_strided_slice %31 {offsets = [1, 0], sizes = [1, 3072], strides = [1, 1]} : vector<2x3072xf32> to vector<1x3072xf32>
    %34 = math.exp %32 : vector<1x3072xf32>
    %35 = arith.mulf %0, %34 : vector<1x3072xf32>
    %36 = arith.addf %35, %33 : vector<1x3072xf32>
    %37 = arith.addf %20, %32 : vector<1x3072xf32>
    %38 = tpu.concatenate %36, %2 in 0 : vector<1x3072xf32>, vector<1x3072xf32> -> vector<2x3072xf32>
    %c128 = arith.constant 128 : index
    %c0_19 = arith.constant 0 : index
    %39 = vector.load %arg2[%c128, %c0_19] : memref<256x2xf32, #tpu.memory_space<vmem>>, vector<64x2xf32>
    %cst_20 = arith.constant dense<0.000000e+00> : vector<64x3072xf32>
    %40 = tpu.matmul %39, %38, %cst_20 {dimension_numbers = #tpu.dot_dimension_numbers<[1], [0], [0], [1], [0, 0, 1, 1], [], []>} : vector<64x2xf32>, vector<2x3072xf32>, vector<64x3072xf32> -> vector<64x3072xf32>
    %cst_21 = arith.constant 0.00999999977 : f32
    %41 = vector.broadcast %cst_21 : f32 to vector<64x3072xf32>
    %42 = arith.mulf %41, %40 : vector<64x3072xf32>
    %43 = arith.maximumf %40, %42 : vector<64x3072xf32>
    %c4 = arith.constant 4 : index
    %c0_22 = arith.constant 0 : index
    %44 = vector.load %arg3[%c4, %c0_22] : memref<8x64xf32, #tpu.memory_space<vmem>>, vector<2x64xf32>
    %cst_23 = arith.constant dense<0.000000e+00> : vector<2x3072xf32>
    %45 = tpu.matmul %44, %43, %cst_23 {dimension_numbers = #tpu.dot_dimension_numbers<[1], [0], [0], [1], [0, 0, 1, 1], [], []>} : vector<2x64xf32>, vector<64x3072xf32>, vector<2x3072xf32> -> vector<2x3072xf32>
    %c4_24 = arith.constant 4 : index
    %c0_25 = arith.constant 0 : index
    %46 = vector.load %arg4[%c4_24, %c0_25] : memref<8x1xf32, #tpu.memory_space<vmem>>, vector<2x1xf32>
    %47 = vector.broadcast %46 : vector<2x1xf32> to vector<2x3072xf32>
    %48 = arith.addf %45, %47 : vector<2x3072xf32>
    %49 = vector.extract_strided_slice %48 {offsets = [0, 0], sizes = [1, 3072], strides = [1, 1]} : vector<2x3072xf32> to vector<1x3072xf32>
    %50 = vector.extract_strided_slice %48 {offsets = [1, 0], sizes = [1, 3072], strides = [1, 1]} : vector<2x3072xf32> to vector<1x3072xf32>
    %51 = math.exp %49 : vector<1x3072xf32>
    %52 = arith.mulf %19, %51 : vector<1x3072xf32>
    %53 = arith.addf %52, %50 : vector<1x3072xf32>
    %54 = arith.addf %37, %49 : vector<1x3072xf32>
    %55 = tpu.concatenate %53, %2 in 0 : vector<1x3072xf32>, vector<1x3072xf32> -> vector<2x3072xf32>
    %c192 = arith.constant 192 : index
    %c0_26 = arith.constant 0 : index
    %56 = vector.load %arg2[%c192, %c0_26] : memref<256x2xf32, #tpu.memory_space<vmem>>, vector<64x2xf32>
    %cst_27 = arith.constant dense<0.000000e+00> : vector<64x3072xf32>
    %57 = tpu.matmul %56, %55, %cst_27 {dimension_numbers = #tpu.dot_dimension_numbers<[1], [0], [0], [1], [0, 0, 1, 1], [], []>} : vector<64x2xf32>, vector<2x3072xf32>, vector<64x3072xf32> -> vector<64x3072xf32>
    %cst_28 = arith.constant 0.00999999977 : f32
    %58 = vector.broadcast %cst_28 : f32 to vector<64x3072xf32>
    %59 = arith.mulf %58, %57 : vector<64x3072xf32>
    %60 = arith.maximumf %57, %59 : vector<64x3072xf32>
    %c6 = arith.constant 6 : index
    %c0_29 = arith.constant 0 : index
    %61 = vector.load %arg3[%c6, %c0_29] : memref<8x64xf32, #tpu.memory_space<vmem>>, vector<2x64xf32>
    %cst_30 = arith.constant dense<0.000000e+00> : vector<2x3072xf32>
    %62 = tpu.matmul %61, %60, %cst_30 {dimension_numbers = #tpu.dot_dimension_numbers<[1], [0], [0], [1], [0, 0, 1, 1], [], []>} : vector<2x64xf32>, vector<64x3072xf32>, vector<2x3072xf32> -> vector<2x3072xf32>
    %c6_31 = arith.constant 6 : index
    %c0_32 = arith.constant 0 : index
    %63 = vector.load %arg4[%c6_31, %c0_32] : memref<8x1xf32, #tpu.memory_space<vmem>>, vector<2x1xf32>
    %64 = vector.broadcast %63 : vector<2x1xf32> to vector<2x3072xf32>
    %65 = arith.addf %62, %64 : vector<2x3072xf32>
    %66 = vector.extract_strided_slice %65 {offsets = [0, 0], sizes = [1, 3072], strides = [1, 1]} : vector<2x3072xf32> to vector<1x3072xf32>
    %67 = vector.extract_strided_slice %65 {offsets = [1, 0], sizes = [1, 3072], strides = [1, 1]} : vector<2x3072xf32> to vector<1x3072xf32>
    %68 = math.exp %66 : vector<1x3072xf32>
    %69 = arith.mulf %36, %68 : vector<1x3072xf32>
    %70 = arith.addf %69, %67 : vector<1x3072xf32>
    %71 = arith.addf %54, %66 : vector<1x3072xf32>
    %72 = arith.mulf %70, %70 : vector<1x3072xf32>
    %73 = arith.mulf %53, %53 : vector<1x3072xf32>
    %74 = arith.addf %72, %73 : vector<1x3072xf32>
    %cst_33 = arith.constant -5.000000e-01 : f32
    %75 = vector.broadcast %cst_33 : f32 to vector<1x3072xf32>
    %76 = arith.mulf %75, %74 : vector<1x3072xf32>
    %cst_34 = arith.constant 1.83787704 : f32
    %77 = vector.broadcast %cst_34 : f32 to vector<1x3072xf32>
    %78 = arith.subf %76, %77 : vector<1x3072xf32>
    %79 = tpu.concatenate %70, %53 in 0 : vector<1x3072xf32>, vector<1x3072xf32> -> vector<2x3072xf32>
    %c0_35 = arith.constant 0 : index
    %c0_36 = arith.constant 0 : index
    %80 = vector.load %arg5[%c0_35, %c0_36] : memref<4x3072xf32, #tpu.memory_space<vmem>>, vector<2x3072xf32>
    tpu.vector_store %arg5[%c0_35, %c0_36], %79 {strides = array<i32>} : memref<4x3072xf32, #tpu.memory_space<vmem>>, vector<2x3072xf32>,
    %c2_37 = arith.constant 2 : index
    %c0_38 = arith.constant 0 : index
    %81 = vector.load %arg5[%c2_37, %c0_38] : memref<4x3072xf32, #tpu.memory_space<vmem>>, vector<1x3072xf32>
    tpu.vector_store %arg5[%c2_37, %c0_38], %78 {strides = array<i32>} : memref<4x3072xf32, #tpu.memory_space<vmem>>, vector<1x3072xf32>,
    %c3 = arith.constant 3 : index
    %c0_39 = arith.constant 0 : index
    %82 = vector.load %arg5[%c3, %c0_39] : memref<4x3072xf32, #tpu.memory_space<vmem>>, vector<1x3072xf32>
    tpu.vector_store %arg5[%c3, %c0_39], %71 {strides = array<i32>} : memref<4x3072xf32, #tpu.memory_space<vmem>>, vector<1x3072xf32>,
    return
  }
  func.func @transform_0(%arg0: i32) -> (i32, i32) {
    %c0_i32 = arith.constant 0 : i32
    %c0_i32_0 = arith.constant 0 : i32
    return %c0_i32, %arg0 : i32, i32
  }
  func.func @transform_1(%arg0: i32) -> (i32, i32) {
    %c0_i32 = arith.constant 0 : i32
    %c0_i32_0 = arith.constant 0 : i32
    %c0_i32_1 = arith.constant 0 : i32
    return %c0_i32, %c0_i32_0 : i32, i32
  }
  func.func @transform_2(%arg0: i32) -> (i32, i32) {
    %c0_i32 = arith.constant 0 : i32
    %c0_i32_0 = arith.constant 0 : i32
    %c0_i32_1 = arith.constant 0 : i32
    return %c0_i32, %c0_i32_0 : i32, i32
  }
  func.func @transform_3(%arg0: i32) -> (i32, i32) {
    %c0_i32 = arith.constant 0 : i32
    %c0_i32_0 = arith.constant 0 : i32
    %c0_i32_1 = arith.constant 0 : i32
    return %c0_i32, %c0_i32_0 : i32, i32
  }
  func.func @transform_4(%arg0: i32) -> (i32, i32) {
    %c0_i32 = arith.constant 0 : i32
    %c0_i32_0 = arith.constant 0 : i32
    return %c0_i32, %arg0 : i32, i32
  }
}

</mosaic_0001>

<bundles_post_ra>
// kernel: tpu_custom_call.1
= control target key start
LH: loop header
LB: loop body
LE: loop exit
PB: predicated region body
PF: predicated region fallthrough
CT: control target
= control target key end

     0   :  { %vm80_vm0 = vcmask 1040384   ;;  %vm138_vm1 = vcmask 1041408   ;;  %vm113_vm2 = vcmask 15360   ;;  %s16284_s0 = inlined_call_operand.vmem [shape: f32[2,3072], index: 0, kind: input, shape index: {}]   ;;  %s16285_s1 = inlined_call_operand.vmem [shape: f32[256,2], index: 1, kind: input, shape index: {}]   ;;  %s16286_s2 = inlined_call_operand.vmem [shape: f32[8,64], index: 2, kind: input, shape index: {}]   ;;  %s16287_s3 = inlined_call_operand.vmem [shape: f32[8,1], index: 3, kind: input, shape index: {}]   ;;  %s16288_s4 = inlined_call_operand.hbm [shape: f32[4,3072], index: 4, kind: output, shape index: {}]  }
   0x1   :  { %v18_v0 = vld [vmem:[%s16284_s0] ss:$2 sm:$0xff] }
   0x2   :  { %v32_v1 = vperm.slane %v18_v0, 0  ;;  %v33_v2 = vperm.slane %v18_v0, 1  ;;  %v34_v3 = vperm.slane %v18_v0, 2  ;;  %v35_v4 = vperm.slane %v18_v0, 3  ;;  %v10511_v5 = vld [vmem:[%s16285_s1] sm:$0xff] }
   0x3   :  { %16570 = vst [vmem:[#allocation5_spill] sm:$0xff] %v10511_v5  ;;  %v38_v6 = vperm.slane %v18_v0, 6  ;;  %v39_v7 = vperm.slane %v18_v0, 7  ;;  %v36_v8 = vperm.slane %v18_v0, 4  ;;  %v37_v9 = vperm.slane %v18_v0, 5 }
   0x4   :  { %v81_v10 = vsel %vm80_vm0, %v32_v1, 1.0  ;;  %v82_v11 = vsel %vm80_vm0, %v33_v2, 1.0  ;;  %v83_v12 = vsel %vm80_vm0, %v34_v3, 1.0  ;;  %v84_v13 = vsel %vm80_vm0, %v35_v4, 1.0 }
   0x5   :  { %9 = vsyncpa [#allocation3], 0  ;;  %9258 = vmatpush.msk.msra.mxu0 %vm138_vm1, %v81_v10  ;;  %9267 = vmatpush.msk.msra.mxu1 %vm138_vm1, %v82_v11  ;;  %v87_v14 = vsel %vm80_vm0, %v38_v6, 1.0  ;;  %v88_v15 = vsel %vm80_vm0, %v39_v7, 1.0  ;;  %v85_v16 = vsel %vm80_vm0, %v36_v8, 1.0  ;;  %v86_v17 = vsel %vm80_vm0, %v37_v9, 1.0 }
   0x6   :  { %9276 = vmatpush.msk.msra.mxu2 %vm138_vm1, %v83_v12  ;;  %9285 = vmatpush.msk.msra.mxu3 %vm138_vm1, %v84_v13  ;;  %v10540_v18 = vld [vmem:[%s16285_s1 + $0x8] sm:$0xff]  ;;  %v10553_v19 = vld [vmem:[%s16285_s1 + $0x10] sm:$0xff]  ;;  %v10566_v20 = vld [vmem:[%s16285_s1 + $0x18] sm:$0xff]  ;;  %vm1586_vm3 = vcmask 523264   ;;  %vm2164_vm4 = vcmask 1042434   ;;  %vm2167_vm5 = vcmask 1044484  }
   0x7   :  { %9259 = vmatmul.msk.f32.vlgmr.msra.gmra.mxu0 %vm113_vm2, %v10511_v5  ;;  %9268 = vmatmul.msk.f32.vlgmr.msra.gmra.mxu1 %vm113_vm2, %v10511_v5  ;;  %v10579_v21 = vld [vmem:[%s16285_s1 + $0x20] sm:$0xff]  ;;  %v10592_v22 = vld [vmem:[%s16284_s0 + $0x10] ss:$2 sm:$0xff]  ;;  %v10601_v27 = vld [vmem:[%s16285_s1 + $0x28] sm:$0xff]  ;;  %vm2169_vm6 = vcmask 1046534   ;;  %vm2171_vm7 = vcmask 1045508  }
   0x8   :  { %9277 = vmatmul.msk.f32.vlgmr.msra.gmra.mxu2 %vm113_vm2, %v10511_v5  ;;  %9286 = vmatmul.msk.f32.vlgmr.msra.gmra.mxu3 %vm113_vm2, %v10511_v5  ;;  %v42_v23 = vperm.slane %v10592_v22, 2  ;;  %v43_v24 = vperm.slane %v10592_v22, 3  ;;  %v40_v28 = vperm.slane %v10592_v22, 0  ;;  %v41_v29 = vperm.slane %v10592_v22, 1  ;;  %v10622_v32 = vld [vmem:[%s16285_s1 + $0x30] sm:$0xff]  ;;  %v10635_v33 = vld [vmem:[%s16285_s1 + $0x38] sm:$0xff] }
   0x9   :  { %9312 = vmatpush.msk.msrb.mxu2 %vm138_vm1, %v87_v14  ;;  %9321 = vmatpush.msk.msrb.mxu3 %vm138_vm1, %v88_v15  ;;  %v46_v34 = vperm.slane %v10592_v22, 6  ;;  %v47_v35 = vperm.slane %v10592_v22, 7  ;;  %v44_v38 = vperm.slane %v10592_v22, 4  ;;  %v45_v39 = vperm.slane %v10592_v22, 5  ;;  %v10812_v0 = vld [vmem:[%s16284_s0 + $0x20] ss:$2 sm:$0xff] }
   0xa   :  { %9294 = vmatpush.msk.msrb.mxu0 %vm138_vm1, %v85_v16  ;;  %9303 = vmatpush.msk.msrb.mxu1 %vm138_vm1, %v86_v17  ;;  %v91_v25 = vsel %vm80_vm0, %v42_v23, 1.0  ;;  %v92_v26 = vsel %vm80_vm0, %v43_v24, 1.0  ;;  %v89_v30 = vsel %vm80_vm0, %v40_v28, 1.0  ;;  %v90_v31 = vsel %vm80_vm0, %v41_v29, 1.0  ;;  %s9244_s18 = sshll.u32 %s16288_s4, 4  ;;  %s9245_s18 = int_to_ptr.hbm [resolvable:$true] %s9244_s18 }
   0xb   :  { %9348 = vmatpush.msk.msra.mxu2 %vm138_vm1, %v91_v25  ;;  %9357 = vmatpush.msk.msra.mxu3 %vm138_vm1, %v92_v26  ;;  %v95_v36 = vsel %vm80_vm0, %v46_v34, 1.0  ;;  %v96_v37 = vsel %vm80_vm0, %v47_v35, 1.0  ;;  %v93_v40 = vsel %vm80_vm0, %v44_v38, 1.0  ;;  %v94_v41 = vsel %vm80_vm0, %v45_v39, 1.0 }
   0xc   :  { %9330 = vmatpush.msk.msra.mxu0 %vm138_vm1, %v89_v30  ;;  %9339 = vmatpush.msk.msra.mxu1 %vm138_vm1, %v90_v31  ;;  %v50_v1 = vperm.slane %v10812_v0, 2  ;;  %v51_v2 = vperm.slane %v10812_v0, 3  ;;  %v48_v10 = vperm.slane %v10812_v0, 0  ;;  %v49_v11 = vperm.slane %v10812_v0, 1 }
   0xd   :  { %vm2173_vm8 = vcmask 1043456  }
   0xe   :  { %v99_v3 = vsel %vm80_vm0, %v50_v1, 1.0  ;;  %v100_v4 = vsel %vm80_vm0, %v51_v2, 1.0  ;;  %v97_v12 = vsel %vm80_vm0, %v48_v10, 1.0  ;;  %v98_v13 = vsel %vm80_vm0, %v49_v11, 1.0 }
   0xf   :  { %9260 = vmatmul.msk.f32.gmra.mxu0 %vm113_vm2, %v10540_v18  ;;  %9269 = vmatmul.msk.f32.gmra.mxu1 %vm113_vm2, %v10540_v18  ;;  %v53_v10 = vperm.slane %v10812_v0, 5  ;;  %v54_v11 = vperm.slane %v10812_v0, 6 }
  0x10   :  { %9278 = vmatmul.msk.f32.gmra.mxu2 %vm113_vm2, %v10540_v18  ;;  %9287 = vmatmul.msk.f32.gmra.mxu3 %vm113_vm2, %v10540_v18 }
  0x17   :  { %9261 = vmatmul.msk.f32.gmra.mxu0 %vm113_vm2, %v10553_v19  ;;  %9270 = vmatmul.msk.f32.gmra.mxu1 %vm113_vm2, %v10553_v19 }
  0x18   :  { %9279 = vmatmul.msk.f32.gmra.mxu2 %vm113_vm2, %v10553_v19  ;;  %9288 = vmatmul.msk.f32.gmra.mxu3 %vm113_vm2, %v10553_v19 }
  0x1f   :  { %9262 = vmatmul.msk.f32.gmra.mxu0 %vm113_vm2, %v10566_v20  ;;  %9271 = vmatmul.msk.f32.gmra.mxu1 %vm113_vm2, %v10566_v20 }
  0x20   :  { %9280 = vmatmul.msk.f32.gmra.mxu2 %vm113_vm2, %v10566_v20  ;;  %9289 = vmatmul.msk.f32.gmra.mxu3 %vm113_vm2, %v10566_v20 }
  0x27   :  { %9263 = vmatmul.msk.f32.gmra.mxu0 %vm113_vm2, %v10579_v21  ;;  %9272 = vmatmul.msk.f32.gmra.mxu1 %vm113_vm2, %v10579_v21 }
  0x28   :  { %9281 = vmatmul.msk.f32.gmra.mxu2 %vm113_vm2, %v10579_v21  ;;  %9290 = vmatmul.msk.f32.gmra.mxu3 %vm113_vm2, %v10579_v21 }
  0x2f   :  { %9264 = vmatmul.msk.f32.gmra.mxu0 %vm113_vm2, %v10601_v27  ;;  %9273 = vmatmul.msk.f32.gmra.mxu1 %vm113_vm2, %v10601_v27 }
  0x30   :  { %9282 = vmatmul.msk.f32.gmra.mxu2 %vm113_vm2, %v10601_v27  ;;  %9291 = vmatmul.msk.f32.gmra.mxu3 %vm113_vm2, %v10601_v27 }
  0x37   :  { %9265 = vmatmul.msk.f32.gmra.mxu0 %vm113_vm2, %v10622_v32  ;;  %9274 = vmatmul.msk.f32.gmra.mxu1 %vm113_vm2, %v10622_v32 }
  0x38   :  { %9283 = vmatmul.msk.f32.gmra.mxu2 %vm113_vm2, %v10622_v32  ;;  %9292 = vmatmul.msk.f32.gmra.mxu3 %vm113_vm2, %v10622_v32 }
  0x3f   :  { %9266 = vmatmul.msk.f32.gmra.mxu0 %vm113_vm2, %v10635_v33  ;;  %9275 = vmatmul.msk.f32.gmra.mxu1 %vm113_vm2, %v10635_v33 }
  0x40   :  { %9284 = vmatmul.msk.f32.gmra.mxu2 %vm113_vm2, %v10635_v33  ;;  %9293 = vmatmul.msk.f32.gmra.mxu3 %vm113_vm2, %v10635_v33 }
  0x47   :  { %9295 = vmatmul.msk.f32.vlgmr.msrb.gmra.mxu0 %vm113_vm2, %v10511_v5  ;;  %9304 = vmatmul.msk.f32.vlgmr.msrb.gmra.mxu1 %vm113_vm2, %v10511_v5 }
  0x48   :  { %9313 = vmatmul.msk.f32.vlgmr.msrb.gmra.mxu2 %vm113_vm2, %v10511_v5  ;;  %9322 = vmatmul.msk.f32.vlgmr.msrb.gmra.mxu3 %vm113_vm2, %v10511_v5 }
  0x49   :  { %9384 = vmatpush.msk.msrb.mxu2 %vm138_vm1, %v95_v36  ;;  %9393 = vmatpush.msk.msrb.mxu3 %vm138_vm1, %v96_v37 }
  0x4a   :  { %9366 = vmatpush.msk.msrb.mxu0 %vm138_vm1, %v93_v40  ;;  %9375 = vmatpush.msk.msrb.mxu1 %vm138_vm1, %v94_v41 }
  0x4f   :  { %9296 = vmatmul.msk.f32.gmra.mxu0 %vm113_vm2, %v10540_v18  ;;  %9305 = vmatmul.msk.f32.gmra.mxu1 %vm113_vm2, %v10540_v18 }
  0x50   :  { %9314 = vmatmul.msk.f32.gmra.mxu2 %vm113_vm2, %v10540_v18  ;;  %9323 = vmatmul.msk.f32.gmra.mxu3 %vm113_vm2, %v10540_v18 }
  0x57   :  { %9297 = vmatmul.msk.f32.gmra.mxu0 %vm113_vm2, %v10553_v19  ;;  %9306 = vmatmul.msk.f32.gmra.mxu1 %vm113_vm2, %v10553_v19 }
  0x58   :  { %9315 = vmatmul.msk.f32.gmra.mxu2 %vm113_vm2, %v10553_v19  ;;  %9324 = vmatmul.msk.f32.gmra.mxu3 %vm113_vm2, %v10553_v19 }
  0x5f   :  { %9298 = vmatmul.msk.f32.gmra.mxu0 %vm113_vm2, %v10566_v20  ;;  %9307 = vmatmul.msk.f32.gmra.mxu1 %vm113_vm2, %v10566_v20 }
  0x60   :  { %9316 = vmatmul.msk.f32.gmra.mxu2 %vm113_vm2, %v10566_v20  ;;  %9325 = vmatmul.msk.f32.gmra.mxu3 %vm113_vm2, %v10566_v20 }
  0x67   :  { %9299 = vmatmul.msk.f32.gmra.mxu0 %vm113_vm2, %v10579_v21  ;;  %9308 = vmatmul.msk.f32.gmra.mxu1 %vm113_vm2, %v10579_v21 }
  0x68   :  { %9317 = vmatmul.msk.f32.gmra.mxu2 %vm113_vm2, %v10579_v21  ;;  %9326 = vmatmul.msk.f32.gmra.mxu3 %vm113_vm2, %v10579_v21 }
  0x6f   :  { %9300 = vmatmul.msk.f32.gmra.mxu0 %vm113_vm2, %v10601_v27  ;;  %9309 = vmatmul.msk.f32.gmra.mxu1 %vm113_vm2, %v10601_v27 }
  0x70   :  { %9318 = vmatmul.msk.f32.gmra.mxu2 %vm113_vm2, %v10601_v27  ;;  %9327 = vmatmul.msk.f32.gmra.mxu3 %vm113_vm2, %v10601_v27 }
  0x77   :  { %9301 = vmatmul.msk.f32.gmra.mxu0 %vm113_vm2, %v10622_v32  ;;  %9310 = vmatmul.msk.f32.gmra.mxu1 %vm113_vm2, %v10622_v32 }
  0x78   :  { %9319 = vmatmul.msk.f32.gmra.mxu2 %vm113_vm2, %v10622_v32  ;;  %9328 = vmatmul.msk.f32.gmra.mxu3 %vm113_vm2, %v10622_v32 }
  0x7f   :  { %9302 = vmatmul.msk.f32.gmra.mxu0 %vm113_vm2, %v10635_v33  ;;  %9311 = vmatmul.msk.f32.gmra.mxu1 %vm113_vm2, %v10635_v33 }
  0x80   :  { %9320 = vmatmul.msk.f32.gmra.mxu2 %vm113_vm2, %v10635_v33  ;;  %9329 = vmatmul.msk.f32.gmra.mxu3 %vm113_vm2, %v10635_v33 }
  0x84   :  { %v10721_v42 = vpop.f32.mrf.mxu0  ;;  %v10723_v43 = vpop.f32.mrf.mxu1 }
  0x87   :  { %9331 = vmatmul.msk.f32.vlgmr.msra.gmra.mxu0 %vm113_vm2, %v10511_v5  ;;  %9340 = vmatmul.msk.f32.vlgmr.msra.gmra.mxu1 %vm113_vm2, %v10511_v5 }
  0x88   :  { %9349 = vmatmul.msk.f32.vlgmr.msra.gmra.mxu2 %vm113_vm2, %v10511_v5  ;;  %9358 = vmatmul.msk.f32.vlgmr.msra.gmra.mxu3 %vm113_vm2, %v10511_v5 }
  0x89   :  { %9420 = vmatpush.msk.msra.mxu2 %vm138_vm1, %v99_v3  ;;  %9429 = vmatpush.msk.msra.mxu3 %vm138_vm1, %v100_v4  ;;  %v52_v4 = vperm.slane %v10812_v0, 4 }
  0x8a   :  { %9402 = vmatpush.msk.msra.mxu0 %vm138_vm1, %v97_v12  ;;  %9411 = vmatpush.msk.msra.mxu1 %vm138_vm1, %v98_v13  ;;  %v55_v12 = vperm.slane %v10812_v0, 7 }
  0x8b   :  { %v10733_v44 = vpop.f32.mrf.mxu2  ;;  %v10735_v45 = vpop.f32.mrf.mxu3  ;;  %v101_v13 = vsel %vm80_vm0, %v52_v4, 1.0 }
  0x8c   :  { %v10737_v46 = vpop.f32.mrf.mxu0  ;;  %v10739_v47 = vpop.f32.mrf.mxu1 }
  0x8f   :  { %9332 = vmatmul.msk.f32.gmra.mxu0 %vm113_vm2, %v10540_v18  ;;  %9341 = vmatmul.msk.f32.gmra.mxu1 %vm113_vm2, %v10540_v18 }
  0x90   :  { %9350 = vmatmul.msk.f32.gmra.mxu2 %vm113_vm2, %v10540_v18  ;;  %9359 = vmatmul.msk.f32.gmra.mxu3 %vm113_vm2, %v10540_v18 }
  0x93   :  { %v10749_v48 = vpop.f32.mrf.mxu2  ;;  %v10751_v49 = vpop.f32.mrf.mxu3 }
  0x94   :  { %v10753_v50 = vpop.f32.mrf.mxu0  ;;  %v10755_v51 = vpop.f32.mrf.mxu1 }
  0x97   :  { %9333 = vmatmul.msk.f32.gmra.mxu0 %vm113_vm2, %v10553_v19  ;;  %9342 = vmatmul.msk.f32.gmra.mxu1 %vm113_vm2, %v10553_v19 }
  0x98   :  { %9351 = vmatmul.msk.f32.gmra.mxu2 %vm113_vm2, %v10553_v19  ;;  %9360 = vmatmul.msk.f32.gmra.mxu3 %vm113_vm2, %v10553_v19 }
  0x9b   :  { %v10765_v52 = vpop.f32.mrf.mxu2  ;;  %v10767_v53 = vpop.f32.mrf.mxu3 }
  0x9c   :  { %v10769_v54 = vpop.f32.mrf.mxu0  ;;  %v10771_v55 = vpop.f32.mrf.mxu1 }
  0x9f   :  { %9334 = vmatmul.msk.f32.gmra.mxu0 %vm113_vm2, %v10566_v20  ;;  %9343 = vmatmul.msk.f32.gmra.mxu1 %vm113_vm2, %v10566_v20 }
  0xa0   :  { %9352 = vmatmul.msk.f32.gmra.mxu2 %vm113_vm2, %v10566_v20  ;;  %9361 = vmatmul.msk.f32.gmra.mxu3 %vm113_vm2, %v10566_v20 }
  0xa3   :  { %v10781_v56 = vpop.f32.mrf.mxu2  ;;  %v10783_v57 = vpop.f32.mrf.mxu3 }
  0xa4   :  { %v10785_v58 = vpop.f32.mrf.mxu0  ;;  %v10787_v59 = vpop.f32.mrf.mxu1 }
  0xa7   :  { %9335 = vmatmul.msk.f32.gmra.mxu0 %vm113_vm2, %v10579_v21  ;;  %9344 = vmatmul.msk.f32.gmra.mxu1 %vm113_vm2, %v10579_v21 }
  0xa8   :  { %9353 = vmatmul.msk.f32.gmra.mxu2 %vm113_vm2, %v10579_v21  ;;  %9362 = vmatmul.msk.f32.gmra.mxu3 %vm113_vm2, %v10579_v21 }
  0xab   :  { %v10797_v60 = vpop.f32.mrf.mxu2  ;;  %v10799_v61 = vpop.f32.mrf.mxu3 }
  0xac   :  { %v10801_v62 = vpop.f32.mrf.mxu0  ;;  %v10803_v63 = vpop.f32.mrf.mxu1 }
  0xaf   :  { %9336 = vmatmul.msk.f32.gmra.mxu0 %vm113_vm2, %v10601_v27  ;;  %9345 = vmatmul.msk.f32.gmra.mxu1 %vm113_vm2, %v10601_v27 }
  0xb0   :  { %9354 = vmatmul.msk.f32.gmra.mxu2 %vm113_vm2, %v10601_v27  ;;  %9363 = vmatmul.msk.f32.gmra.mxu3 %vm113_vm2, %v10601_v27 }
  0xb3   :  { %v10822_v6 = vpop.f32.mrf.mxu2  ;;  %v10824_v7 = vpop.f32.mrf.mxu3 }
  0xb4   :  { %v10828_v8 = vpop.f32.mrf.mxu0  ;;  %v10830_v9 = vpop.f32.mrf.mxu1 }
  0xb7   :  { %9337 = vmatmul.msk.f32.gmra.mxu0 %vm113_vm2, %v10622_v32  ;;  %9346 = vmatmul.msk.f32.gmra.mxu1 %vm113_vm2, %v10622_v32 }
  0xb8   :  { %9355 = vmatmul.msk.f32.gmra.mxu2 %vm113_vm2, %v10622_v32  ;;  %9364 = vmatmul.msk.f32.gmra.mxu3 %vm113_vm2, %v10622_v32 }
  0xbb   :  { %v10846_v14 = vpop.f32.mrf.mxu2  ;;  %v10848_v15 = vpop.f32.mrf.mxu3 }
  0xbc   :  { %v10850_v16 = vpop.f32.mrf.mxu0  ;;  %v10852_v17 = vpop.f32.mrf.mxu1 }
  0xbf   :  { %9338 = vmatmul.msk.f32.gmra.mxu0 %vm113_vm2, %v10635_v33  ;;  %9347 = vmatmul.msk.f32.gmra.mxu1 %vm113_vm2, %v10635_v33 }
  0xc0   :  { %9356 = vmatmul.msk.f32.gmra.mxu2 %vm113_vm2, %v10635_v33  ;;  %9365 = vmatmul.msk.f32.gmra.mxu3 %vm113_vm2, %v10635_v33 }
  0xc3   :  { %v10862_v22 = vpop.f32.mrf.mxu2  ;;  %v10864_v23 = vpop.f32.mrf.mxu3 }
  0xc4   :  { %v10866_v24 = vpop.f32.mrf.mxu0  ;;  %v10868_v25 = vpop.f32.mrf.mxu1 }
  0xc5   :  { %16571 = vst [vmem:[#allocation6_spill] sm:$0xff] %v10866_v24 }
  0xc6   :  { %16572 = vst [vmem:[#allocation7_spill] sm:$0xff] %v10868_v25  ;;  %v104_v25 = vsel %vm80_vm0, %v55_v12, 1.0 }
  0xc7   :  { %9367 = vmatmul.msk.f32.vlgmr.msrb.gmra.mxu0 %vm113_vm2, %v10511_v5  ;;  %9376 = vmatmul.msk.f32.vlgmr.msrb.gmra.mxu1 %vm113_vm2, %v10511_v5 }
  0xc8   :  { %9385 = vmatmul.msk.f32.vlgmr.msrb.gmra.mxu2 %vm113_vm2, %v10511_v5  ;;  %9394 = vmatmul.msk.f32.vlgmr.msrb.gmra.mxu3 %vm113_vm2, %v10511_v5 }
  0xc9   :  { %9438 = vmatpush.msk.msrb.mxu0 %vm138_vm1, %v101_v13  ;;  %9465 = vmatpush.msk.msrb.mxu3 %vm138_vm1, %v104_v25 }
  0xcb   :  { %v10878_v26 = vpop.f32.mrf.mxu2  ;;  %v10880_v28 = vpop.f32.mrf.mxu3 }
  0xcc   :  { %16573 = vst [vmem:[#allocation8_spill] sm:$0xff] %v10878_v26  ;;  %v10882_v29 = vpop.f32.mrf.mxu0  ;;  %v10884_v30 = vpop.f32.mrf.mxu1  ;;  %v103_v26 = vsel %vm80_vm0, %v54_v11, 1.0 }
  0xcd   :  { %16574 = vst [vmem:[#allocation9_spill] sm:$0xff] %v10880_v28  ;;  %v102_v28 = vsel %vm80_vm0, %v53_v10, 1.0  ;;  %9456 = vmatpush.msk.msrb.mxu2 %vm138_vm1, %v103_v26 }
  0xce   :  { %16575 = vst [vmem:[#allocation10_spill] sm:$0xff] %v10882_v29  ;;  %9447 = vmatpush.msk.msrb.mxu1 %vm138_vm1, %v102_v28  ;;  %v1364_v29 = vmul.f32 0.01, %v10852_v17 }
  0xcf   :  { %16576 = vst [vmem:[#allocation11_spill] sm:$0xff] %v10884_v30  ;;  %9368 = vmatmul.msk.f32.gmra.mxu0 %vm113_vm2, %v10540_v18  ;;  %9377 = vmatmul.msk.f32.gmra.mxu1 %vm113_vm2, %v10540_v18  ;;  %v1363_v30 = vmul.f32 0.01, %v10850_v16 }
  0xd0   :  { %9386 = vmatmul.msk.f32.gmra.mxu2 %vm113_vm2, %v10540_v18  ;;  %9395 = vmatmul.msk.f32.gmra.mxu3 %vm113_vm2, %v10540_v18 }
  0xd3   :  { %v10894_v31 = vpop.f32.mrf.mxu2  ;;  %v10896_v34 = vpop.f32.mrf.mxu3 }
  0xd4   :  { %16577 = vst [vmem:[#allocation12_spill] sm:$0xff] %v10894_v31  ;;  %v10898_v35 = vpop.f32.mrf.mxu0  ;;  %v10900_v36 = vpop.f32.mrf.mxu1 }
  0xd5   :  { %16578 = vst [vmem:[#allocation13_spill] sm:$0xff] %v10896_v34 }
  0xd6   :  { %16579 = vst [vmem:[#allocation14_spill] sm:$0xff] %v10898_v35  ;;  %v1366_v35 = vmul.f32 0.01, %v10864_v23 }
  0xd7   :  { %16580 = vst [vmem:[#allocation15_spill] sm:$0xff] %v10900_v36  ;;  %9369 = vmatmul.msk.f32.gmra.mxu0 %vm113_vm2, %v10553_v19  ;;  %9378 = vmatmul.msk.f32.gmra.mxu1 %vm113_vm2, %v10553_v19  ;;  %v1365_v36 = vmul.f32 0.01, %v10862_v22 }
  0xd8   :  { %9387 = vmatmul.msk.f32.gmra.mxu2 %vm113_vm2, %v10553_v19  ;;  %9396 = vmatmul.msk.f32.gmra.mxu3 %vm113_vm2, %v10553_v19 }
  0xdb   :  { %v10910_v37 = vpop.f32.mrf.mxu2  ;;  %v10912_v38 = vpop.f32.mrf.mxu3 }
  0xdc   :  { %16581 = vst [vmem:[#allocation16_spill] sm:$0xff] %v10910_v37  ;;  %v10914_v39 = vpop.f32.mrf.mxu0  ;;  %v10916_v40 = vpop.f32.mrf.mxu1 }
  0xdd   :  { %16582 = vst [vmem:[#allocation17_spill] sm:$0xff] %v10912_v38 }
  0xde   :  { %16583 = vst [vmem:[#allocation18_spill] sm:$0xff] %v10914_v39  ;;  %v1340_v39 = vmul.f32 0.01, %v10830_v9 }
  0xdf   :  { %16584 = vst [vmem:[#allocation19_spill] sm:$0xff] %v10916_v40  ;;  %9370 = vmatmul.msk.f32.gmra.mxu0 %vm113_vm2, %v10566_v20  ;;  %9379 = vmatmul.msk.f32.gmra.mxu1 %vm113_vm2, %v10566_v20  ;;  %v1339_v40 = vmul.f32 0.01, %v10828_v8 }
  0xe0   :  { %9388 = vmatmul.msk.f32.gmra.mxu2 %vm113_vm2, %v10566_v20  ;;  %9397 = vmatmul.msk.f32.gmra.mxu3 %vm113_vm2, %v10566_v20 }
  0xe3   :  { %v10926_v41 = vpop.f32.mrf.mxu2  ;;  %v10928_v1 = vpop.f32.mrf.mxu3 }
  0xe4   :  { %16585 = vst [vmem:[#allocation20_spill] sm:$0xff] %v10926_v41  ;;  %v10930_v2 = vpop.f32.mrf.mxu0  ;;  %v10932_v3 = vpop.f32.mrf.mxu1 }
  0xe5   :  { %16586 = vst [vmem:[#allocation21_spill] sm:$0xff] %v10928_v1 }
  0xe6   :  { %16587 = vst [vmem:[#allocation22_spill] sm:$0xff] %v10930_v2  ;;  %v1316_v2 = vmul.f32 0.01, %v10803_v63 }
  0xe7   :  { %16588 = vst [vmem:[#allocation23_spill] sm:$0xff] %v10932_v3  ;;  %9371 = vmatmul.msk.f32.gmra.mxu0 %vm113_vm2, %v10579_v21  ;;  %9380 = vmatmul.msk.f32.gmra.mxu1 %vm113_vm2, %v10579_v21  ;;  %v1315_v3 = vmul.f32 0.01, %v10801_v62 }
  0xe8   :  { %9389 = vmatmul.msk.f32.gmra.mxu2 %vm113_vm2, %v10579_v21  ;;  %9398 = vmatmul.msk.f32.gmra.mxu3 %vm113_vm2, %v10579_v21 }
  0xeb   :  { %v10954_v0 = vpop.f32.mrf.mxu2  ;;  %v10956_v4 = vpop.f32.mrf.mxu3 }
  0xec   :  { %16589 = vst [vmem:[#allocation24_spill] sm:$0xff] %v10954_v0  ;;  %v10958_v10 = vpop.f32.mrf.mxu0  ;;  %v10960_v11 = vpop.f32.mrf.mxu1  ;;  %v1342_v0 = vmul.f32 0.01, %v10848_v15 }
  0xed   :  { %16590 = vst [vmem:[#allocation25_spill] sm:$0xff] %v10956_v4  ;;  %v1341_v4 = vmul.f32 0.01, %v10846_v14 }
  0xee   :  { %16591 = vst [vmem:[#allocation26_spill] sm:$0xff] %v10958_v10  ;;  %v1558_v10 = vmax.f32 %v10864_v23, %v1366_v35  ;;  %v1294_v23 = vmul.f32 0.01, %v10799_v61 }
  0xef   :  { %16592 = vst [vmem:[#allocation27_spill] sm:$0xff] %v10960_v11  ;;  %9372 = vmatmul.msk.f32.gmra.mxu0 %vm113_vm2, %v10601_v27  ;;  %9381 = vmatmul.msk.f32.gmra.mxu1 %vm113_vm2, %v10601_v27  ;;  %v1557_v11 = vmax.f32 %v10862_v22, %v1365_v36  ;;  %v1293_v22 = vmul.f32 0.01, %v10797_v60  ;;  %v1533_v35 = vmax.f32 %v10846_v14, %v1341_v4  ;;  %v1244_v4 = vmul.f32 0.01, %v10755_v51 }
  0xf0   :  { %9390 = vmatmul.msk.f32.gmra.mxu2 %vm113_vm2, %v10601_v27  ;;  %9399 = vmatmul.msk.f32.gmra.mxu3 %vm113_vm2, %v10601_v27  ;;  %v1534_v36 = vmax.f32 %v10848_v15, %v1342_v0  ;;  %v1243_v0 = vmul.f32 0.01, %v10753_v50 }
  0xf3   :  { %v10970_v25 = vpop.f32.mrf.mxu2  ;;  %v10972_v26 = vpop.f32.mrf.mxu3 }
  0xf4   :  { %16593 = vst [vmem:[#allocation28_spill] sm:$0xff] %v10970_v25  ;;  %v10974_v28 = vpop.f32.mrf.mxu0  ;;  %v10976_v12 = vpop.f32.mrf.mxu1  ;;  %v1556_v25 = vmax.f32 %v10852_v17, %v1364_v29  ;;  %v1292_v17 = vmul.f32 0.01, %v10787_v59  ;;  %v1531_v29 = vmax.f32 %v10828_v8, %v1339_v40 }
  0xf5   :  { %16594 = vst [vmem:[#allocation29_spill] sm:$0xff] %v10972_v26  ;;  %v1555_v26 = vmax.f32 %v10850_v16, %v1363_v30  ;;  %v1291_v16 = vmul.f32 0.01, %v10785_v58  ;;  %v1532_v30 = vmax.f32 %v10830_v9, %v1340_v39 }
  0xf7   :  { %9373 = vmatmul.msk.f32.gmra.mxu0 %vm113_vm2, %v10622_v32  ;;  %9382 = vmatmul.msk.f32.gmra.mxu1 %vm113_vm2, %v10622_v32 }
  0xf8   :  { %9391 = vmatmul.msk.f32.gmra.mxu2 %vm113_vm2, %v10622_v32  ;;  %9400 = vmatmul.msk.f32.gmra.mxu3 %vm113_vm2, %v10622_v32 }
  0xfb   :  { %v10986_v13 = vpop.f32.mrf.mxu2  ;;  %v10988_v24 = vpop.f32.mrf.mxu3 }
  0xfc   :  { %16595 = vst [vmem:[#allocation30_spill] sm:$0xff] %v10988_v24  ;;  %v10990_v34 = vpop.f32.mrf.mxu0  ;;  %v10992_v31 = vpop.f32.mrf.mxu1  ;;  %v1508_v24 = vmax.f32 %v10803_v63, %v1316_v2  ;;  %v1268_v63 = vmul.f32 0.01, %v10771_v55  ;;  %v1483_v2 = vmax.f32 %v10785_v58, %v1291_v16  ;;  %v1245_v58 = vmul.f32 0.01, %v10765_v52 }
  0xfd   :  { %v1435_v16 = vmax.f32 %v10753_v50, %v1243_v0 }
  0xff   :  { %9374 = vmatmul.msk.f32.gmra.mxu0 %vm113_vm2, %v10635_v33  ;;  %9383 = vmatmul.msk.f32.gmra.mxu1 %vm113_vm2, %v10635_v33 }
 0x100   :  { %9392 = vmatmul.msk.f32.gmra.mxu2 %vm113_vm2, %v10635_v33  ;;  %9401 = vmatmul.msk.f32.gmra.mxu3 %vm113_vm2, %v10635_v33 }
 0x103   :  { %v11004_v38 = vpop.f32.mrf.mxu2  ;;  %v11006_v37 = vpop.f32.mrf.mxu3 }
 0x104   :  { %v11010_v1 = vpop.f32.mrf.mxu0  ;;  %v11012_v41 = vpop.f32.mrf.mxu1 }
 0x105   :  { %16596 = vst [vmem:[#allocation31_spill] sm:$0xff] %v11010_v1  ;;  %v1318_v1 = vmul.f32 0.01, %v10824_v7 }
 0x106   :  { %16597 = vst [vmem:[#allocation32_spill] sm:$0xff] %v11012_v41  ;;  %v1317_v41 = vmul.f32 0.01, %v10822_v6 }
 0x107   :  { %9403 = vmatmul.msk.f32.vlgmr.msra.gmra.mxu0 %vm113_vm2, %v10511_v5  ;;  %9412 = vmatmul.msk.f32.vlgmr.msra.gmra.mxu1 %vm113_vm2, %v10511_v5  ;;  %v1510_v40 = vmax.f32 %v10824_v7, %v1318_v1  ;;  %v1270_v7 = vmul.f32 0.01, %v10783_v57  ;;  %v1486_v1 = vmax.f32 %v10799_v61, %v1294_v23 }
 0x108   :  { %9421 = vmatmul.msk.f32.vlgmr.msra.gmra.mxu2 %vm113_vm2, %v10511_v5  ;;  %9430 = vmatmul.msk.f32.vlgmr.msra.gmra.mxu3 %vm113_vm2, %v10511_v5  ;;  %v1507_v5 = vmax.f32 %v10801_v62, %v1315_v3  ;;  %v1509_v39 = vmax.f32 %v10822_v6, %v1317_v41  ;;  %v1267_v62 = vmul.f32 0.01, %v10769_v54  ;;  %v1484_v3 = vmax.f32 %v10787_v59, %v1292_v17 }
 0x109   :  { %1598 = vmatpush.msra.mxu0 %v1555_v26  ;;  %1618 = vmatpush.msra.mxu1 %v1556_v25  ;;  %v1269_v6 = vmul.f32 0.01, %v10781_v56  ;;  %v1485_v41 = vmax.f32 %v10797_v60, %v1293_v22  ;;  %v1219_v59 = vmul.f32 0.01, %v10737_v46  ;;  %v1220_v60 = vmul.f32 0.01, %v10739_v47 }
 0x10a   :  { %1638 = vmatpush.msra.mxu2 %v1557_v11  ;;  %1658 = vmatpush.msra.mxu3 %v1558_v10  ;;  %v1459_v61 = vmax.f32 %v10769_v54, %v1267_v62  ;;  %v1221_v10 = vmul.f32 0.01, %v10749_v48  ;;  %v1222_v11 = vmul.f32 0.01, %v10751_v49  ;;  %v1462_v26 = vmax.f32 %v10783_v57, %v1270_v7 }
 0x10b   :  { %1599 = vmatpush.msra.mxu0 %v1531_v29  ;;  %1619 = vmatpush.msra.mxu1 %v1532_v30  ;;  %v11044_v8 = vpop.f32.mrf.mxu2  ;;  %v11046_v9 = vpop.f32.mrf.mxu3  ;;  %v1461_v25 = vmax.f32 %v10781_v56, %v1269_v6  ;;  %v1195_v54 = vmul.f32 0.01, %v10721_v42  ;;  %v1436_v17 = vmax.f32 %v10755_v51, %v1244_v4  ;;  %v1197_v57 = vmul.f32 0.01, %v10733_v44 }
 0x10c   :  { %16598 = vst [vmem:[#allocation33_spill] sm:$0xff] %v11046_v9  ;;  %1639 = vmatpush.msra.mxu2 %v1533_v35  ;;  %1659 = vmatpush.msra.mxu3 %v1534_v36  ;;  %v11050_v14 = vpop.f32.mrf.mxu0  ;;  %v11052_v15 = vpop.f32.mrf.mxu1  ;;  %v1198_v30 = vmul.f32 0.01, %v10735_v45  ;;  %v1437_v22 = vmax.f32 %v10765_v52, %v1245_v58  ;;  %v1411_v51 = vmax.f32 %v10737_v46, %v1219_v59 }
 0x10d   :  { %1600 = vmatpush.msra.mxu0 %v1507_v5  ;;  %1620 = vmatpush.msra.mxu1 %v1508_v24  ;;  %v1246_v5 = vmul.f32 0.01, %v10767_v53  ;;  %v1460_v24 = vmax.f32 %v10771_v55, %v1268_v63  ;;  %v1196_v55 = vmul.f32 0.01, %v10723_v43  ;;  %v1412_v36 = vmax.f32 %v10739_v47, %v1220_v60 }
 0x10e   :  { %1640 = vmatpush.msra.mxu2 %v1509_v39  ;;  %1660 = vmatpush.msra.mxu3 %v1510_v40  ;;  %v1413_v39 = vmax.f32 %v10749_v48, %v1221_v10  ;;  %v1414_v40 = vmax.f32 %v10751_v49, %v1222_v11  ;;  %v1387_v52 = vmax.f32 %v10721_v42, %v1195_v54  ;;  %v1367_v60 = vmul.f32 0.01, %v10990_v34  ;;  %v16601_v54 = vld [vmem:[#allocation30_spill] sm:$0xff] }
 0x10f   :  { %1601 = vmatpush.msra.mxu0 %v1483_v2  ;;  %1621 = vmatpush.msra.mxu1 %v1484_v3  ;;  %v1438_v23 = vmax.f32 %v10767_v53, %v1246_v5  ;;  %v1388_v53 = vmax.f32 %v10723_v43, %v1196_v55  ;;  %v1389_v62 = vmax.f32 %v10733_v44, %v1197_v57  ;;  %v1370_v10 = vmul.f32 0.01, %v11006_v37  ;;  %v16602_v55 = vld [vmem:[#allocation26_spill] sm:$0xff] }
 0x110   :  { %1641 = vmatpush.msra.mxu2 %v1485_v41  ;;  %1661 = vmatpush.msra.mxu3 %v1486_v1  ;;  %v1390_v46 = vmax.f32 %v10735_v45, %v1198_v30  ;;  %v1343_v11 = vmul.f32 0.01, %v10974_v28  ;;  %v1559_v30 = vmax.f32 %v10990_v34, %v1367_v60  ;;  %v16611_v60 = vld [vmem:[#allocation22_spill] sm:$0xff] }
 0x111   :  { %9404 = vmatmul.msk.f32.gmra.mxu0 %vm113_vm2, %v10540_v18  ;;  %9413 = vmatmul.msk.f32.gmra.mxu1 %vm113_vm2, %v10540_v18  ;;  %v1562_v34 = vmax.f32 %v11006_v37, %v1370_v10  ;;  %v16613_v37 = vld [vmem:[#allocation24_spill] sm:$0xff]  ;;  %v16614_v10 = vld [vmem:[#allocation25_spill] sm:$0xff] }
 0x112   :  { %9422 = vmatmul.msk.f32.gmra.mxu2 %vm113_vm2, %v10540_v18  ;;  %9431 = vmatmul.msk.f32.gmra.mxu3 %vm113_vm2, %v10540_v18 }
 0x113   :  { %1602 = vmatpush.msra.mxu0 %v1459_v61  ;;  %1622 = vmatpush.msra.mxu1 %v1460_v24  ;;  %v11086_v29 = vpop.f32.mrf.mxu2  ;;  %v11088_v56 = vpop.f32.mrf.mxu3  ;;  %v1368_v61 = vmul.f32 0.01, %v10992_v31  ;;  %v1369_v24 = vmul.f32 0.01, %v11004_v38 }
 0x114   :  { %1642 = vmatpush.msra.mxu2 %v1461_v25  ;;  %1662 = vmatpush.msra.mxu3 %v1462_v26  ;;  %v11094_v35 = vpop.f32.mrf.mxu0  ;;  %v11096_v50 = vpop.f32.mrf.mxu1  ;;  %v1344_v25 = vmul.f32 0.01, %v10976_v12  ;;  %v1345_v26 = vmul.f32 0.01, %v10986_v13 }
 0x115   :  { %1603 = vmatpush.msra.mxu0 %v1435_v16  ;;  %1623 = vmatpush.msra.mxu1 %v1436_v17  ;;  %v1319_v16 = vmul.f32 0.01, %v16602_v55  ;;  %v16603_v17 = vld [vmem:[#allocation27_spill] sm:$0xff] }
 0x116   :  { %1643 = vmatpush.msra.mxu2 %v1437_v22  ;;  %1663 = vmatpush.msra.mxu3 %v1438_v23  ;;  %v1320_v57 = vmul.f32 0.01, %v16603_v17  ;;  %v1560_v22 = vmax.f32 %v10992_v31, %v1368_v61  ;;  %v16604_v23 = vld [vmem:[#allocation5_spill] sm:$0xff]  ;;  %v1295_v61 = vmul.f32 0.01, %v16611_v60 }
 0x117   :  { %1604 = vmatpush.msra.mxu0 %v1411_v51  ;;  %1624 = vmatpush.msra.mxu1 %v1412_v36 }
 0x118   :  { %1644 = vmatpush.msra.mxu2 %v1413_v39  ;;  %1664 = vmatpush.msra.mxu3 %v1414_v40  ;;  %v16607_v39 = vld [vmem:[#allocation28_spill] sm:$0xff]  ;;  %v1512_v9 = vmax.f32 %v16603_v17, %v1320_v57 }
 0x119   :  { %1605 = vmatpush.msra.mxu0 %v1387_v52  ;;  %1625 = vmatpush.msra.mxu1 %v1388_v53  ;;  %v1321_v40 = vmul.f32 0.01, %v16607_v39  ;;  %v16608_v52 = vld [vmem:[#allocation29_spill] sm:$0xff] }
 0x11a   :  { %1645 = vmatpush.msra.mxu2 %v1389_v62  ;;  %1665 = vmatpush.msra.mxu3 %v1390_v46  ;;  %v1322_v53 = vmul.f32 0.01, %v16608_v52  ;;  %v1561_v62 = vmax.f32 %v11004_v38, %v1369_v24  ;;  %v1536_v38 = vmax.f32 %v10976_v12, %v1344_v25  ;;  %v1297_v24 = vmul.f32 0.01, %v16613_v37 }
 0x11b   :  { %9405 = vmatmul.msk.f32.gmra.mxu0 %vm113_vm2, %v10553_v19  ;;  %9414 = vmatmul.msk.f32.gmra.mxu1 %vm113_vm2, %v10553_v19  ;;  %v11110_v42 = vpop.f32.mrf.mxu2  ;;  %v11112_v43 = vpop.f32.mrf.mxu3 }
 0x11c   :  { %9423 = vmatmul.msk.f32.gmra.mxu2 %vm113_vm2, %v10553_v19  ;;  %9432 = vmatmul.msk.f32.gmra.mxu3 %vm113_vm2, %v10553_v19  ;;  %v11118_v44 = vpop.f32.mrf.mxu0  ;;  %v11120_v45 = vpop.f32.mrf.mxu1  ;;  %v1514_v12 = vmax.f32 %v16608_v52, %v1322_v53  ;;  %v1489_v17 = vmax.f32 %v16613_v37, %v1297_v24 }
 0x123   :  { %9406 = vmatmul.msk.f32.gmra.mxu0 %vm113_vm2, %v10566_v20  ;;  %9415 = vmatmul.msk.f32.gmra.mxu1 %vm113_vm2, %v10566_v20  ;;  %v11126_v47 = vpop.f32.mrf.mxu2  ;;  %v11128_v48 = vpop.f32.mrf.mxu3 }
 0x124   :  { %9424 = vmatmul.msk.f32.gmra.mxu2 %vm113_vm2, %v10566_v20  ;;  %9433 = vmatmul.msk.f32.gmra.mxu3 %vm113_vm2, %v10566_v20  ;;  %v11134_v19 = vpop.f32.mrf.mxu0  ;;  %v11136_v49 = vpop.f32.mrf.mxu1 }
 0x12b   :  { %9407 = vmatmul.msk.f32.gmra.mxu0 %vm113_vm2, %v10579_v21  ;;  %9416 = vmatmul.msk.f32.gmra.mxu1 %vm113_vm2, %v10579_v21  ;;  %v11142_v63 = vpop.f32.mrf.mxu2  ;;  %v11144_v2 = vpop.f32.mrf.mxu3 }
 0x12c   :  { %9425 = vmatmul.msk.f32.gmra.mxu2 %vm113_vm2, %v10579_v21  ;;  %9434 = vmatmul.msk.f32.gmra.mxu3 %vm113_vm2, %v10579_v21  ;;  %v11150_v20 = vpop.f32.mrf.mxu0  ;;  %v11152_v3 = vpop.f32.mrf.mxu1 }
 0x133   :  { %9408 = vmatmul.msk.f32.gmra.mxu0 %vm113_vm2, %v10601_v27  ;;  %9417 = vmatmul.msk.f32.gmra.mxu1 %vm113_vm2, %v10601_v27  ;;  %v11158_v6 = vpop.f32.mrf.mxu2  ;;  %v11160_v7 = vpop.f32.mrf.mxu3 }
 0x134   :  { %9426 = vmatmul.msk.f32.gmra.mxu2 %vm113_vm2, %v10601_v27  ;;  %9435 = vmatmul.msk.f32.gmra.mxu3 %vm113_vm2, %v10601_v27  ;;  %v11166_v21 = vpop.f32.mrf.mxu0  ;;  %v11168_v41 = vpop.f32.mrf.mxu1 }
 0x13b   :  { %9409 = vmatmul.msk.f32.gmra.mxu0 %vm113_vm2, %v10622_v32  ;;  %9418 = vmatmul.msk.f32.gmra.mxu1 %vm113_vm2, %v10622_v32  ;;  %v11174_v1 = vpop.f32.mrf.mxu2  ;;  %v11176_v0 = vpop.f32.mrf.mxu3 }
 0x13c   :  { %9427 = vmatmul.msk.f32.gmra.mxu2 %vm113_vm2, %v10622_v32  ;;  %9436 = vmatmul.msk.f32.gmra.mxu3 %vm113_vm2, %v10622_v32  ;;  %v11182_v27 = vpop.f32.mrf.mxu0  ;;  %v11184_v4 = vpop.f32.mrf.mxu1 }
 0x143   :  { %9410 = vmatmul.msk.f32.gmra.mxu0 %vm113_vm2, %v10635_v33  ;;  %9419 = vmatmul.msk.f32.gmra.mxu1 %vm113_vm2, %v10635_v33  ;;  %v11190_v58 = vpop.f32.mrf.mxu2  ;;  %v11192_v5 = vpop.f32.mrf.mxu3 }
 0x144   :  { %9428 = vmatmul.msk.f32.gmra.mxu2 %vm113_vm2, %v10635_v33  ;;  %9437 = vmatmul.msk.f32.gmra.mxu3 %vm113_vm2, %v10635_v33  ;;  %v11198_v32 = vpop.f32.mrf.mxu0  ;;  %v11200_v59 = vpop.f32.mrf.mxu1  ;;  %v1346_v33 = vmul.f32 0.01, %v16601_v54 }
 0x145   :  { %16599 = vst [vmem:[#allocation34_spill] sm:$0xff] %v11198_v32  ;;  %v1298_v32 = vmul.f32 0.01, %v16614_v10 }
 0x146   :  { %16600 = vst [vmem:[#allocation35_spill] sm:$0xff] %v11200_v59  ;;  %v1535_v59 = vmax.f32 %v10974_v28, %v1343_v11  ;;  %v1513_v28 = vmax.f32 %v16607_v39, %v1321_v40  ;;  %v16615_v11 = vld [vmem:[#allocation18_spill] sm:$0xff]  ;;  %v16620_v40 = vld [vmem:[#allocation15_spill] sm:$0xff] }
 0x147   :  { %v1271_v25 = vmul.f32 0.01, %v16615_v11  ;;  %v1490_v57 = vmax.f32 %v16614_v10, %v1298_v32  ;;  %v1248_v52 = vmul.f32 0.01, %v16620_v40  ;;  %v16629_v10 = vld [vmem:[#allocation12_spill] sm:$0xff] }
 0x149   :  { %v1463_v37 = vmax.f32 %v16615_v11, %v1271_v25  ;;  %v16631_v11 = vld [vmem:[#allocation6_spill] sm:$0xff] }
 0x14a   :  { %v1199_v25 = vmul.f32 0.01, %v16631_v11 }
 0x14b   :  { %9439 = vmatmul.msk.f32.vlgmr.msrb.gmra.mxu0 %vm113_vm2, %v16604_v23  ;;  %9448 = vmatmul.msk.f32.vlgmr.msrb.gmra.mxu1 %vm113_vm2, %v16604_v23  ;;  %v11218_v51 = vpop.f32.mrf.mxu2  ;;  %v11220_v36 = vpop.f32.mrf.mxu3 }
 0x14c   :  { %16605 = vst [vmem:[#allocation30_spill] sm:$0xff] %v11218_v51  ;;  %9457 = vmatmul.msk.f32.vlgmr.msrb.gmra.mxu2 %vm113_vm2, %v16604_v23  ;;  %9466 = vmatmul.msk.f32.vlgmr.msrb.gmra.mxu3 %vm113_vm2, %v16604_v23  ;;  %v11230_v31 = vpop.f32.mrf.mxu0  ;;  %v11232_v46 = vpop.f32.mrf.mxu1  ;;  %v1537_v23 = vmax.f32 %v10986_v13, %v1345_v26  ;;  %v1487_v26 = vmax.f32 %v16611_v60, %v1295_v61  ;;  %v16628_v61 = vld [vmem:[#allocation11_spill] sm:$0xff] }
 0x14d   :  { %16606 = vst [vmem:[#allocation26_spill] sm:$0xff] %v11220_v36  ;;  %v16612_v36 = vld [vmem:[#allocation23_spill] sm:$0xff]  ;;  %1678 = vmatpush.msrb.mxu0 %v1559_v30  ;;  %1698 = vmatpush.msrb.mxu1 %v1560_v22  ;;  %v16619_v22 = vld [vmem:[#allocation14_spill] sm:$0xff] }
 0x14e   :  { %16609 = vst [vmem:[#allocation27_spill] sm:$0xff] %v11230_v31  ;;  %v1296_v51 = vmul.f32 0.01, %v16612_v36  ;;  %v1538_v31 = vmax.f32 %v16601_v54, %v1346_v33  ;;  %1718 = vmatpush.msrb.mxu2 %v1561_v62  ;;  %1738 = vmatpush.msrb.mxu3 %v1562_v34  ;;  %v16616_v30 = vld [vmem:[#allocation19_spill] sm:$0xff]  ;;  %v16617_v33 = vld [vmem:[#allocation20_spill] sm:$0xff]  ;;  %v16624_v62 = vld [vmem:[#allocation17_spill] sm:$0xff] }
 0x14f   :  { %16610 = vst [vmem:[#allocation5_spill] sm:$0xff] %v11232_v46  ;;  %v1511_v46 = vmax.f32 %v16602_v55, %v1319_v16  ;;  %1679 = vmatpush.msrb.mxu0 %v1535_v59  ;;  %1699 = vmatpush.msrb.mxu1 %v1536_v38  ;;  %v1272_v13 = vmul.f32 0.01, %v16616_v30  ;;  %v1273_v55 = vmul.f32 0.01, %v16617_v33  ;;  %v16618_v59 = vld [vmem:[#allocation21_spill] sm:$0xff] }
 0x150   :  { %1719 = vmatpush.msrb.mxu2 %v1537_v23  ;;  %1739 = vmatpush.msrb.mxu3 %v1538_v31  ;;  %v1488_v54 = vmax.f32 %v16612_v36, %v1296_v51  ;;  %v1274_v16 = vmul.f32 0.01, %v16618_v59  ;;  %v1247_v39 = vmul.f32 0.01, %v16619_v22  ;;  %v1250_v34 = vmul.f32 0.01, %v16624_v62 }
 0x151   :  { %1680 = vmatpush.msrb.mxu0 %v1511_v46  ;;  %1700 = vmatpush.msrb.mxu1 %v1512_v9  ;;  %v16623_v9 = vld [vmem:[#allocation16_spill] sm:$0xff]  ;;  %v16627_v46 = vld [vmem:[#allocation10_spill] sm:$0xff]  ;;  %v1224_v38 = vmul.f32 0.01, %v16628_v61  ;;  %v1464_v24 = vmax.f32 %v16616_v30, %v1272_v13  ;;  %v1225_v23 = vmul.f32 0.01, %v16629_v10 }
 0x152   :  { %1720 = vmatpush.msrb.mxu2 %v1513_v28  ;;  %1740 = vmatpush.msrb.mxu3 %v1514_v12  ;;  %v1249_v36 = vmul.f32 0.01, %v16623_v9  ;;  %v1223_v60 = vmul.f32 0.01, %v16627_v46  ;;  %v16630_v28 = vld [vmem:[#allocation13_spill] sm:$0xff]  ;;  %v16632_v30 = vld [vmem:[#allocation7_spill] sm:$0xff] }
 0x153   :  { %1681 = vmatpush.msrb.mxu0 %v1487_v26  ;;  %1701 = vmatpush.msrb.mxu1 %v1488_v54  ;;  %v11256_v53 = vpop.f32.mrf.mxu2  ;;  %v11258_v51 = vpop.f32.mrf.mxu3  ;;  %v1226_v12 = vmul.f32 0.01, %v16630_v28  ;;  %v1465_v26 = vmax.f32 %v16617_v33, %v1273_v55  ;;  %v1466_v54 = vmax.f32 %v16618_v59, %v1274_v16  ;;  %v1200_v13 = vmul.f32 0.01, %v16632_v30  ;;  %v16634_v55 = vld [vmem:[#allocation9_spill] sm:$0xff] }
 0x154   :  { %16621 = vst [vmem:[#allocation28_spill] sm:$0xff] %v11256_v53  ;;  %1721 = vmatpush.msrb.mxu2 %v1489_v17  ;;  %1741 = vmatpush.msrb.mxu3 %v1490_v57  ;;  %v11262_v31 = vpop.f32.mrf.mxu0  ;;  %v11264_v32 = vpop.f32.mrf.mxu1  ;;  %v1439_v17 = vmax.f32 %v16619_v22, %v1247_v39  ;;  %v1440_v57 = vmax.f32 %v16620_v40, %v1248_v52  ;;  %v1202_v59 = vmul.f32 0.01, %v16634_v55 }
 0x155   :  { %16622 = vst [vmem:[#allocation29_spill] sm:$0xff] %v11258_v51  ;;  %9440 = vmatmul.msk.f32.gmra.mxu0 %vm113_vm2, %v10540_v18  ;;  %9449 = vmatmul.msk.f32.gmra.mxu1 %vm113_vm2, %v10540_v18  ;;  %v16633_v51 = vld [vmem:[#allocation8_spill] sm:$0xff]  ;;  %v1441_v16 = vmax.f32 %v16623_v9, %v1249_v36  ;;  %v1442_v53 = vmax.f32 %v16624_v62, %v1250_v34 }
 0x156   :  { %16625 = vst [vmem:[#allocation22_spill] sm:$0xff] %v11262_v31  ;;  %9458 = vmatmul.msk.f32.gmra.mxu2 %vm113_vm2, %v10540_v18  ;;  %9467 = vmatmul.msk.f32.gmra.mxu3 %vm113_vm2, %v10540_v18  ;;  %v1201_v33 = vmul.f32 0.01, %v16633_v51  ;;  %v1415_v18 = vmax.f32 %v16627_v46, %v1223_v60  ;;  %v1417_v22 = vmax.f32 %v16629_v10, %v1225_v23 }
 0x157   :  { %16626 = vst [vmem:[#allocation23_spill] sm:$0xff] %v11264_v32  ;;  %1682 = vmatpush.msrb.mxu0 %v1463_v37  ;;  %1702 = vmatpush.msrb.mxu1 %v1464_v24  ;;  %v1416_v32 = vmax.f32 %v16628_v61, %v1224_v38  ;;  %v1418_v39 = vmax.f32 %v16630_v28, %v1226_v12  ;;  %v10418_v37 = vld [vmem:[%s16285_s1 + $0x18] sm:$0xff]  ;;  %v10419_v12 = vld [vmem:[%s16285_s1 + $0x20] sm:$0xff] }
 0x158   :  { %1722 = vmatpush.msrb.mxu2 %v1465_v26  ;;  %1742 = vmatpush.msrb.mxu3 %v1466_v54  ;;  %v1391_v40 = vmax.f32 %v16631_v11, %v1199_v25  ;;  %v1392_v52 = vmax.f32 %v16632_v30, %v1200_v13  ;;  %v1393_v62 = vmax.f32 %v16633_v51, %v1201_v33  ;;  %v10420_v30 = vld [vmem:[%s16285_s1 + $0x28] sm:$0xff] }
 0x159   :  { %1683 = vmatpush.msrb.mxu0 %v1439_v17  ;;  %1703 = vmatpush.msrb.mxu1 %v1440_v57  ;;  %v1394_v34 = vmax.f32 %v16634_v55, %v1202_v59  ;;  %v10421_v55 = vld [vmem:[%s16285_s1 + $0x30] sm:$0xff]  ;;  %v10478_v59 = vmov 0  }
 0x15a   :  { %1723 = vmatpush.msrb.mxu2 %v1441_v16  ;;  %1743 = vmatpush.msrb.mxu3 %v1442_v53  ;;  %v10417_v53 = vld [vmem:[%s16285_s1 + $0x10] sm:$0xff]  ;;  %v1580_v16 = vld [vmem:[%s16287_s3] sm:$0x3] }
 0x15b   :  { %1684 = vmatpush.msrb.mxu0 %v1415_v18  ;;  %1704 = vmatpush.msrb.mxu1 %v1416_v32  ;;  %v11296_v9 = vpop.f32.mrf.mxu2  ;;  %v11298_v36 = vpop.f32.mrf.mxu3 }
 0x15c   :  { %16635 = vst [vmem:[#allocation24_spill] sm:$0xff] %v11296_v9  ;;  %1724 = vmatpush.msrb.mxu2 %v1417_v22  ;;  %1744 = vmatpush.msrb.mxu3 %v1418_v39  ;;  %v11302_v46 = vpop.f32.mrf.mxu0  ;;  %v11304_v60 = vpop.f32.mrf.mxu1 }
 0x15d   :  { %16636 = vst [vmem:[#allocation25_spill] sm:$0xff] %v11298_v36  ;;  %1685 = vmatpush.msrb.mxu0 %v1391_v40  ;;  %1705 = vmatpush.msrb.mxu1 %v1392_v52  ;;  %v10422_v52 = vld [vmem:[%s16285_s1 + $0x38] sm:$0xff]  ;;  %v1324_v36 = vmul.f32 0.01, %v11152_v3 }
 0x15e   :  { %16637 = vst [vmem:[#allocation18_spill] sm:$0xff] %v11302_v46  ;;  %1725 = vmatpush.msrb.mxu2 %v1393_v62  ;;  %1745 = vmatpush.msrb.mxu3 %v1394_v34  ;;  %v1371_v62 = vmul.f32 0.01, %v11182_v27  ;;  %v1372_v34 = vmul.f32 0.01, %v11184_v4 }
 0x15f   :  { %16638 = vst [vmem:[#allocation19_spill] sm:$0xff] %v11304_v60  ;;  %9441 = vmatmul.msk.f32.gmra.mxu0 %vm113_vm2, %v10417_v53  ;;  %9450 = vmatmul.msk.f32.gmra.mxu1 %vm113_vm2, %v10417_v53  ;;  %v1516_v46 = vmax.f32 %v11152_v3, %v1324_v36 }
 0x160   :  { %9459 = vmatmul.msk.f32.gmra.mxu2 %vm113_vm2, %v10417_v53  ;;  %9468 = vmatmul.msk.f32.gmra.mxu3 %vm113_vm2, %v10417_v53  ;;  %v1373_v53 = vmul.f32 0.01, %v11190_v58  ;;  %v1563_v9 = vmax.f32 %v11182_v27, %v1371_v62  ;;  %v1564_v31 = vmax.f32 %v11184_v4, %v1372_v34  ;;  %v1299_v27 = vmul.f32 0.01, %v11134_v19 }
 0x161   :  { %10223 = vset.pattern.permute.xlu0 %v10478_v59  ;;  %10224 = vset.pattern.permute.xlu1 %v10478_v59  ;;  %v1347_v59 = vmul.f32 0.01, %v11166_v21  ;;  %v1300_v4 = vmul.f32 0.01, %v11136_v49 }
 0x162   :  { %1583 = vperm.xlu0 %10223, %v1580_v16   ;;  %v1348_v16 = vmul.f32 0.01, %v11168_v41 }
 0x163   :  { %v11313_v51 = vpop.f32.mrf.mxu2  ;;  %v11315_v32 = vpop.f32.mrf.mxu3  ;;  %v1539_v62 = vmax.f32 %v11166_v21, %v1347_v59  ;;  %v1230_v59 = vmul.f32 0.01, %v11088_v56 }
 0x164   :  { %16639 = vst [vmem:[#allocation20_spill] sm:$0xff] %v11313_v51  ;;  %v11317_v61 = vpop.f32.mrf.mxu0  ;;  %v11319_v38 = vpop.f32.mrf.mxu1  ;;  %v1540_v34 = vmax.f32 %v11168_v41, %v1348_v16 }
 0x165   :  { %16640 = vst [vmem:[#allocation21_spill] sm:$0xff] %v11315_v32  ;;  %v1325_v32 = vmul.f32 0.01, %v11158_v6 }
 0x167   :  { %9442 = vmatmul.msk.f32.gmra.mxu0 %vm113_vm2, %v10418_v37  ;;  %9451 = vmatmul.msk.f32.gmra.mxu1 %vm113_vm2, %v10418_v37  ;;  %v1517_v21 = vmax.f32 %v11158_v6, %v1325_v32  ;;  %v1277_v6 = vmul.f32 0.01, %v11126_v47 }
 0x168   :  { %9460 = vmatmul.msk.f32.gmra.mxu2 %vm113_vm2, %v10418_v37  ;;  %9469 = vmatmul.msk.f32.gmra.mxu3 %vm113_vm2, %v10418_v37 }
 0x169   :  { %v1469_v16 = vmax.f32 %v11126_v47, %v1277_v6  ;;  %v1205_v47 = vmul.f32 0.01, %v11044_v8 }
 0x16b   :  { %v11328_v24 = vpop.f32.mrf.mxu2  ;;  %v11330_v10 = vpop.f32.mrf.mxu3 }
 0x16c   :  { %v11332_v23 = vpop.f32.mrf.mxu0  ;;  %v11334_v28 = vpop.f32.mrf.mxu1 }
 0x16f   :  { %9443 = vmatmul.msk.f32.gmra.mxu0 %vm113_vm2, %v10419_v12  ;;  %9452 = vmatmul.msk.f32.gmra.mxu1 %vm113_vm2, %v10419_v12 }
 0x170   :  { %9461 = vmatmul.msk.f32.gmra.mxu2 %vm113_vm2, %v10419_v12  ;;  %9470 = vmatmul.msk.f32.gmra.mxu3 %vm113_vm2, %v10419_v12 }
 0x173   :  { %v11343_v26 = vpop.f32.mrf.mxu2  ;;  %v11345_v54 = vpop.f32.mrf.mxu3 }
 0x174   :  { %v11347_v11 = vpop.f32.mrf.mxu0  ;;  %v11349_v25 = vpop.f32.mrf.mxu1 }
 0x177   :  { %9444 = vmatmul.msk.f32.gmra.mxu0 %vm113_vm2, %v10420_v30  ;;  %9453 = vmatmul.msk.f32.gmra.mxu1 %vm113_vm2, %v10420_v30 }
 0x178   :  { %9462 = vmatmul.msk.f32.gmra.mxu2 %vm113_vm2, %v10420_v30  ;;  %9471 = vmatmul.msk.f32.gmra.mxu3 %vm113_vm2, %v10420_v30  ;;  %v1374_v30 = vmul.f32 0.01, %v11192_v5 }
 0x17a   :  { %v1566_v51 = vmax.f32 %v11192_v5, %v1374_v30  ;;  %v1302_v5 = vmul.f32 0.01, %v11144_v2 }
 0x17b   :  { %v11358_v13 = vpop.f32.mrf.mxu2  ;;  %v11360_v17 = vpop.f32.mrf.mxu3 }
 0x17c   :  { %v11362_v57 = vpop.f32.mrf.mxu0  ;;  %v11364_v33 = vpop.f32.mrf.mxu1 }
 0x17f   :  { %9445 = vmatmul.msk.f32.gmra.mxu0 %vm113_vm2, %v10421_v55  ;;  %9454 = vmatmul.msk.f32.gmra.mxu1 %vm113_vm2, %v10421_v55 }
 0x180   :  { %9463 = vmatmul.msk.f32.gmra.mxu2 %vm113_vm2, %v10421_v55  ;;  %9472 = vmatmul.msk.f32.gmra.mxu3 %vm113_vm2, %v10421_v55  ;;  %v11402_v55 = vld [vmem:[%s16286_s2] sm:$0x3] }
 0x183   :  { %v11376_v18 = vpop.f32.mrf.mxu2  ;;  %v11378_v22 = vpop.f32.mrf.mxu3 }
 0x184   :  { %v11380_v39 = vpop.f32.mrf.mxu0  ;;  %v11382_v40 = vpop.f32.mrf.mxu1 }
 0x185   :  { %16641 = vst [vmem:[#allocation14_spill] sm:$0xff] %v11380_v39 }
 0x186   :  { %16642 = vst [vmem:[#allocation15_spill] sm:$0xff] %v11382_v40  ;;  %v1350_v40 = vmul.f32 0.01, %v11176_v0 }
 0x187   :  { %9446 = vmatmul.msk.f32.gmra.mxu0 %vm113_vm2, %v10422_v52  ;;  %9455 = vmatmul.msk.f32.gmra.mxu1 %vm113_vm2, %v10422_v52 }
 0x188   :  { %9464 = vmatmul.msk.f32.gmra.mxu2 %vm113_vm2, %v10422_v52  ;;  %9473 = vmatmul.msk.f32.gmra.mxu3 %vm113_vm2, %v10422_v52  ;;  %v1349_v52 = vmul.f32 0.01, %v11174_v1  ;;  %v1542_v30 = vmax.f32 %v11176_v0, %v1350_v40  ;;  %v1491_v0 = vmax.f32 %v11134_v19, %v1299_v27  ;;  %v1251_v19 = vmul.f32 0.01, %v11094_v35  ;;  %v16648_v27 = vld [vmem:[#allocation32_spill] sm:$0xff] }
 0x18b   :  { %v11394_v37 = vpop.f32.mrf.mxu2  ;;  %v11396_v12 = vpop.f32.mrf.mxu3 }
 0x18c   :  { %16643 = vst [vmem:[#allocation16_spill] sm:$0xff] %v11394_v37 }
 0x18d   :  { %16644 = vst [vmem:[#allocation17_spill] sm:$0xff] %v11396_v12  ;;  %v1323_v12 = vmul.f32 0.01, %v11150_v20 }
 0x18e   :  { %v11408_v39 = vpop.f32.mrf.mxu0  ;;  %v11410_v37 = vpop.f32.mrf.mxu1 }
 0x18f   :  { %16645 = vst [vmem:[#allocation10_spill] sm:$0xff] %v11408_v39  ;;  %9474 = vmatmul.msk.f32.vlgmr.msra.gmra.mxu0 %vm1586_vm3, %v11402_v55  ;;  %9475 = vmatmul.msk.f32.vlgmr.msra.gmra.mxu1 %vm1586_vm3, %v11402_v55  ;;  %v1326_v39 = vmul.f32 0.01, %v11160_v7  ;;  %v1515_v60 = vmax.f32 %v11150_v20, %v1323_v12  ;;  %v1229_v12 = vmul.f32 0.01, %v11086_v29 }
 0x190   :  { %16646 = vst [vmem:[#allocation11_spill] sm:$0xff] %v11410_v37  ;;  %v1565_v37 = vmax.f32 %v11190_v58, %v1373_v53  ;;  %9476 = vmatmul.msk.f32.vlgmr.msra.gmra.mxu2 %vm1586_vm3, %v11402_v55  ;;  %9477 = vmatmul.msk.f32.vlgmr.msra.gmra.mxu3 %vm1586_vm3, %v11402_v55  ;;  %v1301_v58 = vmul.f32 0.01, %v11142_v63  ;;  %v1541_v53 = vmax.f32 %v11174_v1, %v1349_v52  ;;  %v1276_v1 = vmul.f32 0.01, %v11120_v45 }
 0x191   :  { %1758 = vmatpush.msra.mxu0 %v1563_v9  ;;  %1778 = vmatpush.msra.mxu1 %v1564_v31  ;;  %v1518_v41 = vmax.f32 %v11160_v7, %v1326_v39  ;;  %v1275_v31 = vmul.f32 0.01, %v11118_v44  ;;  %v1492_v9 = vmax.f32 %v11136_v49, %v1300_v4  ;;  %v1278_v7 = vmul.f32 0.01, %v11128_v48 }
 0x192   :  { %1798 = vmatpush.msra.mxu2 %v1565_v37  ;;  %1818 = vmatpush.msra.mxu3 %v1566_v51  ;;  %v1493_v36 = vmax.f32 %v11142_v63, %v1301_v58  ;;  %v1494_v51 = vmax.f32 %v11144_v2, %v1302_v5  ;;  %v1252_v49 = vmul.f32 0.01, %v11096_v50  ;;  %v1227_v63 = vmul.f32 0.01, %v11050_v14  ;;  %v16649_v58 = vld [vmem:[#allocation33_spill] sm:$0xff] }
 0x193   :  { %1759 = vmatpush.msra.mxu0 %v1539_v62  ;;  %1779 = vmatpush.msra.mxu1 %v1540_v34  ;;  %v1228_v2 = vmul.f32 0.01, %v11052_v15  ;;  %v1467_v40 = vmax.f32 %v11118_v44, %v1275_v31  ;;  %v1468_v37 = vmax.f32 %v11120_v45, %v1276_v1  ;;  %v1470_v52 = vmax.f32 %v11128_v48, %v1278_v7  ;;  %v16647_v44 = vld [vmem:[#allocation31_spill] sm:$0xff] }
 0x194   :  { %1799 = vmatpush.msra.mxu2 %v1541_v53  ;;  %1819 = vmatpush.msra.mxu3 %v1542_v30  ;;  %v1203_v45 = vmul.f32 0.01, %v16647_v44  ;;  %v1204_v4 = vmul.f32 0.01, %v16648_v27  ;;  %v1443_v62 = vmax.f32 %v11094_v35, %v1251_v19  ;;  %v1444_v34 = vmax.f32 %v11096_v50, %v1252_v49 }
 0x195   :  { %1760 = vmatpush.msra.mxu0 %v1515_v60  ;;  %1780 = vmatpush.msra.mxu1 %v1516_v46  ;;  %v11444_v20 = vpop.f32.mrf.mxu2  ;;  %v11446_v3 = vpop.f32.mrf.mxu3  ;;  %v1253_v46 = vmul.f32 0.01, %v11110_v42  ;;  %v1254_v60 = vmul.f32 0.01, %v11112_v43  ;;  %v1206_v48 = vmul.f32 0.01, %v16649_v58  ;;  %v1419_v30 = vmax.f32 %v11050_v14, %v1227_v63 }
 0x196   :  { %1800 = vmatpush.msra.mxu2 %v1517_v21  ;;  %1820 = vmatpush.msra.mxu3 %v1518_v41  ;;  %v1420_v21 = vmax.f32 %v11052_v15, %v1228_v2  ;;  %v1375_v35 = vmul.f32 0.01, %v11362_v57  ;;  %v1376_v50 = vmul.f32 0.01, %v11364_v33  ;;  %v1421_v41 = vmax.f32 %v11086_v29, %v1229_v12 }
 0x197   :  { %1761 = vmatpush.msra.mxu0 %v1491_v0  ;;  %1781 = vmatpush.msra.mxu1 %v1492_v9  ;;  %v1445_v5 = vmax.f32 %v11110_v42, %v1253_v46  ;;  %v1446_v53 = vmax.f32 %v11112_v43, %v1254_v60  ;;  %v1422_v31 = vmax.f32 %v11088_v56, %v1230_v59  ;;  %v1377_v42 = vmul.f32 0.01, %v11376_v18 }
 0x198   :  { %1801 = vmatpush.msra.mxu2 %v1493_v36  ;;  %1821 = vmatpush.msra.mxu3 %v1494_v51  ;;  %v11456_v32 = vpop.f32.mrf.mxu0  ;;  %v11458_v39 = vpop.f32.mrf.mxu1  ;;  %v1378_v43 = vmul.f32 0.01, %v11378_v22  ;;  %v1395_v14 = vmax.f32 %v16647_v44, %v1203_v45  ;;  %v1396_v15 = vmax.f32 %v16648_v27, %v1204_v4  ;;  %v1397_v29 = vmax.f32 %v11044_v8, %v1205_v47  ;;  %v16651_v44 = vld [vmem:[#allocation19_spill] sm:$0xff]  ;;  %v16653_v47 = vld [vmem:[#allocation21_spill] sm:$0xff] }
 0x199   :  { %9478 = vmatmul.msk.f32.vlgmr.msrb.gmra.mxu0 %vm1586_vm3, %v11402_v55  ;;  %9479 = vmatmul.msk.f32.vlgmr.msrb.gmra.mxu1 %vm1586_vm3, %v11402_v55  ;;  %v1398_v56 = vmax.f32 %v16649_v58, %v1206_v48  ;;  %v1351_v7 = vmul.f32 0.01, %v11347_v11  ;;  %v1352_v36 = vmul.f32 0.01, %v11349_v25  ;;  %v1567_v51 = vmax.f32 %v11362_v57, %v1375_v35 }
 0x19a   :  { %9480 = vmatmul.msk.f32.vlgmr.msrb.gmra.mxu2 %vm1586_vm3, %v11402_v55  ;;  %9481 = vmatmul.msk.f32.vlgmr.msrb.gmra.mxu3 %vm1586_vm3, %v11402_v55  ;;  %v1568_v19 = vmax.f32 %v11364_v33, %v1376_v50  ;;  %v1353_v8 = vmul.f32 0.01, %v11358_v13  ;;  %v1354_v49 = vmul.f32 0.01, %v11360_v17  ;;  %v1569_v46 = vmax.f32 %v11376_v18, %v1377_v42  ;;  %v16655_v50 = vld [vmem:[#allocation23_spill] sm:$0xff] }
 0x19b   :  { %1762 = vmatpush.msra.mxu0 %v1467_v40  ;;  %1782 = vmatpush.msra.mxu1 %v1468_v37  ;;  %v1570_v60 = vmax.f32 %v11378_v22, %v1378_v43  ;;  %v1327_v63 = vmul.f32 0.01, %v11332_v23  ;;  %v1328_v2 = vmul.f32 0.01, %v11334_v28  ;;  %v1329_v57 = vmul.f32 0.01, %v11343_v26 }
 0x19c   :  { %1802 = vmatpush.msra.mxu2 %v1469_v16  ;;  %1822 = vmatpush.msra.mxu3 %v1470_v52  ;;  %v1330_v33 = vmul.f32 0.01, %v11345_v54  ;;  %v1303_v40 = vmul.f32 0.01, %v11317_v61  ;;  %v1304_v18 = vmul.f32 0.01, %v11319_v38  ;;  %v1543_v22 = vmax.f32 %v11347_v11, %v1351_v7 }
 0x19d   :  { %1763 = vmatpush.msra.mxu0 %v1443_v62  ;;  %1783 = vmatpush.msra.mxu1 %v1444_v34  ;;  %v1544_v37 = vmax.f32 %v11349_v25, %v1352_v36  ;;  %v1305_v12 = vmul.f32 0.01, %v11328_v24  ;;  %v1306_v59 = vmul.f32 0.01, %v11330_v10  ;;  %v1545_v16 = vmax.f32 %v11358_v13, %v1353_v8  ;;  %v16650_v11 = vld [vmem:[#allocation18_spill] sm:$0xff]  ;;  %v16657_v43 = vld [vmem:[#allocation27_spill] sm:$0xff] }
 0x19e   :  { %1803 = vmatpush.msra.mxu2 %v1445_v5  ;;  %1823 = vmatpush.msra.mxu3 %v1446_v53  ;;  %v1546_v52 = vmax.f32 %v11360_v17, %v1354_v49  ;;  %v1279_v25 = vmul.f32 0.01, %v16650_v11  ;;  %v1280_v45 = vmul.f32 0.01, %v16651_v44  ;;  %v1519_v27 = vmax.f32 %v11332_v23, %v1327_v63  ;;  %v16652_v17 = vld [vmem:[#allocation20_spill] sm:$0xff]  ;;  %v16661_v8 = vld [vmem:[#allocation34_spill] sm:$0xff] }
 0x19f   :  { %1764 = vmatpush.msra.mxu0 %v1419_v30  ;;  %1784 = vmatpush.msra.mxu1 %v1420_v21  ;;  %v11494_v1 = vpop.f32.mrf.mxu2  ;;  %v11496_v0 = vpop.f32.mrf.mxu3  ;;  %v1520_v4 = vmax.f32 %v11334_v28, %v1328_v2  ;;  %v1281_v34 = vmul.f32 0.01, %v16652_v17  ;;  %v1282_v58 = vmul.f32 0.01, %v16653_v47  ;;  %v1521_v48 = vmax.f32 %v11343_v26, %v1329_v57  ;;  %v16654_v28 = vld [vmem:[#allocation22_spill] sm:$0xff]  ;;  %v16660_v36 = vld [vmem:[#allocation28_spill] sm:$0xff] }
 0x1a0   :  { %1804 = vmatpush.msra.mxu2 %v1421_v41  ;;  %1824 = vmatpush.msra.mxu3 %v1422_v31  ;;  %v11500_v9 = vpop.f32.mrf.mxu0  ;;  %v11502_v6 = vpop.f32.mrf.mxu1  ;;  %v1522_v5 = vmax.f32 %v11345_v54, %v1330_v33  ;;  %v1255_v30 = vmul.f32 0.01, %v16654_v28  ;;  %v1495_v21 = vmax.f32 %v11317_v61, %v1303_v40  ;;  %v1496_v35 = vmax.f32 %v11319_v38, %v1304_v18  ;;  %v16656_v31 = vld [vmem:[#allocation24_spill] sm:$0xff]  ;;  %v16663_v2 = vld [vmem:[#allocation35_spill] sm:$0xff]  ;;  %v16664_v33 = vld [vmem:[#allocation30_spill] sm:$0xff] }
 0x1a1   :  { %1765 = vmatpush.msra.mxu0 %v1395_v14  ;;  %1785 = vmatpush.msra.mxu1 %v1396_v15  ;;  %v1256_v41 = vmul.f32 0.01, %v16655_v50  ;;  %v1257_v26 = vmul.f32 0.01, %v16656_v31  ;;  %v1497_v54 = vmax.f32 %v11328_v24, %v1305_v12  ;;  %v1498_v42 = vmax.f32 %v11330_v10, %v1306_v59  ;;  %v16658_v15 = vld [vmem:[#allocation25_spill] sm:$0xff] }
 0x1a2   :  { %1805 = vmatpush.msra.mxu2 %v1397_v29  ;;  %1825 = vmatpush.msra.mxu3 %v1398_v56  ;;  %v1231_v14 = vmul.f32 0.01, %v16657_v43  ;;  %v1258_v29 = vmul.f32 0.01, %v16658_v15  ;;  %v1471_v61 = vmax.f32 %v16650_v11, %v1279_v25  ;;  %v1472_v38 = vmax.f32 %v16651_v44, %v1280_v45  ;;  %v16659_v56 = vld [vmem:[#allocation5_spill] sm:$0xff] }
 0x1a3   :  { %1838 = vmatpush.msrb.mxu0 %v1567_v51  ;;  %1858 = vmatpush.msrb.mxu1 %v1568_v19  ;;  %v1232_v7 = vmul.f32 0.01, %v16659_v56  ;;  %v1233_v51 = vmul.f32 0.01, %v16660_v36  ;;  %v1473_v24 = vmax.f32 %v16652_v17, %v1281_v34  ;;  %v1474_v10 = vmax.f32 %v16653_v47, %v1282_v58  ;;  %v3825_v19 = vld [vmem:[%s16287_s3 + $0x2] sm:$0x3] }
 0x1a4   :  { %1878 = vmatpush.msrb.mxu2 %v1569_v46  ;;  %1898 = vmatpush.msrb.mxu3 %v1570_v60  ;;  %v1207_v49 = vmul.f32 0.01, %v16661_v8  ;;  %v16662_v46 = vld [vmem:[#allocation29_spill] sm:$0xff]  ;;  %v1447_v63 = vmax.f32 %v16654_v28, %v1255_v30  ;;  %v1208_v57 = vmul.f32 0.01, %v16663_v2  ;;  %v1448_v18 = vmax.f32 %v16655_v50, %v1256_v41 }
 0x1a5   :  { %9482 = vmatmul.msk.f32.vlgmr.msra.gmra.mxu0 %vm1586_vm3, %v11402_v55  ;;  %9483 = vmatmul.msk.f32.vlgmr.msra.gmra.mxu1 %vm1586_vm3, %v11402_v55  ;;  %v1234_v60 = vmul.f32 0.01, %v16662_v46  ;;  %v1209_v40 = vmul.f32 0.01, %v16664_v33  ;;  %v1423_v59 = vmax.f32 %v16657_v43, %v1231_v14  ;;  %v1424_v25 = vmax.f32 %v16659_v56, %v1232_v7 }
 0x1a6   :  { %9484 = vmatmul.msk.f32.vlgmr.msra.gmra.mxu2 %vm1586_vm3, %v11402_v55  ;;  %9485 = vmatmul.msk.f32.vlgmr.msra.gmra.mxu3 %vm1586_vm3, %v11402_v55  ;;  %v1425_v44 = vmax.f32 %v16660_v36, %v1233_v51  ;;  %v1400_v34 = vmax.f32 %v16663_v2, %v1208_v57  ;;  %v1283_v36 = vmul.f32 0.01, %v11500_v9  ;;  %v1284_v51 = vmul.f32 0.01, %v11502_v6 }
 0x1a7   :  { %1839 = vmatpush.msrb.mxu0 %v1543_v22  ;;  %1859 = vmatpush.msrb.mxu1 %v1544_v37  ;;  %v11536_v62 = vpop.f32.mrf.mxu2  ;;  %v11538_v13 = vpop.f32.mrf.mxu3  ;;  %v1449_v22 = vmax.f32 %v16656_v31, %v1257_v26  ;;  %v16665_v37 = vld [vmem:[#allocation26_spill] sm:$0xff]  ;;  %v1426_v17 = vmax.f32 %v16662_v46, %v1234_v60  ;;  %v1401_v47 = vmax.f32 %v16664_v33, %v1209_v40  ;;  %v1259_v33 = vmul.f32 0.01, %v11456_v32 }
 0x1a8   :  { %1879 = vmatpush.msrb.mxu2 %v1545_v16  ;;  %1899 = vmatpush.msrb.mxu3 %v1546_v52  ;;  %v11544_v53 = vpop.f32.mrf.mxu0  ;;  %v11546_v23 = vpop.f32.mrf.mxu1  ;;  %v1210_v12 = vmul.f32 0.01, %v16665_v37  ;;  %v1450_v16 = vmax.f32 %v16658_v15, %v1258_v29  ;;  %v1260_v40 = vmul.f32 0.01, %v11458_v39 }
 0x1a9   :  { %1840 = vmatpush.msrb.mxu0 %v1519_v27  ;;  %1860 = vmatpush.msrb.mxu1 %v1520_v4  ;;  %v1399_v4 = vmax.f32 %v16661_v8, %v1207_v49 }
 0x1aa   :  { %1880 = vmatpush.msrb.mxu2 %v1521_v48  ;;  %1900 = vmatpush.msrb.mxu3 %v1522_v5  ;;  %v1402_v58 = vmax.f32 %v16665_v37, %v1210_v12 }
 0x1ab   :  { %1841 = vmatpush.msrb.mxu0 %v1495_v21  ;;  %1861 = vmatpush.msrb.mxu1 %v1496_v35 }
 0x1ac   :  { %1881 = vmatpush.msrb.mxu2 %v1497_v54  ;;  %1901 = vmatpush.msrb.mxu3 %v1498_v42 }
 0x1ad   :  { %1842 = vmatpush.msrb.mxu0 %v1471_v61  ;;  %1862 = vmatpush.msrb.mxu1 %v1472_v38  ;;  %v1307_v61 = vmul.f32 0.01, %v11544_v53  ;;  %v1308_v38 = vmul.f32 0.01, %v11546_v23 }
 0x1ae   :  { %1882 = vmatpush.msrb.mxu2 %v1473_v24  ;;  %1902 = vmatpush.msrb.mxu3 %v1474_v10 }
 0x1af   :  { %3828 = vperm.xlu0 %10223, %v3825_v19   ;;  %1843 = vmatpush.msrb.mxu0 %v1447_v63  ;;  %v11576_v52 = vpop.f32.mrf.mxu2  ;;  %v11578_v11 = vpop.f32.mrf.mxu3 }
 0x1b0   :  { %1863 = vmatpush.msrb.mxu1 %v1448_v18  ;;  %1883 = vmatpush.msrb.mxu2 %v1449_v22  ;;  %v899_v45 = vpop.f32.mrf.mxu0  ;;  %v940_v27 = vpop.f32.mrf.mxu1  ;;  %v1499_v18 = vmax.f32 %v11544_v53, %v1307_v61  ;;  %v1500_v22 = vmax.f32 %v11546_v23, %v1308_v38  ;;  %v1309_v53 = vmul.f32 0.01, %v11576_v52  ;;  %v1310_v23 = vmul.f32 0.01, %v11578_v11 }
 0x1b1   :  { %1903 = vmatpush.msrb.mxu3 %v1450_v16  ;;  %1844 = vmatpush.msrb.mxu0 %v1423_v59  ;;  %v1331_v43 = vmul.f32 0.01, %v899_v45  ;;  %v1332_v14 = vmul.f32 0.01, %v940_v27  ;;  %v1238_v61 = vmul.f32 0.01, %v11446_v3 }
 0x1b2   :  { %1864 = vmatpush.msrb.mxu1 %v1424_v25  ;;  %1884 = vmatpush.msrb.mxu2 %v1425_v44  ;;  %v16666_v25 = vld [vmem:[#allocation10_spill] sm:$0xff] }
 0x1b3   :  { %1904 = vmatpush.msrb.mxu3 %v1426_v17  ;;  %1845 = vmatpush.msrb.mxu0 %v1399_v4  ;;  %v1523_v24 = vmax.f32 %v899_v45, %v1331_v43  ;;  %v1524_v10 = vmax.f32 %v940_v27, %v1332_v14  ;;  %v1235_v44 = vmul.f32 0.01, %v16666_v25  ;;  %v16667_v45 = vld [vmem:[#allocation11_spill] sm:$0xff]  ;;  %v1475_v4 = vmax.f32 %v11500_v9, %v1283_v36 }
 0x1b4   :  { %1865 = vmatpush.msrb.mxu1 %v1400_v34  ;;  %1885 = vmatpush.msrb.mxu2 %v1401_v47  ;;  %v1236_v27 = vmul.f32 0.01, %v16667_v45  ;;  %v1476_v17 = vmax.f32 %v11502_v6, %v1284_v51  ;;  %v1451_v9 = vmax.f32 %v11456_v32, %v1259_v33  ;;  %v1452_v6 = vmax.f32 %v11458_v39, %v1260_v40  ;;  %v16671_v51 = vld [vmem:[#allocation17_spill] sm:$0xff] }
 0x1b5   :  { %1905 = vmatpush.msrb.mxu3 %v1402_v58  ;;  %9486 = vmatmul.msk.f32.vlgmr.msrb.gmra.mxu0 %vm1586_vm3, %v11402_v55  ;;  %v16668_v58 = vld [vmem:[#allocation14_spill] sm:$0xff]  ;;  %v1261_v39 = vmul.f32 0.01, %v11494_v1  ;;  %v1262_v43 = vmul.f32 0.01, %v11496_v0 }
 0x1b6   :  { %9487 = vmatmul.msk.f32.vlgmr.msrb.gmra.mxu1 %vm1586_vm3, %v11402_v55  ;;  %9488 = vmatmul.msk.f32.vlgmr.msrb.gmra.mxu2 %vm1586_vm3, %v11402_v55 }
 0x1b7   :  { %9489 = vmatmul.msk.f32.vlgmr.msrb.gmra.mxu3 %vm1586_vm3, %v11402_v55  ;;  %v11595_v48 = vpop.f32.mrf.mxu2  ;;  %v11597_v5 = vpop.f32.mrf.mxu3 }
 0x1b8   :  { %v902_v28 = vpop.f32.mrf.mxu0  ;;  %v943_v30 = vpop.f32.mrf.mxu1  ;;  %v1333_v37 = vmul.f32 0.01, %v11595_v48  ;;  %v1334_v12 = vmul.f32 0.01, %v11597_v5 }
 0x1b9   :  { %v1355_v50 = vmul.f32 0.01, %v902_v28  ;;  %v1356_v26 = vmul.f32 0.01, %v943_v30 }
 0x1bb   :  { %v1547_v56 = vmax.f32 %v902_v28, %v1355_v50  ;;  %v1548_v7 = vmax.f32 %v943_v30, %v1356_v26  ;;  %v1211_v28 = vmul.f32 0.01, %v16668_v58  ;;  %v16669_v30 = vld [vmem:[#allocation15_spill] sm:$0xff]  ;;  %v1427_v26 = vmax.f32 %v16666_v25, %v1235_v44 }
 0x1bc   :  { %v1212_v50 = vmul.f32 0.01, %v16669_v30 }
 0x1bd   :  { %v1403_v14 = vmax.f32 %v16668_v58, %v1211_v28 }
 0x1bf   :  { %v11599_v21 = vpop.f32.mrf.mxu2  ;;  %v11601_v35 = vpop.f32.mrf.mxu3 }
 0x1c0   :  { %v905_v41 = vpop.f32.mrf.mxu0  ;;  %v946_v31 = vpop.f32.mrf.mxu1  ;;  %v1357_v19 = vmul.f32 0.01, %v11599_v21  ;;  %v1358_v46 = vmul.f32 0.01, %v11601_v35 }
 0x1c1   :  { %v1379_v54 = vmul.f32 0.01, %v905_v41  ;;  %v1380_v42 = vmul.f32 0.01, %v946_v31 }
 0x1c2   :  { %v1549_v34 = vmax.f32 %v11599_v21, %v1357_v19  ;;  %v1550_v47 = vmax.f32 %v11601_v35, %v1358_v46  ;;  %v1525_v21 = vmax.f32 %v11595_v48, %v1333_v37  ;;  %v1526_v35 = vmax.f32 %v11597_v5, %v1334_v12 }
 0x1c3   :  { %v1571_v15 = vmax.f32 %v905_v41, %v1379_v54  ;;  %v1572_v29 = vmax.f32 %v946_v31, %v1380_v42  ;;  %v1285_v41 = vmul.f32 0.01, %v11536_v62  ;;  %v1286_v31 = vmul.f32 0.01, %v11538_v13 }
 0x1c4   :  { %v1428_v54 = vmax.f32 %v16667_v45, %v1236_v27  ;;  %v1501_v48 = vmax.f32 %v11576_v52, %v1309_v53  ;;  %v1502_v5 = vmax.f32 %v11578_v11, %v1310_v23  ;;  %v16670_v11 = vld [vmem:[#allocation16_spill] sm:$0xff]  ;;  %v1454_v19 = vmax.f32 %v11496_v0, %v1262_v43 }
 0x1c5   :  { %1918 = vmatpush.msra.mxu0 %v1571_v15  ;;  %1938 = vmatpush.msra.mxu1 %v1572_v29  ;;  %v1404_v15 = vmax.f32 %v16669_v30, %v1212_v50  ;;  %v1237_v29 = vmul.f32 0.01, %v11444_v20  ;;  %v1477_v38 = vmax.f32 %v11536_v62, %v1285_v41  ;;  %v1213_v36 = vmul.f32 0.01, %v16670_v11 }
 0x1c7   :  { %v987_v8 = vpop.f32.mrf.mxu2  ;;  %v1028_v49 = vpop.f32.mrf.mxu3  ;;  %1919 = vmatpush.msra.mxu0 %v1547_v56  ;;  %1939 = vmatpush.msra.mxu1 %v1548_v7  ;;  %v1478_v56 = vmax.f32 %v11538_v13, %v1286_v31  ;;  %v1429_v62 = vmax.f32 %v11444_v20, %v1237_v29  ;;  %v1430_v13 = vmax.f32 %v11446_v3, %v1238_v61 }
 0x1c8   :  { %v1381_v60 = vmul.f32 0.01, %v987_v8  ;;  %v1382_v63 = vmul.f32 0.01, %v1028_v49  ;;  %v11609_v2 = vpop.f32.mrf.mxu0  ;;  %v11611_v57 = vpop.f32.mrf.mxu1 }
 0x1c9   :  { %1920 = vmatpush.msra.mxu0 %v1523_v24  ;;  %1940 = vmatpush.msra.mxu1 %v1524_v10  ;;  %v1214_v24 = vmul.f32 0.01, %v16671_v51  ;;  %v1453_v10 = vmax.f32 %v11494_v1, %v1261_v39 }
 0x1ca   :  { %v1573_v59 = vmax.f32 %v987_v8, %v1381_v60  ;;  %v1574_v16 = vmax.f32 %v1028_v49, %v1382_v63  ;;  %v1405_v8 = vmax.f32 %v16670_v11, %v1213_v36 }
 0x1cb   :  { %1921 = vmatpush.msra.mxu0 %v1499_v18  ;;  %1941 = vmatpush.msra.mxu1 %v1500_v22  ;;  %v1406_v1 = vmax.f32 %v16671_v51, %v1214_v24 }
 0x1cc   :  { %1958 = vmatpush.msra.mxu2 %v1573_v59  ;;  %1978 = vmatpush.msra.mxu3 %v1574_v16 }
 0x1cd   :  { %1922 = vmatpush.msra.mxu0 %v1475_v4  ;;  %1942 = vmatpush.msra.mxu1 %v1476_v17 }
 0x1ce   :  { %1959 = vmatpush.msra.mxu2 %v1549_v34  ;;  %1979 = vmatpush.msra.mxu3 %v1550_v47 }
 0x1cf   :  { %v11637_v42 = vpop.f32.mrf.mxu2  ;;  %v11639_v32 = vpop.f32.mrf.mxu3  ;;  %1923 = vmatpush.msra.mxu0 %v1451_v9  ;;  %1943 = vmatpush.msra.mxu1 %v1452_v6 }
 0x1d0   :  { %1960 = vmatpush.msra.mxu2 %v1525_v21  ;;  %1980 = vmatpush.msra.mxu3 %v1526_v35 }
 0x1d1   :  { %1924 = vmatpush.msra.mxu0 %v1427_v26  ;;  %1944 = vmatpush.msra.mxu1 %v1428_v54 }
 0x1d2   :  { %v11651_v7 = vpop.f32.mrf.mxu0  ;;  %v11653_v52 = vpop.f32.mrf.mxu1  ;;  %1961 = vmatpush.msra.mxu2 %v1501_v48  ;;  %1981 = vmatpush.msra.mxu3 %v1502_v5 }
 0x1d3   :  { %1925 = vmatpush.msra.mxu0 %v1403_v14  ;;  %1945 = vmatpush.msra.mxu1 %v1404_v15  ;;  %v11704_v31 = vmul.f32 0.01, %v11651_v7 }
 0x1d4   :  { %1962 = vmatpush.msra.mxu2 %v1477_v38  ;;  %1982 = vmatpush.msra.mxu3 %v1478_v56  ;;  %v11709_v5 = vpop.permute.xlu0 %1583 }
 0x1d5   :  { %9490 = vmatmul.msk.f32.vlgmr.msra.gmra.mxu0 %vm1586_vm3, %v11402_v55  ;;  %9491 = vmatmul.msk.f32.vlgmr.msra.gmra.mxu1 %vm1586_vm3, %v11402_v55 }
 0x1d6   :  { %1963 = vmatpush.msra.mxu2 %v1453_v10  ;;  %1983 = vmatpush.msra.mxu3 %v1454_v19 }
 0x1d8   :  { %1964 = vmatpush.msra.mxu2 %v1429_v62  ;;  %1984 = vmatpush.msra.mxu3 %v1430_v13 }
 0x1d9   :  { %v11667_v0 = vpop.f32.mrf.mxu2  ;;  %v11669_v49 = vpop.f32.mrf.mxu3 }
 0x1da   :  { %1965 = vmatpush.msra.mxu2 %v1405_v8  ;;  %1985 = vmatpush.msra.mxu3 %v1406_v1 }
 0x1db   :  { %9492 = vmatmul.msk.f32.vlgmr.msra.gmra.mxu2 %vm1586_vm3, %v11402_v55  ;;  %9493 = vmatmul.msk.f32.vlgmr.msra.gmra.mxu3 %vm1586_vm3, %v11402_v55 }
 0x1dc   :  { %v11675_v20 = vpop.f32.mrf.mxu0  ;;  %v11677_v3 = vpop.f32.mrf.mxu1 }
 0x1dd   :  { %v1263_v39 = vmul.f32 0.01, %v11675_v20  ;;  %v1264_v43 = vmul.f32 0.01, %v11677_v3 }
 0x1e3   :  { %v11679_v46 = vpop.f32.mrf.mxu2  ;;  %v11681_v60 = vpop.f32.mrf.mxu3 }
 0x1e4   :  { %v11683_v63 = vpop.f32.mrf.mxu0  ;;  %v11685_v33 = vpop.f32.mrf.mxu1 }
 0x1e5   :  { %v1287_v48 = vmul.f32 0.01, %v11683_v63  ;;  %v1288_v14 = vmul.f32 0.01, %v11685_v33 }
 0x1eb   :  { %v11687_v40 = vpop.f32.mrf.mxu2  ;;  %v11689_v18 = vpop.f32.mrf.mxu3 }
 0x1ec   :  { %v1060_v22 = vpop.f32.mrf.mxu0  ;;  %v1101_v37 = vpop.f32.mrf.mxu1 }
 0x1ed   :  { %v1311_v21 = vmul.f32 0.01, %v1060_v22  ;;  %v1312_v35 = vmul.f32 0.01, %v1101_v37 }
 0x1ef   :  { %v1503_v19 = vmax.f32 %v1060_v22, %v1311_v21  ;;  %v1504_v62 = vmax.f32 %v1101_v37, %v1312_v35  ;;  %v1480_v22 = vmax.f32 %v11685_v33, %v1288_v14  ;;  %v1216_v33 = vmul.f32 0.01, %v11611_v57 }
 0x1f3   :  { %v11691_v12 = vpop.f32.mrf.mxu2  ;;  %v11693_v59 = vpop.f32.mrf.mxu3 }
 0x1f4   :  { %v1063_v16 = vpop.f32.mrf.mxu0  ;;  %v1104_v25 = vpop.f32.mrf.mxu1  ;;  %v1313_v37 = vmul.f32 0.01, %v11691_v12 }
 0x1f5   :  { %v1335_v50 = vmul.f32 0.01, %v1063_v16  ;;  %v1336_v9 = vmul.f32 0.01, %v1104_v25 }
 0x1f7   :  { %v1527_v15 = vmax.f32 %v1063_v16, %v1335_v50  ;;  %v1528_v29 = vmax.f32 %v1104_v25, %v1336_v9  ;;  %v1289_v50 = vmul.f32 0.01, %v11687_v40 }
 0x1fb   :  { %v11695_v44 = vpop.f32.mrf.mxu2  ;;  %v11697_v45 = vpop.f32.mrf.mxu3 }
 0x1fc   :  { %v1066_v27 = vpop.f32.mrf.mxu0  ;;  %v1107_v4 = vpop.f32.mrf.mxu1  ;;  %v1337_v13 = vmul.f32 0.01, %v11695_v44  ;;  %v1338_v1 = vmul.f32 0.01, %v11697_v45 }
 0x1fd   :  { %v1359_v23 = vmul.f32 0.01, %v1066_v27  ;;  %v1360_v58 = vmul.f32 0.01, %v1107_v4 }
 0x1fe   :  { %v1530_v9 = vmax.f32 %v11697_v45, %v1338_v1 }
 0x1ff   :  { %v1551_v26 = vmax.f32 %v1066_v27, %v1359_v23  ;;  %v1552_v54 = vmax.f32 %v1107_v4, %v1360_v58  ;;  %v1240_v4 = vmul.f32 0.01, %v11653_v52  ;;  %v1479_v23 = vmax.f32 %v11683_v63, %v1287_v48 }
 0x200   :  { %v1215_v63 = vmul.f32 0.01, %v11609_v2 }
 0x203   :  { %v11699_v17 = vpop.f32.mrf.mxu2  ;;  %v11701_v53 = vpop.f32.mrf.mxu3 }
 0x204   :  { %v1069_v34 = vpop.f32.mrf.mxu0  ;;  %v1110_v47 = vpop.f32.mrf.mxu1  ;;  %v1361_v61 = vmul.f32 0.01, %v11699_v17  ;;  %v1362_v11 = vmul.f32 0.01, %v11701_v53 }
 0x205   :  { %v1383_v28 = vmul.f32 0.01, %v1069_v34  ;;  %v1384_v30 = vmul.f32 0.01, %v1110_v47 }
 0x206   :  { %v1554_v58 = vmax.f32 %v11701_v53, %v1362_v11  ;;  %v1529_v53 = vmax.f32 %v11695_v44, %v1337_v13 }
 0x207   :  { %v1575_v6 = vmax.f32 %v1069_v34, %v1383_v28  ;;  %v1576_v41 = vmax.f32 %v1110_v47, %v1384_v30  ;;  %v1314_v34 = vmul.f32 0.01, %v11693_v59  ;;  %v1553_v47 = vmax.f32 %v11699_v17, %v1361_v61 }
 0x208   :  { %v1455_v28 = vmax.f32 %v11675_v20, %v1263_v39  ;;  %v1456_v30 = vmax.f32 %v11677_v3, %v1264_v43  ;;  %v1290_v17 = vmul.f32 0.01, %v11689_v18  ;;  %v1265_v20 = vmul.f32 0.01, %v11679_v46 }
 0x209   :  { %1998 = vmatpush.msrb.mxu0 %v1575_v6  ;;  %2018 = vmatpush.msrb.mxu1 %v1576_v41  ;;  %v1431_v6 = vmax.f32 %v11651_v7, %v11704_v31  ;;  %v1432_v41 = vmax.f32 %v11653_v52, %v1240_v4  ;;  %v1505_v3 = vmax.f32 %v11691_v12, %v1313_v37  ;;  %v1241_v12 = vmul.f32 0.01, %v11667_v0 }
 0x20a   :  { %v1506_v44 = vmax.f32 %v11693_v59, %v1314_v34  ;;  %v1407_v7 = vmax.f32 %v11609_v2, %v1215_v63  ;;  %v1408_v52 = vmax.f32 %v11611_v57, %v1216_v33  ;;  %v1242_v31 = vmul.f32 0.01, %v11669_v49 }
 0x20b   :  { %v1151_v38 = vpop.f32.mrf.mxu2  ;;  %v1192_v56 = vpop.f32.mrf.mxu3  ;;  %1999 = vmatpush.msrb.mxu0 %v1551_v26  ;;  %2019 = vmatpush.msrb.mxu1 %v1552_v54  ;;  %v1266_v26 = vmul.f32 0.01, %v11681_v60  ;;  %v1481_v59 = vmax.f32 %v11687_v40, %v1289_v50  ;;  %v1482_v39 = vmax.f32 %v11689_v18, %v1290_v17  ;;  %v1217_v40 = vmul.f32 0.01, %v11637_v42 }
 0x20c   :  { %v1385_v36 = vmul.f32 0.01, %v1151_v38  ;;  %v1386_v51 = vmul.f32 0.01, %v1192_v56  ;;  %v1607_v24 = vpop.f32.mrf.mxu0  ;;  %v1627_v10 = vpop.f32.mrf.mxu1  ;;  %v1218_v18 = vmul.f32 0.01, %v11639_v32  ;;  %v1433_v11 = vmax.f32 %v11667_v0, %v1241_v12 }
 0x20d   :  { %2000 = vmatpush.msrb.mxu0 %v1527_v15  ;;  %2020 = vmatpush.msrb.mxu1 %v1528_v29  ;;  %v11716_v8 = vadd.f32 %v1607_v24, %v11709_v5  ;;  %v11720_v27 = vadd.f32 %v1627_v10, %v11709_v5  ;;  %v1457_v29 = vmax.f32 %v11679_v46, %v1265_v20 }
 0x20e   :  { %v1577_v16 = vmax.f32 %v1151_v38, %v1385_v36  ;;  %v1578_v25 = vmax.f32 %v1192_v56, %v1386_v51  ;;  %v1458_v61 = vmax.f32 %v11681_v60, %v1266_v26  ;;  %v1434_v46 = vmax.f32 %v11669_v49, %v1242_v31  ;;  %v9255_v26 = vld [vmem:[%s16284_s0 + $0x1] ss:$2 sm:$0xff] }
 0x20f   :  { %16672 = vst [vmem:[#allocation12_spill] sm:$0xff] %v11716_v8  ;;  %2001 = vmatpush.msrb.mxu0 %v1503_v19  ;;  %2021 = vmatpush.msrb.mxu1 %v1504_v62  ;;  %v2072_v60 = vmul.f32 1.442695, %v11720_v27  ;;  %v1409_v36 = vmax.f32 %v11637_v42, %v1217_v40  ;;  %v1410_v51 = vmax.f32 %v11639_v32, %v1218_v18  ;;  %v2070_v49 = vmul.f32 1.442695, %v11716_v8 }
 0x210   :  { %16673 = vst [vmem:[#allocation13_spill] sm:$0xff] %v11720_v27  ;;  %2038 = vmatpush.msrb.mxu2 %v1577_v16  ;;  %2058 = vmatpush.msrb.mxu3 %v1578_v25 }
 0x211   :  { %2219 = vst [vmem:[#allocation1] sm:$0xff] %v11716_v8  ;;  %2002 = vmatpush.msrb.mxu0 %v1479_v23  ;;  %2022 = vmatpush.msrb.mxu1 %v1480_v22 }
 0x212   :  { %2220 = vst [vmem:[#allocation1 + $0x9] sm:$0xff] %v11720_v27  ;;  %2039 = vmatpush.msrb.mxu2 %v1553_v47  ;;  %2059 = vmatpush.msrb.mxu3 %v1554_v58 }
 0x213   :  { %v1647_v21 = vpop.f32.mrf.mxu2  ;;  %v1667_v35 = vpop.f32.mrf.mxu3  ;;  %2003 = vmatpush.msrb.mxu0 %v1455_v28  ;;  %2023 = vmatpush.msrb.mxu1 %v1456_v30 }
 0x214   :  { %v11747_v45 = vadd.f32 %v1647_v21, %v11709_v5  ;;  %v11750_v54 = vadd.f32 %v1667_v35, %v11709_v5  ;;  %2040 = vmatpush.msrb.mxu2 %v1529_v53  ;;  %2060 = vmatpush.msrb.mxu3 %v1530_v9 }
 0x215   :  { %2004 = vmatpush.msrb.mxu0 %v1431_v6  ;;  %2024 = vmatpush.msrb.mxu1 %v1432_v41 }
 0x216   :  { %16674 = vst [vmem:[#allocation6_spill] sm:$0xff] %v11747_v45  ;;  %v2074_v43 = vmul.f32 1.442695, %v11747_v45  ;;  %v1687_v48 = vpop.f32.mrf.mxu0  ;;  %v1707_v14 = vpop.f32.mrf.mxu1  ;;  %2041 = vmatpush.msrb.mxu2 %v1505_v3  ;;  %2061 = vmatpush.msrb.mxu3 %v1506_v44  ;;  %v2076_v2 = vmul.f32 1.442695, %v11750_v54 }
 0x217   :  { %16675 = vst [vmem:[#allocation7_spill] sm:$0xff] %v11750_v54  ;;  %v11763_v57 = vadd.f32 %v1687_v48, %v11709_v5  ;;  %v11766_v15 = vadd.f32 %v1707_v14, %v11709_v5  ;;  %2005 = vmatpush.msrb.mxu0 %v1407_v7  ;;  %2025 = vmatpush.msrb.mxu1 %v1408_v52 }
 0x218   :  { %2221 = vst [vmem:[#allocation1 + $0x12] sm:$0xff] %v11747_v45  ;;  %2042 = vmatpush.msrb.mxu2 %v1481_v59  ;;  %2062 = vmatpush.msrb.mxu3 %v1482_v39  ;;  %10225 = vpow2.f32 %v2074_v43 }
 0x219   :  { %2222 = vst [vmem:[#allocation1 + $0x1b] sm:$0xff] %v11750_v54  ;;  %v2078_v38 = vmul.f32 1.442695, %v11763_v57  ;;  %v2080_v56 = vmul.f32 1.442695, %v11766_v15  ;;  %9494 = vmatmul.msk.f32.vlgmr.msrb.gmra.mxu0 %vm1586_vm3, %v11402_v55  ;;  %9495 = vmatmul.msk.f32.vlgmr.msrb.gmra.mxu1 %vm1586_vm3, %v11402_v55  ;;  %10227 = vpow2.f32 %v2076_v2 }
 0x21a   :  { %16676 = vst [vmem:[#allocation8_spill] sm:$0xff] %v11763_v57  ;;  %2043 = vmatpush.msrb.mxu2 %v1457_v29  ;;  %2063 = vmatpush.msrb.mxu3 %v1458_v61 }
 0x21b   :  { %16677 = vst [vmem:[#allocation9_spill] sm:$0xff] %v11766_v15  ;;  %10229 = vpow2.f32 %v2078_v38 }
 0x21c   :  { %2223 = vst [vmem:[#allocation1 + $0x24] sm:$0xff] %v11763_v57  ;;  %2044 = vmatpush.msrb.mxu2 %v1433_v11  ;;  %2064 = vmatpush.msrb.mxu3 %v1434_v46  ;;  %10231 = vpow2.f32 %v2080_v56 }
 0x21d   :  { %2224 = vst [vmem:[#allocation1 + $0x2d] sm:$0xff] %v11766_v15  ;;  %v1727_v24 = vpop.f32.mrf.mxu2  ;;  %v1747_v0 = vpop.f32.mrf.mxu3  ;;  %10233 = vpow2.f32 %v2072_v60 }
 0x21e   :  { %v11787_v10 = vadd.f32 %v1727_v24, %v11709_v5  ;;  %v11790_v19 = vadd.f32 %v1747_v0, %v11709_v5  ;;  %2045 = vmatpush.msrb.mxu2 %v1409_v36  ;;  %2065 = vmatpush.msrb.mxu3 %v1410_v51  ;;  %v10226_v42 = vpop.eup %10225  ;;  %10235 = vpow2.f32 %v2070_v49  ;;  %v11849_v51 = vld [vmem:[%s16285_s1 + $0x40] sm:$0xff] }
 0x21f   :  { %9496 = vmatmul.msk.f32.vlgmr.msrb.gmra.mxu2 %vm1586_vm3, %v11402_v55  ;;  %9497 = vmatmul.msk.f32.vlgmr.msrb.gmra.mxu3 %vm1586_vm3, %v11402_v55  ;;  %v10228_v13 = vpop.eup %10227  ;;  %v2143_v23 = vrot.slane %v10226_v42, 6 }
 0x220   :  { %16678 = vst [vmem:[#allocation31_spill] sm:$0xff] %v11787_v10  ;;  %v2082_v32 = vmul.f32 1.442695, %v11787_v10  ;;  %v2084_v62 = vmul.f32 1.442695, %v11790_v19  ;;  %v2144_v22 = vrot.slane %v10228_v13, 5 }
 0x221   :  { %16679 = vst [vmem:[#allocation32_spill] sm:$0xff] %v11790_v19  ;;  %v10230_v1 = vpop.eup %10229 }
 0x222   :  { %2225 = vst [vmem:[#allocation1 + $0x36] sm:$0xff] %v11787_v10  ;;  %10237 = vpow2.f32 %v2082_v32  ;;  %v10232_v16 = vpop.eup %10231  ;;  %v1767_v25 = vpop.f32.mrf.mxu0  ;;  %v2145_v37 = vrot.slane %v10230_v1, 4  ;;  %v2165_v17 = vsel %vm2164_vm4, %v2143_v23, %v2144_v22 }
 0x223   :  { %2226 = vst [vmem:[#allocation1 + $0x3f] sm:$0xff] %v11790_v19  ;;  %10239 = vpow2.f32 %v2084_v62  ;;  %v10234_v4 = vpop.eup %10233  ;;  %v1787_v55 = vpop.f32.mrf.mxu1  ;;  %v2146_v34 = vrot.slane %v10232_v16, 3  ;;  %v11801_v58 = vadd.f32 %v1767_v25, %v11709_v5 }
 0x224   :  { %v10236_v47 = vpop.eup %10235  ;;  %v11804_v28 = vadd.f32 %v1787_v55, %v11709_v5  ;;  %v2142_v30 = vrot.slane %v10234_v4, 7 }
 0x225   :  { %16680 = vst [vmem:[#allocation33_spill] sm:$0xff] %v11801_v58  ;;  %v2168_v41 = vsel %vm2167_vm5, %v2145_v37, %v2146_v34 }
 0x226   :  { %16681 = vst [vmem:[#allocation18_spill] sm:$0xff] %v11804_v28  ;;  %v2163_v44 = vsel %vm80_vm0, %v10236_v47, %v2142_v30  ;;  %v2088_v39 = vmul.f32 1.442695, %v11804_v28  ;;  %v2086_v47 = vmul.f32 1.442695, %v11801_v58 }
 0x227   :  { %v2166_v52 = vsel %vm138_vm1, %v2163_v44, %v2165_v17 }
 0x228   :  { %v10238_v63 = vpop.eup %10237  ;;  %10241 = vpow2.f32 %v2088_v39 }
 0x229   :  { %v10240_v50 = vpop.eup %10239  ;;  %v2147_v53 = vrot.slane %v10238_v63, 2  ;;  %v1807_v9 = vpop.f32.mrf.mxu2 }
 0x22a   :  { %v2228_v33 = vld [vmem:[#allocation1 + $0x1] ss:$9 sm:$0xff]  ;;  %v1827_v6 = vpop.f32.mrf.mxu3  ;;  %v2148_v20 = vrot.slane %v10240_v50, 1  ;;  %v11811_v3 = vadd.f32 %v1807_v9, %v11709_v5 }
 0x22b   :  { %2229 = vst [vmem:[#allocation1] sm:$0xff] %v11801_v58  ;;  %v11814_v21 = vadd.f32 %v1827_v6, %v11709_v5 }
 0x22c   :  { %2230 = vst [vmem:[#allocation1 + $0x9] sm:$0xff] %v11804_v28  ;;  %v2170_v35 = vsel %vm2169_vm6, %v2147_v53, %v2148_v20  ;;  %v2090_v43 = vmul.f32 1.442695, %v11811_v3 }
 0x22d   :  { %16682 = vst [vmem:[#allocation19_spill] sm:$0xff] %v11811_v3  ;;  %v2172_v7 = vsel %vm2171_vm7, %v2168_v41, %v2170_v35  ;;  %v2092_v46 = vmul.f32 1.442695, %v11814_v21 }
 0x22e   :  { %16683 = vst [vmem:[#allocation20_spill] sm:$0xff] %v11814_v21  ;;  %v2174_v12 = vsel %vm2173_vm8, %v2166_v52, %v2172_v7  ;;  %10243 = vpow2.f32 %v2090_v43  ;;  %v10242_v37 = vpop.eup %10241  ;;  %v11905_v52 = vld [vmem:[%s16285_s1 + $0x50] sm:$0xff] }
 0x22f   :  { %2231 = vst [vmem:[#allocation1 + $0x12] sm:$0xff] %v11811_v3  ;;  %v2192_v31 = vmul.f32 %v9255_v26, %v2174_v12  ;;  %10245 = vpow2.f32 %v2092_v46  ;;  %v2149_v20 = vrot.slane %v10242_v37, 7  ;;  %v11976_v37 = vld [vmem:[%s16285_s1 + $0x68] sm:$0xff] }
 0x230   :  { %2232 = vst [vmem:[#allocation1 + $0x1b] sm:$0xff] %v11814_v21 }
 0x231   :  { %v11826_v59 = vadd.f32 %v2228_v33, %v2192_v31  ;;  %v11892_v33 = vld [vmem:[%s16285_s1 + $0x48] sm:$0xff] }
 0x232   :  { %v1847_v48 = vpop.f32.mrf.mxu0 }
 0x233   :  { %16684 = vst [vmem:[#allocation21_spill] sm:$0xff] %v11826_v59  ;;  %v11831_v14 = vadd.f32 %v1847_v48, %v11709_v5  ;;  %v1867_v2 = vpop.f32.mrf.mxu1  ;;  %v2280_v40 = vperm.slane %v11826_v59, 0  ;;  %v2281_v18 = vperm.slane %v11826_v59, 1  ;;  %v2282_v29 = vperm.slane %v11826_v59, 2 }
 0x234   :  { %v11837_v61 = vadd.f32 %v1867_v2, %v11709_v5  ;;  %v2283_v38 = vperm.slane %v11826_v59, 3  ;;  %v2284_v56 = vperm.slane %v11826_v59, 4  ;;  %v2285_v11 = vperm.slane %v11826_v59, 5  ;;  %v10244_v30 = vpop.eup %10243  ;;  %v9256_v2 = vld [vmem:[%s16284_s0 + $0x11] ss:$2 sm:$0xff] }
 0x235   :  { %16685 = vst [vmem:[#allocation22_spill] sm:$0xff] %v11831_v14  ;;  %v2328_v60 = vsel %vm80_vm0, %v2280_v40, 1.0  ;;  %v2329_v36 = vsel %vm80_vm0, %v2281_v18, 1.0  ;;  %v2094_v24 = vmul.f32 1.442695, %v11831_v14  ;;  %v2330_v0 = vsel %vm80_vm0, %v2282_v29, 1.0  ;;  %v10246_v50 = vpop.eup %10245 }
 0x236   :  { %16686 = vst [vmem:[#allocation23_spill] sm:$0xff] %v11837_v61  ;;  %9498 = vmatpush.msk.msra.mxu0 %vm138_vm1, %v2328_v60  ;;  %9507 = vmatpush.msk.msra.mxu1 %vm138_vm1, %v2329_v36  ;;  %v2331_v49 = vsel %vm80_vm0, %v2283_v38, 1.0  ;;  %v2096_v42 = vmul.f32 1.442695, %v11837_v61  ;;  %v2332_v32 = vsel %vm80_vm0, %v2284_v56, 1.0  ;;  %v2333_v62 = vsel %vm80_vm0, %v2285_v11, 1.0 }
 0x237   :  { %2233 = vst [vmem:[#allocation1 + $0x24] sm:$0xff] %v11831_v14  ;;  %9516 = vmatpush.msk.msra.mxu2 %vm138_vm1, %v2330_v0  ;;  %9525 = vmatpush.msk.msra.mxu3 %vm138_vm1, %v2331_v49  ;;  %v2286_v13 = vperm.slane %v11826_v59, 6  ;;  %v2287_v1 = vperm.slane %v11826_v59, 7  ;;  %10247 = vpow2.f32 %v2094_v24  ;;  %v2150_v9 = vrot.slane %v10244_v30, 6  ;;  %v11930_v60 = vld [vmem:[%s16285_s1 + $0x58] sm:$0xff] }
 0x238   :  { %2234 = vst [vmem:[#allocation1 + $0x2d] sm:$0xff] %v11837_v61  ;;  %9499 = vmatmul.msk.f32.vlgmr.msra.gmra.mxu0 %vm113_vm2, %v11849_v51  ;;  %9508 = vmatmul.msk.f32.vlgmr.msra.gmra.mxu1 %vm113_vm2, %v11849_v51  ;;  %10249 = vpow2.f32 %v2096_v42  ;;  %v2151_v6 = vrot.slane %v10246_v50, 5  ;;  %v11997_v50 = vld [vmem:[%s16285_s1 + $0x70] sm:$0xff] }
 0x239   :  { %v1887_v16 = vpop.f32.mrf.mxu2  ;;  %9517 = vmatmul.msk.f32.vlgmr.msra.gmra.mxu2 %vm113_vm2, %v11849_v51  ;;  %9526 = vmatmul.msk.f32.vlgmr.msra.gmra.mxu3 %vm113_vm2, %v11849_v51  ;;  %v2334_v25 = vsel %vm80_vm0, %v2286_v13, 1.0  ;;  %v2335_v22 = vsel %vm80_vm0, %v2287_v1, 1.0 }
 0x23a   :  { %v11874_v4 = vadd.f32 %v1887_v16, %v11709_v5  ;;  %v1907_v23 = vpop.f32.mrf.mxu3  ;;  %9534 = vmatpush.msk.msrb.mxu0 %vm138_vm1, %v2332_v32  ;;  %9543 = vmatpush.msk.msrb.mxu1 %vm138_vm1, %v2333_v62  ;;  %v2176_v12 = vsel %vm2164_vm4, %v2150_v9, %v2151_v6 }
 0x23b   :  { %v11880_v55 = vadd.f32 %v1907_v23, %v11709_v5  ;;  %9552 = vmatpush.msk.msrb.mxu2 %vm138_vm1, %v2334_v25  ;;  %9561 = vmatpush.msk.msrb.mxu3 %vm138_vm1, %v2335_v22  ;;  %v11961_v22 = vld [vmem:[%s16285_s1 + $0x60] sm:$0xff] }
 0x23c   :  { %16687 = vst [vmem:[#allocation24_spill] sm:$0xff] %v11874_v4  ;;  %v2098_v34 = vmul.f32 1.442695, %v11874_v4 }
 0x23d   :  { %16688 = vst [vmem:[#allocation27_spill] sm:$0xff] %v11880_v55  ;;  %v2100_v63 = vmul.f32 1.442695, %v11880_v55  ;;  %v10248_v17 = vpop.eup %10247 }
 0x23e   :  { %2235 = vst [vmem:[#allocation1 + $0x36] sm:$0xff] %v11874_v4  ;;  %10251 = vpow2.f32 %v2098_v34  ;;  %v10250_v53 = vpop.eup %10249  ;;  %v2152_v35 = vrot.slane %v10248_v17, 4  ;;  %v12010_v17 = vld [vmem:[%s16285_s1 + $0x78] sm:$0xff] }
 0x23f   :  { %2236 = vst [vmem:[#allocation1 + $0x3f] sm:$0xff] %v11880_v55  ;;  %10253 = vpow2.f32 %v2100_v63  ;;  %v2153_v26 = vrot.slane %v10250_v53, 3 }
 0x240   :  { %9500 = vmatmul.msk.f32.gmra.mxu0 %vm113_vm2, %v11892_v33  ;;  %9509 = vmatmul.msk.f32.gmra.mxu1 %vm113_vm2, %v11892_v33  ;;  %10255 = vpow2.f32 %v2086_v47 }
 0x241   :  { %9518 = vmatmul.msk.f32.gmra.mxu2 %vm113_vm2, %v11892_v33  ;;  %9527 = vmatmul.msk.f32.gmra.mxu3 %vm113_vm2, %v11892_v33  ;;  %v2178_v48 = vsel %vm2167_vm5, %v2152_v35, %v2153_v26 }
 0x244   :  { %v10252_v41 = vpop.eup %10251 }
 0x245   :  { %v10254_v44 = vpop.eup %10253  ;;  %v2154_v7 = vrot.slane %v10252_v41, 2 }
 0x246   :  { %v2155_v31 = vrot.slane %v10254_v44, 1  ;;  %v10256_v39 = vpop.eup %10255  ;;  %v2237_v11 = vld [vmem:[#allocation1 + $0x1] ss:$9 sm:$0xff] }
 0x247   :  { %v2175_v43 = vsel %vm80_vm0, %v10256_v39, %v2149_v20 }
 0x248   :  { %v2179_v40 = vsel %vm2169_vm6, %v2154_v7, %v2155_v31  ;;  %9501 = vmatmul.msk.f32.gmra.mxu0 %vm113_vm2, %v11905_v52  ;;  %9510 = vmatmul.msk.f32.gmra.mxu1 %vm113_vm2, %v11905_v52  ;;  %v2177_v18 = vsel %vm138_vm1, %v2175_v43, %v2176_v12 }
 0x249   :  { %v2180_v29 = vsel %vm2171_vm7, %v2178_v48, %v2179_v40  ;;  %9519 = vmatmul.msk.f32.gmra.mxu2 %vm113_vm2, %v11905_v52  ;;  %9528 = vmatmul.msk.f32.gmra.mxu3 %vm113_vm2, %v11905_v52 }
 0x24a   :  { %v2181_v38 = vsel %vm2173_vm8, %v2177_v18, %v2180_v29 }
 0x24b   :  { %v2193_v56 = vmul.f32 %v9256_v2, %v2181_v38 }
 0x24d   :  { %v11925_v46 = vadd.f32 %v2237_v11, %v2193_v56 }
 0x24f   :  { %16689 = vst [vmem:[#allocation25_spill] sm:$0xff] %v11925_v46  ;;  %v2288_v36 = vperm.slane %v11925_v46, 0  ;;  %v2289_v24 = vperm.slane %v11925_v46, 1  ;;  %v2290_v0 = vperm.slane %v11925_v46, 2  ;;  %v2291_v49 = vperm.slane %v11925_v46, 3 }
 0x250   :  { %9502 = vmatmul.msk.f32.gmra.mxu0 %vm113_vm2, %v11930_v60  ;;  %9511 = vmatmul.msk.f32.gmra.mxu1 %vm113_vm2, %v11930_v60  ;;  %v2292_v53 = vperm.slane %v11925_v46, 4  ;;  %v2293_v9 = vperm.slane %v11925_v46, 5  ;;  %v2294_v6 = vperm.slane %v11925_v46, 6  ;;  %v2295_v41 = vperm.slane %v11925_v46, 7 }
 0x251   :  { %v2336_v42 = vsel %vm80_vm0, %v2288_v36, 1.0  ;;  %v2337_v32 = vsel %vm80_vm0, %v2289_v24, 1.0  ;;  %v2338_v62 = vsel %vm80_vm0, %v2290_v0, 1.0  ;;  %v2339_v13 = vsel %vm80_vm0, %v2291_v49, 1.0  ;;  %9520 = vmatmul.msk.f32.gmra.mxu2 %vm113_vm2, %v11930_v60  ;;  %9529 = vmatmul.msk.f32.gmra.mxu3 %vm113_vm2, %v11930_v60 }
 0x252   :  { %9570 = vmatpush.msk.msra.mxu0 %vm138_vm1, %v2336_v42  ;;  %9579 = vmatpush.msk.msra.mxu1 %vm138_vm1, %v2337_v32  ;;  %v1927_v1 = vpop.f32.mrf.mxu0  ;;  %v1947_v16 = vpop.f32.mrf.mxu1  ;;  %v2340_v20 = vsel %vm80_vm0, %v2292_v53, 1.0  ;;  %v2341_v35 = vsel %vm80_vm0, %v2293_v9, 1.0  ;;  %v2342_v26 = vsel %vm80_vm0, %v2294_v6, 1.0  ;;  %v2343_v44 = vsel %vm80_vm0, %v2295_v41, 1.0 }
 0x253   :  { %9588 = vmatpush.msk.msra.mxu2 %vm138_vm1, %v2338_v62  ;;  %9597 = vmatpush.msk.msra.mxu3 %vm138_vm1, %v2339_v13  ;;  %v11953_v25 = vadd.f32 %v1927_v1, %v11709_v5  ;;  %v11956_v23 = vadd.f32 %v1947_v16, %v11709_v5 }
 0x255   :  { %16690 = vst [vmem:[#allocation5_spill] sm:$0xff] %v11953_v25  ;;  %v2104_v43 = vmul.f32 1.442695, %v11956_v23  ;;  %v2102_v49 = vmul.f32 1.442695, %v11953_v25 }
 0x256   :  { %16691 = vst [vmem:[#allocation28_spill] sm:$0xff] %v11956_v23 }
 0x257   :  { %2238 = vst [vmem:[#allocation1] sm:$0xff] %v11953_v25  ;;  %10257 = vpow2.f32 %v2104_v43 }
 0x258   :  { %2239 = vst [vmem:[#allocation1 + $0x9] sm:$0xff] %v11956_v23  ;;  %9503 = vmatmul.msk.f32.gmra.mxu0 %vm113_vm2, %v11961_v22  ;;  %9512 = vmatmul.msk.f32.gmra.mxu1 %vm113_vm2, %v11961_v22 }
 0x259   :  { %9521 = vmatmul.msk.f32.gmra.mxu2 %vm113_vm2, %v11961_v22  ;;  %9530 = vmatmul.msk.f32.gmra.mxu3 %vm113_vm2, %v11961_v22 }
 0x25d   :  { %v10258_v0 = vpop.eup %10257 }
 0x25e   :  { %v1967_v34 = vpop.f32.mrf.mxu2  ;;  %v1987_v47 = vpop.f32.mrf.mxu3 }
 0x25f   :  { %v11979_v63 = vadd.f32 %v1967_v34, %v11709_v5  ;;  %v11982_v30 = vadd.f32 %v1987_v47, %v11709_v5  ;;  %v2156_v34 = vrot.slane %v10258_v0, 7 }
 0x260   :  { %9504 = vmatmul.msk.f32.gmra.mxu0 %vm113_vm2, %v11976_v37  ;;  %9513 = vmatmul.msk.f32.gmra.mxu1 %vm113_vm2, %v11976_v37 }
 0x261   :  { %16692 = vst [vmem:[#allocation34_spill] sm:$0xff] %v11979_v63  ;;  %9522 = vmatmul.msk.f32.gmra.mxu2 %vm113_vm2, %v11976_v37  ;;  %9531 = vmatmul.msk.f32.gmra.mxu3 %vm113_vm2, %v11976_v37  ;;  %v2106_v48 = vmul.f32 1.442695, %v11979_v63  ;;  %v2108_v2 = vmul.f32 1.442695, %v11982_v30 }
 0x262   :  { %16693 = vst [vmem:[#allocation29_spill] sm:$0xff] %v11982_v30 }
 0x263   :  { %2240 = vst [vmem:[#allocation1 + $0x12] sm:$0xff] %v11979_v63  ;;  %10259 = vpow2.f32 %v2106_v48 }
 0x264   :  { %2241 = vst [vmem:[#allocation1 + $0x1b] sm:$0xff] %v11982_v30  ;;  %10261 = vpow2.f32 %v2108_v2 }
 0x268   :  { %9505 = vmatmul.msk.f32.gmra.mxu0 %vm113_vm2, %v11997_v50  ;;  %9514 = vmatmul.msk.f32.gmra.mxu1 %vm113_vm2, %v11997_v50 }
 0x269   :  { %9523 = vmatmul.msk.f32.gmra.mxu2 %vm113_vm2, %v11997_v50  ;;  %9532 = vmatmul.msk.f32.gmra.mxu3 %vm113_vm2, %v11997_v50  ;;  %v10260_v42 = vpop.eup %10259 }
 0x26a   :  { %v10262_v32 = vpop.eup %10261  ;;  %v2157_v13 = vrot.slane %v10260_v42, 6 }
 0x26b   :  { %v2158_v1 = vrot.slane %v10262_v32, 5 }
 0x26d   :  { %v2183_v41 = vsel %vm2164_vm4, %v2157_v13, %v2158_v1 }
 0x270   :  { %9506 = vmatmul.msk.f32.gmra.mxu0 %vm113_vm2, %v12010_v17  ;;  %9515 = vmatmul.msk.f32.gmra.mxu1 %vm113_vm2, %v12010_v17 }
 0x271   :  { %9524 = vmatmul.msk.f32.gmra.mxu2 %vm113_vm2, %v12010_v17  ;;  %9533 = vmatmul.msk.f32.gmra.mxu3 %vm113_vm2, %v12010_v17 }
 0x278   :  { %9535 = vmatmul.msk.f32.vlgmr.msrb.gmra.mxu0 %vm113_vm2, %v11849_v51  ;;  %9544 = vmatmul.msk.f32.vlgmr.msrb.gmra.mxu1 %vm113_vm2, %v11849_v51 }
 0x279   :  { %9553 = vmatmul.msk.f32.vlgmr.msrb.gmra.mxu2 %vm113_vm2, %v11849_v51  ;;  %9562 = vmatmul.msk.f32.vlgmr.msrb.gmra.mxu3 %vm113_vm2, %v11849_v51 }
 0x27a   :  { %9606 = vmatpush.msk.msrb.mxu0 %vm138_vm1, %v2340_v20  ;;  %9615 = vmatpush.msk.msrb.mxu1 %vm138_vm1, %v2341_v35 }
 0x27b   :  { %9624 = vmatpush.msk.msrb.mxu2 %vm138_vm1, %v2342_v26  ;;  %9633 = vmatpush.msk.msrb.mxu3 %vm138_vm1, %v2343_v44 }
 0x280   :  { %9536 = vmatmul.msk.f32.gmra.mxu0 %vm113_vm2, %v11892_v33  ;;  %9545 = vmatmul.msk.f32.gmra.mxu1 %vm113_vm2, %v11892_v33 }
 0x281   :  { %9554 = vmatmul.msk.f32.gmra.mxu2 %vm113_vm2, %v11892_v33  ;;  %9563 = vmatmul.msk.f32.gmra.mxu3 %vm113_vm2, %v11892_v33 }
 0x288   :  { %9537 = vmatmul.msk.f32.gmra.mxu0 %vm113_vm2, %v11905_v52  ;;  %9546 = vmatmul.msk.f32.gmra.mxu1 %vm113_vm2, %v11905_v52 }
 0x289   :  { %9555 = vmatmul.msk.f32.gmra.mxu2 %vm113_vm2, %v11905_v52  ;;  %9564 = vmatmul.msk.f32.gmra.mxu3 %vm113_vm2, %v11905_v52 }
 0x290   :  { %9538 = vmatmul.msk.f32.gmra.mxu0 %vm113_vm2, %v11930_v60  ;;  %9547 = vmatmul.msk.f32.gmra.mxu1 %vm113_vm2, %v11930_v60 }
 0x291   :  { %9556 = vmatmul.msk.f32.gmra.mxu2 %vm113_vm2, %v11930_v60  ;;  %9565 = vmatmul.msk.f32.gmra.mxu3 %vm113_vm2, %v11930_v60 }
 0x296   :  { %v2007_v7 = vpop.f32.mrf.mxu0  ;;  %v2027_v12 = vpop.f32.mrf.mxu1 }
 0x297   :  { %v12065_v31 = vadd.f32 %v2007_v7, %v11709_v5  ;;  %v12068_v39 = vadd.f32 %v2027_v12, %v11709_v5  ;;  %v9257_v7 = vld [vmem:[%s16284_s0 + $0x21] ss:$2 sm:$0xff] }
 0x298   :  { %9539 = vmatmul.msk.f32.gmra.mxu0 %vm113_vm2, %v11961_v22  ;;  %9548 = vmatmul.msk.f32.gmra.mxu1 %vm113_vm2, %v11961_v22 }
 0x299   :  { %16694 = vst [vmem:[#allocation35_spill] sm:$0xff] %v12065_v31  ;;  %9557 = vmatmul.msk.f32.gmra.mxu2 %vm113_vm2, %v11961_v22  ;;  %9566 = vmatmul.msk.f32.gmra.mxu3 %vm113_vm2, %v11961_v22  ;;  %v2110_v40 = vmul.f32 1.442695, %v12065_v31  ;;  %v2112_v18 = vmul.f32 1.442695, %v12068_v39 }
 0x29a   :  { %16695 = vst [vmem:[#allocation30_spill] sm:$0xff] %v12068_v39 }
 0x29b   :  { %2242 = vst [vmem:[#allocation1 + $0x24] sm:$0xff] %v12065_v31  ;;  %10263 = vpow2.f32 %v2110_v40 }
 0x29c   :  { %2243 = vst [vmem:[#allocation1 + $0x2d] sm:$0xff] %v12068_v39  ;;  %10265 = vpow2.f32 %v2112_v18 }
 0x2a0   :  { %9540 = vmatmul.msk.f32.gmra.mxu0 %vm113_vm2, %v11976_v37  ;;  %9549 = vmatmul.msk.f32.gmra.mxu1 %vm113_vm2, %v11976_v37 }
 0x2a1   :  { %9558 = vmatmul.msk.f32.gmra.mxu2 %vm113_vm2, %v11976_v37  ;;  %9567 = vmatmul.msk.f32.gmra.mxu3 %vm113_vm2, %v11976_v37 }
 0x2a2   :  { %v2047_v29 = vpop.f32.mrf.mxu2  ;;  %v2067_v38 = vpop.f32.mrf.mxu3 }
 0x2a3   :  { %v12094_v56 = vadd.f32 %v2047_v29, %v11709_v5  ;;  %v12097_v11 = vadd.f32 %v2067_v38, %v11709_v5  ;;  %v10264_v5 = vpop.eup %10263 }
 0x2a4   :  { %v10266_v62 = vpop.eup %10265  ;;  %v2159_v47 = vrot.slane %v10264_v5, 4 }
 0x2a5   :  { %16696 = vst [vmem:[#allocation26_spill] sm:$0xff] %v12094_v56  ;;  %v2114_v36 = vmul.f32 1.442695, %v12094_v56  ;;  %v2116_v24 = vmul.f32 1.442695, %v12097_v11  ;;  %v2160_v53 = vrot.slane %v10266_v62, 3 }
 0x2a6   :  { %16697 = vst [vmem:[#allocation10_spill] sm:$0xff] %v12097_v11 }
 0x2a7   :  { %2244 = vst [vmem:[#allocation1 + $0x36] sm:$0xff] %v12094_v56  ;;  %10267 = vpow2.f32 %v2114_v36  ;;  %v2185_v44 = vsel %vm2167_vm5, %v2159_v47, %v2160_v53 }
 0x2a8   :  { %2245 = vst [vmem:[#allocation1 + $0x3f] sm:$0xff] %v12097_v11  ;;  %10269 = vpow2.f32 %v2116_v24  ;;  %9541 = vmatmul.msk.f32.gmra.mxu0 %vm113_vm2, %v11997_v50  ;;  %9550 = vmatmul.msk.f32.gmra.mxu1 %vm113_vm2, %v11997_v50 }
 0x2a9   :  { %9559 = vmatmul.msk.f32.gmra.mxu2 %vm113_vm2, %v11997_v50  ;;  %9568 = vmatmul.msk.f32.gmra.mxu3 %vm113_vm2, %v11997_v50  ;;  %10271 = vpow2.f32 %v2102_v49 }
 0x2ad   :  { %v10268_v16 = vpop.eup %10267 }
 0x2ae   :  { %v10270_v9 = vpop.eup %10269  ;;  %v2161_v6 = vrot.slane %v10268_v16, 2 }
 0x2af   :  { %v2162_v20 = vrot.slane %v10270_v9, 1  ;;  %v10272_v35 = vpop.eup %10271  ;;  %v2246_v18 = vld [vmem:[#allocation1 + $0x1] ss:$9 sm:$0xff] }
 0x2b0   :  { %9542 = vmatmul.msk.f32.gmra.mxu0 %vm113_vm2, %v12010_v17  ;;  %9551 = vmatmul.msk.f32.gmra.mxu1 %vm113_vm2, %v12010_v17  ;;  %v2182_v26 = vsel %vm80_vm0, %v10272_v35, %v2156_v34 }
 0x2b1   :  { %v2186_v12 = vsel %vm2169_vm6, %v2161_v6, %v2162_v20  ;;  %9560 = vmatmul.msk.f32.gmra.mxu2 %vm113_vm2, %v12010_v17  ;;  %9569 = vmatmul.msk.f32.gmra.mxu3 %vm113_vm2, %v12010_v17  ;;  %v2184_v43 = vsel %vm138_vm1, %v2182_v26, %v2183_v41 }
 0x2b2   :  { %v2187_v48 = vsel %vm2171_vm7, %v2185_v44, %v2186_v12 }
 0x2b3   :  { %v2188_v2 = vsel %vm2173_vm8, %v2184_v43, %v2187_v48 }
 0x2b4   :  { %v2194_v40 = vmul.f32 %v9257_v7, %v2188_v2 }
 0x2b5   :  { %v12130_v29 = vpop.f32.mrf.mxu0  ;;  %v12132_v38 = vpop.f32.mrf.mxu1 }
 0x2b6   :  { %v12134_v36 = vadd.f32 %v2246_v18, %v2194_v40 }
 0x2b8   :  { %16698 = vst [vmem:[#allocation11_spill] sm:$0xff] %v12134_v36  ;;  %9571 = vmatmul.msk.f32.vlgmr.msra.gmra.mxu0 %vm113_vm2, %v11849_v51  ;;  %9580 = vmatmul.msk.f32.vlgmr.msra.gmra.mxu1 %vm113_vm2, %v11849_v51  ;;  %v2296_v24 = vperm.slane %v12134_v36, 0  ;;  %v2297_v0 = vperm.slane %v12134_v36, 1  ;;  %v2298_v49 = vperm.slane %v12134_v36, 2  ;;  %v2299_v42 = vperm.slane %v12134_v36, 3 }
 0x2b9   :  { %9589 = vmatmul.msk.f32.vlgmr.msra.gmra.mxu2 %vm113_vm2, %v11849_v51  ;;  %9598 = vmatmul.msk.f32.vlgmr.msra.gmra.mxu3 %vm113_vm2, %v11849_v51  ;;  %v2300_v63 = vperm.slane %v12134_v36, 4  ;;  %v2301_v23 = vperm.slane %v12134_v36, 5  ;;  %v2302_v25 = vperm.slane %v12134_v36, 6  ;;  %v2303_v46 = vperm.slane %v12134_v36, 7 }
 0x2ba   :  { %v2344_v32 = vsel %vm80_vm0, %v2296_v24, 1.0  ;;  %v2345_v5 = vsel %vm80_vm0, %v2297_v0, 1.0  ;;  %v2346_v62 = vsel %vm80_vm0, %v2298_v49, 1.0  ;;  %v2347_v13 = vsel %vm80_vm0, %v2299_v42, 1.0 }
 0x2bb   :  { %9642 = vmatpush.msk.msra.mxu0 %vm138_vm1, %v2344_v32  ;;  %9651 = vmatpush.msk.msra.mxu1 %vm138_vm1, %v2345_v5  ;;  %v2348_v55 = vsel %vm80_vm0, %v2300_v63, 1.0  ;;  %v2349_v4 = vsel %vm80_vm0, %v2301_v23, 1.0  ;;  %v2350_v36 = vsel %vm80_vm0, %v2302_v25, 1.0  ;;  %v2351_v61 = vsel %vm80_vm0, %v2303_v46, 1.0 }
 0x2bc   :  { %v12154_v1 = vpop.f32.mrf.mxu2  ;;  %v12156_v16 = vpop.f32.mrf.mxu3  ;;  %9660 = vmatpush.msk.msra.mxu2 %vm138_vm1, %v2346_v62  ;;  %9669 = vmatpush.msk.msra.mxu3 %vm138_vm1, %v2347_v13 }
 0x2bd   :  { %v12160_v34 = vpop.f32.mrf.mxu0  ;;  %v12162_v47 = vpop.f32.mrf.mxu1 }
 0x2c0   :  { %9572 = vmatmul.msk.f32.gmra.mxu0 %vm113_vm2, %v11892_v33  ;;  %9581 = vmatmul.msk.f32.gmra.mxu1 %vm113_vm2, %v11892_v33 }
 0x2c1   :  { %9590 = vmatmul.msk.f32.gmra.mxu2 %vm113_vm2, %v11892_v33  ;;  %9599 = vmatmul.msk.f32.gmra.mxu3 %vm113_vm2, %v11892_v33 }
 0x2c4   :  { %v12172_v53 = vpop.f32.mrf.mxu2  ;;  %v12174_v9 = vpop.f32.mrf.mxu3 }
 0x2c5   :  { %v12176_v6 = vpop.f32.mrf.mxu0  ;;  %v12178_v41 = vpop.f32.mrf.mxu1 }
 0x2c8   :  { %9573 = vmatmul.msk.f32.gmra.mxu0 %vm113_vm2, %v11905_v52  ;;  %9582 = vmatmul.msk.f32.gmra.mxu1 %vm113_vm2, %v11905_v52 }
 0x2c9   :  { %9591 = vmatmul.msk.f32.gmra.mxu2 %vm113_vm2, %v11905_v52  ;;  %9600 = vmatmul.msk.f32.gmra.mxu3 %vm113_vm2, %v11905_v52 }
 0x2cc   :  { %v12188_v20 = vpop.f32.mrf.mxu2  ;;  %v12190_v35 = vpop.f32.mrf.mxu3 }
 0x2cd   :  { %v12192_v26 = vpop.f32.mrf.mxu0  ;;  %v12194_v44 = vpop.f32.mrf.mxu1 }
 0x2d0   :  { %9574 = vmatmul.msk.f32.gmra.mxu0 %vm113_vm2, %v11930_v60  ;;  %9583 = vmatmul.msk.f32.gmra.mxu1 %vm113_vm2, %v11930_v60 }
 0x2d1   :  { %9592 = vmatmul.msk.f32.gmra.mxu2 %vm113_vm2, %v11930_v60  ;;  %9601 = vmatmul.msk.f32.gmra.mxu3 %vm113_vm2, %v11930_v60 }
 0x2d4   :  { %v12204_v7 = vpop.f32.mrf.mxu2  ;;  %v12206_v12 = vpop.f32.mrf.mxu3 }
 0x2d5   :  { %v12208_v43 = vpop.f32.mrf.mxu0  ;;  %v12210_v48 = vpop.f32.mrf.mxu1 }
 0x2d8   :  { %9575 = vmatmul.msk.f32.gmra.mxu0 %vm113_vm2, %v11961_v22  ;;  %9584 = vmatmul.msk.f32.gmra.mxu1 %vm113_vm2, %v11961_v22 }
 0x2d9   :  { %9593 = vmatmul.msk.f32.gmra.mxu2 %vm113_vm2, %v11961_v22  ;;  %9602 = vmatmul.msk.f32.gmra.mxu3 %vm113_vm2, %v11961_v22 }
 0x2dc   :  { %v12220_v2 = vpop.f32.mrf.mxu2  ;;  %v12222_v40 = vpop.f32.mrf.mxu3 }
 0x2dd   :  { %v12224_v18 = vpop.f32.mrf.mxu0  ;;  %v12226_v24 = vpop.f32.mrf.mxu1 }
 0x2e0   :  { %9576 = vmatmul.msk.f32.gmra.mxu0 %vm113_vm2, %v11976_v37  ;;  %9585 = vmatmul.msk.f32.gmra.mxu1 %vm113_vm2, %v11976_v37 }
 0x2e1   :  { %9594 = vmatmul.msk.f32.gmra.mxu2 %vm113_vm2, %v11976_v37  ;;  %9603 = vmatmul.msk.f32.gmra.mxu3 %vm113_vm2, %v11976_v37 }
 0x2e4   :  { %v12236_v0 = vpop.f32.mrf.mxu2  ;;  %v12238_v49 = vpop.f32.mrf.mxu3 }
 0x2e5   :  { %v12240_v42 = vpop.f32.mrf.mxu0  ;;  %v12242_v32 = vpop.f32.mrf.mxu1 }
 0x2e8   :  { %9577 = vmatmul.msk.f32.gmra.mxu0 %vm113_vm2, %v11997_v50  ;;  %9586 = vmatmul.msk.f32.gmra.mxu1 %vm113_vm2, %v11997_v50 }
 0x2e9   :  { %9595 = vmatmul.msk.f32.gmra.mxu2 %vm113_vm2, %v11997_v50  ;;  %9604 = vmatmul.msk.f32.gmra.mxu3 %vm113_vm2, %v11997_v50 }
 0x2ec   :  { %v12252_v5 = vpop.f32.mrf.mxu2  ;;  %v12254_v62 = vpop.f32.mrf.mxu3 }
 0x2ed   :  { %v12256_v13 = vpop.f32.mrf.mxu0  ;;  %v12258_v11 = vpop.f32.mrf.mxu1 }
 0x2f0   :  { %9578 = vmatmul.msk.f32.gmra.mxu0 %vm113_vm2, %v12010_v17  ;;  %9587 = vmatmul.msk.f32.gmra.mxu1 %vm113_vm2, %v12010_v17 }
 0x2f1   :  { %9596 = vmatmul.msk.f32.gmra.mxu2 %vm113_vm2, %v12010_v17  ;;  %9605 = vmatmul.msk.f32.gmra.mxu3 %vm113_vm2, %v12010_v17 }
 0x2f4   :  { %v12268_v56 = vpop.f32.mrf.mxu2  ;;  %v12270_v39 = vpop.f32.mrf.mxu3 }
 0x2f5   :  { %v12272_v31 = vpop.f32.mrf.mxu0  ;;  %v12274_v30 = vpop.f32.mrf.mxu1 }
 0x2f6   :  { %16699 = vst [vmem:[#allocation14_spill] sm:$0xff] %v12272_v31 }
 0x2f7   :  { %16700 = vst [vmem:[#allocation15_spill] sm:$0xff] %v12274_v30 }
 0x2f8   :  { %9607 = vmatmul.msk.f32.vlgmr.msrb.gmra.mxu0 %vm113_vm2, %v11849_v51  ;;  %9616 = vmatmul.msk.f32.vlgmr.msrb.gmra.mxu1 %vm113_vm2, %v11849_v51 }
 0x2f9   :  { %9625 = vmatmul.msk.f32.vlgmr.msrb.gmra.mxu2 %vm113_vm2, %v11849_v51  ;;  %9634 = vmatmul.msk.f32.vlgmr.msrb.gmra.mxu3 %vm113_vm2, %v11849_v51 }
 0x2fa   :  { %9678 = vmatpush.msk.msrb.mxu0 %vm138_vm1, %v2348_v55  ;;  %9687 = vmatpush.msk.msrb.mxu1 %vm138_vm1, %v2349_v4 }
 0x2fb   :  { %9696 = vmatpush.msk.msrb.mxu2 %vm138_vm1, %v2350_v36  ;;  %9705 = vmatpush.msk.msrb.mxu3 %vm138_vm1, %v2351_v61 }
 0x2fc   :  { %v12296_v14 = vpop.f32.mrf.mxu2  ;;  %v12298_v59 = vpop.f32.mrf.mxu3 }
 0x2fd   :  { %16701 = vst [vmem:[#allocation16_spill] sm:$0xff] %v12296_v14  ;;  %v12300_v21 = vpop.f32.mrf.mxu0  ;;  %v12302_v63 = vpop.f32.mrf.mxu1 }
 0x2fe   :  { %16702 = vst [vmem:[#allocation17_spill] sm:$0xff] %v12298_v59 }
 0x2ff   :  { %16703 = vst [vmem:[#allocation36_spill] sm:$0xff] %v12300_v21  ;;  %v3609_v21 = vmul.f32 0.01, %v12258_v11 }
 0x300   :  { %16704 = vst [vmem:[#allocation37_spill] sm:$0xff] %v12302_v63  ;;  %9608 = vmatmul.msk.f32.gmra.mxu0 %vm113_vm2, %v11892_v33  ;;  %9617 = vmatmul.msk.f32.gmra.mxu1 %vm113_vm2, %v11892_v33  ;;  %v3608_v63 = vmul.f32 0.01, %v12256_v13 }
 0x301   :  { %9626 = vmatmul.msk.f32.gmra.mxu2 %vm113_vm2, %v11892_v33  ;;  %9635 = vmatmul.msk.f32.gmra.mxu3 %vm113_vm2, %v11892_v33 }
 0x304   :  { %v12312_v61 = vpop.f32.mrf.mxu2  ;;  %v12314_v4 = vpop.f32.mrf.mxu3 }
 0x305   :  { %16705 = vst [vmem:[#allocation38_spill] sm:$0xff] %v12312_v61  ;;  %v12316_v55 = vpop.f32.mrf.mxu0  ;;  %v12318_v46 = vpop.f32.mrf.mxu1 }
 0x306   :  { %16706 = vst [vmem:[#allocation39_spill] sm:$0xff] %v12314_v4 }
 0x307   :  { %16707 = vst [vmem:[#allocation40_spill] sm:$0xff] %v12316_v55  ;;  %v3611_v55 = vmul.f32 0.01, %v12270_v39 }
 0x308   :  { %16708 = vst [vmem:[#allocation41_spill] sm:$0xff] %v12318_v46  ;;  %9609 = vmatmul.msk.f32.gmra.mxu0 %vm113_vm2, %v11905_v52  ;;  %9618 = vmatmul.msk.f32.gmra.mxu1 %vm113_vm2, %v11905_v52  ;;  %v3610_v46 = vmul.f32 0.01, %v12268_v56 }
 0x309   :  { %9627 = vmatmul.msk.f32.gmra.mxu2 %vm113_vm2, %v11905_v52  ;;  %9636 = vmatmul.msk.f32.gmra.mxu3 %vm113_vm2, %v11905_v52 }
 0x30c   :  { %v12328_v25 = vpop.f32.mrf.mxu2  ;;  %v12330_v23 = vpop.f32.mrf.mxu3 }
 0x30d   :  { %16709 = vst [vmem:[#allocation42_spill] sm:$0xff] %v12328_v25  ;;  %v12332_v36 = vpop.f32.mrf.mxu0  ;;  %v12334_v3 = vpop.f32.mrf.mxu1 }
 0x30e   :  { %16710 = vst [vmem:[#allocation43_spill] sm:$0xff] %v12330_v23 }
 0x30f   :  { %16711 = vst [vmem:[#allocation44_spill] sm:$0xff] %v12332_v36  ;;  %v3585_v36 = vmul.f32 0.01, %v12242_v32 }
 0x310   :  { %16712 = vst [vmem:[#allocation45_spill] sm:$0xff] %v12334_v3  ;;  %9610 = vmatmul.msk.f32.gmra.mxu0 %vm113_vm2, %v11930_v60  ;;  %9619 = vmatmul.msk.f32.gmra.mxu1 %vm113_vm2, %v11930_v60  ;;  %v3584_v3 = vmul.f32 0.01, %v12240_v42 }
 0x311   :  { %9628 = vmatmul.msk.f32.gmra.mxu2 %vm113_vm2, %v11930_v60  ;;  %9637 = vmatmul.msk.f32.gmra.mxu3 %vm113_vm2, %v11930_v60 }
 0x314   :  { %v12344_v28 = vpop.f32.mrf.mxu2  ;;  %v12346_v58 = vpop.f32.mrf.mxu3 }
 0x315   :  { %16713 = vst [vmem:[#allocation46_spill] sm:$0xff] %v12344_v28  ;;  %v12348_v19 = vpop.f32.mrf.mxu0  ;;  %v12350_v10 = vpop.f32.mrf.mxu1 }
 0x316   :  { %16714 = vst [vmem:[#allocation47_spill] sm:$0xff] %v12346_v58 }
 0x317   :  { %16715 = vst [vmem:[#allocation48_spill] sm:$0xff] %v12348_v19  ;;  %v3561_v19 = vmul.f32 0.01, %v12226_v24 }
 0x318   :  { %16716 = vst [vmem:[#allocation49_spill] sm:$0xff] %v12350_v10  ;;  %9611 = vmatmul.msk.f32.gmra.mxu0 %vm113_vm2, %v11961_v22  ;;  %9620 = vmatmul.msk.f32.gmra.mxu1 %vm113_vm2, %v11961_v22  ;;  %v3560_v10 = vmul.f32 0.01, %v12224_v18 }
 0x319   :  { %9629 = vmatmul.msk.f32.gmra.mxu2 %vm113_vm2, %v11961_v22  ;;  %9638 = vmatmul.msk.f32.gmra.mxu3 %vm113_vm2, %v11961_v22 }
 0x31c   :  { %v12360_v15 = vpop.f32.mrf.mxu2  ;;  %v12362_v57 = vpop.f32.mrf.mxu3 }
 0x31d   :  { %16717 = vst [vmem:[#allocation50_spill] sm:$0xff] %v12360_v15  ;;  %v12364_v54 = vpop.f32.mrf.mxu0  ;;  %v12366_v45 = vpop.f32.mrf.mxu1  ;;  %v3587_v15 = vmul.f32 0.01, %v12254_v62 }
 0x31e   :  { %16718 = vst [vmem:[#allocation51_spill] sm:$0xff] %v12362_v57  ;;  %v3586_v57 = vmul.f32 0.01, %v12252_v5 }
 0x31f   :  { %16719 = vst [vmem:[#allocation52_spill] sm:$0xff] %v12364_v54  ;;  %v3803_v54 = vmax.f32 %v12270_v39, %v3611_v55  ;;  %v3539_v39 = vmul.f32 0.01, %v12222_v40 }
 0x320   :  { %16720 = vst [vmem:[#allocation53_spill] sm:$0xff] %v12366_v45  ;;  %9612 = vmatmul.msk.f32.gmra.mxu0 %vm113_vm2, %v11976_v37  ;;  %9621 = vmatmul.msk.f32.gmra.mxu1 %vm113_vm2, %v11976_v37  ;;  %v3802_v45 = vmax.f32 %v12268_v56, %v3610_v46  ;;  %v3538_v56 = vmul.f32 0.01, %v12220_v2  ;;  %v3778_v55 = vmax.f32 %v12252_v5, %v3586_v57  ;;  %v3466_v5 = vmul.f32 0.01, %v12172_v53 }
 0x321   :  { %9630 = vmatmul.msk.f32.gmra.mxu2 %vm113_vm2, %v11976_v37  ;;  %9639 = vmatmul.msk.f32.gmra.mxu3 %vm113_vm2, %v11976_v37  ;;  %v3779_v46 = vmax.f32 %v12254_v62, %v3587_v15  ;;  %v3513_v15 = vmul.f32 0.01, %v12194_v44  ;;  %v3467_v62 = vmul.f32 0.01, %v12174_v9 }
 0x324   :  { %v12376_v27 = vpop.f32.mrf.mxu2  ;;  %v12378_v8 = vpop.f32.mrf.mxu3 }
 0x325   :  { %16721 = vst [vmem:[#allocation54_spill] sm:$0xff] %v12376_v27  ;;  %v12380_v59 = vpop.f32.mrf.mxu0  ;;  %v12382_v14 = vpop.f32.mrf.mxu1  ;;  %v3801_v27 = vmax.f32 %v12258_v11, %v3609_v21  ;;  %v3536_v21 = vmul.f32 0.01, %v12208_v43  ;;  %v3537_v11 = vmul.f32 0.01, %v12210_v48 }
 0x326   :  { %16722 = vst [vmem:[#allocation55_spill] sm:$0xff] %v12378_v8  ;;  %v3800_v8 = vmax.f32 %v12256_v13, %v3608_v63  ;;  %v3776_v13 = vmax.f32 %v12240_v42, %v3584_v3  ;;  %v3777_v63 = vmax.f32 %v12242_v32, %v3585_v36  ;;  %v3705_v32 = vmax.f32 %v12194_v44, %v3513_v15 }
 0x327   :  { %v3441_v44 = vmul.f32 0.01, %v12132_v38 }
 0x328   :  { %9613 = vmatmul.msk.f32.gmra.mxu0 %vm113_vm2, %v11997_v50  ;;  %9622 = vmatmul.msk.f32.gmra.mxu1 %vm113_vm2, %v11997_v50 }
 0x329   :  { %9631 = vmatmul.msk.f32.gmra.mxu2 %vm113_vm2, %v11997_v50  ;;  %9640 = vmatmul.msk.f32.gmra.mxu3 %vm113_vm2, %v11997_v50 }
 0x32c   :  { %v12392_v30 = vpop.f32.mrf.mxu2  ;;  %v12394_v31 = vpop.f32.mrf.mxu3 }
 0x32d   :  { %16723 = vst [vmem:[#allocation56_spill] sm:$0xff] %v12394_v31  ;;  %v12396_v4 = vpop.f32.mrf.mxu0  ;;  %v12398_v61 = vpop.f32.mrf.mxu1  ;;  %v3753_v31 = vmax.f32 %v12226_v24, %v3561_v19  ;;  %v3729_v19 = vmax.f32 %v12210_v48, %v3537_v11  ;;  %v3731_v24 = vmax.f32 %v12222_v40, %v3539_v39  ;;  %v3464_v48 = vmul.f32 0.01, %v12160_v34 }
 0x330   :  { %9614 = vmatmul.msk.f32.gmra.mxu0 %vm113_vm2, %v12010_v17  ;;  %9623 = vmatmul.msk.f32.gmra.mxu1 %vm113_vm2, %v12010_v17 }
 0x331   :  { %9632 = vmatmul.msk.f32.gmra.mxu2 %vm113_vm2, %v12010_v17  ;;  %9641 = vmatmul.msk.f32.gmra.mxu3 %vm113_vm2, %v12010_v17 }
 0x334   :  { %v12410_v23 = vpop.f32.mrf.mxu2  ;;  %v12412_v25 = vpop.f32.mrf.mxu3 }
 0x335   :  { %v12416_v58 = vpop.f32.mrf.mxu0  ;;  %v12418_v28 = vpop.f32.mrf.mxu1 }
 0x336   :  { %16724 = vst [vmem:[#allocation57_spill] sm:$0xff] %v12416_v58  ;;  %v3563_v58 = vmul.f32 0.01, %v12238_v49 }
 0x337   :  { %16725 = vst [vmem:[#allocation58_spill] sm:$0xff] %v12418_v28  ;;  %v3562_v28 = vmul.f32 0.01, %v12236_v0 }
 0x338   :  { %9643 = vmatmul.msk.f32.vlgmr.msra.gmra.mxu0 %vm113_vm2, %v11849_v51  ;;  %9652 = vmatmul.msk.f32.vlgmr.msra.gmra.mxu1 %vm113_vm2, %v11849_v51  ;;  %v3755_v42 = vmax.f32 %v12238_v49, %v3563_v58  ;;  %v3515_v58 = vmul.f32 0.01, %v12206_v12  ;;  %v3489_v49 = vmul.f32 0.01, %v12178_v41 }
 0x339   :  { %9661 = vmatmul.msk.f32.vlgmr.msra.gmra.mxu2 %vm113_vm2, %v11849_v51  ;;  %9670 = vmatmul.msk.f32.vlgmr.msra.gmra.mxu3 %vm113_vm2, %v11849_v51  ;;  %v3752_v51 = vmax.f32 %v12224_v18, %v3560_v10  ;;  %v3728_v10 = vmax.f32 %v12208_v43, %v3536_v21  ;;  %v3730_v18 = vmax.f32 %v12220_v2, %v3538_v56  ;;  %v3490_v43 = vmul.f32 0.01, %v12188_v20 }
 0x33a   :  { %3842 = vmatpush.msra.mxu0 %v3800_v8  ;;  %3862 = vmatpush.msra.mxu1 %v3801_v27  ;;  %v3754_v27 = vmax.f32 %v12236_v0, %v3562_v28  ;;  %v3514_v28 = vmul.f32 0.01, %v12204_v7  ;;  %v3488_v0 = vmul.f32 0.01, %v12176_v6  ;;  %v3465_v2 = vmul.f32 0.01, %v12162_v47 }
 0x33b   :  { %3882 = vmatpush.msra.mxu2 %v3802_v45  ;;  %3902 = vmatpush.msra.mxu3 %v3803_v54  ;;  %v3512_v54 = vmul.f32 0.01, %v12192_v26  ;;  %v3707_v21 = vmax.f32 %v12206_v12, %v3515_v58  ;;  %v3442_v12 = vmul.f32 0.01, %v12154_v1  ;;  %v3443_v56 = vmul.f32 0.01, %v12156_v16 }
 0x33c   :  { %3843 = vmatpush.msra.mxu0 %v3776_v13  ;;  %3863 = vmatpush.msra.mxu1 %v3777_v63  ;;  %v12450_v3 = vpop.f32.mrf.mxu2  ;;  %v12452_v8 = vpop.f32.mrf.mxu3  ;;  %v3706_v36 = vmax.f32 %v12204_v7, %v3514_v28  ;;  %v3680_v11 = vmax.f32 %v12176_v6, %v3488_v0  ;;  %v3681_v13 = vmax.f32 %v12178_v41, %v3489_v49 }
 0x33d   :  { %3883 = vmatpush.msra.mxu2 %v3778_v55  ;;  %3903 = vmatpush.msra.mxu3 %v3779_v46  ;;  %v12456_v57 = vpop.f32.mrf.mxu0  ;;  %v12458_v45 = vpop.f32.mrf.mxu1  ;;  %v3704_v40 = vmax.f32 %v12192_v26, %v3512_v54  ;;  %v3440_v26 = vmul.f32 0.01, %v12130_v29  ;;  %v3656_v41 = vmax.f32 %v12160_v34, %v3464_v48  ;;  %v3657_v46 = vmax.f32 %v12162_v47, %v3465_v2 }
 0x33e   :  { %3844 = vmatpush.msra.mxu0 %v3752_v51  ;;  %3864 = vmatpush.msra.mxu1 %v3753_v31  ;;  %v3491_v31 = vmul.f32 0.01, %v12190_v35  ;;  %v3658_v51 = vmax.f32 %v12172_v53, %v3466_v5  ;;  %v3635_v34 = vmax.f32 %v12156_v16, %v3443_v56  ;;  %v3612_v48 = vmul.f32 0.01, %v12396_v4 }
 0x33f   :  { %3884 = vmatpush.msra.mxu2 %v3754_v27  ;;  %3904 = vmatpush.msra.mxu3 %v3755_v42  ;;  %v3659_v27 = vmax.f32 %v12174_v9, %v3467_v62  ;;  %v3634_v42 = vmax.f32 %v12154_v1, %v3442_v12  ;;  %v3613_v2 = vmul.f32 0.01, %v12398_v61  ;;  %v3588_v5 = vmul.f32 0.01, %v12380_v59 }
 0x340   :  { %3845 = vmatpush.msra.mxu0 %v3728_v10  ;;  %3865 = vmatpush.msra.mxu1 %v3729_v19  ;;  %v3683_v39 = vmax.f32 %v12190_v35, %v3491_v31  ;;  %v3633_v35 = vmax.f32 %v12132_v38, %v3441_v44  ;;  %v3589_v62 = vmul.f32 0.01, %v12382_v14  ;;  %v3804_v12 = vmax.f32 %v12396_v4, %v3612_v48 }
 0x341   :  { %3885 = vmatpush.msra.mxu2 %v3730_v18  ;;  %3905 = vmatpush.msra.mxu3 %v3731_v24  ;;  %v3805_v56 = vmax.f32 %v12398_v61, %v3613_v2  ;;  %v16738_v2 = vld [vmem:[#allocation49_spill] sm:$0xff] }
 0x342   :  { %9644 = vmatmul.msk.f32.gmra.mxu0 %vm113_vm2, %v11892_v33  ;;  %9653 = vmatmul.msk.f32.gmra.mxu1 %vm113_vm2, %v11892_v33 }
 0x343   :  { %9662 = vmatmul.msk.f32.gmra.mxu2 %vm113_vm2, %v11892_v33  ;;  %9671 = vmatmul.msk.f32.gmra.mxu3 %vm113_vm2, %v11892_v33  ;;  %v3682_v33 = vmax.f32 %v12188_v20, %v3490_v43  ;;  %v3632_v20 = vmax.f32 %v12130_v29, %v3440_v26  ;;  %v16729_v26 = vld [vmem:[#allocation52_spill] sm:$0xff] }
 0x344   :  { %3846 = vmatpush.msra.mxu0 %v3704_v40  ;;  %3866 = vmatpush.msra.mxu1 %v3705_v32  ;;  %v12492_v63 = vpop.f32.mrf.mxu2  ;;  %v12494_v7 = vpop.f32.mrf.mxu3  ;;  %v3614_v40 = vmul.f32 0.01, %v12410_v23  ;;  %v3615_v32 = vmul.f32 0.01, %v12412_v25  ;;  %v3564_v44 = vmul.f32 0.01, %v16729_v26 }
 0x345   :  { %3886 = vmatpush.msra.mxu2 %v3706_v36  ;;  %3906 = vmatpush.msra.mxu3 %v3707_v21  ;;  %v12500_v55 = vpop.f32.mrf.mxu0  ;;  %v12502_v6 = vpop.f32.mrf.mxu1  ;;  %v3590_v36 = vmul.f32 0.01, %v12392_v30  ;;  %v16728_v21 = vld [vmem:[#allocation56_spill] sm:$0xff] }
 0x346   :  { %3847 = vmatpush.msra.mxu0 %v3680_v11  ;;  %3867 = vmatpush.msra.mxu1 %v3681_v13  ;;  %v16730_v11 = vld [vmem:[#allocation53_spill] sm:$0xff]  ;;  %v3806_v4 = vmax.f32 %v12410_v23, %v3614_v40  ;;  %v3807_v61 = vmax.f32 %v12412_v25, %v3615_v32  ;;  %v16739_v23 = vld [vmem:[#allocation50_spill] sm:$0xff]  ;;  %v16740_v40 = vld [vmem:[#allocation51_spill] sm:$0xff] }
 0x347   :  { %3887 = vmatpush.msra.mxu2 %v3682_v33  ;;  %3907 = vmatpush.msra.mxu3 %v3683_v39  ;;  %v3565_v13 = vmul.f32 0.01, %v16730_v11  ;;  %v10423_v33 = vld [vmem:[%s16285_s1 + $0x40] sm:$0xff]  ;;  %v3542_v25 = vmul.f32 0.01, %v16739_v23 }
 0x348   :  { %3848 = vmatpush.msra.mxu0 %v3656_v41  ;;  %3868 = vmatpush.msra.mxu1 %v3657_v46  ;;  %v16733_v46 = vld [vmem:[#allocation54_spill] sm:$0xff]  ;;  %v3543_v32 = vmul.f32 0.01, %v16740_v40 }
 0x349   :  { %3888 = vmatpush.msra.mxu2 %v3658_v51  ;;  %3908 = vmatpush.msra.mxu3 %v3659_v27  ;;  %v3566_v51 = vmul.f32 0.01, %v16733_v46  ;;  %v16734_v27 = vld [vmem:[#allocation55_spill] sm:$0xff] }
 0x34a   :  { %3849 = vmatpush.msra.mxu0 %v3632_v20  ;;  %3869 = vmatpush.msra.mxu1 %v3633_v35  ;;  %v3567_v20 = vmul.f32 0.01, %v16734_v27 }
 0x34b   :  { %3889 = vmatpush.msra.mxu2 %v3634_v42  ;;  %3909 = vmatpush.msra.mxu3 %v3635_v34  ;;  %v16737_v34 = vld [vmem:[#allocation48_spill] sm:$0xff] }
 0x34c   :  { %9645 = vmatmul.msk.f32.gmra.mxu0 %vm113_vm2, %v11905_v52  ;;  %9654 = vmatmul.msk.f32.gmra.mxu1 %vm113_vm2, %v11905_v52  ;;  %v12516_v29 = vpop.f32.mrf.mxu2  ;;  %v12518_v38 = vpop.f32.mrf.mxu3  ;;  %v3540_v48 = vmul.f32 0.01, %v16737_v34 }
 0x34d   :  { %9663 = vmatmul.msk.f32.gmra.mxu2 %vm113_vm2, %v11905_v52  ;;  %9672 = vmatmul.msk.f32.gmra.mxu3 %vm113_vm2, %v11905_v52  ;;  %v12524_v1 = vpop.f32.mrf.mxu0  ;;  %v12526_v16 = vpop.f32.mrf.mxu1 }
 0x354   :  { %9646 = vmatmul.msk.f32.gmra.mxu0 %vm113_vm2, %v11930_v60  ;;  %9655 = vmatmul.msk.f32.gmra.mxu1 %vm113_vm2, %v11930_v60  ;;  %v12532_v47 = vpop.f32.mrf.mxu2  ;;  %v12534_v53 = vpop.f32.mrf.mxu3 }
 0x355   :  { %9664 = vmatmul.msk.f32.gmra.mxu2 %vm113_vm2, %v11930_v60  ;;  %9673 = vmatmul.msk.f32.gmra.mxu3 %vm113_vm2, %v11930_v60  ;;  %v12540_v52 = vpop.f32.mrf.mxu0  ;;  %v12542_v9 = vpop.f32.mrf.mxu1 }
 0x35c   :  { %9647 = vmatmul.msk.f32.gmra.mxu0 %vm113_vm2, %v11961_v22  ;;  %9656 = vmatmul.msk.f32.gmra.mxu1 %vm113_vm2, %v11961_v22  ;;  %v12548_v54 = vpop.f32.mrf.mxu2  ;;  %v12550_v15 = vpop.f32.mrf.mxu3 }
 0x35d   :  { %9665 = vmatmul.msk.f32.gmra.mxu2 %vm113_vm2, %v11961_v22  ;;  %9674 = vmatmul.msk.f32.gmra.mxu3 %vm113_vm2, %v11961_v22  ;;  %v12556_v60 = vpop.f32.mrf.mxu0  ;;  %v12558_v10 = vpop.f32.mrf.mxu1 }
 0x364   :  { %9648 = vmatmul.msk.f32.gmra.mxu0 %vm113_vm2, %v11976_v37  ;;  %9657 = vmatmul.msk.f32.gmra.mxu1 %vm113_vm2, %v11976_v37  ;;  %v12564_v19 = vpop.f32.mrf.mxu2  ;;  %v12566_v28 = vpop.f32.mrf.mxu3 }
 0x365   :  { %9666 = vmatmul.msk.f32.gmra.mxu2 %vm113_vm2, %v11976_v37  ;;  %9675 = vmatmul.msk.f32.gmra.mxu3 %vm113_vm2, %v11976_v37  ;;  %v12572_v22 = vpop.f32.mrf.mxu0  ;;  %v12574_v58 = vpop.f32.mrf.mxu1 }
 0x36c   :  { %9649 = vmatmul.msk.f32.gmra.mxu0 %vm113_vm2, %v11997_v50  ;;  %9658 = vmatmul.msk.f32.gmra.mxu1 %vm113_vm2, %v11997_v50  ;;  %v12580_v18 = vpop.f32.mrf.mxu2  ;;  %v12582_v24 = vpop.f32.mrf.mxu3 }
 0x36d   :  { %9667 = vmatmul.msk.f32.gmra.mxu2 %vm113_vm2, %v11997_v50  ;;  %9676 = vmatmul.msk.f32.gmra.mxu3 %vm113_vm2, %v11997_v50  ;;  %v12588_v37 = vpop.f32.mrf.mxu0  ;;  %v12590_v0 = vpop.f32.mrf.mxu1 }
 0x374   :  { %9650 = vmatmul.msk.f32.gmra.mxu0 %vm113_vm2, %v12010_v17  ;;  %9659 = vmatmul.msk.f32.gmra.mxu1 %vm113_vm2, %v12010_v17  ;;  %v12596_v49 = vpop.f32.mrf.mxu2  ;;  %v12598_v43 = vpop.f32.mrf.mxu3 }
 0x375   :  { %9668 = vmatmul.msk.f32.gmra.mxu2 %vm113_vm2, %v12010_v17  ;;  %9677 = vmatmul.msk.f32.gmra.mxu3 %vm113_vm2, %v12010_v17  ;;  %v12604_v50 = vpop.f32.mrf.mxu0  ;;  %v12606_v31 = vpop.f32.mrf.mxu1  ;;  %v3591_v17 = vmul.f32 0.01, %v16728_v21 }
 0x376   :  { %16726 = vst [vmem:[#allocation59_spill] sm:$0xff] %v12604_v50 }
 0x377   :  { %16727 = vst [vmem:[#allocation60_spill] sm:$0xff] %v12606_v31  ;;  %v3781_v31 = vmax.f32 %v12382_v14, %v3589_v62  ;;  %v3783_v50 = vmax.f32 %v16728_v21, %v3591_v17  ;;  %v3759_v14 = vmax.f32 %v16734_v27, %v3567_v20  ;;  %v16743_v17 = vld [vmem:[#allocation46_spill] sm:$0xff] }
 0x378   :  { %v16749_v27 = vld [vmem:[#allocation42_spill] sm:$0xff] }
 0x379   :  { %v3494_v20 = vmul.f32 0.01, %v16749_v27 }
 0x37c   :  { %9679 = vmatmul.msk.f32.vlgmr.msrb.gmra.mxu0 %vm113_vm2, %v10423_v33  ;;  %9688 = vmatmul.msk.f32.vlgmr.msrb.gmra.mxu1 %vm113_vm2, %v10423_v33  ;;  %v12625_v39 = vpop.f32.mrf.mxu2  ;;  %v12627_v41 = vpop.f32.mrf.mxu3 }
 0x37d   :  { %16731 = vst [vmem:[#allocation56_spill] sm:$0xff] %v12625_v39  ;;  %9697 = vmatmul.msk.f32.vlgmr.msrb.gmra.mxu2 %vm113_vm2, %v10423_v33  ;;  %9706 = vmatmul.msk.f32.vlgmr.msrb.gmra.mxu3 %vm113_vm2, %v10423_v33  ;;  %v12635_v35 = vpop.f32.mrf.mxu0  ;;  %v12637_v42 = vpop.f32.mrf.mxu1  ;;  %v3780_v39 = vmax.f32 %v12380_v59, %v3588_v5  ;;  %v3782_v33 = vmax.f32 %v12392_v30, %v3590_v36  ;;  %v16741_v5 = vld [vmem:[#allocation44_spill] sm:$0xff] }
 0x37e   :  { %16732 = vst [vmem:[#allocation52_spill] sm:$0xff] %v12627_v41  ;;  %v3541_v41 = vmul.f32 0.01, %v16738_v2  ;;  %3922 = vmatpush.msrb.mxu0 %v3804_v12  ;;  %3942 = vmatpush.msrb.mxu1 %v3805_v56  ;;  %v3758_v59 = vmax.f32 %v16733_v46, %v3566_v51  ;;  %v3516_v62 = vmul.f32 0.01, %v16741_v5  ;;  %v16742_v12 = vld [vmem:[#allocation45_spill] sm:$0xff]  ;;  %v3732_v36 = vmax.f32 %v16737_v34, %v3540_v48 }
 0x37f   :  { %16735 = vst [vmem:[#allocation53_spill] sm:$0xff] %v12635_v35  ;;  %3962 = vmatpush.msrb.mxu2 %v3806_v4  ;;  %3982 = vmatpush.msrb.mxu3 %v3807_v61  ;;  %v3757_v35 = vmax.f32 %v16730_v11, %v3565_v13  ;;  %v3517_v30 = vmul.f32 0.01, %v16742_v12  ;;  %v3734_v11 = vmax.f32 %v16739_v23, %v3542_v25  ;;  %v16750_v4 = vld [vmem:[#allocation43_spill] sm:$0xff]  ;;  %v16753_v34 = vld [vmem:[#allocation36_spill] sm:$0xff] }
 0x380   :  { %16736 = vst [vmem:[#allocation54_spill] sm:$0xff] %v12637_v42  ;;  %v3756_v42 = vmax.f32 %v16729_v26, %v3564_v44  ;;  %3923 = vmatpush.msrb.mxu0 %v3780_v39  ;;  %3943 = vmatpush.msrb.mxu1 %v3781_v31  ;;  %v3733_v21 = vmax.f32 %v16738_v2, %v3541_v41  ;;  %v3518_v26 = vmul.f32 0.01, %v16743_v17  ;;  %v16744_v44 = vld [vmem:[#allocation47_spill] sm:$0xff]  ;;  %v16746_v39 = vld [vmem:[#allocation41_spill] sm:$0xff] }
 0x381   :  { %3963 = vmatpush.msrb.mxu2 %v3782_v33  ;;  %3983 = vmatpush.msrb.mxu3 %v3783_v50  ;;  %v3519_v31 = vmul.f32 0.01, %v16744_v44  ;;  %v3735_v13 = vmax.f32 %v16740_v40, %v3543_v32  ;;  %v16745_v50 = vld [vmem:[#allocation40_spill] sm:$0xff]  ;;  %v3493_v46 = vmul.f32 0.01, %v16746_v39  ;;  %v16754_v2 = vld [vmem:[#allocation37_spill] sm:$0xff]  ;;  %v3708_v25 = vmax.f32 %v16741_v5, %v3516_v62 }
 0x382   :  { %3924 = vmatpush.msrb.mxu0 %v3756_v42  ;;  %3944 = vmatpush.msrb.mxu1 %v3757_v35  ;;  %v3492_v56 = vmul.f32 0.01, %v16745_v50  ;;  %v3495_v61 = vmul.f32 0.01, %v16750_v4  ;;  %v3468_v48 = vmul.f32 0.01, %v16753_v34  ;;  %v3709_v40 = vmax.f32 %v16742_v12, %v3517_v30 }
 0x383   :  { %3964 = vmatpush.msrb.mxu2 %v3758_v59  ;;  %3984 = vmatpush.msrb.mxu3 %v3759_v14  ;;  %v3469_v23 = vmul.f32 0.01, %v16754_v2  ;;  %v10424_v32 = vld [vmem:[%s16285_s1 + $0x48] sm:$0xff]  ;;  %v16755_v33 = vld [vmem:[#allocation38_spill] sm:$0xff]  ;;  %v16756_v14 = vld [vmem:[#allocation39_spill] sm:$0xff] }
 0x384   :  { %3925 = vmatpush.msrb.mxu0 %v3732_v36  ;;  %3945 = vmatpush.msrb.mxu1 %v3733_v21  ;;  %v12661_v51 = vpop.f32.mrf.mxu2  ;;  %v12663_v41 = vpop.f32.mrf.mxu3  ;;  %v3470_v59 = vmul.f32 0.01, %v16755_v33  ;;  %v3471_v36 = vmul.f32 0.01, %v16756_v14  ;;  %v3710_v21 = vmax.f32 %v16743_v17, %v3518_v26  ;;  %v16757_v5 = vld [vmem:[#allocation14_spill] sm:$0xff]  ;;  %v16758_v12 = vld [vmem:[#allocation15_spill] sm:$0xff]  ;;  %v3686_v26 = vmax.f32 %v16749_v27, %v3494_v20 }
 0x385   :  { %16747 = vst [vmem:[#allocation55_spill] sm:$0xff] %v12661_v51  ;;  %3965 = vmatpush.msrb.mxu2 %v3734_v11  ;;  %3985 = vmatpush.msrb.mxu3 %v3735_v13  ;;  %v12667_v35 = vpop.f32.mrf.mxu0  ;;  %v12669_v42 = vpop.f32.mrf.mxu1  ;;  %v3711_v11 = vmax.f32 %v16744_v44, %v3519_v31  ;;  %v3444_v62 = vmul.f32 0.01, %v16757_v5  ;;  %v3445_v30 = vmul.f32 0.01, %v16758_v12  ;;  %v3684_v13 = vmax.f32 %v16745_v50, %v3492_v56  ;;  %v16759_v51 = vld [vmem:[#allocation16_spill] sm:$0xff] }
 0x386   :  { %16748 = vst [vmem:[#allocation48_spill] sm:$0xff] %v12663_v41  ;;  %9680 = vmatmul.msk.f32.gmra.mxu0 %vm113_vm2, %v10424_v32  ;;  %9689 = vmatmul.msk.f32.gmra.mxu1 %vm113_vm2, %v10424_v32  ;;  %v3685_v41 = vmax.f32 %v16746_v39, %v3493_v46  ;;  %v3687_v44 = vmax.f32 %v16750_v4, %v3495_v61 }
 0x387   :  { %16751 = vst [vmem:[#allocation49_spill] sm:$0xff] %v12667_v35  ;;  %9698 = vmatmul.msk.f32.gmra.mxu2 %vm113_vm2, %v10424_v32  ;;  %9707 = vmatmul.msk.f32.gmra.mxu3 %vm113_vm2, %v10424_v32  ;;  %v16760_v35 = vld [vmem:[#allocation17_spill] sm:$0xff]  ;;  %v3660_v31 = vmax.f32 %v16753_v34, %v3468_v48  ;;  %v3661_v32 = vmax.f32 %v16754_v2, %v3469_v23  ;;  %v10425_v48 = vld [vmem:[%s16285_s1 + $0x50] sm:$0xff]  ;;  %v10426_v23 = vld [vmem:[%s16285_s1 + $0x58] sm:$0xff] }
 0x388   :  { %16752 = vst [vmem:[#allocation50_spill] sm:$0xff] %v12669_v42  ;;  %3926 = vmatpush.msrb.mxu0 %v3708_v25  ;;  %3946 = vmatpush.msrb.mxu1 %v3709_v40  ;;  %v3446_v42 = vmul.f32 0.01, %v16759_v51  ;;  %v3447_v17 = vmul.f32 0.01, %v16760_v35  ;;  %v3662_v50 = vmax.f32 %v16755_v33, %v3470_v59  ;;  %v3663_v56 = vmax.f32 %v16756_v14, %v3471_v36  ;;  %v10427_v14 = vld [vmem:[%s16285_s1 + $0x60] sm:$0xff] }
 0x389   :  { %3966 = vmatpush.msrb.mxu2 %v3710_v21  ;;  %3986 = vmatpush.msrb.mxu3 %v3711_v11  ;;  %v3636_v39 = vmax.f32 %v16757_v5, %v3444_v62  ;;  %v3637_v46 = vmax.f32 %v16758_v12, %v3445_v30  ;;  %v10428_v62 = vld [vmem:[%s16285_s1 + $0x68] sm:$0xff] }
 0x38a   :  { %3927 = vmatpush.msrb.mxu0 %v3684_v13  ;;  %3947 = vmatpush.msrb.mxu1 %v3685_v41  ;;  %v3638_v4 = vmax.f32 %v16759_v51, %v3446_v42  ;;  %v3639_v41 = vmax.f32 %v16760_v35, %v3447_v17 }
 0x38b   :  { %3967 = vmatpush.msrb.mxu2 %v3686_v26  ;;  %3987 = vmatpush.msrb.mxu3 %v3687_v44  ;;  %v10429_v26 = vld [vmem:[%s16285_s1 + $0x70] sm:$0xff] }
 0x38c   :  { %3928 = vmatpush.msrb.mxu0 %v3660_v31  ;;  %3948 = vmatpush.msrb.mxu1 %v3661_v32  ;;  %v12700_v27 = vpop.f32.mrf.mxu2  ;;  %v12702_v20 = vpop.f32.mrf.mxu3 }
 0x38d   :  { %16761 = vst [vmem:[#allocation51_spill] sm:$0xff] %v12700_v27  ;;  %3968 = vmatpush.msrb.mxu2 %v3662_v50  ;;  %3988 = vmatpush.msrb.mxu3 %v3663_v56  ;;  %v12706_v61 = vpop.f32.mrf.mxu0  ;;  %v12708_v34 = vpop.f32.mrf.mxu1  ;;  %v10430_v56 = vld [vmem:[%s16285_s1 + $0x78] sm:$0xff] }
 0x38e   :  { %16762 = vst [vmem:[#allocation44_spill] sm:$0xff] %v12702_v20  ;;  %3929 = vmatpush.msrb.mxu0 %v3636_v39  ;;  %3949 = vmatpush.msrb.mxu1 %v3637_v46  ;;  %v3616_v39 = vmul.f32 0.01, %v12588_v37  ;;  %v3617_v46 = vmul.f32 0.01, %v12590_v0 }
 0x38f   :  { %16763 = vst [vmem:[#allocation45_spill] sm:$0xff] %v12706_v61  ;;  %3969 = vmatpush.msrb.mxu2 %v3638_v4  ;;  %3989 = vmatpush.msrb.mxu3 %v3639_v41  ;;  %v3569_v20 = vmul.f32 0.01, %v12558_v10 }
 0x390   :  { %16764 = vst [vmem:[#allocation46_spill] sm:$0xff] %v12708_v34  ;;  %9681 = vmatmul.msk.f32.gmra.mxu0 %vm113_vm2, %v10425_v48  ;;  %9690 = vmatmul.msk.f32.gmra.mxu1 %vm113_vm2, %v10425_v48  ;;  %v3808_v27 = vmax.f32 %v12588_v37, %v3616_v39  ;;  %v3544_v37 = vmul.f32 0.01, %v12540_v52 }
 0x391   :  { %9699 = vmatmul.msk.f32.gmra.mxu2 %vm113_vm2, %v10425_v48  ;;  %9708 = vmatmul.msk.f32.gmra.mxu3 %vm113_vm2, %v10425_v48  ;;  %v3618_v48 = vmul.f32 0.01, %v12596_v49 }
 0x394   :  { %v12717_v51 = vpop.f32.mrf.mxu2  ;;  %v12719_v35 = vpop.f32.mrf.mxu3 }
 0x395   :  { %16765 = vst [vmem:[#allocation47_spill] sm:$0xff] %v12717_v51  ;;  %v12721_v42 = vpop.f32.mrf.mxu0  ;;  %v12723_v2 = vpop.f32.mrf.mxu1  ;;  %v3570_v51 = vmul.f32 0.01, %v12564_v19 }
 0x396   :  { %16766 = vst [vmem:[#allocation40_spill] sm:$0xff] %v12719_v35  ;;  %v3809_v35 = vmax.f32 %v12590_v0, %v3617_v46  ;;  %v3545_v0 = vmul.f32 0.01, %v12542_v9 }
 0x398   :  { %9682 = vmatmul.msk.f32.gmra.mxu0 %vm113_vm2, %v10426_v23  ;;  %9691 = vmatmul.msk.f32.gmra.mxu1 %vm113_vm2, %v10426_v23 }
 0x399   :  { %9700 = vmatmul.msk.f32.gmra.mxu2 %vm113_vm2, %v10426_v23  ;;  %9709 = vmatmul.msk.f32.gmra.mxu3 %vm113_vm2, %v10426_v23  ;;  %v3619_v23 = vmul.f32 0.01, %v12598_v43 }
 0x39b   :  { %v3811_v34 = vmax.f32 %v12598_v43, %v3619_v23  ;;  %v3547_v43 = vmul.f32 0.01, %v12550_v15 }
 0x39c   :  { %v12732_v25 = vpop.f32.mrf.mxu2  ;;  %v12734_v40 = vpop.f32.mrf.mxu3 }
 0x39d   :  { %16767 = vst [vmem:[#allocation41_spill] sm:$0xff] %v12734_v40  ;;  %v12736_v33 = vpop.f32.mrf.mxu0  ;;  %v12738_v59 = vpop.f32.mrf.mxu1  ;;  %v3761_v40 = vmax.f32 %v12558_v10, %v3569_v20 }
 0x3a0   :  { %9683 = vmatmul.msk.f32.gmra.mxu0 %vm113_vm2, %v10427_v14  ;;  %9692 = vmatmul.msk.f32.gmra.mxu1 %vm113_vm2, %v10427_v14 }
 0x3a1   :  { %9701 = vmatmul.msk.f32.gmra.mxu2 %vm113_vm2, %v10427_v14  ;;  %9710 = vmatmul.msk.f32.gmra.mxu3 %vm113_vm2, %v10427_v14  ;;  %v12803_v14 = vld [vmem:[%s16286_s2 + $0x2] sm:$0x3] }
 0x3a4   :  { %v12747_v36 = vpop.f32.mrf.mxu2  ;;  %v12749_v21 = vpop.f32.mrf.mxu3 }
 0x3a5   :  { %v12751_v11 = vpop.f32.mrf.mxu0  ;;  %v12753_v5 = vpop.f32.mrf.mxu1 }
 0x3a8   :  { %9684 = vmatmul.msk.f32.gmra.mxu0 %vm113_vm2, %v10428_v62  ;;  %9693 = vmatmul.msk.f32.gmra.mxu1 %vm113_vm2, %v10428_v62 }
 0x3a9   :  { %9702 = vmatmul.msk.f32.gmra.mxu2 %vm113_vm2, %v10428_v62  ;;  %9711 = vmatmul.msk.f32.gmra.mxu3 %vm113_vm2, %v10428_v62  ;;  %v3592_v62 = vmul.f32 0.01, %v12572_v22 }
 0x3ab   :  { %v3784_v39 = vmax.f32 %v12572_v22, %v3592_v62  ;;  %v3762_v22 = vmax.f32 %v12564_v19, %v3570_v51  ;;  %v3522_v19 = vmul.f32 0.01, %v12532_v47  ;;  %v3739_v51 = vmax.f32 %v12550_v15, %v3547_v43 }
 0x3ac   :  { %v12762_v12 = vpop.f32.mrf.mxu2  ;;  %v12764_v30 = vpop.f32.mrf.mxu3  ;;  %v3473_v15 = vmul.f32 0.01, %v12458_v45  ;;  %v3475_v62 = vmul.f32 0.01, %v12494_v7 }
 0x3ad   :  { %v12766_v13 = vpop.f32.mrf.mxu0  ;;  %v12768_v17 = vpop.f32.mrf.mxu1 }
 0x3b0   :  { %9685 = vmatmul.msk.f32.gmra.mxu0 %vm113_vm2, %v10429_v26  ;;  %9694 = vmatmul.msk.f32.gmra.mxu1 %vm113_vm2, %v10429_v26 }
 0x3b1   :  { %9703 = vmatmul.msk.f32.gmra.mxu2 %vm113_vm2, %v10429_v26  ;;  %9712 = vmatmul.msk.f32.gmra.mxu3 %vm113_vm2, %v10429_v26  ;;  %v3593_v26 = vmul.f32 0.01, %v12574_v58 }
 0x3b3   :  { %v3785_v46 = vmax.f32 %v12574_v58, %v3593_v26  ;;  %v3714_v26 = vmax.f32 %v12532_v47, %v3522_v19  ;;  %v3450_v47 = vmul.f32 0.01, %v12450_v3  ;;  %v3596_v19 = vmul.f32 0.01, %v12751_v11 }
 0x3b4   :  { %v12777_v44 = vpop.f32.mrf.mxu2  ;;  %v12779_v31 = vpop.f32.mrf.mxu3 }
 0x3b5   :  { %v12781_v32 = vpop.f32.mrf.mxu0  ;;  %v12783_v50 = vpop.f32.mrf.mxu1 }
 0x3b6   :  { %16768 = vst [vmem:[#allocation42_spill] sm:$0xff] %v12781_v32  ;;  %v3568_v32 = vmul.f32 0.01, %v12556_v60 }
 0x3b7   :  { %16769 = vst [vmem:[#allocation43_spill] sm:$0xff] %v12783_v50  ;;  %v3595_v50 = vmul.f32 0.01, %v12582_v24 }
 0x3b8   :  { %9686 = vmatmul.msk.f32.gmra.mxu0 %vm113_vm2, %v10430_v56  ;;  %9695 = vmatmul.msk.f32.gmra.mxu1 %vm113_vm2, %v10430_v56  ;;  %v3760_v61 = vmax.f32 %v12556_v60, %v3568_v32 }
 0x3b9   :  { %9704 = vmatmul.msk.f32.gmra.mxu2 %vm113_vm2, %v10430_v56  ;;  %9713 = vmatmul.msk.f32.gmra.mxu3 %vm113_vm2, %v10430_v56  ;;  %v3594_v56 = vmul.f32 0.01, %v12580_v18  ;;  %v3787_v23 = vmax.f32 %v12582_v24, %v3595_v50  ;;  %v3736_v24 = vmax.f32 %v12540_v52, %v3544_v37  ;;  %v3496_v52 = vmul.f32 0.01, %v12500_v55  ;;  %v16775_v37 = vld [vmem:[#allocation58_spill] sm:$0xff] }
 0x3bc   :  { %v12794_v4 = vpop.f32.mrf.mxu2  ;;  %v12796_v41 = vpop.f32.mrf.mxu3 }
 0x3bd   :  { %16770 = vst [vmem:[#allocation36_spill] sm:$0xff] %v12794_v4 }
 0x3be   :  { %16771 = vst [vmem:[#allocation37_spill] sm:$0xff] %v12796_v41 }
 0x3bf   :  { %v12809_v4 = vpop.f32.mrf.mxu0  ;;  %v12811_v41 = vpop.f32.mrf.mxu1 }
 0x3c0   :  { %16772 = vst [vmem:[#allocation38_spill] sm:$0xff] %v12809_v4  ;;  %9714 = vmatmul.msk.f32.vlgmr.msra.gmra.mxu0 %vm1586_vm3, %v12803_v14  ;;  %9715 = vmatmul.msk.f32.vlgmr.msra.gmra.mxu1 %vm1586_vm3, %v12803_v14  ;;  %v3571_v4 = vmul.f32 0.01, %v12566_v28 }
 0x3c1   :  { %16773 = vst [vmem:[#allocation39_spill] sm:$0xff] %v12811_v41  ;;  %v3810_v41 = vmax.f32 %v12596_v49, %v3618_v48  ;;  %9716 = vmatmul.msk.f32.vlgmr.msra.gmra.mxu2 %vm1586_vm3, %v12803_v14  ;;  %9717 = vmatmul.msk.f32.vlgmr.msra.gmra.mxu3 %vm1586_vm3, %v12803_v14  ;;  %v3546_v49 = vmul.f32 0.01, %v12548_v54  ;;  %v3786_v48 = vmax.f32 %v12580_v18, %v3594_v56  ;;  %v3521_v18 = vmul.f32 0.01, %v12526_v16 }
 0x3c2   :  { %4002 = vmatpush.msra.mxu0 %v3808_v27  ;;  %4022 = vmatpush.msra.mxu1 %v3809_v35  ;;  %v3763_v58 = vmax.f32 %v12566_v28, %v3571_v4  ;;  %v3520_v27 = vmul.f32 0.01, %v12524_v1  ;;  %v3523_v28 = vmul.f32 0.01, %v12534_v53  ;;  %v3499_v35 = vmul.f32 0.01, %v12518_v38 }
 0x3c3   :  { %4042 = vmatpush.msra.mxu2 %v3810_v41  ;;  %4062 = vmatpush.msra.mxu3 %v3811_v34  ;;  %v3737_v34 = vmax.f32 %v12542_v9, %v3545_v0  ;;  %v3738_v20 = vmax.f32 %v12548_v54, %v3546_v49  ;;  %v3497_v9 = vmul.f32 0.01, %v12502_v6  ;;  %v3472_v54 = vmul.f32 0.01, %v12456_v57 }
 0x3c4   :  { %4003 = vmatpush.msra.mxu0 %v3784_v39  ;;  %4023 = vmatpush.msra.mxu1 %v3785_v46  ;;  %v3712_v50 = vmax.f32 %v12524_v1, %v3520_v27  ;;  %v3713_v4 = vmax.f32 %v12526_v16, %v3521_v18  ;;  %v3474_v41 = vmul.f32 0.01, %v12492_v63  ;;  %v3715_v56 = vmax.f32 %v12534_v53, %v3523_v28  ;;  %v16774_v1 = vld [vmem:[#allocation57_spill] sm:$0xff] }
 0x3c5   :  { %4043 = vmatpush.msra.mxu2 %v3786_v48  ;;  %4063 = vmatpush.msra.mxu3 %v3787_v23  ;;  %v3448_v16 = vmul.f32 0.01, %v16774_v1  ;;  %v3449_v0 = vmul.f32 0.01, %v16775_v37  ;;  %v3688_v39 = vmax.f32 %v12500_v55, %v3496_v52  ;;  %v3689_v46 = vmax.f32 %v12502_v6, %v3497_v9 }
 0x3c6   :  { %4004 = vmatpush.msra.mxu0 %v3760_v61  ;;  %4024 = vmatpush.msra.mxu1 %v3761_v40  ;;  %v12845_v60 = vpop.f32.mrf.mxu2  ;;  %v12847_v10 = vpop.f32.mrf.mxu3  ;;  %v3498_v61 = vmul.f32 0.01, %v12516_v29  ;;  %v3451_v53 = vmul.f32 0.01, %v12452_v8  ;;  %v3691_v43 = vmax.f32 %v12518_v38, %v3499_v35  ;;  %v3664_v48 = vmax.f32 %v12456_v57, %v3472_v54 }
 0x3c7   :  { %4044 = vmatpush.msra.mxu2 %v3762_v22  ;;  %4064 = vmatpush.msra.mxu3 %v3763_v58  ;;  %v3665_v23 = vmax.f32 %v12458_v45, %v3473_v15  ;;  %v3620_v55 = vmul.f32 0.01, %v12766_v13  ;;  %v3621_v6 = vmul.f32 0.01, %v12768_v17  ;;  %v3666_v22 = vmax.f32 %v12492_v63, %v3474_v41 }
 0x3c8   :  { %4005 = vmatpush.msra.mxu0 %v3736_v24  ;;  %4025 = vmatpush.msra.mxu1 %v3737_v34  ;;  %v3690_v49 = vmax.f32 %v12516_v29, %v3498_v61  ;;  %v3667_v58 = vmax.f32 %v12494_v7, %v3475_v62  ;;  %v3622_v29 = vmul.f32 0.01, %v12777_v44  ;;  %v3623_v38 = vmul.f32 0.01, %v12779_v31 }
 0x3c9   :  { %4045 = vmatpush.msra.mxu2 %v3738_v20  ;;  %4065 = vmatpush.msra.mxu3 %v3739_v51  ;;  %v12857_v40 = vpop.f32.mrf.mxu0  ;;  %v12859_v32 = vpop.f32.mrf.mxu1  ;;  %v3640_v57 = vmax.f32 %v16774_v1, %v3448_v16  ;;  %v3641_v45 = vmax.f32 %v16775_v37, %v3449_v0  ;;  %v3642_v63 = vmax.f32 %v12450_v3, %v3450_v47  ;;  %v3597_v28 = vmul.f32 0.01, %v12753_v5 }
 0x3ca   :  { %9718 = vmatmul.msk.f32.vlgmr.msrb.gmra.mxu0 %vm1586_vm3, %v12803_v14  ;;  %9719 = vmatmul.msk.f32.vlgmr.msrb.gmra.mxu1 %vm1586_vm3, %v12803_v14  ;;  %v3643_v7 = vmax.f32 %v12452_v8, %v3451_v53  ;;  %v3812_v20 = vmax.f32 %v12766_v13, %v3620_v55  ;;  %v3813_v51 = vmax.f32 %v12768_v17, %v3621_v6  ;;  %v3598_v3 = vmul.f32 0.01, %v12762_v12 }
 0x3cb   :  { %9720 = vmatmul.msk.f32.vlgmr.msrb.gmra.mxu2 %vm1586_vm3, %v12803_v14  ;;  %9721 = vmatmul.msk.f32.vlgmr.msrb.gmra.mxu3 %vm1586_vm3, %v12803_v14  ;;  %v3599_v8 = vmul.f32 0.01, %v12764_v30  ;;  %v3814_v52 = vmax.f32 %v12777_v44, %v3622_v29  ;;  %v3815_v9 = vmax.f32 %v12779_v31, %v3623_v38  ;;  %v3572_v61 = vmul.f32 0.01, %v12736_v33  ;;  %v16784_v29 = vld [vmem:[#allocation44_spill] sm:$0xff] }
 0x3cc   :  { %4006 = vmatpush.msra.mxu0 %v3712_v50  ;;  %4026 = vmatpush.msra.mxu1 %v3713_v4  ;;  %v3573_v35 = vmul.f32 0.01, %v12738_v59  ;;  %v3574_v13 = vmul.f32 0.01, %v12747_v36  ;;  %v3575_v17 = vmul.f32 0.01, %v12749_v21  ;;  %v3788_v31 = vmax.f32 %v12751_v11, %v3596_v19 }
 0x3cd   :  { %4046 = vmatpush.msra.mxu2 %v3714_v26  ;;  %4066 = vmatpush.msra.mxu3 %v3715_v56  ;;  %v3548_v54 = vmul.f32 0.01, %v12721_v42  ;;  %v3549_v44 = vmul.f32 0.01, %v12723_v2  ;;  %v3789_v15 = vmax.f32 %v12753_v5, %v3597_v28  ;;  %v3550_v50 = vmul.f32 0.01, %v12732_v25 }
 0x3ce   :  { %4007 = vmatpush.msra.mxu0 %v3688_v39  ;;  %4027 = vmatpush.msra.mxu1 %v3689_v46  ;;  %v16776_v4 = vld [vmem:[#allocation41_spill] sm:$0xff]  ;;  %v3790_v62 = vmax.f32 %v12762_v12, %v3598_v3  ;;  %v3791_v26 = vmax.f32 %v12764_v30, %v3599_v8  ;;  %v16778_v56 = vld [vmem:[#allocation46_spill] sm:$0xff]  ;;  %v3764_v16 = vmax.f32 %v12736_v33, %v3572_v61  ;;  %v16779_v30 = vld [vmem:[#allocation47_spill] sm:$0xff] }
 0x3cf   :  { %4047 = vmatpush.msra.mxu2 %v3690_v49  ;;  %4067 = vmatpush.msra.mxu3 %v3691_v43  ;;  %v3551_v41 = vmul.f32 0.01, %v16776_v4  ;;  %v16777_v11 = vld [vmem:[#allocation45_spill] sm:$0xff]  ;;  %v3525_v1 = vmul.f32 0.01, %v16778_v56  ;;  %v3765_v37 = vmax.f32 %v12738_v59, %v3573_v35  ;;  %v16780_v46 = vld [vmem:[#allocation40_spill] sm:$0xff]  ;;  %v3766_v53 = vmax.f32 %v12747_v36, %v3574_v13 }
 0x3d0   :  { %4008 = vmatpush.msra.mxu0 %v3664_v48  ;;  %4028 = vmatpush.msra.mxu1 %v3665_v23  ;;  %v12895_v27 = vpop.f32.mrf.mxu2  ;;  %v12897_v18 = vpop.f32.mrf.mxu3  ;;  %v3524_v5 = vmul.f32 0.01, %v16777_v11  ;;  %v3526_v39 = vmul.f32 0.01, %v16779_v30  ;;  %v3527_v47 = vmul.f32 0.01, %v16780_v46  ;;  %v3767_v49 = vmax.f32 %v12749_v21, %v3575_v17 }
 0x3d1   :  { %4048 = vmatpush.msra.mxu2 %v3666_v22  ;;  %4068 = vmatpush.msra.mxu3 %v3667_v58  ;;  %v12901_v24 = vpop.f32.mrf.mxu0  ;;  %v12903_v34 = vpop.f32.mrf.mxu1  ;;  %v16781_v59 = vld [vmem:[#allocation49_spill] sm:$0xff]  ;;  %v16782_v23 = vld [vmem:[#allocation50_spill] sm:$0xff]  ;;  %v3740_v6 = vmax.f32 %v12721_v42, %v3548_v54  ;;  %v3741_v22 = vmax.f32 %v12723_v2, %v3549_v44  ;;  %v16783_v58 = vld [vmem:[#allocation51_spill] sm:$0xff]  ;;  %v3503_v21 = vmul.f32 0.01, %v16784_v29  ;;  %v3742_v38 = vmax.f32 %v12732_v25, %v3550_v50 }
 0x3d2   :  { %4009 = vmatpush.msra.mxu0 %v3640_v57  ;;  %4029 = vmatpush.msra.mxu1 %v3641_v45  ;;  %v3500_v48 = vmul.f32 0.01, %v16781_v59  ;;  %v3501_v55 = vmul.f32 0.01, %v16782_v23  ;;  %v3502_v36 = vmul.f32 0.01, %v16783_v58  ;;  %v3743_v57 = vmax.f32 %v16776_v4, %v3551_v41 }
 0x3d3   :  { %4049 = vmatpush.msra.mxu2 %v3642_v63  ;;  %4069 = vmatpush.msra.mxu3 %v3643_v7  ;;  %v16785_v45 = vld [vmem:[#allocation53_spill] sm:$0xff]  ;;  %v16786_v7 = vld [vmem:[#allocation54_spill] sm:$0xff]  ;;  %v3716_v42 = vmax.f32 %v16777_v11, %v3524_v5  ;;  %v3717_v2 = vmax.f32 %v16778_v56, %v3525_v1  ;;  %v16787_v28 = vld [vmem:[#allocation55_spill] sm:$0xff]  ;;  %v3718_v25 = vmax.f32 %v16779_v30, %v3526_v39 }
 0x3d4   :  { %4082 = vmatpush.msrb.mxu0 %v3812_v20  ;;  %4102 = vmatpush.msrb.mxu1 %v3813_v51  ;;  %v3476_v63 = vmul.f32 0.01, %v16785_v45  ;;  %v3477_v19 = vmul.f32 0.01, %v16786_v7  ;;  %v3478_v20 = vmul.f32 0.01, %v16787_v28  ;;  %v3719_v8 = vmax.f32 %v16780_v46, %v3527_v47 }
 0x3d5   :  { %4122 = vmatpush.msrb.mxu2 %v3814_v52  ;;  %4142 = vmatpush.msrb.mxu3 %v3815_v9  ;;  %v16788_v51 = vld [vmem:[#allocation48_spill] sm:$0xff]  ;;  %v16789_v52 = vld [vmem:[#allocation59_spill] sm:$0xff]  ;;  %v3692_v13 = vmax.f32 %v16781_v59, %v3500_v48  ;;  %v3693_v17 = vmax.f32 %v16782_v23, %v3501_v55  ;;  %v3694_v50 = vmax.f32 %v16783_v58, %v3502_v36 }
 0x3d6   :  { %9722 = vmatmul.msk.f32.vlgmr.msra.gmra.mxu0 %vm1586_vm3, %v12803_v14  ;;  %9723 = vmatmul.msk.f32.vlgmr.msra.gmra.mxu1 %vm1586_vm3, %v12803_v14  ;;  %v3479_v3 = vmul.f32 0.01, %v16788_v51  ;;  %v3452_v9 = vmul.f32 0.01, %v16789_v52  ;;  %v16790_v61 = vld [vmem:[#allocation60_spill] sm:$0xff]  ;;  %v3695_v4 = vmax.f32 %v16784_v29, %v3503_v21  ;;  %v3668_v41 = vmax.f32 %v16785_v45, %v3476_v63 }
 0x3d7   :  { %9724 = vmatmul.msk.f32.vlgmr.msra.gmra.mxu2 %vm1586_vm3, %v12803_v14  ;;  %9725 = vmatmul.msk.f32.vlgmr.msra.gmra.mxu3 %vm1586_vm3, %v12803_v14  ;;  %v3453_v35 = vmul.f32 0.01, %v16790_v61  ;;  %v16791_v54 = vld [vmem:[#allocation56_spill] sm:$0xff]  ;;  %v3670_v5 = vmax.f32 %v16787_v28, %v3478_v20  ;;  %v3529_v28 = vmul.f32 0.01, %v12903_v34 }
 0x3d8   :  { %4083 = vmatpush.msrb.mxu0 %v3788_v31  ;;  %4103 = vmatpush.msrb.mxu1 %v3789_v15  ;;  %v12937_v0 = vpop.f32.mrf.mxu2  ;;  %v12939_v12 = vpop.f32.mrf.mxu3  ;;  %v3454_v44 = vmul.f32 0.01, %v16791_v54  ;;  %v16792_v31 = vld [vmem:[#allocation52_spill] sm:$0xff]  ;;  %v3671_v56 = vmax.f32 %v16788_v51, %v3479_v3 }
 0x3d9   :  { %4123 = vmatpush.msrb.mxu2 %v3790_v62  ;;  %4143 = vmatpush.msrb.mxu3 %v3791_v26  ;;  %v12945_v43 = vpop.f32.mrf.mxu0  ;;  %v12947_v33 = vpop.f32.mrf.mxu1  ;;  %v3455_v15 = vmul.f32 0.01, %v16792_v31  ;;  %v3669_v62 = vmax.f32 %v16786_v7, %v3477_v19  ;;  %v3645_v30 = vmax.f32 %v16790_v61, %v3453_v35 }
 0x3da   :  { %4084 = vmatpush.msrb.mxu0 %v3764_v16  ;;  %4104 = vmatpush.msrb.mxu1 %v3765_v37  ;;  %v3644_v37 = vmax.f32 %v16789_v52, %v3452_v9  ;;  %v3646_v39 = vmax.f32 %v16791_v54, %v3454_v44  ;;  %v3552_v63 = vmul.f32 0.01, %v12945_v43  ;;  %v3553_v7 = vmul.f32 0.01, %v12947_v33 }
 0x3db   :  { %4124 = vmatpush.msrb.mxu2 %v3766_v53  ;;  %4144 = vmatpush.msrb.mxu3 %v3767_v49  ;;  %v3647_v46 = vmax.f32 %v16792_v31, %v3455_v15  ;;  %v3505_v54 = vmul.f32 0.01, %v12859_v32 }
 0x3dc   :  { %4085 = vmatpush.msrb.mxu0 %v3740_v6  ;;  %4105 = vmatpush.msrb.mxu1 %v3741_v22  ;;  %v3744_v44 = vmax.f32 %v12945_v43, %v3552_v63  ;;  %v3745_v31 = vmax.f32 %v12947_v33, %v3553_v7  ;;  %v3483_v63 = vmul.f32 0.01, %v12847_v10 }
 0x3dd   :  { %4125 = vmatpush.msrb.mxu2 %v3742_v38  ;;  %4145 = vmatpush.msrb.mxu3 %v3743_v57 }
 0x3de   :  { %4086 = vmatpush.msrb.mxu0 %v3716_v42  ;;  %4106 = vmatpush.msrb.mxu1 %v3717_v2  ;;  %v3528_v2 = vmul.f32 0.01, %v12901_v24 }
 0x3df   :  { %4126 = vmatpush.msrb.mxu2 %v3718_v25  ;;  %4146 = vmatpush.msrb.mxu3 %v3719_v8 }
 0x3e0   :  { %4087 = vmatpush.msrb.mxu0 %v3692_v13  ;;  %4107 = vmatpush.msrb.mxu1 %v3693_v17  ;;  %v12975_v26 = vpop.f32.mrf.mxu2  ;;  %v12977_v11 = vpop.f32.mrf.mxu3  ;;  %v3504_v17 = vmul.f32 0.01, %v12857_v40 }
 0x3e1   :  { %4127 = vmatpush.msrb.mxu2 %v3694_v50  ;;  %4147 = vmatpush.msrb.mxu3 %v3695_v4  ;;  %v3144_v1 = vpop.f32.mrf.mxu0  ;;  %v3185_v16 = vpop.f32.mrf.mxu1  ;;  %v3554_v43 = vmul.f32 0.01, %v12975_v26  ;;  %v3555_v33 = vmul.f32 0.01, %v12977_v11 }
 0x3e2   :  { %4088 = vmatpush.msrb.mxu0 %v3668_v41  ;;  %4108 = vmatpush.msrb.mxu1 %v3669_v62  ;;  %v3576_v21 = vmul.f32 0.01, %v3144_v1  ;;  %v3577_v38 = vmul.f32 0.01, %v3185_v16  ;;  %v16793_v62 = vld [vmem:[#allocation38_spill] sm:$0xff] }
 0x3e3   :  { %4128 = vmatpush.msrb.mxu2 %v3670_v5  ;;  %4148 = vmatpush.msrb.mxu3 %v3671_v56  ;;  %v3480_v5 = vmul.f32 0.01, %v16793_v62  ;;  %v16794_v56 = vld [vmem:[#allocation39_spill] sm:$0xff] }
 0x3e4   :  { %4089 = vmatpush.msrb.mxu0 %v3644_v37  ;;  %4109 = vmatpush.msrb.mxu1 %v3645_v30  ;;  %v3768_v20 = vmax.f32 %v3144_v1, %v3576_v21  ;;  %v3769_v51 = vmax.f32 %v3185_v16, %v3577_v38  ;;  %v3481_v1 = vmul.f32 0.01, %v16794_v56  ;;  %v3720_v16 = vmax.f32 %v12901_v24, %v3528_v2 }
 0x3e5   :  { %4129 = vmatpush.msrb.mxu2 %v3646_v39  ;;  %4149 = vmatpush.msrb.mxu3 %v3647_v46  ;;  %v3721_v37 = vmax.f32 %v12903_v34, %v3529_v28  ;;  %v16795_v46 = vld [vmem:[#allocation42_spill] sm:$0xff]  ;;  %v3696_v24 = vmax.f32 %v12857_v40, %v3504_v17  ;;  %v3697_v34 = vmax.f32 %v12859_v32, %v3505_v54  ;;  %v3506_v32 = vmul.f32 0.01, %v12895_v27  ;;  %v16798_v28 = vld [vmem:[#allocation37_spill] sm:$0xff] }
 0x3e6   :  { %9726 = vmatmul.msk.f32.vlgmr.msrb.gmra.mxu0 %vm1586_vm3, %v12803_v14  ;;  %9727 = vmatmul.msk.f32.vlgmr.msrb.gmra.mxu1 %vm1586_vm3, %v12803_v14  ;;  %v3507_v21 = vmul.f32 0.01, %v12897_v18 }
 0x3e7   :  { %9728 = vmatmul.msk.f32.vlgmr.msrb.gmra.mxu2 %vm1586_vm3, %v12803_v14  ;;  %9729 = vmatmul.msk.f32.vlgmr.msrb.gmra.mxu3 %vm1586_vm3, %v12803_v14 }
 0x3e8   :  { %v12993_v47 = vpop.f32.mrf.mxu2  ;;  %v12995_v53 = vpop.f32.mrf.mxu3 }
 0x3e9   :  { %v3147_v49 = vpop.f32.mrf.mxu0  ;;  %v3188_v59 = vpop.f32.mrf.mxu1  ;;  %v3578_v15 = vmul.f32 0.01, %v12993_v47  ;;  %v3579_v50 = vmul.f32 0.01, %v12995_v53 }
 0x3ea   :  { %v3600_v55 = vmul.f32 0.01, %v3147_v49  ;;  %v3601_v58 = vmul.f32 0.01, %v3188_v59 }
 0x3ec   :  { %v3792_v19 = vmax.f32 %v3147_v49, %v3600_v55  ;;  %v3793_v42 = vmax.f32 %v3188_v59, %v3601_v58  ;;  %v3456_v49 = vmul.f32 0.01, %v16795_v46  ;;  %v16796_v59 = vld [vmem:[#allocation43_spill] sm:$0xff]  ;;  %v3672_v58 = vmax.f32 %v16793_v62, %v3480_v5 }
 0x3ed   :  { %v3457_v55 = vmul.f32 0.01, %v16796_v59 }
 0x3ee   :  { %v3648_v38 = vmax.f32 %v16795_v46, %v3456_v49 }
 0x3f0   :  { %v12997_v48 = vpop.f32.mrf.mxu2  ;;  %v12999_v23 = vpop.f32.mrf.mxu3 }
 0x3f1   :  { %v3150_v6 = vpop.f32.mrf.mxu0  ;;  %v3191_v22 = vpop.f32.mrf.mxu1  ;;  %v3602_v3 = vmul.f32 0.01, %v12997_v48  ;;  %v3603_v52 = vmul.f32 0.01, %v12999_v23 }
 0x3f2   :  { %v3624_v36 = vmul.f32 0.01, %v3150_v6  ;;  %v3625_v29 = vmul.f32 0.01, %v3191_v22 }
 0x3f3   :  { %v3794_v30 = vmax.f32 %v12997_v48, %v3602_v3  ;;  %v3795_v39 = vmax.f32 %v12999_v23, %v3603_v52  ;;  %v3770_v48 = vmax.f32 %v12993_v47, %v3578_v15  ;;  %v3771_v23 = vmax.f32 %v12995_v53, %v3579_v50 }
 0x3f4   :  { %v3816_v57 = vmax.f32 %v3150_v6, %v3624_v36  ;;  %v3817_v45 = vmax.f32 %v3191_v22, %v3625_v29  ;;  %v3530_v6 = vmul.f32 0.01, %v12937_v0  ;;  %v3531_v22 = vmul.f32 0.01, %v12939_v12 }
 0x3f5   :  { %v3673_v36 = vmax.f32 %v16794_v56, %v3481_v1  ;;  %v3746_v47 = vmax.f32 %v12975_v26, %v3554_v43  ;;  %v3747_v53 = vmax.f32 %v12977_v11, %v3555_v33  ;;  %v16797_v11 = vld [vmem:[#allocation36_spill] sm:$0xff]  ;;  %v3699_v3 = vmax.f32 %v12897_v18, %v3507_v21 }
 0x3f6   :  { %4162 = vmatpush.msra.mxu0 %v3816_v57  ;;  %4182 = vmatpush.msra.mxu1 %v3817_v45  ;;  %v3649_v57 = vmax.f32 %v16796_v59, %v3457_v55  ;;  %v3482_v45 = vmul.f32 0.01, %v12845_v60  ;;  %v3722_v7 = vmax.f32 %v12937_v0, %v3530_v6  ;;  %v3458_v2 = vmul.f32 0.01, %v16797_v11 }
 0x3f8   :  { %v3232_v25 = vpop.f32.mrf.mxu2  ;;  %v3273_v8 = vpop.f32.mrf.mxu3  ;;  %4163 = vmatpush.msra.mxu0 %v3792_v19  ;;  %4183 = vmatpush.msra.mxu1 %v3793_v42  ;;  %v3723_v19 = vmax.f32 %v12939_v12, %v3531_v22  ;;  %v3674_v0 = vmax.f32 %v12845_v60, %v3482_v45  ;;  %v3675_v12 = vmax.f32 %v12847_v10, %v3483_v63 }
 0x3f9   :  { %v3626_v9 = vmul.f32 0.01, %v3232_v25  ;;  %v3627_v61 = vmul.f32 0.01, %v3273_v8  ;;  %v13007_v35 = vpop.f32.mrf.mxu0  ;;  %v13009_v13 = vpop.f32.mrf.mxu1 }
 0x3fa   :  { %4164 = vmatpush.msra.mxu0 %v3768_v20  ;;  %4184 = vmatpush.msra.mxu1 %v3769_v51  ;;  %v3459_v20 = vmul.f32 0.01, %v16798_v28  ;;  %v3698_v51 = vmax.f32 %v12895_v27, %v3506_v32 }
 0x3fb   :  { %v3818_v4 = vmax.f32 %v3232_v25, %v3626_v9  ;;  %v3819_v41 = vmax.f32 %v3273_v8, %v3627_v61  ;;  %v3650_v25 = vmax.f32 %v16797_v11, %v3458_v2 }
 0x3fc   :  { %4165 = vmatpush.msra.mxu0 %v3744_v44  ;;  %4185 = vmatpush.msra.mxu1 %v3745_v31  ;;  %v3651_v27 = vmax.f32 %v16798_v28, %v3459_v20 }
 0x3fd   :  { %4202 = vmatpush.msra.mxu2 %v3818_v4  ;;  %4222 = vmatpush.msra.mxu3 %v3819_v41 }
 0x3fe   :  { %4166 = vmatpush.msra.mxu0 %v3720_v16  ;;  %4186 = vmatpush.msra.mxu1 %v3721_v37 }
 0x3ff   :  { %4203 = vmatpush.msra.mxu2 %v3794_v30  ;;  %4223 = vmatpush.msra.mxu3 %v3795_v39 }
 0x400   :  { %v13035_v29 = vpop.f32.mrf.mxu2  ;;  %v13037_v40 = vpop.f32.mrf.mxu3  ;;  %4167 = vmatpush.msra.mxu0 %v3696_v24  ;;  %4187 = vmatpush.msra.mxu1 %v3697_v34 }
 0x401   :  { %4204 = vmatpush.msra.mxu2 %v3770_v48  ;;  %4224 = vmatpush.msra.mxu3 %v3771_v23 }
 0x402   :  { %4168 = vmatpush.msra.mxu0 %v3672_v58  ;;  %4188 = vmatpush.msra.mxu1 %v3673_v36  ;;  %v13101_v36 = vpop.permute.xlu0 %3828 }
 0x403   :  { %v13049_v42 = vpop.f32.mrf.mxu0  ;;  %v13051_v26 = vpop.f32.mrf.mxu1  ;;  %4205 = vmatpush.msra.mxu2 %v3746_v47  ;;  %4225 = vmatpush.msra.mxu3 %v3747_v53 }
 0x404   :  { %4169 = vmatpush.msra.mxu0 %v3648_v38  ;;  %4189 = vmatpush.msra.mxu1 %v3649_v57  ;;  %v13104_v32 = vmul.f32 0.01, %v13049_v42 }
 0x405   :  { %4206 = vmatpush.msra.mxu2 %v3722_v7  ;;  %4226 = vmatpush.msra.mxu3 %v3723_v19 }
 0x406   :  { %9730 = vmatmul.msk.f32.vlgmr.msra.gmra.mxu0 %vm1586_vm3, %v12803_v14  ;;  %9731 = vmatmul.msk.f32.vlgmr.msra.gmra.mxu1 %vm1586_vm3, %v12803_v14 }
 0x407   :  { %4207 = vmatpush.msra.mxu2 %v3698_v51  ;;  %4227 = vmatpush.msra.mxu3 %v3699_v3 }
 0x409   :  { %4208 = vmatpush.msra.mxu2 %v3674_v0  ;;  %4228 = vmatpush.msra.mxu3 %v3675_v12 }
 0x40a   :  { %v13065_v18 = vpop.f32.mrf.mxu2  ;;  %v13067_v8 = vpop.f32.mrf.mxu3 }
 0x40b   :  { %4209 = vmatpush.msra.mxu2 %v3650_v25  ;;  %4229 = vmatpush.msra.mxu3 %v3651_v27 }
 0x40c   :  { %9732 = vmatmul.msk.f32.vlgmr.msra.gmra.mxu2 %vm1586_vm3, %v12803_v14  ;;  %9733 = vmatmul.msk.f32.vlgmr.msra.gmra.mxu3 %vm1586_vm3, %v12803_v14 }
 0x40d   :  { %v13073_v60 = vpop.f32.mrf.mxu0  ;;  %v13075_v10 = vpop.f32.mrf.mxu1 }
 0x40e   :  { %v3508_v21 = vmul.f32 0.01, %v13073_v60  ;;  %v3509_v3 = vmul.f32 0.01, %v13075_v10 }
 0x414   :  { %v13077_v52 = vpop.f32.mrf.mxu2  ;;  %v13079_v9 = vpop.f32.mrf.mxu3 }
 0x415   :  { %v13081_v61 = vpop.f32.mrf.mxu0  ;;  %v13083_v17 = vpop.f32.mrf.mxu1 }
 0x416   :  { %v3532_v47 = vmul.f32 0.01, %v13081_v61  ;;  %v3533_v53 = vmul.f32 0.01, %v13083_v17 }
 0x41c   :  { %v13085_v54 = vpop.f32.mrf.mxu2  ;;  %v13087_v44 = vpop.f32.mrf.mxu3 }
 0x41d   :  { %v3305_v31 = vpop.f32.mrf.mxu0  ;;  %v3346_v15 = vpop.f32.mrf.mxu1 }
 0x41e   :  { %v3556_v22 = vmul.f32 0.01, %v3305_v31  ;;  %v3557_v48 = vmul.f32 0.01, %v3346_v15 }
 0x420   :  { %v3748_v19 = vmax.f32 %v3305_v31, %v3556_v22  ;;  %v3749_v0 = vmax.f32 %v3346_v15, %v3557_v48  ;;  %v3725_v15 = vmax.f32 %v13083_v17, %v3533_v53  ;;  %v3461_v17 = vmul.f32 0.01, %v13009_v13 }
 0x424   :  { %v13089_v50 = vpop.f32.mrf.mxu2  ;;  %v13091_v4 = vpop.f32.mrf.mxu3 }
 0x425   :  { %v3308_v41 = vpop.f32.mrf.mxu0  ;;  %v3349_v62 = vpop.f32.mrf.mxu1 }
 0x426   :  { %v3580_v55 = vmul.f32 0.01, %v3308_v41  ;;  %v3581_v24 = vmul.f32 0.01, %v3349_v62 }
 0x428   :  { %v3772_v38 = vmax.f32 %v3308_v41, %v3580_v55  ;;  %v3773_v57 = vmax.f32 %v3349_v62, %v3581_v24  ;;  %v3534_v55 = vmul.f32 0.01, %v13085_v54 }
 0x42c   :  { %v13093_v5 = vpop.f32.mrf.mxu2  ;;  %v13095_v56 = vpop.f32.mrf.mxu3 }
 0x42d   :  { %v3311_v1 = vpop.f32.mrf.mxu0  ;;  %v3352_v16 = vpop.f32.mrf.mxu1  ;;  %v3582_v27 = vmul.f32 0.01, %v13093_v5  ;;  %v3583_v31 = vmul.f32 0.01, %v13095_v56 }
 0x42e   :  { %v3604_v33 = vmul.f32 0.01, %v3311_v1  ;;  %v3605_v46 = vmul.f32 0.01, %v3352_v16 }
 0x42f   :  { %v3775_v24 = vmax.f32 %v13095_v56, %v3583_v31 }
 0x430   :  { %v3796_v23 = vmax.f32 %v3311_v1, %v3604_v33  ;;  %v3797_v58 = vmax.f32 %v3352_v16, %v3605_v46  ;;  %v3485_v1 = vmul.f32 0.01, %v13051_v26  ;;  %v3724_v16 = vmax.f32 %v13081_v61, %v3532_v47 }
 0x431   :  { %v3558_v33 = vmul.f32 0.01, %v13089_v50  ;;  %v3460_v61 = vmul.f32 0.01, %v13007_v35 }
 0x434   :  { %v13097_v37 = vpop.f32.mrf.mxu2  ;;  %v13099_v43 = vpop.f32.mrf.mxu3 }
 0x435   :  { %v3314_v30 = vpop.f32.mrf.mxu0  ;;  %v3355_v39 = vpop.f32.mrf.mxu1  ;;  %v3606_v45 = vmul.f32 0.01, %v13097_v37  ;;  %v3607_v11 = vmul.f32 0.01, %v13099_v43 }
 0x436   :  { %v3628_v49 = vmul.f32 0.01, %v3314_v30  ;;  %v3629_v59 = vmul.f32 0.01, %v3355_v39 }
 0x437   :  { %v3799_v46 = vmax.f32 %v13099_v43, %v3607_v11  ;;  %v3774_v43 = vmax.f32 %v13093_v5, %v3582_v27 }
 0x438   :  { %v3820_v34 = vmax.f32 %v3314_v30, %v3628_v49  ;;  %v3821_v6 = vmax.f32 %v3355_v39, %v3629_v59  ;;  %v3559_v30 = vmul.f32 0.01, %v13091_v4  ;;  %v3798_v39 = vmax.f32 %v13097_v37, %v3606_v45 }
 0x439   :  { %v3700_v49 = vmax.f32 %v13073_v60, %v3508_v21  ;;  %v3701_v59 = vmax.f32 %v13075_v10, %v3509_v3  ;;  %v3535_v37 = vmul.f32 0.01, %v13087_v44  ;;  %v3510_v60 = vmul.f32 0.01, %v13077_v52 }
 0x43a   :  { %4242 = vmatpush.msrb.mxu0 %v3820_v34  ;;  %4262 = vmatpush.msrb.mxu1 %v3821_v6  ;;  %v3676_v34 = vmax.f32 %v13049_v42, %v13104_v32  ;;  %v3677_v6 = vmax.f32 %v13051_v26, %v3485_v1  ;;  %v3750_v10 = vmax.f32 %v13089_v50, %v3558_v33  ;;  %v3486_v50 = vmul.f32 0.01, %v13065_v18 }
 0x43b   :  { %v3751_v5 = vmax.f32 %v13091_v4, %v3559_v30  ;;  %v3652_v42 = vmax.f32 %v13007_v35, %v3460_v61  ;;  %v3653_v26 = vmax.f32 %v13009_v13, %v3461_v17  ;;  %v3487_v32 = vmul.f32 0.01, %v13067_v8 }
 0x43c   :  { %v3396_v63 = vpop.f32.mrf.mxu2  ;;  %v3437_v7 = vpop.f32.mrf.mxu3  ;;  %4243 = vmatpush.msrb.mxu0 %v3796_v23  ;;  %4263 = vmatpush.msrb.mxu1 %v3797_v58  ;;  %v3511_v23 = vmul.f32 0.01, %v13079_v9  ;;  %v3726_v4 = vmax.f32 %v13085_v54, %v3534_v55  ;;  %v3727_v21 = vmax.f32 %v13087_v44, %v3535_v37  ;;  %v3462_v35 = vmul.f32 0.01, %v13035_v29 }
 0x43d   :  { %v3630_v2 = vmul.f32 0.01, %v3396_v63  ;;  %v3631_v28 = vmul.f32 0.01, %v3437_v7  ;;  %v3851_v20 = vpop.f32.mrf.mxu0  ;;  %v3871_v51 = vpop.f32.mrf.mxu1  ;;  %v3463_v54 = vmul.f32 0.01, %v13037_v40  ;;  %v3702_v44 = vmax.f32 %v13077_v52, %v3510_v60 }
 0x43e   :  { %v13113_v12 = vadd.f32 %v3851_v20, %v13101_v36  ;;  %v13116_v25 = vadd.f32 %v3871_v51, %v13101_v36  ;;  %4244 = vmatpush.msrb.mxu0 %v3772_v38  ;;  %4264 = vmatpush.msrb.mxu1 %v3773_v57  ;;  %v3703_v45 = vmax.f32 %v13079_v9, %v3511_v23 }
 0x43f   :  { %v3822_v41 = vmax.f32 %v3396_v63, %v3630_v2  ;;  %v3823_v62 = vmax.f32 %v3437_v7, %v3631_v28  ;;  %v3679_v52 = vmax.f32 %v13067_v8, %v3487_v32  ;;  %v3654_v2 = vmax.f32 %v13035_v29, %v3462_v35 }
 0x440   :  { %16799 = vst [vmem:[#allocation14_spill] sm:$0xff] %v13113_v12  ;;  %4245 = vmatpush.msrb.mxu0 %v3748_v19  ;;  %4265 = vmatpush.msrb.mxu1 %v3749_v0  ;;  %v4316_v13 = vmul.f32 1.442695, %v13116_v25  ;;  %v3678_v19 = vmax.f32 %v13065_v18, %v3486_v50  ;;  %v3655_v28 = vmax.f32 %v13037_v40, %v3463_v54  ;;  %v4314_v0 = vmul.f32 1.442695, %v13113_v12 }
 0x441   :  { %16800 = vst [vmem:[#allocation15_spill] sm:$0xff] %v13116_v25  ;;  %4282 = vmatpush.msrb.mxu2 %v3822_v41  ;;  %4302 = vmatpush.msrb.mxu3 %v3823_v62  ;;  %v10431_v50 = vld [vmem:[%s16284_s0] ss:$2 sm:$0xff] }
 0x442   :  { %4458 = vst [vmem:[#allocation1] sm:$0xff] %v13113_v12  ;;  %4246 = vmatpush.msrb.mxu0 %v3724_v16  ;;  %4266 = vmatpush.msrb.mxu1 %v3725_v15  ;;  %10273 = vpow2.f32 %v4316_v13 }
 0x443   :  { %4459 = vst [vmem:[#allocation1 + $0x9] sm:$0xff] %v13116_v25  ;;  %4283 = vmatpush.msrb.mxu2 %v3798_v39  ;;  %4303 = vmatpush.msrb.mxu3 %v3799_v46 }
 0x444   :  { %v3891_v22 = vpop.f32.mrf.mxu2  ;;  %v3911_v48 = vpop.f32.mrf.mxu3  ;;  %4247 = vmatpush.msrb.mxu0 %v3700_v49  ;;  %4267 = vmatpush.msrb.mxu1 %v3701_v59 }
 0x445   :  { %v13145_v56 = vadd.f32 %v3891_v22, %v13101_v36  ;;  %v13148_v58 = vadd.f32 %v3911_v48, %v13101_v36  ;;  %4284 = vmatpush.msrb.mxu2 %v3774_v43  ;;  %4304 = vmatpush.msrb.mxu3 %v3775_v24 }
 0x446   :  { %4248 = vmatpush.msrb.mxu0 %v3676_v34  ;;  %4268 = vmatpush.msrb.mxu1 %v3677_v6 }
 0x447   :  { %16801 = vst [vmem:[#allocation16_spill] sm:$0xff] %v13145_v56  ;;  %v3931_v47 = vpop.f32.mrf.mxu0  ;;  %v3951_v53 = vpop.f32.mrf.mxu1  ;;  %4285 = vmatpush.msrb.mxu2 %v3750_v10  ;;  %4305 = vmatpush.msrb.mxu3 %v3751_v5  ;;  %v4318_v63 = vmul.f32 1.442695, %v13145_v56  ;;  %v4320_v7 = vmul.f32 1.442695, %v13148_v58 }
 0x448   :  { %16802 = vst [vmem:[#allocation17_spill] sm:$0xff] %v13148_v58  ;;  %v13161_v38 = vadd.f32 %v3931_v47, %v13101_v36  ;;  %v13164_v57 = vadd.f32 %v3951_v53, %v13101_v36  ;;  %4249 = vmatpush.msrb.mxu0 %v3652_v42  ;;  %4269 = vmatpush.msrb.mxu1 %v3653_v26  ;;  %v10274_v3 = vpop.eup %10273 }
 0x449   :  { %4460 = vst [vmem:[#allocation1 + $0x12] sm:$0xff] %v13145_v56  ;;  %4286 = vmatpush.msrb.mxu2 %v3726_v4  ;;  %4306 = vmatpush.msrb.mxu3 %v3727_v21  ;;  %10275 = vpow2.f32 %v4318_v63  ;;  %v4386_v39 = vrot.slane %v10274_v3, 7 }
 0x44a   :  { %4461 = vst [vmem:[#allocation1 + $0x1b] sm:$0xff] %v13148_v58  ;;  %9734 = vmatmul.msk.f32.vlgmr.msrb.gmra.mxu0 %vm1586_vm3, %v12803_v14  ;;  %9735 = vmatmul.msk.f32.vlgmr.msrb.gmra.mxu1 %vm1586_vm3, %v12803_v14  ;;  %v4322_v9 = vmul.f32 1.442695, %v13161_v38  ;;  %v4324_v11 = vmul.f32 1.442695, %v13164_v57  ;;  %10277 = vpow2.f32 %v4320_v7 }
 0x44b   :  { %16803 = vst [vmem:[#allocation57_spill] sm:$0xff] %v13161_v38  ;;  %4287 = vmatpush.msrb.mxu2 %v3702_v44  ;;  %4307 = vmatpush.msrb.mxu3 %v3703_v45 }
 0x44c   :  { %16804 = vst [vmem:[#allocation58_spill] sm:$0xff] %v13164_v57  ;;  %10279 = vpow2.f32 %v4322_v9 }
 0x44d   :  { %4462 = vst [vmem:[#allocation1 + $0x24] sm:$0xff] %v13161_v38  ;;  %4288 = vmatpush.msrb.mxu2 %v3678_v19  ;;  %4308 = vmatpush.msrb.mxu3 %v3679_v52  ;;  %10281 = vpow2.f32 %v4324_v11 }
 0x44e   :  { %4463 = vst [vmem:[#allocation1 + $0x2d] sm:$0xff] %v13164_v57  ;;  %v3971_v18 = vpop.f32.mrf.mxu2  ;;  %v3991_v20 = vpop.f32.mrf.mxu3 }
 0x44f   :  { %v13184_v8 = vadd.f32 %v3971_v18, %v13101_v36  ;;  %v13187_v51 = vadd.f32 %v3991_v20, %v13101_v36  ;;  %4289 = vmatpush.msrb.mxu2 %v3654_v2  ;;  %4309 = vmatpush.msrb.mxu3 %v3655_v28  ;;  %v10276_v27 = vpop.eup %10275  ;;  %v13249_v18 = vld [vmem:[%s16285_s1 + $0x80] sm:$0xff] }
 0x450   :  { %9736 = vmatmul.msk.f32.vlgmr.msrb.gmra.mxu2 %vm1586_vm3, %v12803_v14  ;;  %9737 = vmatmul.msk.f32.vlgmr.msrb.gmra.mxu3 %vm1586_vm3, %v12803_v14  ;;  %v10278_v31 = vpop.eup %10277  ;;  %v4387_v16 = vrot.slane %v10276_v27, 6 }
 0x451   :  { %16805 = vst [vmem:[#allocation41_spill] sm:$0xff] %v13184_v8  ;;  %v4326_v29 = vmul.f32 1.442695, %v13184_v8  ;;  %v4328_v40 = vmul.f32 1.442695, %v13187_v51  ;;  %v4388_v15 = vrot.slane %v10278_v31, 5 }
 0x452   :  { %16806 = vst [vmem:[#allocation45_spill] sm:$0xff] %v13187_v51  ;;  %v10280_v41 = vpop.eup %10279 }
 0x453   :  { %4464 = vst [vmem:[#allocation1 + $0x36] sm:$0xff] %v13184_v8  ;;  %10283 = vpow2.f32 %v4326_v29  ;;  %v4011_v62 = vpop.f32.mrf.mxu0  ;;  %v10282_v1 = vpop.eup %10281  ;;  %v4389_v46 = vrot.slane %v10280_v41, 4  ;;  %v4408_v24 = vsel %vm2164_vm4, %v4387_v16, %v4388_v15 }
 0x454   :  { %4465 = vst [vmem:[#allocation1 + $0x3f] sm:$0xff] %v13187_v51  ;;  %10285 = vpow2.f32 %v4328_v40  ;;  %v4031_v14 = vpop.f32.mrf.mxu1  ;;  %v13199_v33 = vadd.f32 %v4011_v62, %v13101_v36  ;;  %v4390_v61 = vrot.slane %v10282_v1, 3 }
 0x455   :  { %10287 = vpow2.f32 %v4314_v0  ;;  %v13202_v49 = vadd.f32 %v4031_v14, %v13101_v36 }
 0x456   :  { %16807 = vst [vmem:[#allocation46_spill] sm:$0xff] %v13199_v33  ;;  %v4410_v48 = vsel %vm2167_vm5, %v4389_v46, %v4390_v61  ;;  %v4330_v61 = vmul.f32 1.442695, %v13199_v33 }
 0x457   :  { %16808 = vst [vmem:[#allocation47_spill] sm:$0xff] %v13202_v49  ;;  %v4332_v21 = vmul.f32 1.442695, %v13202_v49 }
 0x459   :  { %v10284_v30 = vpop.eup %10283  ;;  %10289 = vpow2.f32 %v4332_v21 }
 0x45a   :  { %v10286_v59 = vpop.eup %10285  ;;  %v4391_v55 = vrot.slane %v10284_v30, 2  ;;  %v4051_v37 = vpop.f32.mrf.mxu2 }
 0x45b   :  { %v4467_v17 = vld [vmem:[#allocation1 + $0x1] ss:$9 sm:$0xff]  ;;  %v4071_v43 = vpop.f32.mrf.mxu3  ;;  %v4392_v34 = vrot.slane %v10286_v59, 1  ;;  %v13208_v6 = vadd.f32 %v4051_v37, %v13101_v36  ;;  %v10288_v10 = vpop.eup %10287 }
 0x45c   :  { %4468 = vst [vmem:[#allocation1] sm:$0xff] %v13199_v33  ;;  %v13211_v60 = vadd.f32 %v4071_v43, %v13101_v36  ;;  %v4407_v22 = vsel %vm80_vm0, %v10288_v10, %v4386_v39  ;;  %v13290_v59 = vld [vmem:[%s16285_s1 + $0x88] sm:$0xff] }
 0x45d   :  { %4469 = vst [vmem:[#allocation1 + $0x9] sm:$0xff] %v13202_v49  ;;  %v4411_v23 = vsel %vm2169_vm6, %v4391_v55, %v4392_v34  ;;  %v4409_v5 = vsel %vm138_vm1, %v4407_v22, %v4408_v24  ;;  %v4334_v47 = vmul.f32 1.442695, %v13208_v6 }
 0x45e   :  { %16809 = vst [vmem:[#allocation40_spill] sm:$0xff] %v13208_v6  ;;  %v4412_v42 = vsel %vm2171_vm7, %v4410_v48, %v4411_v23  ;;  %v4336_v9 = vmul.f32 1.442695, %v13211_v60 }
 0x45f   :  { %16810 = vst [vmem:[#allocation49_spill] sm:$0xff] %v13211_v60  ;;  %v4413_v26 = vsel %vm2173_vm8, %v4409_v5, %v4412_v42  ;;  %10291 = vpow2.f32 %v4334_v47  ;;  %v10290_v46 = vpop.eup %10289 }
 0x460   :  { %4470 = vst [vmem:[#allocation1 + $0x12] sm:$0xff] %v13208_v6  ;;  %v4431_v32 = vmul.f32 %v10431_v50, %v4413_v26  ;;  %10293 = vpow2.f32 %v4336_v9  ;;  %v4393_v22 = vrot.slane %v10290_v46, 7 }
 0x461   :  { %4471 = vst [vmem:[#allocation1 + $0x1b] sm:$0xff] %v13211_v60 }
 0x462   :  { %v13224_v4 = vadd.f32 %v4467_v17, %v4431_v32  ;;  %v13304_v32 = vld [vmem:[%s16285_s1 + $0x90] sm:$0xff] }
 0x463   :  { %v4091_v53 = vpop.f32.mrf.mxu0  ;;  %v4111_v35 = vpop.f32.mrf.mxu1 }
 0x464   :  { %16811 = vst [vmem:[#allocation50_spill] sm:$0xff] %v13224_v4  ;;  %v13229_v13 = vadd.f32 %v4091_v53, %v13101_v36  ;;  %v13232_v54 = vadd.f32 %v4111_v35, %v13101_v36  ;;  %v4519_v44 = vperm.slane %v13224_v4, 0  ;;  %v4520_v45 = vperm.slane %v13224_v4, 1 }
 0x465   :  { %v4521_v63 = vperm.slane %v13224_v4, 2  ;;  %v4522_v7 = vperm.slane %v13224_v4, 3  ;;  %v4523_v19 = vperm.slane %v13224_v4, 4  ;;  %v4524_v52 = vperm.slane %v13224_v4, 5  ;;  %v10292_v17 = vpop.eup %10291 }
 0x466   :  { %16812 = vst [vmem:[#allocation51_spill] sm:$0xff] %v13229_v13  ;;  %v4338_v11 = vmul.f32 1.442695, %v13229_v13  ;;  %v4567_v2 = vsel %vm80_vm0, %v4519_v44, 1.0  ;;  %v4568_v28 = vsel %vm80_vm0, %v4520_v45, 1.0  ;;  %v4525_v27 = vperm.slane %v13224_v4, 6  ;;  %v10294_v55 = vpop.eup %10293 }
 0x467   :  { %16813 = vst [vmem:[#allocation44_spill] sm:$0xff] %v13232_v54  ;;  %v4340_v20 = vmul.f32 1.442695, %v13232_v54  ;;  %9738 = vmatpush.msk.msra.mxu0 %vm138_vm1, %v4567_v2  ;;  %9747 = vmatpush.msk.msra.mxu1 %vm138_vm1, %v4568_v28  ;;  %v4569_v29 = vsel %vm80_vm0, %v4521_v63, 1.0  ;;  %v4570_v40 = vsel %vm80_vm0, %v4522_v7, 1.0  ;;  %v4571_v3 = vsel %vm80_vm0, %v4523_v19, 1.0 }
 0x468   :  { %4472 = vst [vmem:[#allocation1 + $0x24] sm:$0xff] %v13229_v13  ;;  %9756 = vmatpush.msk.msra.mxu2 %vm138_vm1, %v4569_v29  ;;  %9765 = vmatpush.msk.msra.mxu3 %vm138_vm1, %v4570_v40  ;;  %v4572_v0 = vsel %vm80_vm0, %v4524_v52, 1.0  ;;  %v4526_v62 = vperm.slane %v13224_v4, 7  ;;  %10295 = vpow2.f32 %v4338_v11  ;;  %v4573_v16 = vsel %vm80_vm0, %v4525_v27, 1.0  ;;  %v10432_v7 = vld [vmem:[%s16284_s0 + $0x10] ss:$2 sm:$0xff] }
 0x469   :  { %4473 = vst [vmem:[#allocation1 + $0x2d] sm:$0xff] %v13232_v54  ;;  %9739 = vmatmul.msk.f32.vlgmr.msra.gmra.mxu0 %vm113_vm2, %v13249_v18  ;;  %9748 = vmatmul.msk.f32.vlgmr.msra.gmra.mxu1 %vm113_vm2, %v13249_v18  ;;  %10297 = vpow2.f32 %v4340_v20  ;;  %v4394_v24 = vrot.slane %v10292_v17, 6  ;;  %v4395_v34 = vrot.slane %v10294_v55, 5  ;;  %v13328_v11 = vld [vmem:[%s16285_s1 + $0x98] sm:$0xff] }
 0x46a   :  { %v4131_v31 = vpop.f32.mrf.mxu2  ;;  %v4151_v41 = vpop.f32.mrf.mxu3  ;;  %9757 = vmatmul.msk.f32.vlgmr.msra.gmra.mxu2 %vm113_vm2, %v13249_v18  ;;  %9766 = vmatmul.msk.f32.vlgmr.msra.gmra.mxu3 %vm113_vm2, %v13249_v18  ;;  %v4574_v15 = vsel %vm80_vm0, %v4526_v62, 1.0 }
 0x46b   :  { %v13267_v1 = vadd.f32 %v4131_v31, %v13101_v36  ;;  %v13270_v14 = vadd.f32 %v4151_v41, %v13101_v36  ;;  %9774 = vmatpush.msk.msrb.mxu0 %vm138_vm1, %v4571_v3  ;;  %9783 = vmatpush.msk.msrb.mxu1 %vm138_vm1, %v4572_v0  ;;  %v4415_v26 = vsel %vm2164_vm4, %v4394_v24, %v4395_v34 }
 0x46c   :  { %9792 = vmatpush.msk.msrb.mxu2 %vm138_vm1, %v4573_v16  ;;  %9801 = vmatpush.msk.msrb.mxu3 %vm138_vm1, %v4574_v15 }
 0x46d   :  { %16814 = vst [vmem:[#allocation53_spill] sm:$0xff] %v13267_v1  ;;  %v4342_v30 = vmul.f32 1.442695, %v13267_v1  ;;  %v4344_v39 = vmul.f32 1.442695, %v13270_v14 }
 0x46e   :  { %16815 = vst [vmem:[#allocation54_spill] sm:$0xff] %v13270_v14  ;;  %v10296_v37 = vpop.eup %10295 }
 0x46f   :  { %4474 = vst [vmem:[#allocation1 + $0x36] sm:$0xff] %v13267_v1  ;;  %10299 = vpow2.f32 %v4342_v30  ;;  %v10298_v43 = vpop.eup %10297  ;;  %v4396_v48 = vrot.slane %v10296_v37, 4  ;;  %v13361_v30 = vld [vmem:[%s16285_s1 + $0xa0] sm:$0xff] }
 0x470   :  { %4475 = vst [vmem:[#allocation1 + $0x3f] sm:$0xff] %v13270_v14  ;;  %10301 = vpow2.f32 %v4344_v39  ;;  %v4397_v23 = vrot.slane %v10298_v43, 3 }
 0x471   :  { %10303 = vpow2.f32 %v4330_v61  ;;  %9740 = vmatmul.msk.f32.gmra.mxu0 %vm113_vm2, %v13290_v59  ;;  %9749 = vmatmul.msk.f32.gmra.mxu1 %vm113_vm2, %v13290_v59  ;;  %v13376_v61 = vld [vmem:[%s16285_s1 + $0xa8] sm:$0xff] }
 0x472   :  { %9758 = vmatmul.msk.f32.gmra.mxu2 %vm113_vm2, %v13290_v59  ;;  %9767 = vmatmul.msk.f32.gmra.mxu3 %vm113_vm2, %v13290_v59  ;;  %v4417_v53 = vsel %vm2167_vm5, %v4396_v48, %v4397_v23  ;;  %v13400_v23 = vld [vmem:[%s16285_s1 + $0xb0] sm:$0xff] }
 0x475   :  { %v10300_v10 = vpop.eup %10299 }
 0x476   :  { %v10302_v5 = vpop.eup %10301  ;;  %v4398_v42 = vrot.slane %v10300_v10, 2 }
 0x477   :  { %v4399_v50 = vrot.slane %v10302_v5, 1  ;;  %v10304_v21 = vpop.eup %10303  ;;  %v4476_v52 = vld [vmem:[#allocation1 + $0x1] ss:$9 sm:$0xff] }
 0x478   :  { %v4414_v47 = vsel %vm80_vm0, %v10304_v21, %v4393_v22 }
 0x479   :  { %v4418_v35 = vsel %vm2169_vm6, %v4398_v42, %v4399_v50  ;;  %v4416_v44 = vsel %vm138_vm1, %v4414_v47, %v4415_v26  ;;  %9741 = vmatmul.msk.f32.gmra.mxu0 %vm113_vm2, %v13304_v32  ;;  %9750 = vmatmul.msk.f32.gmra.mxu1 %vm113_vm2, %v13304_v32 }
 0x47a   :  { %v4419_v45 = vsel %vm2171_vm7, %v4417_v53, %v4418_v35  ;;  %9759 = vmatmul.msk.f32.gmra.mxu2 %vm113_vm2, %v13304_v32  ;;  %9768 = vmatmul.msk.f32.gmra.mxu3 %vm113_vm2, %v13304_v32  ;;  %v13417_v53 = vld [vmem:[%s16285_s1 + $0xb8] sm:$0xff] }
 0x47b   :  { %v4420_v63 = vsel %vm2173_vm8, %v4416_v44, %v4419_v45 }
 0x47c   :  { %v4432_v19 = vmul.f32 %v10432_v7, %v4420_v63 }
 0x47e   :  { %v13323_v9 = vadd.f32 %v4476_v52, %v4432_v19 }
 0x480   :  { %16816 = vst [vmem:[#allocation55_spill] sm:$0xff] %v13323_v9  ;;  %v4527_v2 = vperm.slane %v13323_v9, 0  ;;  %v4528_v28 = vperm.slane %v13323_v9, 1  ;;  %v4529_v20 = vperm.slane %v13323_v9, 2  ;;  %v4530_v29 = vperm.slane %v13323_v9, 3 }
 0x481   :  { %9742 = vmatmul.msk.f32.gmra.mxu0 %vm113_vm2, %v13328_v11  ;;  %9751 = vmatmul.msk.f32.gmra.mxu1 %vm113_vm2, %v13328_v11  ;;  %v4531_v35 = vperm.slane %v13323_v9, 4  ;;  %v4532_v44 = vperm.slane %v13323_v9, 5  ;;  %v4533_v45 = vperm.slane %v13323_v9, 6  ;;  %v4534_v63 = vperm.slane %v13323_v9, 7 }
 0x482   :  { %v4575_v40 = vsel %vm80_vm0, %v4527_v2, 1.0  ;;  %v4576_v3 = vsel %vm80_vm0, %v4528_v28, 1.0  ;;  %v4577_v0 = vsel %vm80_vm0, %v4529_v20, 1.0  ;;  %v4578_v27 = vsel %vm80_vm0, %v4530_v29, 1.0  ;;  %9760 = vmatmul.msk.f32.gmra.mxu2 %vm113_vm2, %v13328_v11  ;;  %9769 = vmatmul.msk.f32.gmra.mxu3 %vm113_vm2, %v13328_v11 }
 0x483   :  { %9810 = vmatpush.msk.msra.mxu0 %vm138_vm1, %v4575_v40  ;;  %9819 = vmatpush.msk.msra.mxu1 %vm138_vm1, %v4576_v3  ;;  %v4171_v31 = vpop.f32.mrf.mxu0  ;;  %v4191_v41 = vpop.f32.mrf.mxu1  ;;  %v4579_v7 = vsel %vm80_vm0, %v4531_v35, 1.0  ;;  %v4580_v19 = vsel %vm80_vm0, %v4532_v44, 1.0  ;;  %v4581_v52 = vsel %vm80_vm0, %v4533_v45, 1.0  ;;  %v4582_v2 = vsel %vm80_vm0, %v4534_v63, 1.0 }
 0x484   :  { %9828 = vmatpush.msk.msra.mxu2 %vm138_vm1, %v4577_v0  ;;  %9837 = vmatpush.msk.msra.mxu3 %vm138_vm1, %v4578_v27  ;;  %v13347_v62 = vadd.f32 %v4171_v31, %v13101_v36  ;;  %v13350_v16 = vadd.f32 %v4191_v41, %v13101_v36 }
 0x486   :  { %16817 = vst [vmem:[#allocation48_spill] sm:$0xff] %v13347_v62  ;;  %v4348_v15 = vmul.f32 1.442695, %v13350_v16  ;;  %v4346_v39 = vmul.f32 1.442695, %v13347_v62 }
 0x487   :  { %16818 = vst [vmem:[#allocation59_spill] sm:$0xff] %v13350_v16 }
 0x488   :  { %4477 = vst [vmem:[#allocation1] sm:$0xff] %v13347_v62  ;;  %10305 = vpow2.f32 %v4348_v15 }
 0x489   :  { %4478 = vst [vmem:[#allocation1 + $0x9] sm:$0xff] %v13350_v16  ;;  %9743 = vmatmul.msk.f32.gmra.mxu0 %vm113_vm2, %v13361_v30  ;;  %9752 = vmatmul.msk.f32.gmra.mxu1 %vm113_vm2, %v13361_v30  ;;  %10307 = vpow2.f32 %v4346_v39 }
 0x48a   :  { %9761 = vmatmul.msk.f32.gmra.mxu2 %vm113_vm2, %v13361_v30  ;;  %9770 = vmatmul.msk.f32.gmra.mxu3 %vm113_vm2, %v13361_v30 }
 0x48e   :  { %v10306_v46 = vpop.eup %10305 }
 0x48f   :  { %v4211_v17 = vpop.f32.mrf.mxu2  ;;  %v4231_v55 = vpop.f32.mrf.mxu3  ;;  %v4400_v37 = vrot.slane %v10306_v46, 7 }
 0x490   :  { %v13379_v43 = vadd.f32 %v4211_v17, %v13101_v36  ;;  %v13382_v24 = vadd.f32 %v4231_v55, %v13101_v36  ;;  %v10308_v34 = vpop.eup %10307 }
 0x491   :  { %v4421_v10 = vsel %vm80_vm0, %v10308_v34, %v4400_v37  ;;  %9744 = vmatmul.msk.f32.gmra.mxu0 %vm113_vm2, %v13376_v61  ;;  %9753 = vmatmul.msk.f32.gmra.mxu1 %vm113_vm2, %v13376_v61 }
 0x492   :  { %16819 = vst [vmem:[#allocation60_spill] sm:$0xff] %v13379_v43  ;;  %v4350_v22 = vmul.f32 1.442695, %v13379_v43  ;;  %v4352_v48 = vmul.f32 1.442695, %v13382_v24  ;;  %9762 = vmatmul.msk.f32.gmra.mxu2 %vm113_vm2, %v13376_v61  ;;  %9771 = vmatmul.msk.f32.gmra.mxu3 %vm113_vm2, %v13376_v61 }
 0x493   :  { %16820 = vst [vmem:[#allocation56_spill] sm:$0xff] %v13382_v24 }
 0x494   :  { %4479 = vst [vmem:[#allocation1 + $0x12] sm:$0xff] %v13379_v43  ;;  %10309 = vpow2.f32 %v4350_v22 }
 0x495   :  { %4480 = vst [vmem:[#allocation1 + $0x1b] sm:$0xff] %v13382_v24  ;;  %10311 = vpow2.f32 %v4352_v48 }
 0x499   :  { %9745 = vmatmul.msk.f32.gmra.mxu0 %vm113_vm2, %v13400_v23  ;;  %9754 = vmatmul.msk.f32.gmra.mxu1 %vm113_vm2, %v13400_v23 }
 0x49a   :  { %v10310_v5 = vpop.eup %10309  ;;  %9763 = vmatmul.msk.f32.gmra.mxu2 %vm113_vm2, %v13400_v23  ;;  %9772 = vmatmul.msk.f32.gmra.mxu3 %vm113_vm2, %v13400_v23 }
 0x49b   :  { %v10312_v42 = vpop.eup %10311  ;;  %v4401_v26 = vrot.slane %v10310_v5, 6 }
 0x49c   :  { %v4402_v50 = vrot.slane %v10312_v42, 5 }
 0x49e   :  { %v4422_v21 = vsel %vm2164_vm4, %v4401_v26, %v4402_v50 }
 0x49f   :  { %v13412_v47 = vsel %vm138_vm1, %v4421_v10, %v4422_v21  ;;  %v10433_v21 = vld [vmem:[%s16284_s0 + $0x20] ss:$2 sm:$0xff] }
 0x4a1   :  { %9746 = vmatmul.msk.f32.gmra.mxu0 %vm113_vm2, %v13417_v53  ;;  %9755 = vmatmul.msk.f32.gmra.mxu1 %vm113_vm2, %v13417_v53 }
 0x4a2   :  { %9764 = vmatmul.msk.f32.gmra.mxu2 %vm113_vm2, %v13417_v53  ;;  %9773 = vmatmul.msk.f32.gmra.mxu3 %vm113_vm2, %v13417_v53 }
 0x4a9   :  { %9775 = vmatmul.msk.f32.vlgmr.msrb.gmra.mxu0 %vm113_vm2, %v13249_v18  ;;  %9784 = vmatmul.msk.f32.vlgmr.msrb.gmra.mxu1 %vm113_vm2, %v13249_v18 }
 0x4aa   :  { %9846 = vmatpush.msk.msrb.mxu0 %vm138_vm1, %v4579_v7  ;;  %9855 = vmatpush.msk.msrb.mxu1 %vm138_vm1, %v4580_v19 }
 0x4ab   :  { %9793 = vmatmul.msk.f32.vlgmr.msrb.gmra.mxu2 %vm113_vm2, %v13249_v18  ;;  %9802 = vmatmul.msk.f32.vlgmr.msrb.gmra.mxu3 %vm113_vm2, %v13249_v18 }
 0x4ac   :  { %9864 = vmatpush.msk.msrb.mxu2 %vm138_vm1, %v4581_v52  ;;  %9873 = vmatpush.msk.msrb.mxu3 %vm138_vm1, %v4582_v2 }
 0x4b1   :  { %9776 = vmatmul.msk.f32.gmra.mxu0 %vm113_vm2, %v13290_v59  ;;  %9785 = vmatmul.msk.f32.gmra.mxu1 %vm113_vm2, %v13290_v59 }
 0x4b3   :  { %9794 = vmatmul.msk.f32.gmra.mxu2 %vm113_vm2, %v13290_v59  ;;  %9803 = vmatmul.msk.f32.gmra.mxu3 %vm113_vm2, %v13290_v59 }
 0x4b9   :  { %9777 = vmatmul.msk.f32.gmra.mxu0 %vm113_vm2, %v13304_v32  ;;  %9786 = vmatmul.msk.f32.gmra.mxu1 %vm113_vm2, %v13304_v32 }
 0x4bb   :  { %9795 = vmatmul.msk.f32.gmra.mxu2 %vm113_vm2, %v13304_v32  ;;  %9804 = vmatmul.msk.f32.gmra.mxu3 %vm113_vm2, %v13304_v32 }
 0x4c1   :  { %9778 = vmatmul.msk.f32.gmra.mxu0 %vm113_vm2, %v13328_v11  ;;  %9787 = vmatmul.msk.f32.gmra.mxu1 %vm113_vm2, %v13328_v11 }
 0x4c3   :  { %9796 = vmatmul.msk.f32.gmra.mxu2 %vm113_vm2, %v13328_v11  ;;  %9805 = vmatmul.msk.f32.gmra.mxu3 %vm113_vm2, %v13328_v11 }
 0x4c7   :  { %v4251_v28 = vpop.f32.mrf.mxu0  ;;  %v4271_v20 = vpop.f32.mrf.mxu1 }
 0x4c8   :  { %v13472_v29 = vadd.f32 %v4251_v28, %v13101_v36  ;;  %v13475_v40 = vadd.f32 %v4271_v20, %v13101_v36 }
 0x4c9   :  { %9779 = vmatmul.msk.f32.gmra.mxu0 %vm113_vm2, %v13361_v30  ;;  %9788 = vmatmul.msk.f32.gmra.mxu1 %vm113_vm2, %v13361_v30 }
 0x4ca   :  { %16821 = vst [vmem:[#allocation52_spill] sm:$0xff] %v13472_v29  ;;  %v4354_v3 = vmul.f32 1.442695, %v13472_v29  ;;  %v4356_v0 = vmul.f32 1.442695, %v13475_v40 }
 0x4cb   :  { %16822 = vst [vmem:[#allocation38_spill] sm:$0xff] %v13475_v40  ;;  %9797 = vmatmul.msk.f32.gmra.mxu2 %vm113_vm2, %v13361_v30  ;;  %9806 = vmatmul.msk.f32.gmra.mxu3 %vm113_vm2, %v13361_v30 }
 0x4cc   :  { %4481 = vst [vmem:[#allocation1 + $0x24] sm:$0xff] %v13472_v29  ;;  %10313 = vpow2.f32 %v4354_v3 }
 0x4cd   :  { %4482 = vst [vmem:[#allocation1 + $0x2d] sm:$0xff] %v13475_v40  ;;  %10315 = vpow2.f32 %v4356_v0 }
 0x4d1   :  { %9780 = vmatmul.msk.f32.gmra.mxu0 %vm113_vm2, %v13376_v61  ;;  %9789 = vmatmul.msk.f32.gmra.mxu1 %vm113_vm2, %v13376_v61 }
 0x4d2   :  { %v10314_v17 = vpop.eup %10313 }
 0x4d3   :  { %v4291_v27 = vpop.f32.mrf.mxu2  ;;  %v4311_v31 = vpop.f32.mrf.mxu3  ;;  %9798 = vmatmul.msk.f32.gmra.mxu2 %vm113_vm2, %v13376_v61  ;;  %9807 = vmatmul.msk.f32.gmra.mxu3 %vm113_vm2, %v13376_v61  ;;  %v4403_v37 = vrot.slane %v10314_v17, 4 }
 0x4d4   :  { %v13494_v41 = vadd.f32 %v4291_v27, %v13101_v36  ;;  %v13497_v15 = vadd.f32 %v4311_v31, %v13101_v36  ;;  %v10316_v36 = vpop.eup %10315 }
 0x4d5   :  { %v4404_v34 = vrot.slane %v10316_v36, 3 }
 0x4d6   :  { %16823 = vst [vmem:[#allocation39_spill] sm:$0xff] %v13494_v41  ;;  %v4358_v39 = vmul.f32 1.442695, %v13494_v41  ;;  %v4360_v46 = vmul.f32 1.442695, %v13497_v15 }
 0x4d7   :  { %16824 = vst [vmem:[#allocation42_spill] sm:$0xff] %v13497_v15  ;;  %v4424_v5 = vsel %vm2167_vm5, %v4403_v37, %v4404_v34 }
 0x4d8   :  { %4483 = vst [vmem:[#allocation1 + $0x36] sm:$0xff] %v13494_v41  ;;  %10317 = vpow2.f32 %v4358_v39 }
 0x4d9   :  { %4484 = vst [vmem:[#allocation1 + $0x3f] sm:$0xff] %v13497_v15  ;;  %10319 = vpow2.f32 %v4360_v46  ;;  %9781 = vmatmul.msk.f32.gmra.mxu0 %vm113_vm2, %v13400_v23  ;;  %9790 = vmatmul.msk.f32.gmra.mxu1 %vm113_vm2, %v13400_v23 }
 0x4db   :  { %9799 = vmatmul.msk.f32.gmra.mxu2 %vm113_vm2, %v13400_v23  ;;  %9808 = vmatmul.msk.f32.gmra.mxu3 %vm113_vm2, %v13400_v23 }
 0x4de   :  { %v10318_v55 = vpop.eup %10317 }
 0x4df   :  { %v10320_v10 = vpop.eup %10319  ;;  %v4405_v22 = vrot.slane %v10318_v55, 2 }
 0x4e0   :  { %v4406_v48 = vrot.slane %v10320_v10, 1  ;;  %v4485_v44 = vld [vmem:[#allocation1 + $0x1] ss:$9 sm:$0xff] }
 0x4e1   :  { %9782 = vmatmul.msk.f32.gmra.mxu0 %vm113_vm2, %v13417_v53  ;;  %9791 = vmatmul.msk.f32.gmra.mxu1 %vm113_vm2, %v13417_v53 }
 0x4e2   :  { %v4425_v42 = vsel %vm2169_vm6, %v4405_v22, %v4406_v48 }
 0x4e3   :  { %v4426_v26 = vsel %vm2171_vm7, %v4424_v5, %v4425_v42  ;;  %9800 = vmatmul.msk.f32.gmra.mxu2 %vm113_vm2, %v13417_v53  ;;  %9809 = vmatmul.msk.f32.gmra.mxu3 %vm113_vm2, %v13417_v53 }
 0x4e4   :  { %v4427_v50 = vsel %vm2173_vm8, %v13412_v47, %v4426_v26 }
 0x4e5   :  { %v4433_v35 = vmul.f32 %v10433_v21, %v4427_v50 }
 0x4e6   :  { %v13533_v63 = vpop.f32.mrf.mxu0  ;;  %v13535_v7 = vpop.f32.mrf.mxu1 }
 0x4e7   :  { %v13531_v45 = vadd.f32 %v4485_v44, %v4433_v35 }
 0x4e9   :  { %16825 = vst [vmem:[#allocation43_spill] sm:$0xff] %v13531_v45  ;;  %v4535_v47 = vperm.slane %v13531_v45, 0  ;;  %v4536_v19 = vperm.slane %v13531_v45, 1  ;;  %v4537_v52 = vperm.slane %v13531_v45, 2  ;;  %v4538_v2 = vperm.slane %v13531_v45, 3  ;;  %9811 = vmatmul.msk.f32.vlgmr.msra.gmra.mxu0 %vm113_vm2, %v13249_v18  ;;  %9820 = vmatmul.msk.f32.vlgmr.msra.gmra.mxu1 %vm113_vm2, %v13249_v18 }
 0x4ea   :  { %v4539_v4 = vperm.slane %v13531_v45, 4  ;;  %v4540_v15 = vperm.slane %v13531_v45, 5  ;;  %v4541_v43 = vperm.slane %v13531_v45, 6  ;;  %v4542_v16 = vperm.slane %v13531_v45, 7 }
 0x4eb   :  { %v4583_v28 = vsel %vm80_vm0, %v4535_v47, 1.0  ;;  %v4584_v20 = vsel %vm80_vm0, %v4536_v19, 1.0  ;;  %v4585_v3 = vsel %vm80_vm0, %v4537_v52, 1.0  ;;  %v4586_v0 = vsel %vm80_vm0, %v4538_v2, 1.0  ;;  %9829 = vmatmul.msk.f32.vlgmr.msra.gmra.mxu2 %vm113_vm2, %v13249_v18  ;;  %9838 = vmatmul.msk.f32.vlgmr.msra.gmra.mxu3 %vm113_vm2, %v13249_v18 }
 0x4ec   :  { %9882 = vmatpush.msk.msra.mxu0 %vm138_vm1, %v4583_v28  ;;  %9891 = vmatpush.msk.msra.mxu1 %vm138_vm1, %v4584_v20  ;;  %v4587_v62 = vsel %vm80_vm0, %v4539_v4, 1.0  ;;  %v4588_v14 = vsel %vm80_vm0, %v4540_v15, 1.0  ;;  %v4589_v45 = vsel %vm80_vm0, %v4541_v43, 1.0  ;;  %v4590_v1 = vsel %vm80_vm0, %v4542_v16, 1.0 }
 0x4ed   :  { %v13555_v27 = vpop.f32.mrf.mxu2  ;;  %v13557_v31 = vpop.f32.mrf.mxu3  ;;  %9900 = vmatpush.msk.msra.mxu2 %vm138_vm1, %v4585_v3  ;;  %9909 = vmatpush.msk.msra.mxu3 %vm138_vm1, %v4586_v0 }
 0x4ee   :  { %v13561_v39 = vpop.f32.mrf.mxu0  ;;  %v13563_v46 = vpop.f32.mrf.mxu1 }
 0x4f1   :  { %9812 = vmatmul.msk.f32.gmra.mxu0 %vm113_vm2, %v13290_v59  ;;  %9821 = vmatmul.msk.f32.gmra.mxu1 %vm113_vm2, %v13290_v59 }
 0x4f3   :  { %9830 = vmatmul.msk.f32.gmra.mxu2 %vm113_vm2, %v13290_v59  ;;  %9839 = vmatmul.msk.f32.gmra.mxu3 %vm113_vm2, %v13290_v59 }
 0x4f5   :  { %v13573_v17 = vpop.f32.mrf.mxu2  ;;  %v13575_v36 = vpop.f32.mrf.mxu3 }
 0x4f6   :  { %v13577_v55 = vpop.f32.mrf.mxu0  ;;  %v13579_v37 = vpop.f32.mrf.mxu1 }
 0x4f9   :  { %9813 = vmatmul.msk.f32.gmra.mxu0 %vm113_vm2, %v13304_v32  ;;  %9822 = vmatmul.msk.f32.gmra.mxu1 %vm113_vm2, %v13304_v32 }
 0x4fb   :  { %9831 = vmatmul.msk.f32.gmra.mxu2 %vm113_vm2, %v13304_v32  ;;  %9840 = vmatmul.msk.f32.gmra.mxu3 %vm113_vm2, %v13304_v32 }
 0x4fd   :  { %v13589_v34 = vpop.f32.mrf.mxu2  ;;  %v13591_v10 = vpop.f32.mrf.mxu3 }
 0x4fe   :  { %v13593_v22 = vpop.f32.mrf.mxu0  ;;  %v13595_v48 = vpop.f32.mrf.mxu1 }
 0x501   :  { %9814 = vmatmul.msk.f32.gmra.mxu0 %vm113_vm2, %v13328_v11  ;;  %9823 = vmatmul.msk.f32.gmra.mxu1 %vm113_vm2, %v13328_v11 }
 0x503   :  { %9832 = vmatmul.msk.f32.gmra.mxu2 %vm113_vm2, %v13328_v11  ;;  %9841 = vmatmul.msk.f32.gmra.mxu3 %vm113_vm2, %v13328_v11 }
 0x505   :  { %v13609_v26 = vpop.f32.mrf.mxu2  ;;  %v13611_v50 = vpop.f32.mrf.mxu3 }
 0x506   :  { %v13605_v5 = vpop.f32.mrf.mxu0  ;;  %v13607_v42 = vpop.f32.mrf.mxu1 }
 0x509   :  { %9815 = vmatmul.msk.f32.gmra.mxu0 %vm113_vm2, %v13361_v30  ;;  %9824 = vmatmul.msk.f32.gmra.mxu1 %vm113_vm2, %v13361_v30 }
 0x50b   :  { %9833 = vmatmul.msk.f32.gmra.mxu2 %vm113_vm2, %v13361_v30  ;;  %9842 = vmatmul.msk.f32.gmra.mxu3 %vm113_vm2, %v13361_v30 }
 0x50d   :  { %v13625_v44 = vpop.f32.mrf.mxu2  ;;  %v13627_v47 = vpop.f32.mrf.mxu3 }
 0x50e   :  { %v13621_v21 = vpop.f32.mrf.mxu0  ;;  %v13623_v35 = vpop.f32.mrf.mxu1 }
 0x511   :  { %9816 = vmatmul.msk.f32.gmra.mxu0 %vm113_vm2, %v13376_v61  ;;  %9825 = vmatmul.msk.f32.gmra.mxu1 %vm113_vm2, %v13376_v61 }
 0x513   :  { %9834 = vmatmul.msk.f32.gmra.mxu2 %vm113_vm2, %v13376_v61  ;;  %9843 = vmatmul.msk.f32.gmra.mxu3 %vm113_vm2, %v13376_v61 }
 0x515   :  { %v13641_v2 = vpop.f32.mrf.mxu2  ;;  %v13643_v28 = vpop.f32.mrf.mxu3 }
 0x516   :  { %v13637_v19 = vpop.f32.mrf.mxu0  ;;  %v13639_v52 = vpop.f32.mrf.mxu1 }
 0x519   :  { %9817 = vmatmul.msk.f32.gmra.mxu0 %vm113_vm2, %v13400_v23  ;;  %9826 = vmatmul.msk.f32.gmra.mxu1 %vm113_vm2, %v13400_v23 }
 0x51b   :  { %9835 = vmatmul.msk.f32.gmra.mxu2 %vm113_vm2, %v13400_v23  ;;  %9844 = vmatmul.msk.f32.gmra.mxu3 %vm113_vm2, %v13400_v23 }
 0x51d   :  { %v13657_v0 = vpop.f32.mrf.mxu2  ;;  %v13659_v9 = vpop.f32.mrf.mxu3 }
 0x51e   :  { %v13653_v20 = vpop.f32.mrf.mxu0  ;;  %v13655_v3 = vpop.f32.mrf.mxu1 }
 0x521   :  { %9818 = vmatmul.msk.f32.gmra.mxu0 %vm113_vm2, %v13417_v53  ;;  %9827 = vmatmul.msk.f32.gmra.mxu1 %vm113_vm2, %v13417_v53 }
 0x523   :  { %9836 = vmatmul.msk.f32.gmra.mxu2 %vm113_vm2, %v13417_v53  ;;  %9845 = vmatmul.msk.f32.gmra.mxu3 %vm113_vm2, %v13417_v53 }
 0x525   :  { %v13675_v29 = vpop.f32.mrf.mxu2  ;;  %v13677_v24 = vpop.f32.mrf.mxu3 }
 0x526   :  { %v13671_v41 = vpop.f32.mrf.mxu0  ;;  %v13673_v40 = vpop.f32.mrf.mxu1 }
 0x527   :  { %16826 = vst [vmem:[#allocation36_spill] sm:$0xff] %v13671_v41 }
 0x528   :  { %16827 = vst [vmem:[#allocation37_spill] sm:$0xff] %v13673_v40 }
 0x529   :  { %9847 = vmatmul.msk.f32.vlgmr.msrb.gmra.mxu0 %vm113_vm2, %v13249_v18  ;;  %9856 = vmatmul.msk.f32.vlgmr.msrb.gmra.mxu1 %vm113_vm2, %v13249_v18 }
 0x52a   :  { %9918 = vmatpush.msk.msrb.mxu0 %vm138_vm1, %v4587_v62  ;;  %9927 = vmatpush.msk.msrb.mxu1 %vm138_vm1, %v4588_v14 }
 0x52b   :  { %9865 = vmatmul.msk.f32.vlgmr.msrb.gmra.mxu2 %vm113_vm2, %v13249_v18  ;;  %9874 = vmatmul.msk.f32.vlgmr.msrb.gmra.mxu3 %vm113_vm2, %v13249_v18 }
 0x52c   :  { %9936 = vmatpush.msk.msrb.mxu2 %vm138_vm1, %v4589_v45  ;;  %9945 = vmatpush.msk.msrb.mxu3 %vm138_vm1, %v4590_v1 }
 0x52e   :  { %v13697_v4 = vpop.f32.mrf.mxu0  ;;  %v13699_v15 = vpop.f32.mrf.mxu1 }
 0x52f   :  { %16828 = vst [vmem:[#allocation61_spill] sm:$0xff] %v13697_v4  ;;  %v13701_v62 = vpop.f32.mrf.mxu2  ;;  %v13703_v14 = vpop.f32.mrf.mxu3  ;;  %v5848_v4 = vmul.f32 0.01, %v13655_v3 }
 0x530   :  { %16829 = vst [vmem:[#allocation62_spill] sm:$0xff] %v13699_v15  ;;  %v5847_v15 = vmul.f32 0.01, %v13653_v20 }
 0x531   :  { %16830 = vst [vmem:[#allocation63_spill] sm:$0xff] %v13701_v62  ;;  %9848 = vmatmul.msk.f32.gmra.mxu0 %vm113_vm2, %v13290_v59  ;;  %9857 = vmatmul.msk.f32.gmra.mxu1 %vm113_vm2, %v13290_v59 }
 0x532   :  { %16831 = vst [vmem:[#allocation64_spill] sm:$0xff] %v13703_v14 }
 0x533   :  { %9866 = vmatmul.msk.f32.gmra.mxu2 %vm113_vm2, %v13290_v59  ;;  %9875 = vmatmul.msk.f32.gmra.mxu3 %vm113_vm2, %v13290_v59 }
 0x536   :  { %v13713_v1 = vpop.f32.mrf.mxu0  ;;  %v13715_v16 = vpop.f32.mrf.mxu1 }
 0x537   :  { %16832 = vst [vmem:[#allocation65_spill] sm:$0xff] %v13713_v1  ;;  %v13717_v43 = vpop.f32.mrf.mxu2  ;;  %v13719_v45 = vpop.f32.mrf.mxu3  ;;  %v5850_v1 = vmul.f32 0.01, %v13677_v24 }
 0x538   :  { %16833 = vst [vmem:[#allocation66_spill] sm:$0xff] %v13715_v16  ;;  %v5849_v16 = vmul.f32 0.01, %v13675_v29 }
 0x539   :  { %16834 = vst [vmem:[#allocation67_spill] sm:$0xff] %v13717_v43  ;;  %9849 = vmatmul.msk.f32.gmra.mxu0 %vm113_vm2, %v13304_v32  ;;  %9858 = vmatmul.msk.f32.gmra.mxu1 %vm113_vm2, %v13304_v32 }
 0x53a   :  { %16835 = vst [vmem:[#allocation68_spill] sm:$0xff] %v13719_v45 }
 0x53b   :  { %9867 = vmatmul.msk.f32.gmra.mxu2 %vm113_vm2, %v13304_v32  ;;  %9876 = vmatmul.msk.f32.gmra.mxu3 %vm113_vm2, %v13304_v32 }
 0x53e   :  { %v13729_v54 = vpop.f32.mrf.mxu0  ;;  %v13731_v13 = vpop.f32.mrf.mxu1 }
 0x53f   :  { %16836 = vst [vmem:[#allocation69_spill] sm:$0xff] %v13729_v54  ;;  %v13733_v60 = vpop.f32.mrf.mxu2  ;;  %v13735_v6 = vpop.f32.mrf.mxu3  ;;  %v5824_v54 = vmul.f32 0.01, %v13639_v52 }
 0x540   :  { %16837 = vst [vmem:[#allocation70_spill] sm:$0xff] %v13731_v13  ;;  %v5823_v13 = vmul.f32 0.01, %v13637_v19 }
 0x541   :  { %16838 = vst [vmem:[#allocation71_spill] sm:$0xff] %v13733_v60  ;;  %9850 = vmatmul.msk.f32.gmra.mxu0 %vm113_vm2, %v13328_v11  ;;  %9859 = vmatmul.msk.f32.gmra.mxu1 %vm113_vm2, %v13328_v11 }
 0x542   :  { %16839 = vst [vmem:[#allocation72_spill] sm:$0xff] %v13735_v6 }
 0x543   :  { %9868 = vmatmul.msk.f32.gmra.mxu2 %vm113_vm2, %v13328_v11  ;;  %9877 = vmatmul.msk.f32.gmra.mxu3 %vm113_vm2, %v13328_v11 }
 0x546   :  { %v13745_v49 = vpop.f32.mrf.mxu0  ;;  %v13747_v33 = vpop.f32.mrf.mxu1 }
 0x547   :  { %16840 = vst [vmem:[#allocation73_spill] sm:$0xff] %v13745_v49  ;;  %v13749_v51 = vpop.f32.mrf.mxu2  ;;  %v13751_v8 = vpop.f32.mrf.mxu3  ;;  %v5800_v49 = vmul.f32 0.01, %v13623_v35 }
 0x548   :  { %16841 = vst [vmem:[#allocation74_spill] sm:$0xff] %v13747_v33  ;;  %v5799_v33 = vmul.f32 0.01, %v13621_v21 }
 0x549   :  { %16842 = vst [vmem:[#allocation75_spill] sm:$0xff] %v13749_v51  ;;  %9851 = vmatmul.msk.f32.gmra.mxu0 %vm113_vm2, %v13361_v30  ;;  %9860 = vmatmul.msk.f32.gmra.mxu1 %vm113_vm2, %v13361_v30 }
 0x54a   :  { %16843 = vst [vmem:[#allocation76_spill] sm:$0xff] %v13751_v8 }
 0x54b   :  { %9869 = vmatmul.msk.f32.gmra.mxu2 %vm113_vm2, %v13361_v30  ;;  %9878 = vmatmul.msk.f32.gmra.mxu3 %vm113_vm2, %v13361_v30 }
 0x54e   :  { %v13761_v57 = vpop.f32.mrf.mxu0  ;;  %v13763_v38 = vpop.f32.mrf.mxu1 }
 0x54f   :  { %16844 = vst [vmem:[#allocation77_spill] sm:$0xff] %v13761_v57  ;;  %v13765_v58 = vpop.f32.mrf.mxu2  ;;  %v13767_v56 = vpop.f32.mrf.mxu3  ;;  %v6016_v57 = vmax.f32 %v13639_v52, %v5824_v54  ;;  %v5992_v54 = vmax.f32 %v13623_v35, %v5800_v49  ;;  %v5752_v49 = vmul.f32 0.01, %v13595_v48 }
 0x550   :  { %16845 = vst [vmem:[#allocation78_spill] sm:$0xff] %v13763_v38  ;;  %v6015_v38 = vmax.f32 %v13637_v19, %v5823_v13  ;;  %v5991_v13 = vmax.f32 %v13621_v21, %v5799_v33  ;;  %v5751_v33 = vmul.f32 0.01, %v13593_v22  ;;  %v5754_v21 = vmul.f32 0.01, %v13611_v50 }
 0x551   :  { %16846 = vst [vmem:[#allocation79_spill] sm:$0xff] %v13765_v58  ;;  %9852 = vmatmul.msk.f32.gmra.mxu0 %vm113_vm2, %v13376_v61  ;;  %9861 = vmatmul.msk.f32.gmra.mxu1 %vm113_vm2, %v13376_v61  ;;  %v6040_v58 = vmax.f32 %v13655_v3, %v5848_v4  ;;  %v5802_v3 = vmul.f32 0.01, %v13643_v28  ;;  %v6041_v4 = vmax.f32 %v13675_v29, %v5849_v16  ;;  %v5705_v16 = vmul.f32 0.01, %v13573_v17 }
 0x552   :  { %16847 = vst [vmem:[#allocation80_spill] sm:$0xff] %v13767_v56  ;;  %v6039_v56 = vmax.f32 %v13653_v20, %v5847_v15  ;;  %v5801_v20 = vmul.f32 0.01, %v13641_v2  ;;  %v6042_v15 = vmax.f32 %v13677_v24, %v5850_v1 }
 0x553   :  { %9870 = vmatmul.msk.f32.gmra.mxu2 %vm113_vm2, %v13376_v61  ;;  %9879 = vmatmul.msk.f32.gmra.mxu3 %vm113_vm2, %v13376_v61  ;;  %v5994_v1 = vmax.f32 %v13643_v28, %v5802_v3  ;;  %v5727_v28 = vmul.f32 0.01, %v13577_v55 }
 0x556   :  { %v13777_v25 = vpop.f32.mrf.mxu0  ;;  %v13779_v12 = vpop.f32.mrf.mxu1 }
 0x557   :  { %v13781_v14 = vpop.f32.mrf.mxu2  ;;  %v13783_v62 = vpop.f32.mrf.mxu3 }
 0x558   :  { %16848 = vst [vmem:[#allocation81_spill] sm:$0xff] %v13781_v14  ;;  %v5776_v14 = vmul.f32 0.01, %v13607_v42 }
 0x559   :  { %16849 = vst [vmem:[#allocation82_spill] sm:$0xff] %v13783_v62  ;;  %9853 = vmatmul.msk.f32.gmra.mxu0 %vm113_vm2, %v13400_v23  ;;  %9862 = vmatmul.msk.f32.gmra.mxu1 %vm113_vm2, %v13400_v23  ;;  %v5775_v62 = vmul.f32 0.01, %v13605_v5 }
 0x55b   :  { %9871 = vmatmul.msk.f32.gmra.mxu2 %vm113_vm2, %v13400_v23  ;;  %9880 = vmatmul.msk.f32.gmra.mxu3 %vm113_vm2, %v13400_v23 }
 0x55e   :  { %v13793_v40 = vpop.f32.mrf.mxu0  ;;  %v13795_v41 = vpop.f32.mrf.mxu1 }
 0x55f   :  { %v13797_v45 = vpop.f32.mrf.mxu2  ;;  %v13799_v43 = vpop.f32.mrf.mxu3 }
 0x561   :  { %9854 = vmatmul.msk.f32.gmra.mxu0 %vm113_vm2, %v13417_v53  ;;  %9863 = vmatmul.msk.f32.gmra.mxu1 %vm113_vm2, %v13417_v53 }
 0x563   :  { %9872 = vmatmul.msk.f32.gmra.mxu2 %vm113_vm2, %v13417_v53  ;;  %9881 = vmatmul.msk.f32.gmra.mxu3 %vm113_vm2, %v13417_v53 }
 0x566   :  { %v13811_v6 = vpop.f32.mrf.mxu0  ;;  %v13813_v60 = vpop.f32.mrf.mxu1 }
 0x567   :  { %16850 = vst [vmem:[#allocation83_spill] sm:$0xff] %v13811_v6  ;;  %v13817_v8 = vpop.f32.mrf.mxu2  ;;  %v13819_v51 = vpop.f32.mrf.mxu3  ;;  %v5825_v6 = vmul.f32 0.01, %v13657_v0 }
 0x568   :  { %16851 = vst [vmem:[#allocation84_spill] sm:$0xff] %v13813_v60  ;;  %v5826_v60 = vmul.f32 0.01, %v13659_v9 }
 0x569   :  { %9883 = vmatmul.msk.f32.vlgmr.msra.gmra.mxu0 %vm113_vm2, %v13249_v18  ;;  %9892 = vmatmul.msk.f32.vlgmr.msra.gmra.mxu1 %vm113_vm2, %v13249_v18  ;;  %v6017_v24 = vmax.f32 %v13657_v0, %v5825_v6  ;;  %v5728_v0 = vmul.f32 0.01, %v13579_v37 }
 0x56a   :  { %6081 = vmatpush.msra.mxu0 %v6039_v56  ;;  %6101 = vmatpush.msra.mxu1 %v6040_v58  ;;  %v5777_v56 = vmul.f32 0.01, %v13625_v44  ;;  %v5778_v58 = vmul.f32 0.01, %v13627_v47  ;;  %v6018_v29 = vmax.f32 %v13659_v9, %v5826_v60  ;;  %v5753_v9 = vmul.f32 0.01, %v13609_v26 }
 0x56b   :  { %9901 = vmatmul.msk.f32.vlgmr.msra.gmra.mxu2 %vm113_vm2, %v13249_v18  ;;  %9910 = vmatmul.msk.f32.vlgmr.msra.gmra.mxu3 %vm113_vm2, %v13249_v18  ;;  %v5993_v18 = vmax.f32 %v13641_v2, %v5801_v20  ;;  %v5706_v20 = vmul.f32 0.01, %v13575_v36 }
 0x56c   :  { %6121 = vmatpush.msra.mxu2 %v6041_v4  ;;  %6141 = vmatpush.msra.mxu3 %v6042_v15  ;;  %v5969_v35 = vmax.f32 %v13625_v44, %v5777_v56  ;;  %v5970_v2 = vmax.f32 %v13627_v47, %v5778_v58  ;;  %v5704_v44 = vmul.f32 0.01, %v13563_v46  ;;  %v5943_v47 = vmax.f32 %v13593_v22, %v5751_v33 }
 0x56d   :  { %6082 = vmatpush.msra.mxu0 %v6015_v38  ;;  %6102 = vmatpush.msra.mxu1 %v6016_v57  ;;  %v5967_v38 = vmax.f32 %v13605_v5, %v5775_v62  ;;  %v5968_v57 = vmax.f32 %v13607_v42, %v5776_v14  ;;  %v5729_v5 = vmul.f32 0.01, %v13589_v34  ;;  %v5730_v42 = vmul.f32 0.01, %v13591_v10 }
 0x56e   :  { %v13851_v19 = vpop.f32.mrf.mxu0  ;;  %v13853_v52 = vpop.f32.mrf.mxu1  ;;  %6122 = vmatpush.msra.mxu2 %v6017_v24  ;;  %6142 = vmatpush.msra.mxu3 %v6018_v29  ;;  %v5703_v62 = vmul.f32 0.01, %v13561_v39  ;;  %v5944_v14 = vmax.f32 %v13595_v48, %v5752_v49  ;;  %v5945_v3 = vmax.f32 %v13609_v26, %v5753_v9  ;;  %v5946_v4 = vmax.f32 %v13611_v50, %v5754_v21 }
 0x56f   :  { %v13857_v6 = vpop.f32.mrf.mxu2  ;;  %v13859_v60 = vpop.f32.mrf.mxu3  ;;  %6083 = vmatpush.msra.mxu0 %v5991_v13  ;;  %6103 = vmatpush.msra.mxu1 %v5992_v54  ;;  %v5679_v22 = vmul.f32 0.01, %v13533_v63  ;;  %v5680_v48 = vmul.f32 0.01, %v13535_v7  ;;  %v5919_v15 = vmax.f32 %v13577_v55, %v5727_v28  ;;  %v5920_v56 = vmax.f32 %v13579_v37, %v5728_v0 }
 0x570   :  { %6123 = vmatpush.msra.mxu2 %v5993_v18  ;;  %6143 = vmatpush.msra.mxu3 %v5994_v1  ;;  %v5681_v50 = vmul.f32 0.01, %v13555_v27  ;;  %v5682_v24 = vmul.f32 0.01, %v13557_v31  ;;  %v5922_v29 = vmax.f32 %v13591_v10, %v5730_v42  ;;  %v5895_v37 = vmax.f32 %v13561_v39, %v5703_v62 }
 0x571   :  { %6084 = vmatpush.msra.mxu0 %v5967_v38  ;;  %6104 = vmatpush.msra.mxu1 %v5968_v57  ;;  %v5896_v54 = vmax.f32 %v13563_v46, %v5704_v44  ;;  %v5897_v18 = vmax.f32 %v13573_v17, %v5705_v16  ;;  %v5898_v1 = vmax.f32 %v13575_v36, %v5706_v20  ;;  %v5851_v44 = vmul.f32 0.01, %v13793_v40 }
 0x572   :  { %6124 = vmatpush.msra.mxu2 %v5969_v35  ;;  %6144 = vmatpush.msra.mxu3 %v5970_v2  ;;  %v5872_v10 = vmax.f32 %v13535_v7, %v5680_v48  ;;  %v5873_v33 = vmax.f32 %v13555_v27, %v5681_v50  ;;  %v5874_v39 = vmax.f32 %v13557_v31, %v5682_v24  ;;  %v5854_v16 = vmul.f32 0.01, %v13819_v51 }
 0x573   :  { %9884 = vmatmul.msk.f32.gmra.mxu0 %vm113_vm2, %v13290_v59  ;;  %9893 = vmatmul.msk.f32.gmra.mxu1 %vm113_vm2, %v13290_v59  ;;  %v5827_v20 = vmul.f32 0.01, %v13777_v25  ;;  %v6043_v50 = vmax.f32 %v13793_v40, %v5851_v44 }
 0x574   :  { %9902 = vmatmul.msk.f32.gmra.mxu2 %vm113_vm2, %v13290_v59  ;;  %9911 = vmatmul.msk.f32.gmra.mxu3 %vm113_vm2, %v13290_v59  ;;  %v5921_v59 = vmax.f32 %v13589_v34, %v5729_v5  ;;  %v5871_v34 = vmax.f32 %v13533_v63, %v5679_v22  ;;  %v16854_v22 = vld [vmem:[#allocation77_spill] sm:$0xff] }
 0x575   :  { %6085 = vmatpush.msra.mxu0 %v5943_v47  ;;  %6105 = vmatpush.msra.mxu1 %v5944_v14  ;;  %v5852_v47 = vmul.f32 0.01, %v13795_v41  ;;  %v5853_v14 = vmul.f32 0.01, %v13817_v8  ;;  %v5803_v48 = vmul.f32 0.01, %v16854_v22 }
 0x576   :  { %v13893_v58 = vpop.f32.mrf.mxu0  ;;  %v13895_v26 = vpop.f32.mrf.mxu1  ;;  %6125 = vmatpush.msra.mxu2 %v5945_v3  ;;  %6145 = vmatpush.msra.mxu3 %v5946_v4  ;;  %v5828_v3 = vmul.f32 0.01, %v13779_v12  ;;  %v5829_v4 = vmul.f32 0.01, %v13797_v45 }
 0x577   :  { %v13901_v13 = vpop.f32.mrf.mxu2  ;;  %v13903_v55 = vpop.f32.mrf.mxu3  ;;  %6086 = vmatpush.msra.mxu0 %v5919_v15  ;;  %6106 = vmatpush.msra.mxu1 %v5920_v56  ;;  %v16855_v15 = vld [vmem:[#allocation78_spill] sm:$0xff]  ;;  %v6044_v24 = vmax.f32 %v13795_v41, %v5852_v47  ;;  %v6045_v40 = vmax.f32 %v13817_v8, %v5853_v14  ;;  %v6046_v41 = vmax.f32 %v13819_v51, %v5854_v16  ;;  %v16864_v8 = vld [vmem:[#allocation79_spill] sm:$0xff]  ;;  %v16865_v14 = vld [vmem:[#allocation80_spill] sm:$0xff] }
 0x578   :  { %6126 = vmatpush.msra.mxu2 %v5921_v59  ;;  %6146 = vmatpush.msra.mxu3 %v5922_v29  ;;  %v5804_v56 = vmul.f32 0.01, %v16855_v15  ;;  %v10434_v59 = vld [vmem:[%s16285_s1 + $0x80] sm:$0xff]  ;;  %v16863_v47 = vld [vmem:[#allocation74_spill] sm:$0xff]  ;;  %v5781_v51 = vmul.f32 0.01, %v16864_v8 }
 0x579   :  { %6087 = vmatpush.msra.mxu0 %v5895_v37  ;;  %6107 = vmatpush.msra.mxu1 %v5896_v54  ;;  %v16858_v54 = vld [vmem:[#allocation81_spill] sm:$0xff]  ;;  %v5782_v16 = vmul.f32 0.01, %v16865_v14 }
 0x57a   :  { %6127 = vmatpush.msra.mxu2 %v5897_v18  ;;  %6147 = vmatpush.msra.mxu3 %v5898_v1  ;;  %v5805_v18 = vmul.f32 0.01, %v16858_v54  ;;  %v16859_v1 = vld [vmem:[#allocation82_spill] sm:$0xff] }
 0x57b   :  { %6088 = vmatpush.msra.mxu0 %v5871_v34  ;;  %6108 = vmatpush.msra.mxu1 %v5872_v10  ;;  %v5806_v34 = vmul.f32 0.01, %v16859_v1 }
 0x57c   :  { %6128 = vmatpush.msra.mxu2 %v5873_v33  ;;  %6148 = vmatpush.msra.mxu3 %v5874_v39  ;;  %v16862_v39 = vld [vmem:[#allocation73_spill] sm:$0xff] }
 0x57d   :  { %9885 = vmatmul.msk.f32.gmra.mxu0 %vm113_vm2, %v13304_v32  ;;  %9894 = vmatmul.msk.f32.gmra.mxu1 %vm113_vm2, %v13304_v32  ;;  %v5779_v44 = vmul.f32 0.01, %v16862_v39 }
 0x57e   :  { %v13917_v63 = vpop.f32.mrf.mxu0  ;;  %v13919_v7 = vpop.f32.mrf.mxu1  ;;  %9903 = vmatmul.msk.f32.gmra.mxu2 %vm113_vm2, %v13304_v32  ;;  %9912 = vmatmul.msk.f32.gmra.mxu3 %vm113_vm2, %v13304_v32 }
 0x57f   :  { %v13925_v27 = vpop.f32.mrf.mxu2  ;;  %v13927_v31 = vpop.f32.mrf.mxu3 }
 0x585   :  { %9886 = vmatmul.msk.f32.gmra.mxu0 %vm113_vm2, %v13328_v11  ;;  %9895 = vmatmul.msk.f32.gmra.mxu1 %vm113_vm2, %v13328_v11 }
 0x586   :  { %v13933_v46 = vpop.f32.mrf.mxu0  ;;  %v13935_v17 = vpop.f32.mrf.mxu1  ;;  %9904 = vmatmul.msk.f32.gmra.mxu2 %vm113_vm2, %v13328_v11  ;;  %9913 = vmatmul.msk.f32.gmra.mxu3 %vm113_vm2, %v13328_v11 }
 0x587   :  { %v13941_v32 = vpop.f32.mrf.mxu2  ;;  %v13943_v36 = vpop.f32.mrf.mxu3 }
 0x58d   :  { %9887 = vmatmul.msk.f32.gmra.mxu0 %vm113_vm2, %v13361_v30  ;;  %9896 = vmatmul.msk.f32.gmra.mxu1 %vm113_vm2, %v13361_v30 }
 0x58e   :  { %v13949_v49 = vpop.f32.mrf.mxu0  ;;  %v13951_v38 = vpop.f32.mrf.mxu1  ;;  %9905 = vmatmul.msk.f32.gmra.mxu2 %vm113_vm2, %v13361_v30  ;;  %9914 = vmatmul.msk.f32.gmra.mxu3 %vm113_vm2, %v13361_v30 }
 0x58f   :  { %v13957_v11 = vpop.f32.mrf.mxu2  ;;  %v13959_v57 = vpop.f32.mrf.mxu3 }
 0x595   :  { %9888 = vmatmul.msk.f32.gmra.mxu0 %vm113_vm2, %v13376_v61  ;;  %9897 = vmatmul.msk.f32.gmra.mxu1 %vm113_vm2, %v13376_v61 }
 0x596   :  { %v13965_v9 = vpop.f32.mrf.mxu0  ;;  %v13967_v21 = vpop.f32.mrf.mxu1  ;;  %9906 = vmatmul.msk.f32.gmra.mxu2 %vm113_vm2, %v13376_v61  ;;  %9915 = vmatmul.msk.f32.gmra.mxu3 %vm113_vm2, %v13376_v61 }
 0x597   :  { %v13973_v30 = vpop.f32.mrf.mxu2  ;;  %v13975_v35 = vpop.f32.mrf.mxu3 }
 0x59d   :  { %9889 = vmatmul.msk.f32.gmra.mxu0 %vm113_vm2, %v13400_v23  ;;  %9898 = vmatmul.msk.f32.gmra.mxu1 %vm113_vm2, %v13400_v23 }
 0x59e   :  { %v13981_v2 = vpop.f32.mrf.mxu0  ;;  %v13983_v28 = vpop.f32.mrf.mxu1  ;;  %9907 = vmatmul.msk.f32.gmra.mxu2 %vm113_vm2, %v13400_v23  ;;  %9916 = vmatmul.msk.f32.gmra.mxu3 %vm113_vm2, %v13400_v23 }
 0x59f   :  { %v13989_v61 = vpop.f32.mrf.mxu2  ;;  %v13991_v0 = vpop.f32.mrf.mxu3 }
 0x5a5   :  { %9890 = vmatmul.msk.f32.gmra.mxu0 %vm113_vm2, %v13417_v53  ;;  %9899 = vmatmul.msk.f32.gmra.mxu1 %vm113_vm2, %v13417_v53 }
 0x5a6   :  { %v13997_v5 = vpop.f32.mrf.mxu0  ;;  %v13999_v42 = vpop.f32.mrf.mxu1  ;;  %9908 = vmatmul.msk.f32.gmra.mxu2 %vm113_vm2, %v13417_v53  ;;  %9917 = vmatmul.msk.f32.gmra.mxu3 %vm113_vm2, %v13417_v53  ;;  %v5830_v53 = vmul.f32 0.01, %v13799_v43 }
 0x5a7   :  { %16852 = vst [vmem:[#allocation85_spill] sm:$0xff] %v13997_v5  ;;  %v14005_v23 = vpop.f32.mrf.mxu2  ;;  %v14007_v62 = vpop.f32.mrf.mxu3  ;;  %v6019_v5 = vmax.f32 %v13777_v25, %v5827_v20  ;;  %v5998_v25 = vmax.f32 %v16859_v1, %v5806_v34  ;;  %v16866_v20 = vld [vmem:[#allocation69_spill] sm:$0xff] }
 0x5a8   :  { %16853 = vst [vmem:[#allocation86_spill] sm:$0xff] %v13999_v42  ;;  %v5780_v42 = vmul.f32 0.01, %v16863_v47 }
 0x5ad   :  { %9919 = vmatmul.msk.f32.vlgmr.msrb.gmra.mxu0 %vm113_vm2, %v10434_v59  ;;  %9928 = vmatmul.msk.f32.vlgmr.msrb.gmra.mxu1 %vm113_vm2, %v10434_v59 }
 0x5ae   :  { %v14026_v29 = vpop.f32.mrf.mxu0  ;;  %v14028_v37 = vpop.f32.mrf.mxu1  ;;  %9937 = vmatmul.msk.f32.vlgmr.msrb.gmra.mxu2 %vm113_vm2, %v10434_v59  ;;  %9946 = vmatmul.msk.f32.vlgmr.msrb.gmra.mxu3 %vm113_vm2, %v10434_v59  ;;  %v6021_v59 = vmax.f32 %v13797_v45, %v5829_v4  ;;  %v5972_v4 = vmax.f32 %v16863_v47, %v5780_v42  ;;  %v16879_v47 = vld [vmem:[#allocation62_spill] sm:$0xff] }
 0x5af   :  { %16856 = vst [vmem:[#allocation77_spill] sm:$0xff] %v14026_v29  ;;  %v14036_v10 = vpop.f32.mrf.mxu2  ;;  %v14038_v33 = vpop.f32.mrf.mxu3  ;;  %6161 = vmatpush.msrb.mxu0 %v6043_v50  ;;  %6181 = vmatpush.msrb.mxu1 %v6044_v24  ;;  %v5996_v29 = vmax.f32 %v16855_v15, %v5804_v56  ;;  %v16867_v50 = vld [vmem:[#allocation70_spill] sm:$0xff]  ;;  %v5973_v15 = vmax.f32 %v16864_v8, %v5781_v51  ;;  %v16870_v24 = vld [vmem:[#allocation65_spill] sm:$0xff]  ;;  %v5708_v8 = vmul.f32 0.01, %v16879_v47 }
 0x5b0   :  { %16857 = vst [vmem:[#allocation78_spill] sm:$0xff] %v14028_v37  ;;  %v6020_v37 = vmax.f32 %v13779_v12, %v5828_v3  ;;  %6201 = vmatpush.msrb.mxu2 %v6045_v40  ;;  %6221 = vmatpush.msrb.mxu3 %v6046_v41  ;;  %v5997_v12 = vmax.f32 %v16858_v54, %v5805_v18  ;;  %v5755_v3 = vmul.f32 0.01, %v16866_v20  ;;  %v5756_v45 = vmul.f32 0.01, %v16867_v50  ;;  %v16871_v54 = vld [vmem:[#allocation66_spill] sm:$0xff] }
 0x5b1   :  { %16860 = vst [vmem:[#allocation81_spill] sm:$0xff] %v14036_v10  ;;  %v6022_v10 = vmax.f32 %v13799_v43, %v5830_v53  ;;  %6162 = vmatpush.msrb.mxu0 %v6019_v5  ;;  %v5971_v43 = vmax.f32 %v16862_v39, %v5779_v44  ;;  %v16868_v53 = vld [vmem:[#allocation75_spill] sm:$0xff]  ;;  %v16869_v5 = vld [vmem:[#allocation76_spill] sm:$0xff]  ;;  %v5974_v56 = vmax.f32 %v16865_v14, %v5782_v16  ;;  %v5732_v18 = vmul.f32 0.01, %v16871_v54  ;;  %v16878_v39 = vld [vmem:[#allocation61_spill] sm:$0xff] }
 0x5b2   :  { %16861 = vst [vmem:[#allocation82_spill] sm:$0xff] %v14038_v33  ;;  %v5995_v33 = vmax.f32 %v16854_v22, %v5803_v48  ;;  %6182 = vmatpush.msrb.mxu1 %v6020_v37  ;;  %6202 = vmatpush.msrb.mxu2 %v6021_v59  ;;  %v5757_v22 = vmul.f32 0.01, %v16868_v53  ;;  %v5758_v48 = vmul.f32 0.01, %v16869_v5  ;;  %v16875_v40 = vld [vmem:[#allocation72_spill] sm:$0xff]  ;;  %v5947_v51 = vmax.f32 %v16866_v20, %v5755_v3 }
 0x5b3   :  { %6222 = vmatpush.msrb.mxu3 %v6022_v10  ;;  %v5731_v37 = vmul.f32 0.01, %v16870_v24  ;;  %v5734_v41 = vmul.f32 0.01, %v16875_v40  ;;  %v5707_v44 = vmul.f32 0.01, %v16878_v39  ;;  %v5948_v14 = vmax.f32 %v16867_v50, %v5756_v45 }
 0x5b4   :  { %6163 = vmatpush.msrb.mxu0 %v5995_v33  ;;  %6183 = vmatpush.msrb.mxu1 %v5996_v29  ;;  %v16874_v29 = vld [vmem:[#allocation71_spill] sm:$0xff]  ;;  %v10435_v16 = vld [vmem:[%s16285_s1 + $0x88] sm:$0xff]  ;;  %v16882_v20 = vld [vmem:[#allocation36_spill] sm:$0xff] }
 0x5b5   :  { %6203 = vmatpush.msrb.mxu2 %v5997_v12  ;;  %6223 = vmatpush.msrb.mxu3 %v5998_v25  ;;  %v5733_v34 = vmul.f32 0.01, %v16874_v29  ;;  %v16880_v59 = vld [vmem:[#allocation67_spill] sm:$0xff]  ;;  %v16881_v25 = vld [vmem:[#allocation68_spill] sm:$0xff]  ;;  %v5683_v3 = vmul.f32 0.01, %v16882_v20 }
 0x5b6   :  { %6164 = vmatpush.msrb.mxu0 %v5971_v43  ;;  %6184 = vmatpush.msrb.mxu1 %v5972_v4  ;;  %v14062_v1 = vpop.f32.mrf.mxu0  ;;  %v14064_v42 = vpop.f32.mrf.mxu1  ;;  %v5709_v12 = vmul.f32 0.01, %v16880_v59  ;;  %v5710_v43 = vmul.f32 0.01, %v16881_v25  ;;  %v5949_v4 = vmax.f32 %v16868_v53, %v5757_v22  ;;  %v16883_v50 = vld [vmem:[#allocation37_spill] sm:$0xff] }
 0x5b7   :  { %16872 = vst [vmem:[#allocation73_spill] sm:$0xff] %v14062_v1  ;;  %6204 = vmatpush.msrb.mxu2 %v5973_v15  ;;  %6224 = vmatpush.msrb.mxu3 %v5974_v56  ;;  %v14068_v10 = vpop.f32.mrf.mxu2  ;;  %v14070_v33 = vpop.f32.mrf.mxu3  ;;  %v5950_v15 = vmax.f32 %v16869_v5, %v5758_v48  ;;  %v5684_v45 = vmul.f32 0.01, %v16883_v50  ;;  %v5923_v56 = vmax.f32 %v16870_v24, %v5731_v37  ;;  %v16885_v1 = vld [vmem:[#allocation64_spill] sm:$0xff] }
 0x5b8   :  { %16873 = vst [vmem:[#allocation74_spill] sm:$0xff] %v14064_v42  ;;  %9920 = vmatmul.msk.f32.gmra.mxu0 %vm113_vm2, %v10435_v16  ;;  %9929 = vmatmul.msk.f32.gmra.mxu1 %vm113_vm2, %v10435_v16  ;;  %v5686_v53 = vmul.f32 0.01, %v16885_v1  ;;  %v5925_v22 = vmax.f32 %v16874_v29, %v5733_v34  ;;  %v5926_v5 = vmax.f32 %v16875_v40, %v5734_v41 }
 0x5b9   :  { %16876 = vst [vmem:[#allocation79_spill] sm:$0xff] %v14068_v10  ;;  %9938 = vmatmul.msk.f32.gmra.mxu2 %vm113_vm2, %v10435_v16  ;;  %9947 = vmatmul.msk.f32.gmra.mxu3 %vm113_vm2, %v10435_v16  ;;  %v16884_v10 = vld [vmem:[#allocation63_spill] sm:$0xff]  ;;  %v5899_v48 = vmax.f32 %v16878_v39, %v5707_v44  ;;  %v5900_v16 = vmax.f32 %v16879_v47, %v5708_v8  ;;  %v10436_v44 = vld [vmem:[%s16285_s1 + $0x90] sm:$0xff] }
 0x5ba   :  { %16877 = vst [vmem:[#allocation80_spill] sm:$0xff] %v14070_v33  ;;  %v5924_v33 = vmax.f32 %v16871_v54, %v5732_v18  ;;  %6165 = vmatpush.msrb.mxu0 %v5947_v51  ;;  %6185 = vmatpush.msrb.mxu1 %v5948_v14  ;;  %v5685_v42 = vmul.f32 0.01, %v16884_v10  ;;  %v5901_v24 = vmax.f32 %v16880_v59, %v5709_v12  ;;  %v10437_v8 = vld [vmem:[%s16285_s1 + $0x98] sm:$0xff] }
 0x5bb   :  { %6205 = vmatpush.msrb.mxu2 %v5949_v4  ;;  %6225 = vmatpush.msrb.mxu3 %v5950_v15  ;;  %v5902_v37 = vmax.f32 %v16881_v25, %v5710_v43  ;;  %v5875_v54 = vmax.f32 %v16882_v20, %v5683_v3  ;;  %v5876_v18 = vmax.f32 %v16883_v50, %v5684_v45  ;;  %v10438_v25 = vld [vmem:[%s16285_s1 + $0xa0] sm:$0xff]  ;;  %v10439_v3 = vld [vmem:[%s16285_s1 + $0xa8] sm:$0xff] }
 0x5bc   :  { %6166 = vmatpush.msrb.mxu0 %v5923_v56  ;;  %6186 = vmatpush.msrb.mxu1 %v5924_v33  ;;  %v5877_v40 = vmax.f32 %v16884_v10, %v5685_v42  ;;  %v5878_v41 = vmax.f32 %v16885_v1, %v5686_v53 }
 0x5bd   :  { %6206 = vmatpush.msrb.mxu2 %v5925_v22  ;;  %6226 = vmatpush.msrb.mxu3 %v5926_v5  ;;  %v6064_v22 = vld [vmem:[%s16287_s3 + $0x4] sm:$0x3]  ;;  %v10440_v5 = vld [vmem:[%s16285_s1 + $0xb0] sm:$0xff] }
 0x5be   :  { %6167 = vmatpush.msrb.mxu0 %v5899_v48  ;;  %6187 = vmatpush.msrb.mxu1 %v5900_v16  ;;  %v14101_v29 = vpop.f32.mrf.mxu0  ;;  %v14103_v34 = vpop.f32.mrf.mxu1 }
 0x5bf   :  { %16886 = vst [vmem:[#allocation69_spill] sm:$0xff] %v14101_v29  ;;  %6207 = vmatpush.msrb.mxu2 %v5901_v24  ;;  %6227 = vmatpush.msrb.mxu3 %v5902_v37  ;;  %v14107_v33 = vpop.f32.mrf.mxu2  ;;  %v14109_v39 = vpop.f32.mrf.mxu3 }
 0x5c0   :  { %16887 = vst [vmem:[#allocation70_spill] sm:$0xff] %v14103_v34  ;;  %6168 = vmatpush.msrb.mxu0 %v5875_v54  ;;  %6188 = vmatpush.msrb.mxu1 %v5876_v18  ;;  %v10441_v54 = vld [vmem:[%s16285_s1 + $0xb8] sm:$0xff]  ;;  %v5855_v18 = vmul.f32 0.01, %v13981_v2 }
 0x5c1   :  { %16888 = vst [vmem:[#allocation75_spill] sm:$0xff] %v14107_v33  ;;  %6208 = vmatpush.msrb.mxu2 %v5877_v40  ;;  %6228 = vmatpush.msrb.mxu3 %v5878_v41  ;;  %v5856_v40 = vmul.f32 0.01, %v13983_v28  ;;  %v5857_v41 = vmul.f32 0.01, %v14005_v23 }
 0x5c2   :  { %16889 = vst [vmem:[#allocation76_spill] sm:$0xff] %v14109_v39  ;;  %9921 = vmatmul.msk.f32.gmra.mxu0 %vm113_vm2, %v10436_v44  ;;  %9930 = vmatmul.msk.f32.gmra.mxu1 %vm113_vm2, %v10436_v44  ;;  %v5807_v33 = vmul.f32 0.01, %v13949_v49 }
 0x5c3   :  { %9939 = vmatmul.msk.f32.gmra.mxu2 %vm113_vm2, %v10436_v44  ;;  %9948 = vmatmul.msk.f32.gmra.mxu3 %vm113_vm2, %v10436_v44  ;;  %v5858_v44 = vmul.f32 0.01, %v14007_v62 }
 0x5c4   :  { %6067 = vperm.xlu1 %10224, %v6064_v22   ;;  %v5831_v22 = vmul.f32 0.01, %v13965_v9  ;;  %v5999_v29 = vmax.f32 %v13949_v49, %v5807_v33 }
 0x5c5   :  { %v6050_v34 = vmax.f32 %v14007_v62, %v5858_v44  ;;  %v5786_v62 = vmul.f32 0.01, %v13959_v57 }
 0x5c6   :  { %v14118_v1 = vpop.f32.mrf.mxu0  ;;  %v14120_v42 = vpop.f32.mrf.mxu1 }
 0x5c7   :  { %v14122_v10 = vpop.f32.mrf.mxu2  ;;  %v14124_v47 = vpop.f32.mrf.mxu3 }
 0x5c8   :  { %16890 = vst [vmem:[#allocation65_spill] sm:$0xff] %v14122_v10  ;;  %v5809_v10 = vmul.f32 0.01, %v13973_v30 }
 0x5c9   :  { %16891 = vst [vmem:[#allocation66_spill] sm:$0xff] %v14124_v47  ;;  %v5808_v47 = vmul.f32 0.01, %v13951_v38 }
 0x5ca   :  { %9922 = vmatmul.msk.f32.gmra.mxu0 %vm113_vm2, %v10437_v8  ;;  %9931 = vmatmul.msk.f32.gmra.mxu1 %vm113_vm2, %v10437_v8 }
 0x5cb   :  { %9940 = vmatmul.msk.f32.gmra.mxu2 %vm113_vm2, %v10437_v8  ;;  %9949 = vmatmul.msk.f32.gmra.mxu3 %vm113_vm2, %v10437_v8  ;;  %v14203_v8 = vld [vmem:[%s16286_s2 + $0x4] sm:$0x3] }
 0x5ce   :  { %v14133_v51 = vpop.f32.mrf.mxu0  ;;  %v14135_v14 = vpop.f32.mrf.mxu1 }
 0x5cf   :  { %v14137_v59 = vpop.f32.mrf.mxu2  ;;  %v14139_v12 = vpop.f32.mrf.mxu3 }
 0x5d0   :  { %16892 = vst [vmem:[#allocation71_spill] sm:$0xff] %v14139_v12  ;;  %v6000_v12 = vmax.f32 %v13951_v38, %v5808_v47 }
 0x5d2   :  { %9923 = vmatmul.msk.f32.gmra.mxu0 %vm113_vm2, %v10438_v25  ;;  %9932 = vmatmul.msk.f32.gmra.mxu1 %vm113_vm2, %v10438_v25 }
 0x5d3   :  { %9941 = vmatmul.msk.f32.gmra.mxu2 %vm113_vm2, %v10438_v25  ;;  %9950 = vmatmul.msk.f32.gmra.mxu3 %vm113_vm2, %v10438_v25 }
 0x5d6   :  { %v14148_v43 = vpop.f32.mrf.mxu0  ;;  %v14150_v4 = vpop.f32.mrf.mxu1 }
 0x5d7   :  { %v14152_v15 = vpop.f32.mrf.mxu2  ;;  %v14154_v20 = vpop.f32.mrf.mxu3 }
 0x5da   :  { %9924 = vmatmul.msk.f32.gmra.mxu0 %vm113_vm2, %v10439_v3  ;;  %9933 = vmatmul.msk.f32.gmra.mxu1 %vm113_vm2, %v10439_v3 }
 0x5db   :  { %9942 = vmatmul.msk.f32.gmra.mxu2 %vm113_vm2, %v10439_v3  ;;  %9951 = vmatmul.msk.f32.gmra.mxu3 %vm113_vm2, %v10439_v3 }
 0x5de   :  { %v14163_v50 = vpop.f32.mrf.mxu0  ;;  %v14165_v45 = vpop.f32.mrf.mxu1 }
 0x5df   :  { %v14167_v56 = vpop.f32.mrf.mxu2  ;;  %v14169_v53 = vpop.f32.mrf.mxu3 }
 0x5e2   :  { %9925 = vmatmul.msk.f32.gmra.mxu0 %vm113_vm2, %v10440_v5  ;;  %9934 = vmatmul.msk.f32.gmra.mxu1 %vm113_vm2, %v10440_v5 }
 0x5e3   :  { %9943 = vmatmul.msk.f32.gmra.mxu2 %vm113_vm2, %v10440_v5  ;;  %9952 = vmatmul.msk.f32.gmra.mxu3 %vm113_vm2, %v10440_v5  ;;  %v5832_v5 = vmul.f32 0.01, %v13967_v21 }
 0x5e6   :  { %v14181_v48 = vpop.f32.mrf.mxu0  ;;  %v14183_v16 = vpop.f32.mrf.mxu1 }
 0x5e7   :  { %16893 = vst [vmem:[#allocation72_spill] sm:$0xff] %v14181_v48  ;;  %v14185_v24 = vpop.f32.mrf.mxu2  ;;  %v14187_v37 = vpop.f32.mrf.mxu3 }
 0x5e8   :  { %16894 = vst [vmem:[#allocation61_spill] sm:$0xff] %v14183_v16  ;;  %v5834_v16 = vmul.f32 0.01, %v13991_v0 }
 0x5ea   :  { %9926 = vmatmul.msk.f32.gmra.mxu0 %vm113_vm2, %v10441_v54  ;;  %9935 = vmatmul.msk.f32.gmra.mxu1 %vm113_vm2, %v10441_v54  ;;  %v6026_v44 = vmax.f32 %v13991_v0, %v5834_v16 }
 0x5eb   :  { %9944 = vmatmul.msk.f32.gmra.mxu2 %vm113_vm2, %v10441_v54  ;;  %9953 = vmatmul.msk.f32.gmra.mxu3 %vm113_vm2, %v10441_v54  ;;  %v5833_v54 = vmul.f32 0.01, %v13989_v61 }
 0x5ef   :  { %v14205_v25 = vpop.f32.mrf.mxu2  ;;  %v14207_v3 = vpop.f32.mrf.mxu3 }
 0x5f0   :  { %16895 = vst [vmem:[#allocation62_spill] sm:$0xff] %v14205_v25  ;;  %v14213_v48 = vpop.f32.mrf.mxu0  ;;  %v14215_v39 = vpop.f32.mrf.mxu1  ;;  %v6047_v25 = vmax.f32 %v13981_v2, %v5855_v18  ;;  %v5783_v2 = vmul.f32 0.01, %v13933_v46  ;;  %v6023_v18 = vmax.f32 %v13965_v9, %v5831_v22  ;;  %v6001_v9 = vmax.f32 %v13973_v30, %v5809_v10 }
 0x5f1   :  { %16896 = vst [vmem:[#allocation67_spill] sm:$0xff] %v14207_v3  ;;  %v6048_v3 = vmax.f32 %v13983_v28, %v5856_v40  ;;  %v5784_v28 = vmul.f32 0.01, %v13935_v17  ;;  %v6024_v40 = vmax.f32 %v13967_v21, %v5832_v5  ;;  %v5761_v30 = vmul.f32 0.01, %v13941_v32 }
 0x5f2   :  { %16897 = vst [vmem:[#allocation68_spill] sm:$0xff] %v14213_v48  ;;  %9954 = vmatmul.msk.f32.vlgmr.msra.gmra.mxu0 %vm1586_vm3, %v14203_v8  ;;  %9955 = vmatmul.msk.f32.vlgmr.msra.gmra.mxu1 %vm1586_vm3, %v14203_v8  ;;  %v5810_v48 = vmul.f32 0.01, %v13975_v35  ;;  %v5975_v0 = vmax.f32 %v13933_v46, %v5783_v2  ;;  %v5735_v46 = vmul.f32 0.01, %v13893_v58  ;;  %v16900_v2 = vld [vmem:[#allocation84_spill] sm:$0xff] }
 0x5f3   :  { %16898 = vst [vmem:[#allocation36_spill] sm:$0xff] %v14215_v39  ;;  %v6049_v39 = vmax.f32 %v14005_v23, %v5857_v41  ;;  %9956 = vmatmul.msk.f32.vlgmr.msra.gmra.mxu2 %vm1586_vm3, %v14203_v8  ;;  %9957 = vmatmul.msk.f32.vlgmr.msra.gmra.mxu3 %vm1586_vm3, %v14203_v8  ;;  %v5785_v23 = vmul.f32 0.01, %v13957_v11  ;;  %v6025_v41 = vmax.f32 %v13989_v61, %v5833_v54  ;;  %v5760_v61 = vmul.f32 0.01, %v13919_v7 }
 0x5f4   :  { %6241 = vmatpush.msra.mxu0 %v6047_v25  ;;  %6261 = vmatpush.msra.mxu1 %v6048_v3  ;;  %v6002_v21 = vmax.f32 %v13975_v35, %v5810_v48  ;;  %v5759_v25 = vmul.f32 0.01, %v13917_v63  ;;  %v5762_v35 = vmul.f32 0.01, %v13943_v36  ;;  %v5738_v10 = vmul.f32 0.01, %v13927_v31 }
 0x5f5   :  { %6281 = vmatpush.msra.mxu2 %v6049_v39  ;;  %6301 = vmatpush.msra.mxu3 %v6050_v34  ;;  %v5976_v34 = vmax.f32 %v13935_v17, %v5784_v28  ;;  %v5977_v33 = vmax.f32 %v13957_v11, %v5785_v23  ;;  %v5978_v39 = vmax.f32 %v13959_v57, %v5786_v62  ;;  %v5736_v17 = vmul.f32 0.01, %v13895_v26 }
 0x5f6   :  { %6242 = vmatpush.msra.mxu0 %v6023_v18  ;;  %6262 = vmatpush.msra.mxu1 %v6024_v40  ;;  %v5711_v11 = vmul.f32 0.01, %v13851_v19  ;;  %v5712_v57 = vmul.f32 0.01, %v13853_v52  ;;  %v5951_v48 = vmax.f32 %v13917_v63, %v5759_v25  ;;  %v5952_v16 = vmax.f32 %v13919_v7, %v5760_v61  ;;  %v16899_v63 = vld [vmem:[#allocation83_spill] sm:$0xff] }
 0x5f7   :  { %6282 = vmatpush.msra.mxu2 %v6025_v41  ;;  %6302 = vmatpush.msra.mxu3 %v6026_v44  ;;  %v14249_v49 = vpop.f32.mrf.mxu2  ;;  %v14251_v38 = vpop.f32.mrf.mxu3  ;;  %v5713_v3 = vmul.f32 0.01, %v13901_v13  ;;  %v5714_v22 = vmul.f32 0.01, %v13903_v55  ;;  %v5953_v5 = vmax.f32 %v13941_v32, %v5761_v30  ;;  %v5954_v54 = vmax.f32 %v13943_v36, %v5762_v35 }
 0x5f8   :  { %6243 = vmatpush.msra.mxu0 %v5999_v29  ;;  %6263 = vmatpush.msra.mxu1 %v6000_v12  ;;  %v5737_v29 = vmul.f32 0.01, %v13925_v27  ;;  %v5687_v7 = vmul.f32 0.01, %v16899_v63  ;;  %v5688_v28 = vmul.f32 0.01, %v16900_v2  ;;  %v5927_v18 = vmax.f32 %v13893_v58, %v5735_v46 }
 0x5f9   :  { %6283 = vmatpush.msra.mxu2 %v6001_v9  ;;  %6303 = vmatpush.msra.mxu3 %v6002_v21  ;;  %v5928_v40 = vmax.f32 %v13895_v26, %v5736_v17  ;;  %v5689_v32 = vmul.f32 0.01, %v13857_v6  ;;  %v5690_v36 = vmul.f32 0.01, %v13859_v60  ;;  %v5930_v62 = vmax.f32 %v13927_v31, %v5738_v10 }
 0x5fa   :  { %6244 = vmatpush.msra.mxu0 %v5975_v0  ;;  %6264 = vmatpush.msra.mxu1 %v5976_v34  ;;  %v14261_v47 = vpop.f32.mrf.mxu0  ;;  %v14263_v12 = vpop.f32.mrf.mxu1  ;;  %v5929_v23 = vmax.f32 %v13925_v27, %v5737_v29  ;;  %v5903_v41 = vmax.f32 %v13851_v19, %v5711_v11  ;;  %v5904_v44 = vmax.f32 %v13853_v52, %v5712_v57  ;;  %v5859_v58 = vmul.f32 0.01, %v14163_v50 }
 0x5fb   :  { %6284 = vmatpush.msra.mxu2 %v5977_v33  ;;  %6304 = vmatpush.msra.mxu3 %v5978_v39  ;;  %v5860_v26 = vmul.f32 0.01, %v14165_v45  ;;  %v5905_v9 = vmax.f32 %v13901_v13, %v5713_v3  ;;  %v5906_v21 = vmax.f32 %v13903_v55, %v5714_v22  ;;  %v5861_v27 = vmul.f32 0.01, %v14185_v24 }
 0x5fc   :  { %9958 = vmatmul.msk.f32.vlgmr.msrb.gmra.mxu0 %vm1586_vm3, %v14203_v8  ;;  %9959 = vmatmul.msk.f32.vlgmr.msrb.gmra.mxu1 %vm1586_vm3, %v14203_v8  ;;  %v5862_v31 = vmul.f32 0.01, %v14187_v37  ;;  %v5879_v19 = vmax.f32 %v16899_v63, %v5687_v7  ;;  %v5880_v52 = vmax.f32 %v16900_v2, %v5688_v28  ;;  %v5881_v13 = vmax.f32 %v13857_v6, %v5689_v32 }
 0x5fd   :  { %9960 = vmatmul.msk.f32.vlgmr.msrb.gmra.mxu2 %vm1586_vm3, %v14203_v8  ;;  %9961 = vmatmul.msk.f32.vlgmr.msrb.gmra.mxu3 %vm1586_vm3, %v14203_v8  ;;  %v5882_v55 = vmax.f32 %v13859_v60, %v5690_v36  ;;  %v5835_v30 = vmul.f32 0.01, %v14148_v43  ;;  %v5836_v35 = vmul.f32 0.01, %v14150_v4  ;;  %v6051_v33 = vmax.f32 %v14163_v50, %v5859_v58 }
 0x5fe   :  { %6245 = vmatpush.msra.mxu0 %v5951_v48  ;;  %6265 = vmatpush.msra.mxu1 %v5952_v16  ;;  %v6052_v39 = vmax.f32 %v14165_v45, %v5860_v26  ;;  %v5837_v6 = vmul.f32 0.01, %v14167_v56  ;;  %v5838_v60 = vmul.f32 0.01, %v14169_v53  ;;  %v6053_v46 = vmax.f32 %v14185_v24, %v5861_v27  ;;  %v16901_v16 = vld [vmem:[#allocation71_spill] sm:$0xff]  ;;  %v16907_v26 = vld [vmem:[#allocation74_spill] sm:$0xff] }
 0x5ff   :  { %6285 = vmatpush.msra.mxu2 %v5953_v5  ;;  %6305 = vmatpush.msra.mxu3 %v5954_v54  ;;  %v6054_v17 = vmax.f32 %v14187_v37, %v5862_v31  ;;  %v5811_v29 = vmul.f32 0.01, %v14133_v51  ;;  %v5812_v10 = vmul.f32 0.01, %v14135_v14  ;;  %v5813_v50 = vmul.f32 0.01, %v14152_v15 }
 0x600   :  { %6246 = vmatpush.msra.mxu0 %v5927_v18  ;;  %6266 = vmatpush.msra.mxu1 %v5928_v40  ;;  %v5814_v45 = vmul.f32 0.01, %v14154_v20  ;;  %v5787_v11 = vmul.f32 0.01, %v14118_v1  ;;  %v5788_v24 = vmul.f32 0.01, %v14120_v42  ;;  %v6027_v37 = vmax.f32 %v14148_v43, %v5835_v30 }
 0x601   :  { %6286 = vmatpush.msra.mxu2 %v5929_v23  ;;  %6306 = vmatpush.msra.mxu3 %v5930_v62  ;;  %v14299_v25 = vpop.f32.mrf.mxu2  ;;  %v14301_v61 = vpop.f32.mrf.mxu3  ;;  %v6028_v57 = vmax.f32 %v14150_v4, %v5836_v35  ;;  %v5789_v48 = vmul.f32 0.01, %v14137_v59  ;;  %v5790_v3 = vmul.f32 0.01, %v16901_v16  ;;  %v6029_v22 = vmax.f32 %v14167_v56, %v5837_v6  ;;  %v16902_v43 = vld [vmem:[#allocation69_spill] sm:$0xff]  ;;  %v16903_v54 = vld [vmem:[#allocation70_spill] sm:$0xff] }
 0x602   :  { %6247 = vmatpush.msra.mxu0 %v5903_v41  ;;  %6267 = vmatpush.msra.mxu1 %v5904_v44  ;;  %v14305_v0 = vpop.f32.mrf.mxu0  ;;  %v14307_v34 = vpop.f32.mrf.mxu1  ;;  %v6030_v5 = vmax.f32 %v14169_v53, %v5838_v60  ;;  %v5763_v4 = vmul.f32 0.01, %v16902_v43  ;;  %v5764_v63 = vmul.f32 0.01, %v16903_v54  ;;  %v6003_v7 = vmax.f32 %v14133_v51, %v5811_v29  ;;  %v16904_v53 = vld [vmem:[#allocation65_spill] sm:$0xff]  ;;  %v16905_v40 = vld [vmem:[#allocation66_spill] sm:$0xff] }
 0x603   :  { %6287 = vmatpush.msra.mxu2 %v5905_v9  ;;  %6307 = vmatpush.msra.mxu3 %v5906_v21  ;;  %v6004_v2 = vmax.f32 %v14135_v14, %v5812_v10  ;;  %v5765_v18 = vmul.f32 0.01, %v16904_v53  ;;  %v5766_v32 = vmul.f32 0.01, %v16905_v40  ;;  %v6005_v36 = vmax.f32 %v14152_v15, %v5813_v50  ;;  %v16906_v14 = vld [vmem:[#allocation73_spill] sm:$0xff]  ;;  %v16908_v21 = vld [vmem:[#allocation75_spill] sm:$0xff] }
 0x604   :  { %6248 = vmatpush.msra.mxu0 %v5879_v19  ;;  %6268 = vmatpush.msra.mxu1 %v5880_v52  ;;  %v6006_v23 = vmax.f32 %v14154_v20, %v5814_v45  ;;  %v5739_v41 = vmul.f32 0.01, %v16906_v14  ;;  %v5979_v44 = vmax.f32 %v14118_v1, %v5787_v11  ;;  %v5980_v58 = vmax.f32 %v14120_v42, %v5788_v24  ;;  %v16909_v31 = vld [vmem:[#allocation77_spill] sm:$0xff]  ;;  %v16910_v52 = vld [vmem:[#allocation76_spill] sm:$0xff]  ;;  %v16912_v35 = vld [vmem:[#allocation79_spill] sm:$0xff] }
 0x605   :  { %6288 = vmatpush.msra.mxu2 %v5881_v13  ;;  %6308 = vmatpush.msra.mxu3 %v5882_v55  ;;  %v5740_v9 = vmul.f32 0.01, %v16907_v26  ;;  %v5741_v15 = vmul.f32 0.01, %v16908_v21  ;;  %v5981_v20 = vmax.f32 %v14137_v59, %v5789_v48  ;;  %v5982_v27 = vmax.f32 %v16901_v16, %v5790_v3  ;;  %v16911_v55 = vld [vmem:[#allocation78_spill] sm:$0xff]  ;;  %v16913_v60 = vld [vmem:[#allocation85_spill] sm:$0xff] }
 0x606   :  { %6321 = vmatpush.msrb.mxu0 %v6051_v33  ;;  %6341 = vmatpush.msrb.mxu1 %v6052_v39  ;;  %v5715_v19 = vmul.f32 0.01, %v16909_v31  ;;  %v5742_v13 = vmul.f32 0.01, %v16910_v52  ;;  %v5955_v1 = vmax.f32 %v16902_v43, %v5763_v4  ;;  %v5956_v42 = vmax.f32 %v16903_v54, %v5764_v63  ;;  %v8303_v6 = vld [vmem:[%s16287_s3 + $0x6] sm:$0x3] }
 0x607   :  { %6361 = vmatpush.msrb.mxu2 %v6053_v46  ;;  %6381 = vmatpush.msrb.mxu3 %v6054_v17  ;;  %v5716_v30 = vmul.f32 0.01, %v16911_v55  ;;  %v5717_v33 = vmul.f32 0.01, %v16912_v35  ;;  %v5957_v59 = vmax.f32 %v16904_v53, %v5765_v18  ;;  %v5958_v39 = vmax.f32 %v16905_v40, %v5766_v32  ;;  %v16914_v17 = vld [vmem:[#allocation80_spill] sm:$0xff]  ;;  %v16915_v50 = vld [vmem:[#allocation86_spill] sm:$0xff] }
 0x608   :  { %9962 = vmatmul.msk.f32.vlgmr.msra.gmra.mxu0 %vm1586_vm3, %v14203_v8  ;;  %9963 = vmatmul.msk.f32.vlgmr.msra.gmra.mxu1 %vm1586_vm3, %v14203_v8  ;;  %v5691_v46 = vmul.f32 0.01, %v16913_v60  ;;  %v5718_v29 = vmul.f32 0.01, %v16914_v17  ;;  %v5931_v10 = vmax.f32 %v16906_v14, %v5739_v41  ;;  %v5692_v45 = vmul.f32 0.01, %v16915_v50 }
 0x609   :  { %9964 = vmatmul.msk.f32.vlgmr.msra.gmra.mxu2 %vm1586_vm3, %v14203_v8  ;;  %9965 = vmatmul.msk.f32.vlgmr.msra.gmra.mxu3 %vm1586_vm3, %v14203_v8  ;;  %v14341_v28 = vpop.f32.mrf.mxu2  ;;  %v14343_v56 = vpop.f32.mrf.mxu3  ;;  %v16916_v11 = vld [vmem:[#allocation81_spill] sm:$0xff]  ;;  %v16917_v48 = vld [vmem:[#allocation82_spill] sm:$0xff]  ;;  %v5907_v3 = vmax.f32 %v16909_v31, %v5715_v19  ;;  %v5908_v4 = vmax.f32 %v16911_v55, %v5716_v30  ;;  %v5909_v54 = vmax.f32 %v16912_v35, %v5717_v33  ;;  %v5767_v35 = vmul.f32 0.01, %v14305_v0 }
 0x60a   :  { %6322 = vmatpush.msrb.mxu0 %v6027_v37  ;;  %6342 = vmatpush.msrb.mxu1 %v6028_v57  ;;  %v14349_v62 = vpop.f32.mrf.mxu0  ;;  %v14351_v51 = vpop.f32.mrf.mxu1  ;;  %v5693_v24 = vmul.f32 0.01, %v16916_v11  ;;  %v5932_v37 = vmax.f32 %v16907_v26, %v5740_v9  ;;  %v5933_v57 = vmax.f32 %v16908_v21, %v5741_v15  ;;  %v5694_v16 = vmul.f32 0.01, %v16917_v48 }
 0x60b   :  { %6362 = vmatpush.msrb.mxu2 %v6029_v22  ;;  %6382 = vmatpush.msrb.mxu3 %v6030_v5  ;;  %v5934_v22 = vmax.f32 %v16910_v52, %v5742_v13  ;;  %v5910_v53 = vmax.f32 %v16914_v17, %v5718_v29  ;;  %v5884_v18 = vmax.f32 %v16915_v50, %v5692_v45  ;;  %v5768_v33 = vmul.f32 0.01, %v14307_v34 }
 0x60c   :  { %6323 = vmatpush.msrb.mxu0 %v6003_v7  ;;  %6343 = vmatpush.msrb.mxu1 %v6004_v2  ;;  %v5883_v2 = vmax.f32 %v16913_v60, %v5691_v46  ;;  %v5885_v40 = vmax.f32 %v16916_v11, %v5693_v24  ;;  %v5886_v32 = vmax.f32 %v16917_v48, %v5694_v16  ;;  %v5743_v11 = vmul.f32 0.01, %v14261_v47 }
 0x60d   :  { %6363 = vmatpush.msrb.mxu2 %v6005_v36  ;;  %6383 = vmatpush.msrb.mxu3 %v6006_v23  ;;  %v5744_v24 = vmul.f32 0.01, %v14263_v12 }
 0x60e   :  { %6324 = vmatpush.msrb.mxu0 %v5979_v44  ;;  %6344 = vmatpush.msrb.mxu1 %v5980_v58 }
 0x60f   :  { %6364 = vmatpush.msrb.mxu2 %v5981_v20  ;;  %6384 = vmatpush.msrb.mxu3 %v5982_v27 }
 0x610   :  { %6325 = vmatpush.msrb.mxu0 %v5955_v1  ;;  %6345 = vmatpush.msrb.mxu1 %v5956_v42  ;;  %v5791_v1 = vmul.f32 0.01, %v14349_v62  ;;  %v5792_v42 = vmul.f32 0.01, %v14351_v51 }
 0x611   :  { %6365 = vmatpush.msrb.mxu2 %v5957_v59  ;;  %6385 = vmatpush.msrb.mxu3 %v5958_v39  ;;  %v14381_v5 = vpop.f32.mrf.mxu2  ;;  %v14383_v43 = vpop.f32.mrf.mxu3 }
 0x612   :  { %8306 = vperm.xlu1 %10224, %v8303_v6   ;;  %6326 = vmatpush.msrb.mxu0 %v5931_v10  ;;  %v5383_v63 = vpop.f32.mrf.mxu0  ;;  %v5424_v7 = vpop.f32.mrf.mxu1 }
 0x613   :  { %6346 = vmatpush.msrb.mxu1 %v5932_v37  ;;  %6366 = vmatpush.msrb.mxu2 %v5933_v57  ;;  %v5815_v31 = vmul.f32 0.01, %v5383_v63  ;;  %v5816_v19 = vmul.f32 0.01, %v5424_v7  ;;  %v5983_v37 = vmax.f32 %v14349_v62, %v5791_v1  ;;  %v5984_v57 = vmax.f32 %v14351_v51, %v5792_v42 }
 0x614   :  { %6386 = vmatpush.msrb.mxu3 %v5934_v22  ;;  %6327 = vmatpush.msrb.mxu0 %v5907_v3  ;;  %v5793_v62 = vmul.f32 0.01, %v14381_v5  ;;  %v5794_v51 = vmul.f32 0.01, %v14383_v43  ;;  %v5722_v1 = vmul.f32 0.01, %v14251_v38 }
 0x615   :  { %6347 = vmatpush.msrb.mxu1 %v5908_v4  ;;  %6367 = vmatpush.msrb.mxu2 %v5909_v54  ;;  %v6007_v59 = vmax.f32 %v5383_v63, %v5815_v31  ;;  %v6008_v39 = vmax.f32 %v5424_v7, %v5816_v19  ;;  %v16918_v4 = vld [vmem:[#allocation68_spill] sm:$0xff]  ;;  %v5746_v31 = vmul.f32 0.01, %v14301_v61 }
 0x616   :  { %6387 = vmatpush.msrb.mxu3 %v5910_v53  ;;  %6328 = vmatpush.msrb.mxu0 %v5883_v2  ;;  %v5719_v54 = vmul.f32 0.01, %v16918_v4  ;;  %v16919_v63 = vld [vmem:[#allocation36_spill] sm:$0xff]  ;;  %v5959_v2 = vmax.f32 %v14305_v0, %v5767_v35  ;;  %v5960_v53 = vmax.f32 %v14307_v34, %v5768_v33  ;;  %v5935_v0 = vmax.f32 %v14261_v47, %v5743_v11  ;;  %v16923_v33 = vld [vmem:[#allocation67_spill] sm:$0xff] }
 0x617   :  { %6348 = vmatpush.msrb.mxu1 %v5884_v18  ;;  %6368 = vmatpush.msrb.mxu2 %v5885_v40  ;;  %v5720_v7 = vmul.f32 0.01, %v16919_v63  ;;  %v5936_v34 = vmax.f32 %v14263_v12, %v5744_v24  ;;  %v5745_v12 = vmul.f32 0.01, %v14299_v25 }
 0x618   :  { %6388 = vmatpush.msrb.mxu3 %v5886_v32  ;;  %9966 = vmatmul.msk.f32.vlgmr.msrb.gmra.mxu0 %vm1586_vm3, %v14203_v8  ;;  %v16920_v32 = vld [vmem:[#allocation72_spill] sm:$0xff] }
 0x619   :  { %9967 = vmatmul.msk.f32.vlgmr.msrb.gmra.mxu1 %vm1586_vm3, %v14203_v8  ;;  %9968 = vmatmul.msk.f32.vlgmr.msrb.gmra.mxu2 %vm1586_vm3, %v14203_v8  ;;  %v14400_v36 = vpop.f32.mrf.mxu2  ;;  %v14402_v23 = vpop.f32.mrf.mxu3 }
 0x61a   :  { %9969 = vmatmul.msk.f32.vlgmr.msrb.gmra.mxu3 %vm1586_vm3, %v14203_v8  ;;  %v5386_v14 = vpop.f32.mrf.mxu0  ;;  %v5427_v41 = vpop.f32.mrf.mxu1  ;;  %v5817_v48 = vmul.f32 0.01, %v14400_v36  ;;  %v5818_v16 = vmul.f32 0.01, %v14402_v23 }
 0x61b   :  { %v5839_v26 = vmul.f32 0.01, %v5386_v14  ;;  %v5840_v15 = vmul.f32 0.01, %v5427_v41 }
 0x61d   :  { %v6031_v55 = vmax.f32 %v5386_v14, %v5839_v26  ;;  %v6032_v30 = vmax.f32 %v5427_v41, %v5840_v15  ;;  %v5695_v14 = vmul.f32 0.01, %v16920_v32  ;;  %v16921_v41 = vld [vmem:[#allocation61_spill] sm:$0xff]  ;;  %v5911_v15 = vmax.f32 %v16918_v4, %v5719_v54 }
 0x61e   :  { %v5696_v26 = vmul.f32 0.01, %v16921_v41 }
 0x61f   :  { %v5887_v19 = vmax.f32 %v16920_v32, %v5695_v14 }
 0x621   :  { %v14404_v44 = vpop.f32.mrf.mxu2  ;;  %v14406_v58 = vpop.f32.mrf.mxu3 }
 0x622   :  { %v5389_v9 = vpop.f32.mrf.mxu0  ;;  %v5430_v21 = vpop.f32.mrf.mxu1  ;;  %v5841_v6 = vmul.f32 0.01, %v14404_v44  ;;  %v5842_v17 = vmul.f32 0.01, %v14406_v58 }
 0x623   :  { %v5863_v20 = vmul.f32 0.01, %v5389_v9  ;;  %v5864_v27 = vmul.f32 0.01, %v5430_v21 }
 0x624   :  { %v6033_v18 = vmax.f32 %v14404_v44, %v5841_v6  ;;  %v6034_v40 = vmax.f32 %v14406_v58, %v5842_v17  ;;  %v6009_v44 = vmax.f32 %v14400_v36, %v5817_v48  ;;  %v6010_v58 = vmax.f32 %v14402_v23, %v5818_v16 }
 0x625   :  { %v6055_v52 = vmax.f32 %v5389_v9, %v5863_v20  ;;  %v6056_v13 = vmax.f32 %v5430_v21, %v5864_v27  ;;  %v5769_v9 = vmul.f32 0.01, %v14341_v28  ;;  %v5770_v21 = vmul.f32 0.01, %v14343_v56 }
 0x626   :  { %v5912_v20 = vmax.f32 %v16919_v63, %v5720_v7  ;;  %v5985_v36 = vmax.f32 %v14381_v5, %v5793_v62  ;;  %v5986_v23 = vmax.f32 %v14383_v43, %v5794_v51  ;;  %v16922_v43 = vld [vmem:[#allocation62_spill] sm:$0xff]  ;;  %v5938_v6 = vmax.f32 %v14301_v61, %v5746_v31 }
 0x627   :  { %6401 = vmatpush.msra.mxu0 %v6055_v52  ;;  %6421 = vmatpush.msra.mxu1 %v6056_v13  ;;  %v5888_v52 = vmax.f32 %v16921_v41, %v5696_v26  ;;  %v5721_v13 = vmul.f32 0.01, %v14249_v49  ;;  %v5961_v42 = vmax.f32 %v14341_v28, %v5769_v9  ;;  %v5697_v35 = vmul.f32 0.01, %v16922_v43  ;;  %v16924_v26 = vld [vmem:[#allocation12_spill] sm:$0xff]  ;;  %v16926_v9 = vld [vmem:[#allocation13_spill] sm:$0xff] }
 0x629   :  { %v5471_v60 = vpop.f32.mrf.mxu2  ;;  %v5512_v46 = vpop.f32.mrf.mxu3  ;;  %6402 = vmatpush.msra.mxu0 %v6031_v55  ;;  %6422 = vmatpush.msra.mxu1 %v6032_v30  ;;  %v5962_v55 = vmax.f32 %v14343_v56, %v5770_v21  ;;  %v5913_v28 = vmax.f32 %v14249_v49, %v5721_v13  ;;  %v5914_v56 = vmax.f32 %v14251_v38, %v5722_v1  ;;  %v16927_v21 = vld [vmem:[#allocation15_spill] sm:$0xff]  ;;  %v16931_v1 = vld [vmem:[#allocation17_spill] sm:$0xff] }
 0x62a   :  { %v5865_v29 = vmul.f32 0.01, %v5471_v60  ;;  %v5866_v10 = vmul.f32 0.01, %v5512_v46  ;;  %v14414_v50 = vpop.f32.mrf.mxu0  ;;  %v14416_v45 = vpop.f32.mrf.mxu1  ;;  %v16930_v13 = vld [vmem:[#allocation7_spill] sm:$0xff] }
 0x62b   :  { %6403 = vmatpush.msra.mxu0 %v6007_v59  ;;  %6423 = vmatpush.msra.mxu1 %v6008_v39  ;;  %v5698_v59 = vmul.f32 0.01, %v16923_v33  ;;  %v5937_v39 = vmax.f32 %v14299_v25, %v5745_v12 }
 0x62c   :  { %v6057_v3 = vmax.f32 %v5471_v60, %v5865_v29  ;;  %v6058_v22 = vmax.f32 %v5512_v46, %v5866_v10  ;;  %v5889_v60 = vmax.f32 %v16922_v43, %v5697_v35  ;;  %v16933_v43 = vld [vmem:[#allocation57_spill] sm:$0xff] }
 0x62d   :  { %6404 = vmatpush.msra.mxu0 %v5983_v37  ;;  %6424 = vmatpush.msra.mxu1 %v5984_v57  ;;  %v5890_v25 = vmax.f32 %v16923_v33, %v5698_v59  ;;  %v16934_v59 = vld [vmem:[#allocation9_spill] sm:$0xff] }
 0x62e   :  { %6441 = vmatpush.msra.mxu2 %v6057_v3  ;;  %6461 = vmatpush.msra.mxu3 %v6058_v22 }
 0x62f   :  { %6405 = vmatpush.msra.mxu0 %v5959_v2  ;;  %6425 = vmatpush.msra.mxu1 %v5960_v53 }
 0x630   :  { %6442 = vmatpush.msra.mxu2 %v6033_v18  ;;  %6462 = vmatpush.msra.mxu3 %v6034_v40 }
 0x631   :  { %v14442_v27 = vpop.f32.mrf.mxu2  ;;  %v14444_v47 = vpop.f32.mrf.mxu3  ;;  %6406 = vmatpush.msra.mxu0 %v5935_v0  ;;  %6426 = vmatpush.msra.mxu1 %v5936_v34  ;;  %v16925_v0 = vld [vmem:[#allocation14_spill] sm:$0xff] }
 0x632   :  { %6443 = vmatpush.msra.mxu2 %v6009_v44  ;;  %6463 = vmatpush.msra.mxu3 %v6010_v58  ;;  %v4492_v34 = vadd.f32 %v16925_v0, %v16924_v26  ;;  %v4493_v44 = vadd.f32 %v16927_v21, %v16926_v9 }
 0x633   :  { %6407 = vmatpush.msra.mxu0 %v5911_v15  ;;  %6427 = vmatpush.msra.mxu1 %v5912_v20 }
 0x634   :  { %6444 = vmatpush.msra.mxu2 %v5985_v36  ;;  %6464 = vmatpush.msra.mxu3 %v5986_v23  ;;  %v16928_v23 = vld [vmem:[#allocation6_spill] sm:$0xff] }
 0x635   :  { %v14456_v30 = vpop.f32.mrf.mxu0  ;;  %v14458_v5 = vpop.f32.mrf.mxu1  ;;  %6408 = vmatpush.msra.mxu0 %v5887_v19  ;;  %6428 = vmatpush.msra.mxu1 %v5888_v52  ;;  %v16929_v19 = vld [vmem:[#allocation16_spill] sm:$0xff] }
 0x636   :  { %6445 = vmatpush.msra.mxu2 %v5961_v42  ;;  %6465 = vmatpush.msra.mxu3 %v5962_v55  ;;  %v14524_v52 = vadd.f32 %v16929_v19, %v16928_v23  ;;  %v14528_v42 = vadd.f32 %v16931_v1, %v16930_v13  ;;  %v16932_v55 = vld [vmem:[#allocation8_spill] sm:$0xff]  ;;  %v5724_v19 = vmul.f32 0.01, %v14458_v5 }
 0x637   :  { %9970 = vmatmul.msk.f32.vlgmr.msra.gmra.mxu0 %vm1586_vm3, %v14203_v8  ;;  %9971 = vmatmul.msk.f32.vlgmr.msra.gmra.mxu1 %vm1586_vm3, %v14203_v8  ;;  %v14532_v35 = vadd.f32 %v16933_v43, %v16932_v55  ;;  %v5700_v55 = vmul.f32 0.01, %v14416_v45 }
 0x638   :  { %6446 = vmatpush.msra.mxu2 %v5937_v39  ;;  %6466 = vmatpush.msra.mxu3 %v5938_v6  ;;  %v16935_v39 = vld [vmem:[#allocation58_spill] sm:$0xff] }
 0x639   :  { %v14537_v6 = vadd.f32 %v16935_v39, %v16934_v59 }
 0x63a   :  { %6447 = vmatpush.msra.mxu2 %v5913_v28  ;;  %6467 = vmatpush.msra.mxu3 %v5914_v56 }
 0x63c   :  { %v14472_v61 = vpop.f32.mrf.mxu2  ;;  %v14474_v46 = vpop.f32.mrf.mxu3  ;;  %6448 = vmatpush.msra.mxu2 %v5889_v60  ;;  %6468 = vmatpush.msra.mxu3 %v5890_v25  ;;  %v14541_v25 = vmul.f32 0.01, %v14414_v50 }
 0x63d   :  { %9972 = vmatmul.msk.f32.vlgmr.msra.gmra.mxu2 %vm1586_vm3, %v14203_v8  ;;  %9973 = vmatmul.msk.f32.vlgmr.msra.gmra.mxu3 %vm1586_vm3, %v14203_v8 }
 0x63f   :  { %v14480_v49 = vpop.f32.mrf.mxu0  ;;  %v14482_v38 = vpop.f32.mrf.mxu1 }
 0x640   :  { %v5748_v23 = vmul.f32 0.01, %v14482_v38 }
 0x642   :  { %v5940_v39 = vmax.f32 %v14482_v38, %v5748_v23  ;;  %v5916_v38 = vmax.f32 %v14458_v5, %v5724_v19  ;;  %v5725_v5 = vmul.f32 0.01, %v14472_v61 }
 0x646   :  { %v14484_v17 = vpop.f32.mrf.mxu2  ;;  %v14486_v29 = vpop.f32.mrf.mxu3 }
 0x647   :  { %v14488_v10 = vpop.f32.mrf.mxu0  ;;  %v14490_v11 = vpop.f32.mrf.mxu1 }
 0x648   :  { %v14517_v58 = vmul.f32 0.01, %v14488_v10  ;;  %v14520_v15 = vmul.f32 0.01, %v14490_v11 }
 0x64a   :  { %v5964_v26 = vmax.f32 %v14490_v11, %v14520_v15 }
 0x64e   :  { %v14492_v24 = vpop.f32.mrf.mxu2  ;;  %v14494_v37 = vpop.f32.mrf.mxu3 }
 0x64f   :  { %v14496_v57 = vpop.f32.mrf.mxu0  ;;  %v14498_v48 = vpop.f32.mrf.mxu1 }
 0x650   :  { %v5795_v33 = vmul.f32 0.01, %v14496_v57  ;;  %v5796_v28 = vmul.f32 0.01, %v14498_v48 }
 0x652   :  { %v5987_v9 = vmax.f32 %v14496_v57, %v5795_v33  ;;  %v5988_v11 = vmax.f32 %v14498_v48, %v5796_v28  ;;  %v5774_v28 = vmul.f32 0.01, %v14494_v37 }
 0x656   :  { %v14500_v16 = vpop.f32.mrf.mxu2  ;;  %v14502_v3 = vpop.f32.mrf.mxu3 }
 0x657   :  { %v5547_v22 = vpop.f32.mrf.mxu0  ;;  %v5588_v4 = vpop.f32.mrf.mxu1  ;;  %v5797_v13 = vmul.f32 0.01, %v14500_v16  ;;  %v5798_v43 = vmul.f32 0.01, %v14502_v3 }
 0x658   :  { %v5819_v20 = vmul.f32 0.01, %v5547_v22  ;;  %v5820_v12 = vmul.f32 0.01, %v5588_v4 }
 0x65e   :  { %v14504_v54 = vpop.f32.mrf.mxu2  ;;  %v14506_v63 = vpop.f32.mrf.mxu3 }
 0x65f   :  { %v5550_v7 = vpop.f32.mrf.mxu0  ;;  %v5591_v2 = vpop.f32.mrf.mxu1  ;;  %v5821_v57 = vmul.f32 0.01, %v14504_v54  ;;  %v5822_v15 = vmul.f32 0.01, %v14506_v63 }
 0x660   :  { %v5843_v51 = vmul.f32 0.01, %v5550_v7  ;;  %v5844_v32 = vmul.f32 0.01, %v5591_v2 }
 0x662   :  { %v6035_v56 = vmax.f32 %v5550_v7, %v5843_v51  ;;  %v6036_v60 = vmax.f32 %v5591_v2, %v5844_v32  ;;  %v6011_v7 = vmax.f32 %v5547_v22, %v5819_v20  ;;  %v6012_v2 = vmax.f32 %v5588_v4, %v5820_v12 }
 0x666   :  { %v14508_v53 = vpop.f32.mrf.mxu2  ;;  %v14510_v62 = vpop.f32.mrf.mxu3 }
 0x667   :  { %v5553_v18 = vpop.f32.mrf.mxu0  ;;  %v5594_v40 = vpop.f32.mrf.mxu1  ;;  %v5845_v51 = vmul.f32 0.01, %v14508_v53  ;;  %v5846_v21 = vmul.f32 0.01, %v14510_v62 }
 0x668   :  { %v5867_v14 = vmul.f32 0.01, %v5553_v18  ;;  %v5868_v41 = vmul.f32 0.01, %v5594_v40 }
 0x669   :  { %v6037_v33 = vmax.f32 %v14508_v53, %v5845_v51  ;;  %v6038_v59 = vmax.f32 %v14510_v62, %v5846_v21  ;;  %v6013_v53 = vmax.f32 %v14504_v54, %v5821_v57  ;;  %v6014_v62 = vmax.f32 %v14506_v63, %v5822_v15  ;;  %v16942_v57 = vld [vmem:[#allocation31_spill] sm:$0xff] }
 0x66a   :  { %v6059_v31 = vmax.f32 %v5553_v18, %v5867_v14  ;;  %v6060_v36 = vmax.f32 %v5594_v40, %v5868_v41  ;;  %v14544_v18 = vmul.f32 0.01, %v14456_v30  ;;  %v5747_v40 = vmul.f32 0.01, %v14480_v49  ;;  %v14549_v41 = vpop.permute.xlu1 %6067 }
 0x66b   :  { %v5963_v14 = vmax.f32 %v14488_v10, %v14517_v58  ;;  %v5990_v54 = vmax.f32 %v14502_v3, %v5798_v43 }
 0x66c   :  { %6481 = vmatpush.msrb.mxu0 %v6059_v31  ;;  %6501 = vmatpush.msrb.mxu1 %v6060_v36 }
 0x66e   :  { %v5635_v32 = vpop.f32.mrf.mxu2  ;;  %v5676_v0 = vpop.f32.mrf.mxu3  ;;  %6482 = vmatpush.msrb.mxu0 %v6035_v56  ;;  %6502 = vmatpush.msrb.mxu1 %v6036_v60  ;;  %v5891_v56 = vmax.f32 %v14414_v50, %v14541_v25  ;;  %v5749_v60 = vmul.f32 0.01, %v14484_v17  ;;  %v5750_v50 = vmul.f32 0.01, %v14486_v29 }
 0x66f   :  { %v5869_v31 = vmul.f32 0.01, %v5635_v32  ;;  %v5870_v36 = vmul.f32 0.01, %v5676_v0  ;;  %v6090_v10 = vpop.f32.mrf.mxu0  ;;  %v6110_v58 = vpop.f32.mrf.mxu1 }
 0x670   :  { %v14559_v22 = vadd.f32 %v6090_v10, %v14549_v41  ;;  %v14562_v4 = vadd.f32 %v6110_v58, %v14549_v41  ;;  %6483 = vmatpush.msrb.mxu0 %v6011_v7  ;;  %6503 = vmatpush.msrb.mxu1 %v6012_v2  ;;  %v5726_v7 = vmul.f32 0.01, %v14474_v46  ;;  %v5941_v21 = vmax.f32 %v14484_v17, %v5749_v60  ;;  %v16951_v60 = vld [vmem:[#allocation47_spill] sm:$0xff] }
 0x671   :  { %v6061_v20 = vmax.f32 %v5635_v32, %v5869_v31  ;;  %v6062_v12 = vmax.f32 %v5676_v0, %v5870_v36  ;;  %v5917_v31 = vmax.f32 %v14472_v61, %v5725_v5 }
 0x672   :  { %6697 = vst [vmem:[#allocation1] sm:$0xff] %v14559_v22  ;;  %v14570_v48 = vadd.f32 %v14559_v22, %v4492_v34  ;;  %v14573_v1 = vadd.f32 %v14562_v4, %v4493_v44  ;;  %6484 = vmatpush.msrb.mxu0 %v5987_v9  ;;  %6504 = vmatpush.msrb.mxu1 %v5988_v11  ;;  %v5773_v44 = vmul.f32 0.01, %v14492_v24  ;;  %v5701_v9 = vmul.f32 0.01, %v14442_v27 }
 0x673   :  { %6698 = vst [vmem:[#allocation1 + $0x9] sm:$0xff] %v14562_v4  ;;  %6521 = vmatpush.msrb.mxu2 %v6061_v20  ;;  %6541 = vmatpush.msrb.mxu3 %v6062_v12  ;;  %v5939_v34 = vmax.f32 %v14480_v49, %v5747_v40  ;;  %v5915_v49 = vmax.f32 %v14456_v30, %v14544_v18  ;;  %v6555_v61 = vmul.f32 1.442695, %v14562_v4  ;;  %v16945_v12 = vld [vmem:[#allocation45_spill] sm:$0xff] }
 0x674   :  { %16936 = vst [vmem:[#allocation37_spill] sm:$0xff] %v14570_v48  ;;  %6485 = vmatpush.msrb.mxu0 %v5963_v14  ;;  %6505 = vmatpush.msrb.mxu1 %v5964_v26  ;;  %v5989_v40 = vmax.f32 %v14500_v16, %v5797_v13  ;;  %v5892_v30 = vmax.f32 %v14416_v45, %v5700_v55 }
 0x675   :  { %16937 = vst [vmem:[#allocation63_spill] sm:$0xff] %v14573_v1  ;;  %6522 = vmatpush.msrb.mxu2 %v6037_v33  ;;  %6542 = vmatpush.msrb.mxu3 %v6038_v59  ;;  %v5965_v16 = vmax.f32 %v14492_v24, %v5773_v44  ;;  %v5966_v18 = vmax.f32 %v14494_v37, %v5774_v28 }
 0x676   :  { %v6130_v14 = vpop.f32.mrf.mxu2  ;;  %v6150_v26 = vpop.f32.mrf.mxu3  ;;  %6486 = vmatpush.msrb.mxu0 %v5939_v34  ;;  %6506 = vmatpush.msrb.mxu1 %v5940_v39  ;;  %v5918_v58 = vmax.f32 %v14474_v46, %v5726_v7 }
 0x677   :  { %v6131_v63 = vadd.f32 %v6130_v14, %v14549_v41  ;;  %v6151_v25 = vadd.f32 %v6150_v26, %v14549_v41  ;;  %6523 = vmatpush.msrb.mxu2 %v6013_v53  ;;  %6543 = vmatpush.msrb.mxu3 %v6014_v62  ;;  %v16949_v53 = vld [vmem:[#allocation46_spill] sm:$0xff] }
 0x678   :  { %6487 = vmatpush.msrb.mxu0 %v5915_v49  ;;  %6507 = vmatpush.msrb.mxu1 %v5916_v38  ;;  %v16950_v38 = vld [vmem:[#allocation18_spill] sm:$0xff] }
 0x679   :  { %v6557_v2 = vmul.f32 1.442695, %v6131_v63  ;;  %6699 = vst [vmem:[#allocation1 + $0x12] sm:$0xff] %v6131_v63  ;;  %v14603_v3 = vadd.f32 %v6131_v63, %v14524_v52  ;;  %v14606_v51 = vadd.f32 %v6151_v25, %v14528_v42  ;;  %v6170_v32 = vpop.f32.mrf.mxu0  ;;  %v6190_v45 = vpop.f32.mrf.mxu1  ;;  %6524 = vmatpush.msrb.mxu2 %v5989_v40  ;;  %6544 = vmatpush.msrb.mxu3 %v5990_v54  ;;  %v6559_v0 = vmul.f32 1.442695, %v6151_v25 }
 0x67a   :  { %6700 = vst [vmem:[#allocation1 + $0x1b] sm:$0xff] %v6151_v25  ;;  %v6171_v24 = vadd.f32 %v6170_v32, %v14549_v41  ;;  %v6191_v37 = vadd.f32 %v6190_v45, %v14549_v41  ;;  %6488 = vmatpush.msrb.mxu0 %v5891_v56  ;;  %6508 = vmatpush.msrb.mxu1 %v5892_v30  ;;  %v5702_v52 = vmul.f32 0.01, %v14444_v47  ;;  %v16948_v56 = vld [vmem:[#allocation33_spill] sm:$0xff]  ;;  %v16954_v45 = vld [vmem:[#allocation19_spill] sm:$0xff] }
 0x67b   :  { %16938 = vst [vmem:[#allocation64_spill] sm:$0xff] %v14603_v3  ;;  %v5942_v42 = vmax.f32 %v14486_v29, %v5750_v50  ;;  %6525 = vmatpush.msrb.mxu2 %v5965_v16  ;;  %6545 = vmatpush.msrb.mxu3 %v5966_v18  ;;  %10321 = vpow2.f32 %v6557_v2  ;;  %v4500_v62 = vadd.f32 %v16949_v53, %v16948_v56 }
 0x67c   :  { %16939 = vst [vmem:[#allocation83_spill] sm:$0xff] %v14606_v51  ;;  %v6561_v36 = vmul.f32 1.442695, %v6171_v24  ;;  %v14616_v10 = vadd.f32 %v6171_v24, %v14532_v35  ;;  %9974 = vmatmul.msk.f32.vlgmr.msrb.gmra.mxu0 %vm1586_vm3, %v14203_v8  ;;  %9975 = vmatmul.msk.f32.vlgmr.msrb.gmra.mxu1 %vm1586_vm3, %v14203_v8  ;;  %v6563_v17 = vmul.f32 1.442695, %v6191_v37  ;;  %v14624_v29 = vadd.f32 %v6191_v37, %v14537_v6  ;;  %v16943_v6 = vld [vmem:[#allocation41_spill] sm:$0xff] }
 0x67d   :  { %6701 = vst [vmem:[#allocation1 + $0x24] sm:$0xff] %v6171_v24  ;;  %6526 = vmatpush.msrb.mxu2 %v5941_v21  ;;  %6546 = vmatpush.msrb.mxu3 %v5942_v42  ;;  %10323 = vpow2.f32 %v6559_v0  ;;  %v5893_v35 = vmax.f32 %v14442_v27, %v5701_v9  ;;  %v5894_v23 = vmax.f32 %v14444_v47, %v5702_v52  ;;  %v6553_v8 = vmul.f32 1.442695, %v14559_v22  ;;  %v16944_v27 = vld [vmem:[#allocation32_spill] sm:$0xff] }
 0x67e   :  { %16940 = vst [vmem:[#allocation84_spill] sm:$0xff] %v14616_v10  ;;  %10325 = vpow2.f32 %v6561_v36  ;;  %v4498_v15 = vadd.f32 %v16943_v6, %v16942_v57  ;;  %v4499_v47 = vadd.f32 %v16945_v12, %v16944_v27  ;;  %v10442_v22 = vld [vmem:[%s16286_s2 + $0x4] sm:$0x3]  ;;  %v4501_v40 = vadd.f32 %v16951_v60, %v16950_v38  ;;  %v16962_v12 = vld [vmem:[#allocation22_spill] sm:$0xff] }
 0x67f   :  { %6702 = vst [vmem:[#allocation1 + $0x2d] sm:$0xff] %v6191_v37  ;;  %6527 = vmatpush.msrb.mxu2 %v5917_v31  ;;  %6547 = vmatpush.msrb.mxu3 %v5918_v58  ;;  %10327 = vpow2.f32 %v6563_v17  ;;  %v16955_v0 = vld [vmem:[#allocation40_spill] sm:$0xff] }
 0x680   :  { %16941 = vst [vmem:[#allocation71_spill] sm:$0xff] %v14624_v29  ;;  %v6210_v46 = vpop.f32.mrf.mxu2  ;;  %v6230_v11 = vpop.f32.mrf.mxu3  ;;  %10329 = vpow2.f32 %v6555_v61  ;;  %v4502_v24 = vadd.f32 %v16955_v0, %v16954_v45  ;;  %v16956_v17 = vld [vmem:[#allocation20_spill] sm:$0xff]  ;;  %v16957_v61 = vld [vmem:[#allocation49_spill] sm:$0xff] }
 0x681   :  { %v6211_v20 = vadd.f32 %v6210_v46, %v14549_v41  ;;  %v6231_v4 = vadd.f32 %v6230_v11, %v14549_v41  ;;  %6528 = vmatpush.msrb.mxu2 %v5893_v35  ;;  %6548 = vmatpush.msrb.mxu3 %v5894_v23  ;;  %v10322_v19 = vpop.eup %10321  ;;  %10331 = vpow2.f32 %v6553_v8  ;;  %v4503_v35 = vadd.f32 %v16957_v61, %v16956_v17  ;;  %v16970_v17 = vld [vmem:[#allocation27_spill] sm:$0xff]  ;;  %v16971_v61 = vld [vmem:[#allocation54_spill] sm:$0xff] }
 0x682   :  { %9976 = vmatmul.msk.f32.vlgmr.msrb.gmra.mxu2 %vm1586_vm3, %v10442_v22  ;;  %9977 = vmatmul.msk.f32.vlgmr.msrb.gmra.mxu3 %vm1586_vm3, %v10442_v22  ;;  %v6626_v50 = vrot.slane %v10322_v19, 6  ;;  %v16964_v19 = vld [vmem:[#allocation23_spill] sm:$0xff] }
 0x683   :  { %v6565_v13 = vmul.f32 1.442695, %v6211_v20  ;;  %6703 = vst [vmem:[#allocation1 + $0x36] sm:$0xff] %v6211_v20  ;;  %v14641_v55 = vadd.f32 %v6211_v20, %v4498_v15  ;;  %v6567_v43 = vmul.f32 1.442695, %v6231_v4  ;;  %v10324_v33 = vpop.eup %10323  ;;  %v14643_v59 = vadd.f32 %v6231_v4, %v4499_v47  ;;  %v16960_v20 = vld [vmem:[#allocation21_spill] sm:$0xff] }
 0x684   :  { %6704 = vst [vmem:[#allocation1 + $0x3f] sm:$0xff] %v6231_v4  ;;  %v10326_v34 = vpop.eup %10325  ;;  %v6627_v54 = vrot.slane %v10324_v33, 5  ;;  %v16963_v47 = vld [vmem:[#allocation51_spill] sm:$0xff] }
 0x685   :  { %16946 = vst [vmem:[#allocation69_spill] sm:$0xff] %v14641_v55  ;;  %10333 = vpow2.f32 %v6565_v13  ;;  %v6250_v39 = vpop.f32.mrf.mxu0  ;;  %v6270_v44 = vpop.f32.mrf.mxu1  ;;  %v6628_v25 = vrot.slane %v10326_v34, 4  ;;  %v4504_v22 = vadd.f32 %v16963_v47, %v16962_v12  ;;  %v16965_v13 = vld [vmem:[#allocation44_spill] sm:$0xff] }
 0x686   :  { %16947 = vst [vmem:[#allocation70_spill] sm:$0xff] %v14643_v59  ;;  %v10328_v28 = vpop.eup %10327  ;;  %10335 = vpow2.f32 %v6567_v43  ;;  %v14648_v49 = vadd.f32 %v6250_v39, %v14549_v41  ;;  %v6271_v14 = vadd.f32 %v6270_v44, %v14549_v41  ;;  %v6647_v37 = vsel %vm2164_vm4, %v6626_v50, %v6627_v54 }
 0x687   :  { %v10330_v26 = vpop.eup %10329  ;;  %v6629_v30 = vrot.slane %v10328_v28, 3  ;;  %v4505_v43 = vadd.f32 %v16965_v13, %v16964_v19 }
 0x688   :  { %v14654_v63 = vadd.f32 %v14648_v49, %v4500_v62  ;;  %v14656_v5 = vadd.f32 %v6271_v14, %v4501_v40  ;;  %v10332_v16 = vpop.eup %10331  ;;  %v6625_v7 = vrot.slane %v10330_v26, 7  ;;  %v6571_v33 = vmul.f32 1.442695, %v6271_v14  ;;  %v14692_v40 = vld [vmem:[%s16285_s1 + $0xc0] sm:$0xff] }
 0x689   :  { %v6649_v42 = vsel %vm2167_vm5, %v6628_v25, %v6629_v30 }
 0x68a   :  { %16952 = vst [vmem:[#allocation65_spill] sm:$0xff] %v14654_v63  ;;  %v6646_v23 = vsel %vm80_vm0, %v10332_v16, %v6625_v7  ;;  %10337 = vpow2.f32 %v6571_v33 }
 0x68b   :  { %16953 = vst [vmem:[#allocation66_spill] sm:$0xff] %v14656_v5  ;;  %v10334_v18 = vpop.eup %10333  ;;  %v6706_v2 = vld [vmem:[#allocation1 + $0x1] ss:$9 sm:$0xff]  ;;  %v6648_v11 = vsel %vm138_vm1, %v6646_v23, %v6647_v37 }
 0x68c   :  { %v10336_v32 = vpop.eup %10335  ;;  %v6630_v9 = vrot.slane %v10334_v18, 2  ;;  %6707 = vst [vmem:[#allocation1] sm:$0xff] %v14648_v49  ;;  %v6290_v52 = vpop.f32.mrf.mxu2  ;;  %v16969_v37 = vld [vmem:[#allocation53_spill] sm:$0xff] }
 0x68d   :  { %v6310_v21 = vpop.f32.mrf.mxu3  ;;  %v6631_v31 = vrot.slane %v10336_v32, 1  ;;  %6708 = vst [vmem:[#allocation1 + $0x9] sm:$0xff] %v6271_v14  ;;  %v6291_v36 = vadd.f32 %v6290_v52, %v14549_v41 }
 0x68e   :  { %v6311_v58 = vadd.f32 %v6310_v21, %v14549_v41 }
 0x68f   :  { %v6650_v8 = vsel %vm2169_vm6, %v6630_v9, %v6631_v31  ;;  %6709 = vst [vmem:[#allocation1 + $0x12] sm:$0xff] %v6291_v36  ;;  %v14669_v46 = vadd.f32 %v6291_v36, %v4502_v24  ;;  %v6573_v39 = vmul.f32 1.442695, %v6291_v36  ;;  %v16968_v24 = vld [vmem:[#allocation24_spill] sm:$0xff] }
 0x690   :  { %v6651_v57 = vsel %vm2171_vm7, %v6649_v42, %v6650_v8  ;;  %6710 = vst [vmem:[#allocation1 + $0x1b] sm:$0xff] %v6311_v58  ;;  %v14673_v6 = vadd.f32 %v6311_v58, %v4503_v35  ;;  %v6575_v26 = vmul.f32 1.442695, %v6311_v58  ;;  %v4506_v9 = vadd.f32 %v16969_v37, %v16968_v24 }
 0x691   :  { %16958 = vst [vmem:[#allocation73_spill] sm:$0xff] %v14669_v46  ;;  %v6652_v15 = vsel %vm2173_vm8, %v6648_v11, %v6651_v57  ;;  %10339 = vpow2.f32 %v6573_v39  ;;  %v4507_v35 = vadd.f32 %v16971_v61, %v16970_v17  ;;  %v10338_v11 = vpop.eup %10337 }
 0x692   :  { %16959 = vst [vmem:[#allocation74_spill] sm:$0xff] %v14673_v6  ;;  %v6670_v4 = vmul.f32 %v6652_v15, %v16960_v20  ;;  %10341 = vpow2.f32 %v6575_v26  ;;  %v14753_v20 = vld [vmem:[%s16285_s1 + $0xc8] sm:$0xff]  ;;  %v6632_v39 = vrot.slane %v10338_v11, 7 }
 0x694   :  { %v14677_v27 = vadd.f32 %v6706_v2, %v6670_v4  ;;  %v6569_v4 = vmul.f32 1.442695, %v14648_v49 }
 0x695   :  { %v6330_v34 = vpop.f32.mrf.mxu0 }
 0x696   :  { %16961 = vst [vmem:[#allocation75_spill] sm:$0xff] %v14677_v27  ;;  %v6331_v44 = vadd.f32 %v6330_v34, %v14549_v41  ;;  %v6350_v28 = vpop.f32.mrf.mxu1  ;;  %v16512_v56 = vperm.slane %v14677_v27, 0  ;;  %v16513_v53 = vperm.slane %v14677_v27, 1  ;;  %v16509_v38 = vperm.slane %v14677_v27, 2 }
 0x697   :  { %v6351_v62 = vadd.f32 %v6350_v28, %v14549_v41  ;;  %v16511_v60 = vperm.slane %v14677_v27, 3  ;;  %v16507_v14 = vperm.slane %v14677_v27, 4  ;;  %v16510_v45 = vperm.slane %v14677_v27, 5 }
 0x698   :  { %6711 = vst [vmem:[#allocation1 + $0x24] sm:$0xff] %v6331_v44  ;;  %v14695_v50 = vadd.f32 %v6331_v44, %v4504_v22  ;;  %v6806_v54 = vsel %vm80_vm0, %v16512_v56, 1.0  ;;  %v6577_v25 = vmul.f32 1.442695, %v6331_v44  ;;  %v6807_v16 = vsel %vm80_vm0, %v16513_v53, 1.0  ;;  %v10340_v22 = vpop.eup %10339 }
 0x699   :  { %6712 = vst [vmem:[#allocation1 + $0x2d] sm:$0xff] %v6351_v62  ;;  %v14700_v30 = vadd.f32 %v6351_v62, %v4505_v43  ;;  %9978 = vmatpush.msk.msra.mxu0 %vm138_vm1, %v6806_v54  ;;  %v6579_v18 = vmul.f32 1.442695, %v6351_v62  ;;  %9987 = vmatpush.msk.msra.mxu1 %vm138_vm1, %v6807_v16  ;;  %v6808_v7 = vsel %vm80_vm0, %v16509_v38, 1.0  ;;  %v6809_v2 = vsel %vm80_vm0, %v16511_v60, 1.0  ;;  %v10342_v19 = vpop.eup %10341  ;;  %v14769_v62 = vld [vmem:[%s16285_s1 + $0xd0] sm:$0xff] }
 0x69a   :  { %16966 = vst [vmem:[#allocation77_spill] sm:$0xff] %v14695_v50  ;;  %9979 = vmatmul.msk.f32.vlgmr.msra.gmra.mxu0 %vm113_vm2, %v14692_v40  ;;  %v6810_v32 = vsel %vm80_vm0, %v16507_v14, 1.0  ;;  %9996 = vmatpush.msk.msra.mxu2 %vm138_vm1, %v6808_v7  ;;  %v16506_v0 = vperm.slane %v14677_v27, 6  ;;  %v16508_v21 = vperm.slane %v14677_v27, 7  ;;  %10343 = vpow2.f32 %v6577_v25 }
 0x69b   :  { %16967 = vst [vmem:[#allocation76_spill] sm:$0xff] %v14700_v30  ;;  %10005 = vmatpush.msk.msra.mxu3 %vm138_vm1, %v6809_v2  ;;  %9988 = vmatmul.msk.f32.vlgmr.msra.gmra.mxu1 %vm113_vm2, %v14692_v40  ;;  %v6811_v36 = vsel %vm80_vm0, %v16510_v45, 1.0  ;;  %10345 = vpow2.f32 %v6579_v18  ;;  %v6633_v49 = vrot.slane %v10340_v22, 6  ;;  %v6634_v33 = vrot.slane %v10342_v19, 5 }
 0x69c   :  { %v6370_v52 = vpop.f32.mrf.mxu2  ;;  %9997 = vmatmul.msk.f32.vlgmr.msra.gmra.mxu2 %vm113_vm2, %v14692_v40  ;;  %10006 = vmatmul.msk.f32.vlgmr.msra.gmra.mxu3 %vm113_vm2, %v14692_v40  ;;  %v6812_v58 = vsel %vm80_vm0, %v16506_v0, 1.0  ;;  %v6813_v8 = vsel %vm80_vm0, %v16508_v21, 1.0 }
 0x69d   :  { %v6371_v42 = vadd.f32 %v6370_v52, %v14549_v41  ;;  %v6390_v31 = vpop.f32.mrf.mxu3  ;;  %10014 = vmatpush.msk.msrb.mxu0 %vm138_vm1, %v6810_v32  ;;  %10023 = vmatpush.msk.msrb.mxu1 %vm138_vm1, %v6811_v36  ;;  %v6654_v25 = vsel %vm2164_vm4, %v6633_v49, %v6634_v33  ;;  %v16974_v52 = vld [vmem:[#allocation25_spill] sm:$0xff]  ;;  %v14790_v36 = vld [vmem:[%s16285_s1 + $0xd8] sm:$0xff]  ;;  %v16978_v49 = vld [vmem:[#allocation28_spill] sm:$0xff] }
 0x69e   :  { %v6391_v23 = vadd.f32 %v6390_v31, %v14549_v41  ;;  %10032 = vmatpush.msk.msrb.mxu2 %vm138_vm1, %v6812_v58  ;;  %10041 = vmatpush.msk.msrb.mxu3 %vm138_vm1, %v6813_v8  ;;  %v16979_v33 = vld [vmem:[#allocation59_spill] sm:$0xff] }
 0x69f   :  { %v6581_v57 = vmul.f32 1.442695, %v6371_v42  ;;  %6713 = vst [vmem:[#allocation1 + $0x36] sm:$0xff] %v6371_v42  ;;  %v14747_v15 = vadd.f32 %v6371_v42, %v4506_v9 }
 0x6a0   :  { %v6583_v12 = vmul.f32 1.442695, %v6391_v23  ;;  %6714 = vst [vmem:[#allocation1 + $0x3f] sm:$0xff] %v6391_v23  ;;  %v14756_v47 = vadd.f32 %v6391_v23, %v4507_v35  ;;  %v10344_v13 = vpop.eup %10343 }
 0x6a1   :  { %16972 = vst [vmem:[#allocation78_spill] sm:$0xff] %v14747_v15  ;;  %10347 = vpow2.f32 %v6581_v57  ;;  %v10346_v43 = vpop.eup %10345  ;;  %v6635_v44 = vrot.slane %v10344_v13, 4 }
 0x6a2   :  { %16973 = vst [vmem:[#allocation79_spill] sm:$0xff] %v14756_v47  ;;  %10349 = vpow2.f32 %v6583_v12  ;;  %9980 = vmatmul.msk.f32.gmra.mxu0 %vm113_vm2, %v14753_v20  ;;  %v6636_v28 = vrot.slane %v10346_v43, 3  ;;  %v16977_v12 = vld [vmem:[#allocation48_spill] sm:$0xff] }
 0x6a3   :  { %10351 = vpow2.f32 %v6569_v4  ;;  %9989 = vmatmul.msk.f32.gmra.mxu1 %vm113_vm2, %v14753_v20  ;;  %v16976_v4 = vld [vmem:[#allocation5_spill] sm:$0xff] }
 0x6a4   :  { %9998 = vmatmul.msk.f32.gmra.mxu2 %vm113_vm2, %v14753_v20  ;;  %10007 = vmatmul.msk.f32.gmra.mxu3 %vm113_vm2, %v14753_v20  ;;  %v6656_v2 = vsel %vm2167_vm5, %v6635_v44, %v6636_v28  ;;  %v4508_v22 = vadd.f32 %v16977_v12, %v16976_v4  ;;  %v14831_v28 = vld [vmem:[%s16285_s1 + $0xe0] sm:$0xff] }
 0x6a7   :  { %v10348_v34 = vpop.eup %10347  ;;  %v6715_v31 = vld [vmem:[#allocation1 + $0x1] ss:$9 sm:$0xff] }
 0x6a8   :  { %v10350_v26 = vpop.eup %10349  ;;  %v6637_v54 = vrot.slane %v10348_v34, 2  ;;  %v4509_v34 = vadd.f32 %v16979_v33, %v16978_v49  ;;  %v14872_v49 = vld [vmem:[%s16285_s1 + $0xf0] sm:$0xff] }
 0x6a9   :  { %v6638_v16 = vrot.slane %v10350_v26, 1  ;;  %v10352_v18 = vpop.eup %10351 }
 0x6aa   :  { %9981 = vmatmul.msk.f32.gmra.mxu0 %vm113_vm2, %v14769_v62  ;;  %v6653_v7 = vsel %vm80_vm0, %v10352_v18, %v6632_v39  ;;  %v14848_v18 = vld [vmem:[%s16285_s1 + $0xe8] sm:$0xff] }
 0x6ab   :  { %v6657_v32 = vsel %vm2169_vm6, %v6637_v54, %v6638_v16  ;;  %v6655_v24 = vsel %vm138_vm1, %v6653_v7, %v6654_v25  ;;  %9990 = vmatmul.msk.f32.gmra.mxu1 %vm113_vm2, %v14769_v62 }
 0x6ac   :  { %v6658_v37 = vsel %vm2171_vm7, %v6656_v2, %v6657_v32  ;;  %9999 = vmatmul.msk.f32.gmra.mxu2 %vm113_vm2, %v14769_v62  ;;  %10008 = vmatmul.msk.f32.gmra.mxu3 %vm113_vm2, %v14769_v62 }
 0x6ad   :  { %v6659_v9 = vsel %vm2173_vm8, %v6655_v24, %v6658_v37  ;;  %v16982_v24 = vld [vmem:[#allocation34_spill] sm:$0xff]  ;;  %v16983_v37 = vld [vmem:[#allocation60_spill] sm:$0xff] }
 0x6ae   :  { %v6671_v42 = vmul.f32 %v6659_v9, %v16974_v52  ;;  %v4510_v9 = vadd.f32 %v16983_v37, %v16982_v24 }
 0x6b0   :  { %v14792_v58 = vadd.f32 %v6715_v31, %v6671_v42 }
 0x6b2   :  { %16975 = vst [vmem:[#allocation85_spill] sm:$0xff] %v14792_v58  ;;  %v16504_v17 = vperm.slane %v14792_v58, 0  ;;  %v16505_v61 = vperm.slane %v14792_v58, 1  ;;  %v16501_v35 = vperm.slane %v14792_v58, 2  ;;  %9982 = vmatmul.msk.f32.gmra.mxu0 %vm113_vm2, %v14790_v36  ;;  %v16503_v23 = vperm.slane %v14792_v58, 3 }
 0x6b3   :  { %9991 = vmatmul.msk.f32.gmra.mxu1 %vm113_vm2, %v14790_v36  ;;  %v16494_v24 = vperm.slane %v14792_v58, 6 }
 0x6b4   :  { %v6814_v8 = vsel %vm80_vm0, %v16504_v17, 1.0  ;;  %v6815_v11 = vsel %vm80_vm0, %v16505_v61, 1.0  ;;  %v6816_v57 = vsel %vm80_vm0, %v16501_v35, 1.0  ;;  %10000 = vmatmul.msk.f32.gmra.mxu2 %vm113_vm2, %v14790_v36  ;;  %v6817_v19 = vsel %vm80_vm0, %v16503_v23, 1.0  ;;  %v6410_v13 = vpop.f32.mrf.mxu0  ;;  %v6430_v43 = vpop.f32.mrf.mxu1  ;;  %10009 = vmatmul.msk.f32.gmra.mxu3 %vm113_vm2, %v14790_v36 }
 0x6b5   :  { %10050 = vmatpush.msk.msra.mxu0 %vm138_vm1, %v6814_v8  ;;  %10059 = vmatpush.msk.msra.mxu1 %vm138_vm1, %v6815_v11  ;;  %v6411_v39 = vadd.f32 %v6410_v13, %v14549_v41  ;;  %v6431_v44 = vadd.f32 %v6430_v43, %v14549_v41  ;;  %v16984_v11 = vld [vmem:[#allocation29_spill] sm:$0xff] }
 0x6b6   :  { %10068 = vmatpush.msk.msra.mxu2 %vm138_vm1, %v6816_v57  ;;  %10077 = vmatpush.msk.msra.mxu3 %vm138_vm1, %v6817_v19  ;;  %v16985_v57 = vld [vmem:[#allocation56_spill] sm:$0xff] }
 0x6b7   :  { %6716 = vst [vmem:[#allocation1] sm:$0xff] %v6411_v39  ;;  %v14833_v26 = vadd.f32 %v6411_v39, %v4508_v22  ;;  %v6587_v54 = vmul.f32 1.442695, %v6431_v44  ;;  %v14835_v25 = vadd.f32 %v6431_v44, %v4509_v34  ;;  %v6585_v16 = vmul.f32 1.442695, %v6411_v39 }
 0x6b8   :  { %6717 = vst [vmem:[#allocation1 + $0x9] sm:$0xff] %v6431_v44  ;;  %v4511_v4 = vadd.f32 %v16985_v57, %v16984_v11  ;;  %v16988_v57 = vld [vmem:[#allocation35_spill] sm:$0xff] }
 0x6b9   :  { %16980 = vst [vmem:[#allocation80_spill] sm:$0xff] %v14833_v26  ;;  %10353 = vpow2.f32 %v6587_v54  ;;  %v14885_v54 = vld [vmem:[%s16285_s1 + $0xf8] sm:$0xff] }
 0x6ba   :  { %16981 = vst [vmem:[#allocation86_spill] sm:$0xff] %v14835_v25  ;;  %9983 = vmatmul.msk.f32.gmra.mxu0 %vm113_vm2, %v14831_v28  ;;  %10355 = vpow2.f32 %v6585_v16 }
 0x6bb   :  { %9992 = vmatmul.msk.f32.gmra.mxu1 %vm113_vm2, %v14831_v28 }
 0x6bc   :  { %10001 = vmatmul.msk.f32.gmra.mxu2 %vm113_vm2, %v14831_v28  ;;  %10010 = vmatmul.msk.f32.gmra.mxu3 %vm113_vm2, %v14831_v28 }
 0x6bf   :  { %v10354_v7 = vpop.eup %10353 }
 0x6c0   :  { %v6450_v2 = vpop.f32.mrf.mxu2  ;;  %v6470_v32 = vpop.f32.mrf.mxu3  ;;  %v6639_v52 = vrot.slane %v10354_v7, 7 }
 0x6c1   :  { %v6451_v42 = vadd.f32 %v6450_v2, %v14549_v41  ;;  %v6471_v31 = vadd.f32 %v6470_v32, %v14549_v41  ;;  %v10356_v8 = vpop.eup %10355  ;;  %v16495_v2 = vperm.slane %v14792_v58, 4  ;;  %v16502_v32 = vperm.slane %v14792_v58, 5 }
 0x6c2   :  { %9984 = vmatmul.msk.f32.gmra.mxu0 %vm113_vm2, %v14848_v18  ;;  %v6660_v12 = vsel %vm80_vm0, %v10356_v8, %v6639_v52 }
 0x6c3   :  { %9993 = vmatmul.msk.f32.gmra.mxu1 %vm113_vm2, %v14848_v18  ;;  %v6589_v22 = vmul.f32 1.442695, %v6451_v42  ;;  %6718 = vst [vmem:[#allocation1 + $0x12] sm:$0xff] %v6451_v42  ;;  %v14863_v19 = vadd.f32 %v6451_v42, %v4510_v9  ;;  %v6591_v13 = vmul.f32 1.442695, %v6471_v31  ;;  %v14865_v43 = vadd.f32 %v6471_v31, %v4511_v4  ;;  %v16989_v4 = vld [vmem:[#allocation52_spill] sm:$0xff] }
 0x6c4   :  { %10002 = vmatmul.msk.f32.gmra.mxu2 %vm113_vm2, %v14848_v18  ;;  %6719 = vst [vmem:[#allocation1 + $0x1b] sm:$0xff] %v6471_v31  ;;  %10011 = vmatmul.msk.f32.gmra.mxu3 %vm113_vm2, %v14848_v18  ;;  %v6818_v37 = vsel %vm80_vm0, %v16495_v2, 1.0  ;;  %v16500_v9 = vperm.slane %v14792_v58, 7  ;;  %v6819_v52 = vsel %vm80_vm0, %v16502_v32, 1.0  ;;  %v6820_v42 = vsel %vm80_vm0, %v16494_v24, 1.0 }
 0x6c5   :  { %16986 = vst [vmem:[#allocation81_spill] sm:$0xff] %v14863_v19  ;;  %10357 = vpow2.f32 %v6589_v22  ;;  %v16990_v22 = vld [vmem:[#allocation30_spill] sm:$0xff] }
 0x6c6   :  { %16987 = vst [vmem:[#allocation82_spill] sm:$0xff] %v14865_v43  ;;  %10359 = vpow2.f32 %v6591_v13  ;;  %v6821_v31 = vsel %vm80_vm0, %v16500_v9, 1.0  ;;  %v16991_v13 = vld [vmem:[#allocation38_spill] sm:$0xff] }
 0x6ca   :  { %9985 = vmatmul.msk.f32.gmra.mxu0 %vm113_vm2, %v14872_v49 }
 0x6cb   :  { %v10358_v33 = vpop.eup %10357  ;;  %9994 = vmatmul.msk.f32.gmra.mxu1 %vm113_vm2, %v14872_v49 }
 0x6cc   :  { %10003 = vmatmul.msk.f32.gmra.mxu2 %vm113_vm2, %v14872_v49  ;;  %v10360_v34 = vpop.eup %10359  ;;  %v6640_v39 = vrot.slane %v10358_v33, 6  ;;  %10012 = vmatmul.msk.f32.gmra.mxu3 %vm113_vm2, %v14872_v49  ;;  %v4513_v33 = vadd.f32 %v16991_v13, %v16990_v22  ;;  %v16996_v22 = vld [vmem:[#allocation10_spill] sm:$0xff] }
 0x6cd   :  { %v6641_v44 = vrot.slane %v10360_v34, 5  ;;  %v16997_v13 = vld [vmem:[#allocation42_spill] sm:$0xff] }
 0x6cf   :  { %v6661_v16 = vsel %vm2164_vm4, %v6640_v39, %v6641_v44 }
 0x6d0   :  { %v14889_v7 = vsel %vm138_vm1, %v6660_v12, %v6661_v16  ;;  %v4512_v12 = vadd.f32 %v16989_v4, %v16988_v57 }
 0x6d2   :  { %9986 = vmatmul.msk.f32.gmra.mxu0 %vm113_vm2, %v14885_v54 }
 0x6d3   :  { %9995 = vmatmul.msk.f32.gmra.mxu1 %vm113_vm2, %v14885_v54 }
 0x6d4   :  { %10004 = vmatmul.msk.f32.gmra.mxu2 %vm113_vm2, %v14885_v54  ;;  %10013 = vmatmul.msk.f32.gmra.mxu3 %vm113_vm2, %v14885_v54 }
 0x6da   :  { %10015 = vmatmul.msk.f32.vlgmr.msrb.gmra.mxu0 %vm113_vm2, %v14692_v40 }
 0x6db   :  { %10086 = vmatpush.msk.msrb.mxu0 %vm138_vm1, %v6818_v37  ;;  %10024 = vmatmul.msk.f32.vlgmr.msrb.gmra.mxu1 %vm113_vm2, %v14692_v40 }
 0x6dc   :  { %10033 = vmatmul.msk.f32.vlgmr.msrb.gmra.mxu2 %vm113_vm2, %v14692_v40  ;;  %10095 = vmatpush.msk.msrb.mxu1 %vm138_vm1, %v6819_v52 }
 0x6dd   :  { %10104 = vmatpush.msk.msrb.mxu2 %vm138_vm1, %v6820_v42  ;;  %10042 = vmatmul.msk.f32.vlgmr.msrb.gmra.mxu3 %vm113_vm2, %v14692_v40 }
 0x6de   :  { %10113 = vmatpush.msk.msrb.mxu3 %vm138_vm1, %v6821_v31 }
 0x6e2   :  { %10016 = vmatmul.msk.f32.gmra.mxu0 %vm113_vm2, %v14753_v20 }
 0x6e3   :  { %10025 = vmatmul.msk.f32.gmra.mxu1 %vm113_vm2, %v14753_v20 }
 0x6e4   :  { %10034 = vmatmul.msk.f32.gmra.mxu2 %vm113_vm2, %v14753_v20 }
 0x6e5   :  { %10043 = vmatmul.msk.f32.gmra.mxu3 %vm113_vm2, %v14753_v20 }
 0x6ea   :  { %10017 = vmatmul.msk.f32.gmra.mxu0 %vm113_vm2, %v14769_v62 }
 0x6eb   :  { %10026 = vmatmul.msk.f32.gmra.mxu1 %vm113_vm2, %v14769_v62 }
 0x6ec   :  { %10035 = vmatmul.msk.f32.gmra.mxu2 %vm113_vm2, %v14769_v62 }
 0x6ed   :  { %10044 = vmatmul.msk.f32.gmra.mxu3 %vm113_vm2, %v14769_v62 }
 0x6f2   :  { %10018 = vmatmul.msk.f32.gmra.mxu0 %vm113_vm2, %v14790_v36 }
 0x6f3   :  { %10027 = vmatmul.msk.f32.gmra.mxu1 %vm113_vm2, %v14790_v36 }
 0x6f4   :  { %10036 = vmatmul.msk.f32.gmra.mxu2 %vm113_vm2, %v14790_v36 }
 0x6f5   :  { %10045 = vmatmul.msk.f32.gmra.mxu3 %vm113_vm2, %v14790_v36 }
 0x6f9   :  { %v6490_v8 = vpop.f32.mrf.mxu0  ;;  %v6510_v11 = vpop.f32.mrf.mxu1 }
 0x6fa   :  { %10019 = vmatmul.msk.f32.gmra.mxu0 %vm113_vm2, %v14831_v28  ;;  %v6491_v34 = vadd.f32 %v6490_v8, %v14549_v41  ;;  %v6511_v39 = vadd.f32 %v6510_v11, %v14549_v41  ;;  %v16994_v8 = vld [vmem:[#allocation26_spill] sm:$0xff]  ;;  %v16995_v11 = vld [vmem:[#allocation39_spill] sm:$0xff] }
 0x6fb   :  { %10028 = vmatmul.msk.f32.gmra.mxu1 %vm113_vm2, %v14831_v28  ;;  %v4514_v57 = vadd.f32 %v16995_v11, %v16994_v8 }
 0x6fc   :  { %10037 = vmatmul.msk.f32.gmra.mxu2 %vm113_vm2, %v14831_v28  ;;  %6720 = vst [vmem:[#allocation1 + $0x24] sm:$0xff] %v6491_v34  ;;  %v14963_v44 = vadd.f32 %v6491_v34, %v4512_v12  ;;  %v14965_v16 = vadd.f32 %v6511_v39, %v4513_v33  ;;  %v6593_v37 = vmul.f32 1.442695, %v6491_v34  ;;  %v6595_v52 = vmul.f32 1.442695, %v6511_v39 }
 0x6fd   :  { %6721 = vst [vmem:[#allocation1 + $0x2d] sm:$0xff] %v6511_v39  ;;  %10046 = vmatmul.msk.f32.gmra.mxu3 %vm113_vm2, %v14831_v28  ;;  %v4515_v33 = vadd.f32 %v16997_v13, %v16996_v22  ;;  %v17000_v13 = vld [vmem:[#allocation11_spill] sm:$0xff] }
 0x6fe   :  { %16992 = vst [vmem:[#allocation68_spill] sm:$0xff] %v14963_v44  ;;  %10361 = vpow2.f32 %v6593_v37 }
 0x6ff   :  { %16993 = vst [vmem:[#allocation36_spill] sm:$0xff] %v14965_v16  ;;  %10363 = vpow2.f32 %v6595_v52 }
 0x702   :  { %10020 = vmatmul.msk.f32.gmra.mxu0 %vm113_vm2, %v14848_v18 }
 0x703   :  { %10029 = vmatmul.msk.f32.gmra.mxu1 %vm113_vm2, %v14848_v18 }
 0x704   :  { %10038 = vmatmul.msk.f32.gmra.mxu2 %vm113_vm2, %v14848_v18 }
 0x705   :  { %v6530_v42 = vpop.f32.mrf.mxu2  ;;  %v6550_v31 = vpop.f32.mrf.mxu3  ;;  %10047 = vmatmul.msk.f32.gmra.mxu3 %vm113_vm2, %v14848_v18 }
 0x706   :  { %v6531_v4 = vadd.f32 %v6530_v42, %v14549_v41  ;;  %v6551_v12 = vadd.f32 %v6550_v31, %v14549_v41  ;;  %v10362_v41 = vpop.eup %10361 }
 0x707   :  { %v10364_v37 = vpop.eup %10363  ;;  %v6642_v42 = vrot.slane %v10362_v41, 4 }
 0x708   :  { %v6597_v34 = vmul.f32 1.442695, %v6531_v4  ;;  %6722 = vst [vmem:[#allocation1 + $0x36] sm:$0xff] %v6531_v4  ;;  %v14983_v39 = vadd.f32 %v6531_v4, %v4514_v57  ;;  %v6599_v24 = vmul.f32 1.442695, %v6551_v12  ;;  %v14985_v2 = vadd.f32 %v6551_v12, %v4515_v33 }
 0x709   :  { %6723 = vst [vmem:[#allocation1 + $0x3f] sm:$0xff] %v6551_v12  ;;  %v6643_v31 = vrot.slane %v10364_v37, 3 }
 0x70a   :  { %16998 = vst [vmem:[#allocation72_spill] sm:$0xff] %v14983_v39  ;;  %10365 = vpow2.f32 %v6597_v34  ;;  %10021 = vmatmul.msk.f32.gmra.mxu0 %vm113_vm2, %v14872_v49 }
 0x70b   :  { %16999 = vst [vmem:[#allocation61_spill] sm:$0xff] %v14985_v2  ;;  %10367 = vpow2.f32 %v6599_v24  ;;  %10030 = vmatmul.msk.f32.gmra.mxu1 %vm113_vm2, %v14872_v49  ;;  %v6663_v24 = vsel %vm2167_vm5, %v6642_v42, %v6643_v31 }
 0x70c   :  { %10039 = vmatmul.msk.f32.gmra.mxu2 %vm113_vm2, %v14872_v49 }
 0x70d   :  { %10048 = vmatmul.msk.f32.gmra.mxu3 %vm113_vm2, %v14872_v49 }
 0x710   :  { %v10366_v52 = vpop.eup %10365  ;;  %v6724_v41 = vld [vmem:[#allocation1 + $0x1] ss:$9 sm:$0xff] }
 0x711   :  { %v10368_v8 = vpop.eup %10367  ;;  %v6644_v11 = vrot.slane %v10366_v52, 2 }
 0x712   :  { %v6645_v57 = vrot.slane %v10368_v8, 1  ;;  %10022 = vmatmul.msk.f32.gmra.mxu0 %vm113_vm2, %v14885_v54 }
 0x713   :  { %10031 = vmatmul.msk.f32.gmra.mxu1 %vm113_vm2, %v14885_v54 }
 0x714   :  { %v6664_v4 = vsel %vm2169_vm6, %v6644_v11, %v6645_v57  ;;  %10040 = vmatmul.msk.f32.gmra.mxu2 %vm113_vm2, %v14885_v54 }
 0x715   :  { %v6665_v12 = vsel %vm2171_vm7, %v6663_v24, %v6664_v4  ;;  %10049 = vmatmul.msk.f32.gmra.mxu3 %vm113_vm2, %v14885_v54 }
 0x716   :  { %v6666_v22 = vsel %vm2173_vm8, %v14889_v7, %v6665_v12 }
 0x717   :  { %v6672_v33 = vmul.f32 %v6666_v22, %v17000_v13  ;;  %v15009_v34 = vpop.f32.mrf.mxu0 }
 0x718   :  { %v15013_v52 = vpop.f32.mrf.mxu1 }
 0x719   :  { %v15011_v37 = vadd.f32 %v6724_v41, %v6672_v33 }
 0x71a   :  { %10051 = vmatmul.msk.f32.vlgmr.msra.gmra.mxu0 %vm113_vm2, %v14692_v40 }
 0x71b   :  { %17001 = vst [vmem:[#allocation62_spill] sm:$0xff] %v15011_v37  ;;  %v16497_v42 = vperm.slane %v15011_v37, 0  ;;  %v16499_v31 = vperm.slane %v15011_v37, 1  ;;  %v16496_v7 = vperm.slane %v15011_v37, 2  ;;  %10060 = vmatmul.msk.f32.vlgmr.msra.gmra.mxu1 %vm113_vm2, %v14692_v40  ;;  %v16498_v8 = vperm.slane %v15011_v37, 3 }
 0x71c   :  { %10069 = vmatmul.msk.f32.vlgmr.msra.gmra.mxu2 %vm113_vm2, %v14692_v40  ;;  %v16516_v39 = vperm.slane %v15011_v37, 4  ;;  %v16517_v43 = vperm.slane %v15011_v37, 5  ;;  %v16518_v47 = vperm.slane %v15011_v37, 7  ;;  %v17004_v15 = vperm.slane %v15011_v37, 6 }
 0x71d   :  { %v6822_v11 = vsel %vm80_vm0, %v16497_v42, 1.0  ;;  %v6823_v57 = vsel %vm80_vm0, %v16499_v31, 1.0  ;;  %v6824_v24 = vsel %vm80_vm0, %v16496_v7, 1.0  ;;  %v6825_v4 = vsel %vm80_vm0, %v16498_v8, 1.0  ;;  %10078 = vmatmul.msk.f32.vlgmr.msra.gmra.mxu3 %vm113_vm2, %v14692_v40 }
 0x71e   :  { %10122 = vmatpush.msk.msra.mxu0 %vm138_vm1, %v6822_v11  ;;  %10131 = vmatpush.msk.msra.mxu1 %vm138_vm1, %v6823_v57  ;;  %v6826_v58 = vsel %vm80_vm0, %v16516_v39, 1.0  ;;  %v6827_v19 = vsel %vm80_vm0, %v16517_v43, 1.0  ;;  %v6828_v30 = vsel %vm80_vm0, %v17004_v15, 1.0 }
 0x71f   :  { %v15041_v12 = vpop.f32.mrf.mxu2  ;;  %v15043_v22 = vpop.f32.mrf.mxu0  ;;  %10140 = vmatpush.msk.msra.mxu2 %vm138_vm1, %v6824_v24  ;;  %10149 = vmatpush.msk.msra.mxu3 %vm138_vm1, %v6825_v4 }
 0x720   :  { %v15046_v13 = vpop.f32.mrf.mxu3  ;;  %v15049_v33 = vpop.f32.mrf.mxu1 }
 0x722   :  { %10052 = vmatmul.msk.f32.gmra.mxu0 %vm113_vm2, %v14753_v20 }
 0x723   :  { %10061 = vmatmul.msk.f32.gmra.mxu1 %vm113_vm2, %v14753_v20 }
 0x724   :  { %10070 = vmatmul.msk.f32.gmra.mxu2 %vm113_vm2, %v14753_v20 }
 0x725   :  { %10079 = vmatmul.msk.f32.gmra.mxu3 %vm113_vm2, %v14753_v20 }
 0x727   :  { %v15059_v41 = vpop.f32.mrf.mxu2  ;;  %v15061_v11 = vpop.f32.mrf.mxu0 }
 0x728   :  { %v15063_v57 = vpop.f32.mrf.mxu3  ;;  %v15065_v24 = vpop.f32.mrf.mxu1 }
 0x72a   :  { %10053 = vmatmul.msk.f32.gmra.mxu0 %vm113_vm2, %v14769_v62 }
 0x72b   :  { %10062 = vmatmul.msk.f32.gmra.mxu1 %vm113_vm2, %v14769_v62 }
 0x72c   :  { %10071 = vmatmul.msk.f32.gmra.mxu2 %vm113_vm2, %v14769_v62 }
 0x72d   :  { %10080 = vmatmul.msk.f32.gmra.mxu3 %vm113_vm2, %v14769_v62 }
 0x72f   :  { %v15075_v4 = vpop.f32.mrf.mxu2  ;;  %v15077_v7 = vpop.f32.mrf.mxu0 }
 0x730   :  { %v15079_v42 = vpop.f32.mrf.mxu3  ;;  %v15081_v8 = vpop.f32.mrf.mxu1 }
 0x732   :  { %10054 = vmatmul.msk.f32.gmra.mxu0 %vm113_vm2, %v14790_v36 }
 0x733   :  { %10063 = vmatmul.msk.f32.gmra.mxu1 %vm113_vm2, %v14790_v36 }
 0x734   :  { %10072 = vmatmul.msk.f32.gmra.mxu2 %vm113_vm2, %v14790_v36 }
 0x735   :  { %10081 = vmatmul.msk.f32.gmra.mxu3 %vm113_vm2, %v14790_v36 }
 0x737   :  { %v15091_v31 = vpop.f32.mrf.mxu2  ;;  %v15093_v9 = vpop.f32.mrf.mxu0 }
 0x738   :  { %v15095_v35 = vpop.f32.mrf.mxu1  ;;  %v15097_v32 = vpop.f32.mrf.mxu3 }
 0x73a   :  { %10055 = vmatmul.msk.f32.gmra.mxu0 %vm113_vm2, %v14831_v28 }
 0x73b   :  { %10064 = vmatmul.msk.f32.gmra.mxu1 %vm113_vm2, %v14831_v28 }
 0x73c   :  { %10073 = vmatmul.msk.f32.gmra.mxu2 %vm113_vm2, %v14831_v28 }
 0x73d   :  { %10082 = vmatmul.msk.f32.gmra.mxu3 %vm113_vm2, %v14831_v28 }
 0x73f   :  { %v15107_v23 = vpop.f32.mrf.mxu2  ;;  %v15109_v17 = vpop.f32.mrf.mxu0 }
 0x740   :  { %v15111_v61 = vpop.f32.mrf.mxu1  ;;  %v15113_v0 = vpop.f32.mrf.mxu3 }
 0x742   :  { %10056 = vmatmul.msk.f32.gmra.mxu0 %vm113_vm2, %v14848_v18 }
 0x743   :  { %10065 = vmatmul.msk.f32.gmra.mxu1 %vm113_vm2, %v14848_v18 }
 0x744   :  { %10074 = vmatmul.msk.f32.gmra.mxu2 %vm113_vm2, %v14848_v18 }
 0x745   :  { %10083 = vmatmul.msk.f32.gmra.mxu3 %vm113_vm2, %v14848_v18 }
 0x747   :  { %v15123_v14 = vpop.f32.mrf.mxu2  ;;  %v15125_v21 = vpop.f32.mrf.mxu0 }
 0x748   :  { %v15127_v38 = vpop.f32.mrf.mxu1  ;;  %v15129_v45 = vpop.f32.mrf.mxu3 }
 0x74a   :  { %10057 = vmatmul.msk.f32.gmra.mxu0 %vm113_vm2, %v14872_v49 }
 0x74b   :  { %10066 = vmatmul.msk.f32.gmra.mxu1 %vm113_vm2, %v14872_v49 }
 0x74c   :  { %10075 = vmatmul.msk.f32.gmra.mxu2 %vm113_vm2, %v14872_v49 }
 0x74d   :  { %10084 = vmatmul.msk.f32.gmra.mxu3 %vm113_vm2, %v14872_v49 }
 0x74f   :  { %v15139_v60 = vpop.f32.mrf.mxu2  ;;  %v15141_v56 = vpop.f32.mrf.mxu0 }
 0x750   :  { %v15143_v53 = vpop.f32.mrf.mxu1  ;;  %v15145_v2 = vpop.f32.mrf.mxu3 }
 0x752   :  { %10058 = vmatmul.msk.f32.gmra.mxu0 %vm113_vm2, %v14885_v54 }
 0x753   :  { %10067 = vmatmul.msk.f32.gmra.mxu1 %vm113_vm2, %v14885_v54 }
 0x754   :  { %10076 = vmatmul.msk.f32.gmra.mxu2 %vm113_vm2, %v14885_v54 }
 0x755   :  { %10085 = vmatmul.msk.f32.gmra.mxu3 %vm113_vm2, %v14885_v54 }
 0x757   :  { %v15156_v16 = vpop.f32.mrf.mxu2  ;;  %v15158_v44 = vpop.f32.mrf.mxu0 }
 0x758   :  { %17002 = vst [vmem:[#allocation67_spill] sm:$0xff] %v15158_v44  ;;  %v15162_v25 = vpop.f32.mrf.mxu1  ;;  %v15164_v26 = vpop.f32.mrf.mxu3 }
 0x759   :  { %17003 = vst [vmem:[#allocation12_spill] sm:$0xff] %v15162_v25 }
 0x75a   :  { %10087 = vmatmul.msk.f32.vlgmr.msrb.gmra.mxu0 %vm113_vm2, %v14692_v40 }
 0x75b   :  { %10158 = vmatpush.msk.msrb.mxu0 %vm138_vm1, %v6826_v58  ;;  %10096 = vmatmul.msk.f32.vlgmr.msrb.gmra.mxu1 %vm113_vm2, %v14692_v40  ;;  %v6829_v58 = vsel %vm80_vm0, %v16518_v47, 1.0 }
 0x75c   :  { %10105 = vmatmul.msk.f32.vlgmr.msrb.gmra.mxu2 %vm113_vm2, %v14692_v40  ;;  %10167 = vmatpush.msk.msrb.mxu1 %vm138_vm1, %v6827_v19 }
 0x75d   :  { %10176 = vmatpush.msk.msrb.mxu2 %vm138_vm1, %v6828_v30  ;;  %10114 = vmatmul.msk.f32.vlgmr.msrb.gmra.mxu3 %vm113_vm2, %v14692_v40 }
 0x75e   :  { %10185 = vmatpush.msk.msrb.mxu3 %vm138_vm1, %v6829_v58 }
 0x75f   :  { %v15190_v39 = vpop.f32.mrf.mxu2  ;;  %v15192_v50 = vpop.f32.mrf.mxu0 }
 0x760   :  { %17005 = vst [vmem:[#allocation14_spill] sm:$0xff] %v15190_v39  ;;  %v15195_v43 = vpop.f32.mrf.mxu1  ;;  %v15197_v15 = vpop.f32.mrf.mxu3 }
 0x761   :  { %17006 = vst [vmem:[#allocation13_spill] sm:$0xff] %v15192_v50  ;;  %v8088_v50 = vmul.f32 0.01, %v15156_v16 }
 0x762   :  { %17007 = vst [vmem:[#allocation15_spill] sm:$0xff] %v15195_v43  ;;  %10088 = vmatmul.msk.f32.gmra.mxu0 %vm113_vm2, %v14753_v20  ;;  %v8086_v43 = vmul.f32 0.01, %v15141_v56 }
 0x763   :  { %17008 = vst [vmem:[#allocation6_spill] sm:$0xff] %v15197_v15  ;;  %10097 = vmatmul.msk.f32.gmra.mxu1 %vm113_vm2, %v14753_v20 }
 0x764   :  { %10106 = vmatmul.msk.f32.gmra.mxu2 %vm113_vm2, %v14753_v20 }
 0x765   :  { %10115 = vmatmul.msk.f32.gmra.mxu3 %vm113_vm2, %v14753_v20 }
 0x767   :  { %v15207_v30 = vpop.f32.mrf.mxu2  ;;  %v15209_v19 = vpop.f32.mrf.mxu0 }
 0x768   :  { %17009 = vst [vmem:[#allocation16_spill] sm:$0xff] %v15207_v30  ;;  %v15211_v58 = vpop.f32.mrf.mxu1  ;;  %v15213_v47 = vpop.f32.mrf.mxu3 }
 0x769   :  { %17010 = vst [vmem:[#allocation7_spill] sm:$0xff] %v15209_v19  ;;  %v8063_v19 = vmul.f32 0.01, %v15127_v38 }
 0x76a   :  { %17011 = vst [vmem:[#allocation17_spill] sm:$0xff] %v15211_v58  ;;  %10089 = vmatmul.msk.f32.gmra.mxu0 %vm113_vm2, %v14769_v62 }
 0x76b   :  { %17012 = vst [vmem:[#allocation8_spill] sm:$0xff] %v15213_v47  ;;  %10098 = vmatmul.msk.f32.gmra.mxu1 %vm113_vm2, %v14769_v62 }
 0x76c   :  { %10107 = vmatmul.msk.f32.gmra.mxu2 %vm113_vm2, %v14769_v62 }
 0x76d   :  { %10116 = vmatmul.msk.f32.gmra.mxu3 %vm113_vm2, %v14769_v62 }
 0x76f   :  { %v15223_v37 = vpop.f32.mrf.mxu2  ;;  %v15225_v27 = vpop.f32.mrf.mxu0 }
 0x770   :  { %17013 = vst [vmem:[#allocation57_spill] sm:$0xff] %v15223_v37  ;;  %v15227_v6 = vpop.f32.mrf.mxu1  ;;  %v15229_v46 = vpop.f32.mrf.mxu3 }
 0x771   :  { %17014 = vst [vmem:[#allocation9_spill] sm:$0xff] %v15225_v27  ;;  %v8064_v27 = vmul.f32 0.01, %v15139_v60 }
 0x772   :  { %17015 = vst [vmem:[#allocation58_spill] sm:$0xff] %v15227_v6  ;;  %10090 = vmatmul.msk.f32.gmra.mxu0 %vm113_vm2, %v14790_v36 }
 0x773   :  { %17016 = vst [vmem:[#allocation31_spill] sm:$0xff] %v15229_v46  ;;  %10099 = vmatmul.msk.f32.gmra.mxu1 %vm113_vm2, %v14790_v36  ;;  %v8087_v46 = vmul.f32 0.01, %v15143_v53 }
 0x774   :  { %10108 = vmatmul.msk.f32.gmra.mxu2 %vm113_vm2, %v14790_v36 }
 0x775   :  { %10117 = vmatmul.msk.f32.gmra.mxu3 %vm113_vm2, %v14790_v36 }
 0x777   :  { %v15239_v63 = vpop.f32.mrf.mxu2  ;;  %v15241_v5 = vpop.f32.mrf.mxu0 }
 0x778   :  { %17017 = vst [vmem:[#allocation41_spill] sm:$0xff] %v15239_v63  ;;  %v15243_v59 = vpop.f32.mrf.mxu1  ;;  %v15245_v55 = vpop.f32.mrf.mxu3  ;;  %v8278_v63 = vmax.f32 %v15141_v56, %v8086_v43  ;;  %v8040_v56 = vmul.f32 0.01, %v15123_v14 }
 0x779   :  { %17018 = vst [vmem:[#allocation32_spill] sm:$0xff] %v15241_v5  ;;  %v8280_v5 = vmax.f32 %v15156_v16, %v8088_v50 }
 0x77a   :  { %17019 = vst [vmem:[#allocation45_spill] sm:$0xff] %v15243_v59  ;;  %10091 = vmatmul.msk.f32.gmra.mxu0 %vm113_vm2, %v14831_v28  ;;  %v8038_v59 = vmul.f32 0.01, %v15109_v17 }
 0x77b   :  { %17020 = vst [vmem:[#allocation33_spill] sm:$0xff] %v15245_v55  ;;  %10100 = vmatmul.msk.f32.gmra.mxu1 %vm113_vm2, %v14831_v28  ;;  %v8062_v55 = vmul.f32 0.01, %v15125_v21 }
 0x77c   :  { %10109 = vmatmul.msk.f32.gmra.mxu2 %vm113_vm2, %v14831_v28 }
 0x77d   :  { %10118 = vmatmul.msk.f32.gmra.mxu3 %vm113_vm2, %v14831_v28  ;;  %v8254_v43 = vmax.f32 %v15125_v21, %v8062_v55  ;;  %v8041_v55 = vmul.f32 0.01, %v15129_v45  ;;  %v8230_v21 = vmax.f32 %v15109_v17, %v8038_v59  ;;  %v7991_v17 = vmul.f32 0.01, %v15081_v8 }
 0x77f   :  { %v15255_v29 = vpop.f32.mrf.mxu2  ;;  %v15257_v10 = vpop.f32.mrf.mxu0 }
 0x780   :  { %17021 = vst [vmem:[#allocation46_spill] sm:$0xff] %v15255_v29  ;;  %v15259_v51 = vpop.f32.mrf.mxu1  ;;  %v15261_v3 = vpop.f32.mrf.mxu3 }
 0x781   :  { %17022 = vst [vmem:[#allocation18_spill] sm:$0xff] %v15259_v51  ;;  %v8015_v51 = vmul.f32 0.01, %v15095_v35 }
 0x782   :  { %17023 = vst [vmem:[#allocation47_spill] sm:$0xff] %v15261_v3  ;;  %10092 = vmatmul.msk.f32.gmra.mxu0 %vm113_vm2, %v14848_v18  ;;  %v8089_v3 = vmul.f32 0.01, %v15164_v26 }
 0x783   :  { %10101 = vmatmul.msk.f32.gmra.mxu1 %vm113_vm2, %v14848_v18 }
 0x784   :  { %10110 = vmatmul.msk.f32.gmra.mxu2 %vm113_vm2, %v14848_v18  ;;  %v8281_v50 = vmax.f32 %v15164_v26, %v8089_v3  ;;  %v7990_v3 = vmul.f32 0.01, %v15077_v7 }
 0x785   :  { %10119 = vmatmul.msk.f32.gmra.mxu3 %vm113_vm2, %v14848_v18 }
 0x787   :  { %v15271_v48 = vpop.f32.mrf.mxu2  ;;  %v15273_v1 = vpop.f32.mrf.mxu0 }
 0x788   :  { %17024 = vst [vmem:[#allocation19_spill] sm:$0xff] %v15271_v48  ;;  %v15275_v15 = vpop.f32.mrf.mxu1  ;;  %v15277_v39 = vpop.f32.mrf.mxu3  ;;  %v8014_v48 = vmul.f32 0.01, %v15093_v9 }
 0x789   :  { %17025 = vst [vmem:[#allocation40_spill] sm:$0xff] %v15277_v39  ;;  %v8279_v39 = vmax.f32 %v15143_v53, %v8087_v46  ;;  %v8255_v46 = vmax.f32 %v15127_v38, %v8063_v19  ;;  %v8256_v53 = vmax.f32 %v15139_v60, %v8064_v27  ;;  %v8232_v19 = vmax.f32 %v15123_v14, %v8040_v56 }
 0x78a   :  { %10093 = vmatmul.msk.f32.gmra.mxu0 %vm113_vm2, %v14872_v49  ;;  %v8206_v59 = vmax.f32 %v15093_v9, %v8014_v48  ;;  %v8207_v60 = vmax.f32 %v15095_v35, %v8015_v51  ;;  %v7966_v48 = vmul.f32 0.01, %v15061_v11  ;;  %v7993_v51 = vmul.f32 0.01, %v15097_v32 }
 0x78b   :  { %10102 = vmatmul.msk.f32.gmra.mxu1 %vm113_vm2, %v14872_v49  ;;  %v7967_v35 = vmul.f32 0.01, %v15065_v24  ;;  %v7943_v56 = vmul.f32 0.01, %v15049_v33 }
 0x78c   :  { %10111 = vmatmul.msk.f32.gmra.mxu2 %vm113_vm2, %v14872_v49 }
 0x78d   :  { %10120 = vmatmul.msk.f32.gmra.mxu3 %vm113_vm2, %v14872_v49 }
 0x78f   :  { %v15287_v25 = vpop.f32.mrf.mxu2  ;;  %v15289_v47 = vpop.f32.mrf.mxu0 }
 0x790   :  { %v15291_v44 = vpop.f32.mrf.mxu1  ;;  %v15293_v30 = vpop.f32.mrf.mxu3 }
 0x792   :  { %10094 = vmatmul.msk.f32.gmra.mxu0 %vm113_vm2, %v14885_v54 }
 0x793   :  { %10103 = vmatmul.msk.f32.gmra.mxu1 %vm113_vm2, %v14885_v54 }
 0x794   :  { %10112 = vmatmul.msk.f32.gmra.mxu2 %vm113_vm2, %v14885_v54 }
 0x795   :  { %10121 = vmatmul.msk.f32.gmra.mxu3 %vm113_vm2, %v14885_v54 }
 0x797   :  { %v15306_v37 = vpop.f32.mrf.mxu2  ;;  %v15308_v58 = vpop.f32.mrf.mxu0 }
 0x798   :  { %17026 = vst [vmem:[#allocation20_spill] sm:$0xff] %v15308_v58  ;;  %v15313_v6 = vpop.f32.mrf.mxu1  ;;  %v15317_v29 = vpop.f32.mrf.mxu3  ;;  %v8039_v58 = vmul.f32 0.01, %v15111_v61 }
 0x799   :  { %17027 = vst [vmem:[#allocation49_spill] sm:$0xff] %v15313_v6  ;;  %v8065_v6 = vmul.f32 0.01, %v15145_v2 }
 0x79a   :  { %10123 = vmatmul.msk.f32.vlgmr.msra.gmra.mxu0 %vm113_vm2, %v14692_v40  ;;  %v8231_v16 = vmax.f32 %v15111_v61, %v8039_v58  ;;  %v7992_v61 = vmul.f32 0.01, %v15091_v31  ;;  %v8182_v58 = vmax.f32 %v15077_v7, %v7990_v3  ;;  %v7918_v7 = vmul.f32 0.01, %v15009_v34 }
 0x79b   :  { %8320 = vmatpush.msra.mxu0 %v8278_v63  ;;  %10132 = vmatmul.msk.f32.vlgmr.msra.gmra.mxu1 %vm113_vm2, %v14692_v40  ;;  %v8016_v63 = vmul.f32 0.01, %v15107_v23  ;;  %v8257_v27 = vmax.f32 %v15145_v2, %v8065_v6  ;;  %v8233_v6 = vmax.f32 %v15129_v45, %v8041_v55  ;;  %v7968_v2 = vmul.f32 0.01, %v15075_v4 }
 0x79c   :  { %10141 = vmatmul.msk.f32.vlgmr.msra.gmra.mxu2 %vm113_vm2, %v14692_v40  ;;  %8340 = vmatpush.msra.mxu1 %v8279_v39  ;;  %v8017_v39 = vmul.f32 0.01, %v15113_v0  ;;  %v7942_v45 = vmul.f32 0.01, %v15043_v22  ;;  %v8158_v55 = vmax.f32 %v15061_v11, %v7966_v48 }
 0x79d   :  { %8360 = vmatpush.msra.mxu2 %v8280_v5  ;;  %8321 = vmatpush.msra.mxu0 %v8254_v43  ;;  %v8208_v14 = vmax.f32 %v15107_v23, %v8016_v63  ;;  %v7969_v23 = vmul.f32 0.01, %v15079_v42  ;;  %v7944_v43 = vmul.f32 0.01, %v15059_v41  ;;  %v7945_v63 = vmul.f32 0.01, %v15063_v57 }
 0x79e   :  { %10150 = vmatmul.msk.f32.vlgmr.msra.gmra.mxu3 %vm113_vm2, %v14692_v40  ;;  %8341 = vmatpush.msra.mxu1 %v8255_v46  ;;  %v8209_v9 = vmax.f32 %v15113_v0, %v8017_v39  ;;  %v8183_v0 = vmax.f32 %v15081_v8, %v7991_v17  ;;  %v8184_v46 = vmax.f32 %v15091_v31, %v7992_v61  ;;  %v7919_v31 = vmul.f32 0.01, %v15013_v52 }
 0x79f   :  { %v15343_v38 = vpop.f32.mrf.mxu2  ;;  %v15345_v5 = vpop.f32.mrf.mxu0  ;;  %8380 = vmatpush.msra.mxu3 %v8281_v50  ;;  %8361 = vmatpush.msra.mxu2 %v8256_v53  ;;  %v8185_v53 = vmax.f32 %v15097_v32, %v7993_v51  ;;  %v8160_v39 = vmax.f32 %v15075_v4, %v7968_v2  ;;  %v7921_v32 = vmul.f32 0.01, %v15046_v13  ;;  %v8134_v11 = vmax.f32 %v15043_v22, %v7942_v45 }
 0x7a0   :  { %8322 = vmatpush.msra.mxu0 %v8230_v21  ;;  %8342 = vmatpush.msra.mxu1 %v8231_v16  ;;  %v15353_v40 = vpop.f32.mrf.mxu1  ;;  %v15359_v26 = vpop.f32.mrf.mxu3  ;;  %v7920_v21 = vmul.f32 0.01, %v15041_v12  ;;  %v8159_v16 = vmax.f32 %v15065_v24, %v7967_v35  ;;  %v8136_v3 = vmax.f32 %v15059_v41, %v7944_v43  ;;  %v8110_v4 = vmax.f32 %v15009_v34, %v7918_v7 }
 0x7a1   :  { %8381 = vmatpush.msra.mxu3 %v8257_v27  ;;  %17028 = vst [vmem:[#allocation21_spill] sm:$0xff] %v15359_v26  ;;  %8362 = vmatpush.msra.mxu2 %v8232_v19  ;;  %v8135_v27 = vmax.f32 %v15049_v33, %v7943_v56  ;;  %v8113_v33 = vmax.f32 %v15046_v13, %v7921_v32  ;;  %v8090_v56 = vmul.f32 0.01, %v15289_v47  ;;  %v8091_v43 = vmul.f32 0.01, %v15291_v44  ;;  %v17033_v32 = vld [vmem:[#allocation18_spill] sm:$0xff] }
 0x7a2   :  { %8323 = vmatpush.msra.mxu0 %v8206_v59  ;;  %8343 = vmatpush.msra.mxu1 %v8207_v60  ;;  %v8137_v59 = vmax.f32 %v15063_v57, %v7945_v63  ;;  %v8112_v22 = vmax.f32 %v15041_v12, %v7920_v21  ;;  %v8093_v7 = vmul.f32 0.01, %v15317_v29  ;;  %v8067_v63 = vmul.f32 0.01, %v15275_v15  ;;  %v10443_v21 = vld [vmem:[%s16285_s1 + $0xc0] sm:$0xff] }
 0x7a3   :  { %8382 = vmatpush.msra.mxu3 %v8233_v6  ;;  %8363 = vmatpush.msra.mxu2 %v8208_v14 }
 0x7a4   :  { %10124 = vmatmul.msk.f32.gmra.mxu0 %vm113_vm2, %v14753_v20  ;;  %10133 = vmatmul.msk.f32.gmra.mxu1 %vm113_vm2, %v14753_v20 }
 0x7a5   :  { %8383 = vmatpush.msra.mxu3 %v8209_v9  ;;  %10142 = vmatmul.msk.f32.gmra.mxu2 %vm113_vm2, %v14753_v20 }
 0x7a6   :  { %10151 = vmatmul.msk.f32.gmra.mxu3 %vm113_vm2, %v14753_v20  ;;  %8324 = vmatpush.msra.mxu0 %v8182_v58  ;;  %v8161_v20 = vmax.f32 %v15079_v42, %v7969_v23  ;;  %v8111_v42 = vmax.f32 %v15013_v52, %v7919_v31  ;;  %v8282_v31 = vmax.f32 %v15289_v47, %v8090_v56  ;;  %v17035_v47 = vld [vmem:[#allocation32_spill] sm:$0xff] }
 0x7a7   :  { %v15385_v50 = vpop.f32.mrf.mxu2  ;;  %v15387_v8 = vpop.f32.mrf.mxu0  ;;  %8344 = vmatpush.msra.mxu1 %v8183_v0  ;;  %8364 = vmatpush.msra.mxu2 %v8184_v46  ;;  %v8092_v0 = vmul.f32 0.01, %v15306_v37  ;;  %v8066_v46 = vmul.f32 0.01, %v15273_v1  ;;  %v8285_v56 = vmax.f32 %v15317_v29, %v8093_v7 }
 0x7a8   :  { %8384 = vmatpush.msra.mxu3 %v8185_v53  ;;  %8325 = vmatpush.msra.mxu0 %v8158_v55  ;;  %v15396_v19 = vpop.f32.mrf.mxu1  ;;  %v15400_v24 = vpop.f32.mrf.mxu3  ;;  %v8068_v55 = vmul.f32 0.01, %v15287_v25  ;;  %v8069_v53 = vmul.f32 0.01, %v15293_v30 }
 0x7a9   :  { %8345 = vmatpush.msra.mxu1 %v8159_v16  ;;  %8365 = vmatpush.msra.mxu2 %v8160_v39 }
 0x7aa   :  { %8385 = vmatpush.msra.mxu3 %v8161_v20  ;;  %8326 = vmatpush.msra.mxu0 %v8134_v11  ;;  %v8043_v11 = vmul.f32 0.01, %v17033_v32  ;;  %v17034_v20 = vld [vmem:[#allocation19_spill] sm:$0xff]  ;;  %v8261_v7 = vmax.f32 %v15293_v30, %v8069_v53 }
 0x7ab   :  { %8346 = vmatpush.msra.mxu1 %v8135_v27  ;;  %8366 = vmatpush.msra.mxu2 %v8136_v3  ;;  %v8044_v27 = vmul.f32 0.01, %v17034_v20  ;;  %v8283_v3 = vmax.f32 %v15291_v44, %v8091_v43  ;;  %v17038_v44 = vld [vmem:[#allocation45_spill] sm:$0xff] }
 0x7ac   :  { %8386 = vmatpush.msra.mxu3 %v8137_v59  ;;  %8327 = vmatpush.msra.mxu0 %v8110_v4  ;;  %v8284_v4 = vmax.f32 %v15306_v37, %v8092_v0  ;;  %v8018_v59 = vmul.f32 0.01, %v17035_v47  ;;  %v8019_v43 = vmul.f32 0.01, %v17038_v44  ;;  %v17039_v37 = vld [vmem:[#allocation46_spill] sm:$0xff] }
 0x7ad   :  { %8347 = vmatpush.msra.mxu1 %v8111_v42  ;;  %8367 = vmatpush.msra.mxu2 %v8112_v22  ;;  %v17036_v42 = vld [vmem:[#allocation40_spill] sm:$0xff]  ;;  %v8020_v0 = vmul.f32 0.01, %v17039_v37 }
 0x7ae   :  { %8387 = vmatpush.msra.mxu3 %v8113_v33  ;;  %10125 = vmatmul.msk.f32.gmra.mxu0 %vm113_vm2, %v14769_v62  ;;  %v8045_v22 = vmul.f32 0.01, %v17036_v42  ;;  %v8258_v33 = vmax.f32 %v15273_v1, %v8066_v46  ;;  %v17041_v1 = vld [vmem:[#allocation47_spill] sm:$0xff]  ;;  %v8211_v53 = vmax.f32 %v17038_v44, %v8019_v43 }
 0x7af   :  { %v15409_v34 = vpop.f32.mrf.mxu2  ;;  %v15411_v41 = vpop.f32.mrf.mxu0  ;;  %10134 = vmatmul.msk.f32.gmra.mxu1 %vm113_vm2, %v14769_v62  ;;  %10143 = vmatmul.msk.f32.gmra.mxu2 %vm113_vm2, %v14769_v62  ;;  %v8021_v46 = vmul.f32 0.01, %v17041_v1  ;;  %v17052_v43 = vld [vmem:[#allocation31_spill] sm:$0xff] }
 0x7b0   :  { %10152 = vmatmul.msk.f32.gmra.mxu3 %vm113_vm2, %v14769_v62  ;;  %v15419_v52 = vpop.f32.mrf.mxu1  ;;  %v15421_v12 = vpop.f32.mrf.mxu3 }
 0x7b6   :  { %10126 = vmatmul.msk.f32.gmra.mxu0 %vm113_vm2, %v14790_v36 }
 0x7b7   :  { %v15425_v13 = vpop.f32.mrf.mxu2  ;;  %v15427_v57 = vpop.f32.mrf.mxu0  ;;  %10135 = vmatmul.msk.f32.gmra.mxu1 %vm113_vm2, %v14790_v36  ;;  %10144 = vmatmul.msk.f32.gmra.mxu2 %vm113_vm2, %v14790_v36 }
 0x7b8   :  { %10153 = vmatmul.msk.f32.gmra.mxu3 %vm113_vm2, %v14790_v36  ;;  %v15435_v62 = vpop.f32.mrf.mxu1  ;;  %v15437_v60 = vpop.f32.mrf.mxu3 }
 0x7be   :  { %10127 = vmatmul.msk.f32.gmra.mxu0 %vm113_vm2, %v14831_v28 }
 0x7bf   :  { %v15441_v17 = vpop.f32.mrf.mxu2  ;;  %v15443_v61 = vpop.f32.mrf.mxu0  ;;  %10136 = vmatmul.msk.f32.gmra.mxu1 %vm113_vm2, %v14831_v28  ;;  %10145 = vmatmul.msk.f32.gmra.mxu2 %vm113_vm2, %v14831_v28 }
 0x7c0   :  { %10154 = vmatmul.msk.f32.gmra.mxu3 %vm113_vm2, %v14831_v28  ;;  %v15451_v36 = vpop.f32.mrf.mxu1  ;;  %v15453_v14 = vpop.f32.mrf.mxu3 }
 0x7c6   :  { %10128 = vmatmul.msk.f32.gmra.mxu0 %vm113_vm2, %v14848_v18 }
 0x7c7   :  { %v15457_v6 = vpop.f32.mrf.mxu2  ;;  %v15459_v48 = vpop.f32.mrf.mxu0  ;;  %10137 = vmatmul.msk.f32.gmra.mxu1 %vm113_vm2, %v14848_v18  ;;  %10146 = vmatmul.msk.f32.gmra.mxu2 %vm113_vm2, %v14848_v18 }
 0x7c8   :  { %10155 = vmatmul.msk.f32.gmra.mxu3 %vm113_vm2, %v14848_v18  ;;  %v15467_v28 = vpop.f32.mrf.mxu1  ;;  %v15469_v51 = vpop.f32.mrf.mxu3 }
 0x7ce   :  { %10129 = vmatmul.msk.f32.gmra.mxu0 %vm113_vm2, %v14872_v49 }
 0x7cf   :  { %v15473_v35 = vpop.f32.mrf.mxu2  ;;  %v15475_v2 = vpop.f32.mrf.mxu0  ;;  %10138 = vmatmul.msk.f32.gmra.mxu1 %vm113_vm2, %v14872_v49  ;;  %10147 = vmatmul.msk.f32.gmra.mxu2 %vm113_vm2, %v14872_v49 }
 0x7d0   :  { %10156 = vmatmul.msk.f32.gmra.mxu3 %vm113_vm2, %v14872_v49  ;;  %v15483_v18 = vpop.f32.mrf.mxu1  ;;  %v15485_v9 = vpop.f32.mrf.mxu3 }
 0x7d6   :  { %10130 = vmatmul.msk.f32.gmra.mxu0 %vm113_vm2, %v14885_v54 }
 0x7d7   :  { %v15489_v45 = vpop.f32.mrf.mxu2  ;;  %v15491_v23 = vpop.f32.mrf.mxu0  ;;  %10139 = vmatmul.msk.f32.gmra.mxu1 %vm113_vm2, %v14885_v54  ;;  %10148 = vmatmul.msk.f32.gmra.mxu2 %vm113_vm2, %v14885_v54 }
 0x7d8   :  { %17029 = vst [vmem:[#allocation22_spill] sm:$0xff] %v15491_v23  ;;  %10157 = vmatmul.msk.f32.gmra.mxu3 %vm113_vm2, %v14885_v54  ;;  %v15499_v49 = vpop.f32.mrf.mxu1  ;;  %v15501_v58 = vpop.f32.mrf.mxu3  ;;  %v8042_v54 = vmul.f32 0.01, %v15257_v10  ;;  %v8260_v23 = vmax.f32 %v15287_v25, %v8068_v55  ;;  %v8237_v55 = vmax.f32 %v17036_v42, %v8045_v22  ;;  %v17050_v22 = vld [vmem:[#allocation57_spill] sm:$0xff] }
 0x7d9   :  { %17030 = vst [vmem:[#allocation51_spill] sm:$0xff] %v15499_v49  ;;  %v8259_v49 = vmax.f32 %v15275_v15, %v8067_v63  ;;  %v17042_v15 = vld [vmem:[#allocation9_spill] sm:$0xff]  ;;  %v8210_v63 = vmax.f32 %v17035_v47, %v8018_v59 }
 0x7da   :  { %v8234_v29 = vmax.f32 %v15257_v10, %v8042_v54  ;;  %v7994_v25 = vmul.f32 0.01, %v17042_v15  ;;  %v17044_v54 = vld [vmem:[#allocation41_spill] sm:$0xff] }
 0x7db   :  { %v7996_v30 = vmul.f32 0.01, %v17044_v54  ;;  %v17049_v59 = vld [vmem:[#allocation17_spill] sm:$0xff] }
 0x7dc   :  { %v7971_v42 = vmul.f32 0.01, %v17049_v59 }
 0x7de   :  { %10159 = vmatmul.msk.f32.vlgmr.msrb.gmra.mxu0 %vm113_vm2, %v10443_v21 }
 0x7df   :  { %v15517_v16 = vpop.f32.mrf.mxu2  ;;  %v15519_v39 = vpop.f32.mrf.mxu0  ;;  %10168 = vmatmul.msk.f32.vlgmr.msrb.gmra.mxu1 %vm113_vm2, %v10443_v21  ;;  %10177 = vmatmul.msk.f32.vlgmr.msrb.gmra.mxu2 %vm113_vm2, %v10443_v21 }
 0x7e0   :  { %17031 = vst [vmem:[#allocation23_spill] sm:$0xff] %v15517_v16  ;;  %10186 = vmatmul.msk.f32.vlgmr.msrb.gmra.mxu3 %vm113_vm2, %v10443_v21  ;;  %8400 = vmatpush.msrb.mxu0 %v8282_v31  ;;  %v15532_v16 = vpop.f32.mrf.mxu1  ;;  %v8235_v31 = vmax.f32 %v17033_v32, %v8043_v11  ;;  %v8236_v21 = vmax.f32 %v17034_v20, %v8044_v27  ;;  %v17046_v11 = vld [vmem:[#allocation33_spill] sm:$0xff] }
 0x7e1   :  { %17032 = vst [vmem:[#allocation44_spill] sm:$0xff] %v15519_v39  ;;  %8420 = vmatpush.msrb.mxu1 %v8283_v3  ;;  %8440 = vmatpush.msrb.mxu2 %v8284_v4  ;;  %v15538_v39 = vpop.f32.mrf.mxu3  ;;  %v17043_v3 = vld [vmem:[#allocation58_spill] sm:$0xff]  ;;  %v8212_v32 = vmax.f32 %v17039_v37, %v8020_v0  ;;  %v7997_v20 = vmul.f32 0.01, %v17046_v11  ;;  %v8213_v27 = vmax.f32 %v17041_v1, %v8021_v46  ;;  %v7973_v37 = vmul.f32 0.01, %v17052_v43 }
 0x7e2   :  { %17037 = vst [vmem:[#allocation24_spill] sm:$0xff] %v15532_v16  ;;  %8460 = vmatpush.msrb.mxu3 %v8285_v56  ;;  %8401 = vmatpush.msrb.mxu0 %v8258_v33  ;;  %v7995_v10 = vmul.f32 0.01, %v17043_v3  ;;  %v7972_v33 = vmul.f32 0.01, %v17050_v22  ;;  %v17051_v56 = vld [vmem:[#allocation13_spill] sm:$0xff]  ;;  %v8186_v0 = vmax.f32 %v17042_v15, %v7994_v25  ;;  %v8163_v16 = vmax.f32 %v17049_v59, %v7971_v42 }
 0x7e3   :  { %17040 = vst [vmem:[#allocation53_spill] sm:$0xff] %v15538_v39  ;;  %8421 = vmatpush.msrb.mxu1 %v8259_v49  ;;  %8441 = vmatpush.msrb.mxu2 %v8260_v23  ;;  %v17045_v49 = vld [vmem:[#allocation7_spill] sm:$0xff]  ;;  %v7946_v44 = vmul.f32 0.01, %v17051_v56  ;;  %v10444_v1 = vld [vmem:[%s16285_s1 + $0xc8] sm:$0xff] }
 0x7e4   :  { %8461 = vmatpush.msrb.mxu3 %v8261_v7  ;;  %8402 = vmatpush.msrb.mxu0 %v8234_v29  ;;  %v7970_v23 = vmul.f32 0.01, %v17045_v49  ;;  %v17054_v29 = vld [vmem:[#allocation15_spill] sm:$0xff] }
 0x7e5   :  { %8422 = vmatpush.msrb.mxu1 %v8235_v31  ;;  %8442 = vmatpush.msrb.mxu2 %v8236_v21  ;;  %v7947_v7 = vmul.f32 0.01, %v17054_v29  ;;  %v17055_v31 = vld [vmem:[#allocation16_spill] sm:$0xff]  ;;  %v17057_v25 = vld [vmem:[#allocation67_spill] sm:$0xff]  ;;  %v8138_v26 = vmax.f32 %v17051_v56, %v7946_v44 }
 0x7e6   :  { %8462 = vmatpush.msrb.mxu3 %v8237_v55  ;;  %8403 = vmatpush.msrb.mxu0 %v8210_v63  ;;  %v7948_v21 = vmul.f32 0.01, %v17055_v31  ;;  %v8187_v63 = vmax.f32 %v17043_v3, %v7995_v10  ;;  %v8188_v55 = vmax.f32 %v17044_v54, %v7996_v30  ;;  %v8162_v39 = vmax.f32 %v17045_v49, %v7970_v23  ;;  %v17059_v3 = vld [vmem:[#allocation12_spill] sm:$0xff]  ;;  %v17060_v54 = vld [vmem:[#allocation14_spill] sm:$0xff] }
 0x7e7   :  { %v15555_v4 = vpop.f32.mrf.mxu2  ;;  %v15557_v47 = vpop.f32.mrf.mxu0  ;;  %8423 = vmatpush.msrb.mxu1 %v8211_v53  ;;  %8443 = vmatpush.msrb.mxu2 %v8212_v32  ;;  %v7922_v53 = vmul.f32 0.01, %v17057_v25  ;;  %v17058_v32 = vld [vmem:[#allocation8_spill] sm:$0xff]  ;;  %v7923_v10 = vmul.f32 0.01, %v17059_v3  ;;  %v8165_v49 = vmax.f32 %v17052_v43, %v7973_v37  ;;  %v8139_v23 = vmax.f32 %v17054_v29, %v7947_v7 }
 0x7e8   :  { %17047 = vst [vmem:[#allocation27_spill] sm:$0xff] %v15555_v4  ;;  %8463 = vmatpush.msrb.mxu3 %v8213_v27  ;;  %10160 = vmatmul.msk.f32.gmra.mxu0 %vm113_vm2, %v10444_v1  ;;  %v15568_v46 = vpop.f32.mrf.mxu1  ;;  %v7949_v27 = vmul.f32 0.01, %v17058_v32  ;;  %v8189_v4 = vmax.f32 %v17046_v11, %v7997_v20  ;;  %v7924_v30 = vmul.f32 0.01, %v17060_v54  ;;  %v8140_v11 = vmax.f32 %v17055_v31, %v7948_v21  ;;  %v10447_v31 = vld [vmem:[%s16285_s1 + $0xe0] sm:$0xff] }
 0x7e9   :  { %17048 = vst [vmem:[#allocation54_spill] sm:$0xff] %v15557_v47  ;;  %10169 = vmatmul.msk.f32.gmra.mxu1 %vm113_vm2, %v10444_v1  ;;  %10178 = vmatmul.msk.f32.gmra.mxu2 %vm113_vm2, %v10444_v1  ;;  %v15576_v15 = vpop.f32.mrf.mxu3  ;;  %v8114_v20 = vmax.f32 %v17057_v25, %v7922_v53  ;;  %v10448_v25 = vld [vmem:[%s16285_s1 + $0xe8] sm:$0xff] }
 0x7ea   :  { %17053 = vst [vmem:[#allocation25_spill] sm:$0xff] %v15568_v46  ;;  %10187 = vmatmul.msk.f32.gmra.mxu3 %vm113_vm2, %v10444_v1  ;;  %8404 = vmatpush.msrb.mxu0 %v8186_v0  ;;  %v8164_v46 = vmax.f32 %v17050_v22, %v7972_v33  ;;  %v8141_v59 = vmax.f32 %v17058_v32, %v7949_v27  ;;  %v10446_v0 = vld [vmem:[%s16285_s1 + $0xd8] sm:$0xff] }
 0x7eb   :  { %17056 = vst [vmem:[#allocation5_spill] sm:$0xff] %v15576_v15  ;;  %8424 = vmatpush.msrb.mxu1 %v8187_v63  ;;  %8444 = vmatpush.msrb.mxu2 %v8188_v55  ;;  %v17061_v15 = vld [vmem:[#allocation6_spill] sm:$0xff]  ;;  %v8115_v33 = vmax.f32 %v17059_v3, %v7923_v10 }
 0x7ec   :  { %v7925_v47 = vmul.f32 0.01, %v17061_v15  ;;  %8464 = vmatpush.msrb.mxu3 %v8189_v4  ;;  %8405 = vmatpush.msrb.mxu0 %v8162_v39  ;;  %v8116_v39 = vmax.f32 %v17060_v54, %v7924_v30  ;;  %v10449_v10 = vld [vmem:[%s16285_s1 + $0xf0] sm:$0xff] }
 0x7ed   :  { %8425 = vmatpush.msrb.mxu1 %v8163_v16  ;;  %8445 = vmatpush.msrb.mxu2 %v8164_v46 }
 0x7ee   :  { %8465 = vmatpush.msrb.mxu3 %v8165_v49  ;;  %8406 = vmatpush.msrb.mxu0 %v8138_v26  ;;  %v8117_v4 = vmax.f32 %v17061_v15, %v7925_v47  ;;  %v10445_v26 = vld [vmem:[%s16285_s1 + $0xd0] sm:$0xff] }
 0x7ef   :  { %v15594_v42 = vpop.f32.mrf.mxu2  ;;  %v15596_v22 = vpop.f32.mrf.mxu0  ;;  %8426 = vmatpush.msrb.mxu1 %v8139_v23  ;;  %8446 = vmatpush.msrb.mxu2 %v8140_v11  ;;  %v10450_v11 = vld [vmem:[%s16285_s1 + $0xf8] sm:$0xff] }
 0x7f0   :  { %17062 = vst [vmem:[#allocation48_spill] sm:$0xff] %v15594_v42  ;;  %8466 = vmatpush.msrb.mxu3 %v8141_v59  ;;  %8407 = vmatpush.msrb.mxu0 %v8114_v20  ;;  %v15601_v16 = vpop.f32.mrf.mxu1  ;;  %v8094_v20 = vmul.f32 0.01, %v15475_v2  ;;  %v8047_v42 = vmul.f32 0.01, %v15451_v36 }
 0x7f1   :  { %17063 = vst [vmem:[#allocation28_spill] sm:$0xff] %v15601_v16  ;;  %8427 = vmatpush.msrb.mxu1 %v8115_v33  ;;  %8447 = vmatpush.msrb.mxu2 %v8116_v39  ;;  %v15603_v56 = vpop.f32.mrf.mxu3  ;;  %v8095_v33 = vmul.f32 0.01, %v15483_v18  ;;  %v8096_v39 = vmul.f32 0.01, %v15489_v45 }
 0x7f2   :  { %17064 = vst [vmem:[#allocation59_spill] sm:$0xff] %v15603_v56  ;;  %8467 = vmatpush.msrb.mxu3 %v8117_v4  ;;  %10161 = vmatmul.msk.f32.gmra.mxu0 %vm113_vm2, %v10445_v26  ;;  %v15695_v4 = vld [vmem:[%s16286_s2 + $0x6] sm:$0x3]  ;;  %v8025_v16 = vmul.f32 0.01, %v15453_v14 }
 0x7f3   :  { %10170 = vmatmul.msk.f32.gmra.mxu1 %vm113_vm2, %v10445_v26  ;;  %10179 = vmatmul.msk.f32.gmra.mxu2 %vm113_vm2, %v10445_v26 }
 0x7f4   :  { %10188 = vmatmul.msk.f32.gmra.mxu3 %vm113_vm2, %v10445_v26  ;;  %v8070_v26 = vmul.f32 0.01, %v15459_v48 }
 0x7f7   :  { %v15612_v47 = vpop.f32.mrf.mxu2  ;;  %v15614_v44 = vpop.f32.mrf.mxu0 }
 0x7f8   :  { %17065 = vst [vmem:[#allocation34_spill] sm:$0xff] %v15612_v47  ;;  %v15616_v43 = vpop.f32.mrf.mxu1  ;;  %v8287_v47 = vmax.f32 %v15483_v18, %v8095_v33  ;;  %v8023_v18 = vmul.f32 0.01, %v15435_v62 }
 0x7f9   :  { %v15618_v37 = vpop.f32.mrf.mxu3 }
 0x7fa   :  { %17066 = vst [vmem:[#allocation60_spill] sm:$0xff] %v15618_v37  ;;  %10162 = vmatmul.msk.f32.gmra.mxu0 %vm113_vm2, %v10446_v0  ;;  %v8048_v37 = vmul.f32 0.01, %v15457_v6 }
 0x7fb   :  { %10171 = vmatmul.msk.f32.gmra.mxu1 %vm113_vm2, %v10446_v0  ;;  %10180 = vmatmul.msk.f32.gmra.mxu2 %vm113_vm2, %v10446_v0 }
 0x7fc   :  { %10189 = vmatmul.msk.f32.gmra.mxu3 %vm113_vm2, %v10446_v0  ;;  %v8097_v0 = vmul.f32 0.01, %v15501_v58 }
 0x7ff   :  { %v15627_v1 = vpop.f32.mrf.mxu2  ;;  %v15629_v46 = vpop.f32.mrf.mxu0 }
 0x800   :  { %v15631_v29 = vpop.f32.mrf.mxu1 }
 0x801   :  { %v15633_v7 = vpop.f32.mrf.mxu3 }
 0x802   :  { %10163 = vmatmul.msk.f32.gmra.mxu0 %vm113_vm2, %v10447_v31 }
 0x803   :  { %10172 = vmatmul.msk.f32.gmra.mxu1 %vm113_vm2, %v10447_v31  ;;  %10181 = vmatmul.msk.f32.gmra.mxu2 %vm113_vm2, %v10447_v31 }
 0x804   :  { %10190 = vmatmul.msk.f32.gmra.mxu3 %vm113_vm2, %v10447_v31  ;;  %v8071_v31 = vmul.f32 0.01, %v15467_v28 }
 0x806   :  { %v8263_v33 = vmax.f32 %v15467_v28, %v8071_v31  ;;  %v7998_v28 = vmul.f32 0.01, %v15411_v41 }
 0x807   :  { %v15642_v21 = vpop.f32.mrf.mxu2  ;;  %v15644_v63 = vpop.f32.mrf.mxu0 }
 0x808   :  { %v15646_v55 = vpop.f32.mrf.mxu1  ;;  %v8190_v31 = vmax.f32 %v15411_v41, %v7998_v28  ;;  %v17073_v41 = vld [vmem:[#allocation20_spill] sm:$0xff] }
 0x809   :  { %v15648_v15 = vpop.f32.mrf.mxu3 }
 0x80a   :  { %10164 = vmatmul.msk.f32.gmra.mxu0 %vm113_vm2, %v10448_v25 }
 0x80b   :  { %10173 = vmatmul.msk.f32.gmra.mxu1 %vm113_vm2, %v10448_v25  ;;  %10182 = vmatmul.msk.f32.gmra.mxu2 %vm113_vm2, %v10448_v25 }
 0x80c   :  { %10191 = vmatmul.msk.f32.gmra.mxu3 %vm113_vm2, %v10448_v25  ;;  %v8072_v25 = vmul.f32 0.01, %v15473_v35 }
 0x80f   :  { %v15657_v53 = vpop.f32.mrf.mxu2  ;;  %v15659_v32 = vpop.f32.mrf.mxu0 }
 0x810   :  { %v15661_v27 = vpop.f32.mrf.mxu1 }
 0x811   :  { %v15663_v3 = vpop.f32.mrf.mxu3 }
 0x812   :  { %10165 = vmatmul.msk.f32.gmra.mxu0 %vm113_vm2, %v10449_v10 }
 0x813   :  { %10174 = vmatmul.msk.f32.gmra.mxu1 %vm113_vm2, %v10449_v10  ;;  %10183 = vmatmul.msk.f32.gmra.mxu2 %vm113_vm2, %v10449_v10 }
 0x814   :  { %10192 = vmatmul.msk.f32.gmra.mxu3 %vm113_vm2, %v10449_v10 }
 0x817   :  { %v15672_v54 = vpop.f32.mrf.mxu2  ;;  %v15674_v30 = vpop.f32.mrf.mxu0 }
 0x818   :  { %17067 = vst [vmem:[#allocation29_spill] sm:$0xff] %v15674_v30  ;;  %v15676_v49 = vpop.f32.mrf.mxu1  ;;  %v8286_v30 = vmax.f32 %v15475_v2, %v8094_v20  ;;  %v8022_v2 = vmul.f32 0.01, %v15427_v57  ;;  %v8049_v20 = vmul.f32 0.01, %v15469_v51 }
 0x819   :  { %17068 = vst [vmem:[#allocation56_spill] sm:$0xff] %v15676_v49  ;;  %v15678_v23 = vpop.f32.mrf.mxu3  ;;  %v8073_v49 = vmul.f32 0.01, %v15485_v9 }
 0x81a   :  { %10166 = vmatmul.msk.f32.gmra.mxu0 %vm113_vm2, %v10450_v11 }
 0x81b   :  { %10175 = vmatmul.msk.f32.gmra.mxu1 %vm113_vm2, %v10450_v11  ;;  %10184 = vmatmul.msk.f32.gmra.mxu2 %vm113_vm2, %v10450_v11 }
 0x81c   :  { %10193 = vmatmul.msk.f32.gmra.mxu3 %vm113_vm2, %v10450_v11 }
 0x81f   :  { %v15688_v59 = vpop.f32.mrf.mxu2 }
 0x820   :  { %17069 = vst [vmem:[#allocation35_spill] sm:$0xff] %v15688_v59  ;;  %v8046_v59 = vmul.f32 0.01, %v15443_v61 }
 0x821   :  { %v15701_v10 = vpop.f32.mrf.mxu3  ;;  %v15703_v11 = vpop.f32.mrf.mxu0 }
 0x822   :  { %17070 = vst [vmem:[#allocation52_spill] sm:$0xff] %v15701_v10  ;;  %10194 = vmatmul.msk.f32.vlgmr.msra.gmra.mxu0 %vm1586_vm3, %v15695_v4  ;;  %v15710_v56 = vpop.f32.mrf.mxu1  ;;  %v8288_v10 = vmax.f32 %v15489_v45, %v8096_v39  ;;  %v8024_v45 = vmul.f32 0.01, %v15441_v17  ;;  %v8264_v39 = vmax.f32 %v15473_v35, %v8072_v25  ;;  %v8214_v35 = vmax.f32 %v15427_v57, %v8022_v2 }
 0x823   :  { %17071 = vst [vmem:[#allocation30_spill] sm:$0xff] %v15703_v11  ;;  %10195 = vmatmul.msk.f32.vlgmr.msra.gmra.mxu1 %vm1586_vm3, %v15695_v4  ;;  %10196 = vmatmul.msk.f32.vlgmr.msra.gmra.mxu2 %vm1586_vm3, %v15695_v4  ;;  %v8289_v11 = vmax.f32 %v15501_v58, %v8097_v0  ;;  %v8265_v58 = vmax.f32 %v15485_v9, %v8073_v49  ;;  %v8000_v9 = vmul.f32 0.01, %v15425_v13  ;;  %v7974_v57 = vmul.f32 0.01, %v15387_v8 }
 0x824   :  { %17072 = vst [vmem:[#allocation38_spill] sm:$0xff] %v15710_v56  ;;  %v8262_v56 = vmax.f32 %v15459_v48, %v8070_v26  ;;  %10197 = vmatmul.msk.f32.vlgmr.msra.gmra.mxu3 %vm1586_vm3, %v15695_v4  ;;  %8480 = vmatpush.msra.mxu0 %v8286_v30  ;;  %v8238_v48 = vmax.f32 %v15443_v61, %v8046_v59  ;;  %v7999_v61 = vmul.f32 0.01, %v15419_v52  ;;  %v7976_v49 = vmul.f32 0.01, %v15409_v34 }
 0x825   :  { %8500 = vmatpush.msra.mxu1 %v8287_v47  ;;  %8520 = vmatpush.msra.mxu2 %v8288_v10  ;;  %v8239_v30 = vmax.f32 %v15451_v36, %v8047_v42  ;;  %v8240_v26 = vmax.f32 %v15457_v6, %v8048_v37  ;;  %v8241_v47 = vmax.f32 %v15469_v51, %v8049_v20  ;;  %v8001_v51 = vmul.f32 0.01, %v15437_v60 }
 0x826   :  { %8540 = vmatpush.msra.mxu3 %v8289_v11  ;;  %8481 = vmatpush.msra.mxu0 %v8262_v56  ;;  %v8215_v36 = vmax.f32 %v15435_v62, %v8023_v18  ;;  %v8216_v6 = vmax.f32 %v15441_v17, %v8024_v45  ;;  %v8217_v56 = vmax.f32 %v15453_v14, %v8025_v16  ;;  %v7975_v37 = vmul.f32 0.01, %v15396_v19 }
 0x827   :  { %8501 = vmatpush.msra.mxu1 %v8263_v33  ;;  %8521 = vmatpush.msra.mxu2 %v8264_v39  ;;  %v7950_v17 = vmul.f32 0.01, %v15345_v5  ;;  %v7977_v59 = vmul.f32 0.01, %v15421_v12  ;;  %v7951_v16 = vmul.f32 0.01, %v15353_v40  ;;  %v8191_v10 = vmax.f32 %v15419_v52, %v7999_v61 }
 0x828   :  { %8541 = vmatpush.msra.mxu3 %v8265_v58  ;;  %8482 = vmatpush.msra.mxu0 %v8238_v48  ;;  %v15738_v0 = vpop.f32.mrf.mxu2  ;;  %v7952_v25 = vmul.f32 0.01, %v15385_v50  ;;  %v8192_v11 = vmax.f32 %v15425_v13, %v8000_v9  ;;  %v7926_v2 = vmul.f32 0.01, %v17073_v41  ;;  %v7953_v20 = vmul.f32 0.01, %v15400_v24 }
 0x829   :  { %8502 = vmatpush.msra.mxu1 %v8239_v30  ;;  %8522 = vmatpush.msra.mxu2 %v8240_v26  ;;  %v15744_v42 = vpop.f32.mrf.mxu3  ;;  %v8166_v18 = vmax.f32 %v15387_v8, %v7974_v57  ;;  %v8193_v45 = vmax.f32 %v15437_v60, %v8001_v51  ;;  %v17074_v52 = vld [vmem:[#allocation49_spill] sm:$0xff]  ;;  %v7928_v33 = vmul.f32 0.01, %v15343_v38  ;;  %v8167_v39 = vmax.f32 %v15396_v19, %v7975_v37 }
 0x82a   :  { %8542 = vmatpush.msra.mxu3 %v8241_v47  ;;  %8483 = vmatpush.msra.mxu0 %v8214_v35  ;;  %v7927_v13 = vmul.f32 0.01, %v17074_v52  ;;  %v8168_v48 = vmax.f32 %v15409_v34, %v7976_v49  ;;  %v17075_v58 = vld [vmem:[#allocation21_spill] sm:$0xff]  ;;  %v8142_v8 = vmax.f32 %v15345_v5, %v7950_v17  ;;  %v8169_v60 = vmax.f32 %v15421_v12, %v7977_v59 }
 0x82b   :  { %8503 = vmatpush.msra.mxu1 %v8215_v36  ;;  %8523 = vmatpush.msra.mxu2 %v8216_v6  ;;  %v15751_v62 = vpop.f32.mrf.mxu0  ;;  %v7929_v30 = vmul.f32 0.01, %v17075_v58  ;;  %v8098_v26 = vmul.f32 0.01, %v15659_v32  ;;  %v8143_v28 = vmax.f32 %v15353_v40, %v7951_v16  ;;  %v8144_v35 = vmax.f32 %v15385_v50, %v7952_v25 }
 0x82c   :  { %8543 = vmatpush.msra.mxu3 %v8217_v56  ;;  %10198 = vmatmul.msk.f32.vlgmr.msrb.gmra.mxu0 %vm1586_vm3, %v15695_v4  ;;  %v15758_v14 = vpop.f32.mrf.mxu1  ;;  %v8099_v19 = vmul.f32 0.01, %v15661_v27  ;;  %v8100_v34 = vmul.f32 0.01, %v15672_v54  ;;  %v8118_v47 = vmax.f32 %v17073_v41, %v7926_v2  ;;  %v8145_v5 = vmax.f32 %v15400_v24, %v7953_v20 }
 0x82d   :  { %10199 = vmatmul.msk.f32.vlgmr.msrb.gmra.mxu1 %vm1586_vm3, %v15695_v4  ;;  %10200 = vmatmul.msk.f32.vlgmr.msrb.gmra.mxu2 %vm1586_vm3, %v15695_v4  ;;  %v8101_v12 = vmul.f32 0.01, %v15678_v23  ;;  %v8119_v40 = vmax.f32 %v17074_v52, %v7927_v13  ;;  %v8120_v50 = vmax.f32 %v15343_v38, %v7928_v33  ;;  %v8121_v6 = vmax.f32 %v17075_v58, %v7929_v30  ;;  %v17077_v52 = vld [vmem:[#allocation34_spill] sm:$0xff]  ;;  %v17079_v30 = vld [vmem:[#allocation60_spill] sm:$0xff] }
 0x82e   :  { %10201 = vmatmul.msk.f32.vlgmr.msrb.gmra.mxu3 %vm1586_vm3, %v15695_v4  ;;  %8484 = vmatpush.msra.mxu0 %v8190_v31  ;;  %v8074_v24 = vmul.f32 0.01, %v15644_v63  ;;  %v8290_v57 = vmax.f32 %v15659_v32, %v8098_v26  ;;  %v8075_v56 = vmul.f32 0.01, %v15646_v55  ;;  %v8076_v38 = vmul.f32 0.01, %v15657_v53 }
 0x82f   :  { %8504 = vmatpush.msra.mxu1 %v8191_v10  ;;  %8524 = vmatpush.msra.mxu2 %v8192_v11  ;;  %v8291_v37 = vmax.f32 %v15661_v27, %v8099_v19  ;;  %v8292_v49 = vmax.f32 %v15672_v54, %v8100_v34  ;;  %v8050_v17 = vmul.f32 0.01, %v15629_v46  ;;  %v8077_v59 = vmul.f32 0.01, %v15663_v3 }
 0x830   :  { %8544 = vmatpush.msra.mxu3 %v8193_v45  ;;  %8485 = vmatpush.msra.mxu0 %v8166_v18  ;;  %v8293_v32 = vmax.f32 %v15678_v23, %v8101_v12  ;;  %v8051_v31 = vmul.f32 0.01, %v15631_v29  ;;  %v8052_v16 = vmul.f32 0.01, %v15642_v21  ;;  %v8026_v27 = vmul.f32 0.01, %v15614_v44 }
 0x831   :  { %8505 = vmatpush.msra.mxu1 %v8167_v39  ;;  %8525 = vmatpush.msra.mxu2 %v8168_v48  ;;  %v8053_v54 = vmul.f32 0.01, %v15648_v15  ;;  %v8266_v25 = vmax.f32 %v15644_v63, %v8074_v24  ;;  %v8027_v23 = vmul.f32 0.01, %v15616_v43  ;;  %v8028_v10 = vmul.f32 0.01, %v15627_v1 }
 0x832   :  { %8545 = vmatpush.msra.mxu3 %v8169_v60  ;;  %8486 = vmatpush.msra.mxu0 %v8142_v8  ;;  %v15789_v61 = vpop.f32.mrf.mxu2  ;;  %v8267_v11 = vmax.f32 %v15646_v55, %v8075_v56  ;;  %v8268_v41 = vmax.f32 %v15657_v53, %v8076_v38  ;;  %v8002_v63 = vmul.f32 0.01, %v15596_v22  ;;  %v8029_v2 = vmul.f32 0.01, %v15633_v7  ;;  %v17076_v53 = vld [vmem:[#allocation28_spill] sm:$0xff]  ;;  %v17086_v38 = vld [vmem:[#allocation22_spill] sm:$0xff] }
 0x833   :  { %8506 = vmatpush.msra.mxu1 %v8143_v28  ;;  %8526 = vmatpush.msra.mxu2 %v8144_v35  ;;  %v15793_v9 = vpop.f32.mrf.mxu3  ;;  %v15795_v36 = vpop.f32.mrf.mxu0  ;;  %v8242_v20 = vmax.f32 %v15629_v46, %v8050_v17  ;;  %v8269_v18 = vmax.f32 %v15663_v3, %v8077_v59  ;;  %v8003_v45 = vmul.f32 0.01, %v17076_v53  ;;  %v8004_v13 = vmul.f32 0.01, %v17077_v52  ;;  %v17078_v3 = vld [vmem:[#allocation54_spill] sm:$0xff]  ;;  %v17081_v35 = vld [vmem:[#allocation48_spill] sm:$0xff] }
 0x834   :  { %8546 = vmatpush.msra.mxu3 %v8145_v5  ;;  %8487 = vmatpush.msra.mxu0 %v8118_v47  ;;  %v15800_v51 = vpop.f32.mrf.mxu1  ;;  %v8243_v33 = vmax.f32 %v15631_v29, %v8051_v31  ;;  %v8244_v39 = vmax.f32 %v15642_v21, %v8052_v16  ;;  %v7978_v58 = vmul.f32 0.01, %v17078_v3  ;;  %v8005_v8 = vmul.f32 0.01, %v17079_v30  ;;  %v17080_v29 = vld [vmem:[#allocation25_spill] sm:$0xff]  ;;  %v17082_v5 = vld [vmem:[#allocation44_spill] sm:$0xff] }
 0x835   :  { %8507 = vmatpush.msra.mxu1 %v8119_v40  ;;  %8527 = vmatpush.msra.mxu2 %v8120_v50  ;;  %v8218_v60 = vmax.f32 %v15614_v44, %v8026_v27  ;;  %v8245_v26 = vmax.f32 %v15648_v15, %v8053_v54  ;;  %v7979_v21 = vmul.f32 0.01, %v17080_v29  ;;  %v7980_v19 = vmul.f32 0.01, %v17081_v35  ;;  %v17083_v40 = vld [vmem:[#allocation59_spill] sm:$0xff] }
 0x836   :  { %8547 = vmatpush.msra.mxu3 %v8121_v6  ;;  %8560 = vmatpush.msrb.mxu0 %v8290_v57  ;;  %v8219_v34 = vmax.f32 %v15616_v43, %v8027_v23  ;;  %v8220_v47 = vmax.f32 %v15627_v1, %v8028_v10  ;;  %v7954_v12 = vmul.f32 0.01, %v17082_v5  ;;  %v7981_v44 = vmul.f32 0.01, %v17083_v40  ;;  %v17084_v6 = vld [vmem:[#allocation24_spill] sm:$0xff]  ;;  %v17085_v57 = vld [vmem:[#allocation27_spill] sm:$0xff] }
 0x837   :  { %8580 = vmatpush.msrb.mxu1 %v8291_v37  ;;  %8600 = vmatpush.msrb.mxu2 %v8292_v49  ;;  %v8194_v15 = vmax.f32 %v15596_v22, %v8002_v63  ;;  %v8221_v50 = vmax.f32 %v15633_v7, %v8029_v2  ;;  %v7955_v24 = vmul.f32 0.01, %v17084_v6  ;;  %v7956_v56 = vmul.f32 0.01, %v17085_v57  ;;  %v17087_v49 = vld [vmem:[#allocation5_spill] sm:$0xff]  ;;  %v17088_v59 = vld [vmem:[#allocation51_spill] sm:$0xff] }
 0x838   :  { %8620 = vmatpush.msrb.mxu3 %v8293_v32  ;;  %10202 = vmatmul.msk.f32.vlgmr.msra.gmra.mxu0 %vm1586_vm3, %v15695_v4  ;;  %v8195_v43 = vmax.f32 %v17076_v53, %v8003_v45  ;;  %v8196_v1 = vmax.f32 %v17077_v52, %v8004_v13  ;;  %v7930_v37 = vmul.f32 0.01, %v17086_v38  ;;  %v7957_v17 = vmul.f32 0.01, %v17087_v49  ;;  %v17089_v31 = vld [vmem:[#allocation23_spill] sm:$0xff] }
 0x839   :  { %10203 = vmatmul.msk.f32.vlgmr.msra.gmra.mxu1 %vm1586_vm3, %v15695_v4  ;;  %10204 = vmatmul.msk.f32.vlgmr.msra.gmra.mxu2 %vm1586_vm3, %v15695_v4  ;;  %v8170_v22 = vmax.f32 %v17078_v3, %v7978_v58  ;;  %v8197_v7 = vmax.f32 %v17079_v30, %v8005_v8  ;;  %v7931_v32 = vmul.f32 0.01, %v17088_v59  ;;  %v7932_v16 = vmul.f32 0.01, %v17089_v31 }
 0x83a   :  { %10205 = vmatmul.msk.f32.vlgmr.msra.gmra.mxu3 %vm1586_vm3, %v15695_v4  ;;  %8561 = vmatpush.msrb.mxu0 %v8266_v25  ;;  %v15830_v55 = vpop.f32.mrf.mxu2  ;;  %v8171_v27 = vmax.f32 %v17080_v29, %v7979_v21  ;;  %v8172_v54 = vmax.f32 %v17081_v35, %v7980_v19  ;;  %v17090_v25 = vld [vmem:[#allocation53_spill] sm:$0xff]  ;;  %v8146_v10 = vmax.f32 %v17082_v5, %v7954_v12 }
 0x83b   :  { %8581 = vmatpush.msrb.mxu1 %v8267_v11  ;;  %8601 = vmatpush.msrb.mxu2 %v8268_v41  ;;  %v15836_v48 = vpop.f32.mrf.mxu3  ;;  %v15838_v46 = vpop.f32.mrf.mxu0  ;;  %v7933_v23 = vmul.f32 0.01, %v17090_v25  ;;  %v8173_v11 = vmax.f32 %v17083_v40, %v7981_v44  ;;  %v8147_v63 = vmax.f32 %v17084_v6, %v7955_v24  ;;  %v8148_v2 = vmax.f32 %v17085_v57, %v7956_v56 }
 0x83c   :  { %8621 = vmatpush.msrb.mxu3 %v8269_v18  ;;  %8562 = vmatpush.msrb.mxu0 %v8242_v20  ;;  %v15844_v28 = vpop.f32.mrf.mxu1  ;;  %v8122_v53 = vmax.f32 %v17086_v38, %v7930_v37  ;;  %v8149_v45 = vmax.f32 %v17087_v49, %v7957_v17  ;;  %v8123_v13 = vmax.f32 %v17088_v59, %v7931_v32  ;;  %v8030_v6 = vmul.f32 0.01, %v15838_v46 }
 0x83d   :  { %8582 = vmatpush.msrb.mxu1 %v8243_v33  ;;  %8602 = vmatpush.msrb.mxu2 %v8244_v39  ;;  %v8124_v33 = vmax.f32 %v17089_v31, %v7932_v16  ;;  %v8125_v39 = vmax.f32 %v17090_v25, %v7933_v23  ;;  %v8031_v24 = vmul.f32 0.01, %v15844_v28  ;;  %v8006_v57 = vmul.f32 0.01, %v15795_v36 }
 0x83e   :  { %8622 = vmatpush.msrb.mxu3 %v8245_v26  ;;  %8563 = vmatpush.msrb.mxu0 %v8218_v60  ;;  %v8222_v59 = vmax.f32 %v15838_v46, %v8030_v6 }
 0x83f   :  { %8583 = vmatpush.msrb.mxu1 %v8219_v34  ;;  %8603 = vmatpush.msrb.mxu2 %v8220_v47 }
 0x840   :  { %8623 = vmatpush.msrb.mxu3 %v8221_v50  ;;  %8564 = vmatpush.msrb.mxu0 %v8194_v15 }
 0x841   :  { %8584 = vmatpush.msrb.mxu1 %v8195_v43  ;;  %8604 = vmatpush.msrb.mxu2 %v8196_v1  ;;  %v8007_v1 = vmul.f32 0.01, %v15800_v51 }
 0x842   :  { %8624 = vmatpush.msrb.mxu3 %v8197_v7  ;;  %8565 = vmatpush.msrb.mxu0 %v8170_v22  ;;  %v15869_v41 = vpop.f32.mrf.mxu2  ;;  %v7982_v7 = vmul.f32 0.01, %v15751_v62 }
 0x843   :  { %8585 = vmatpush.msrb.mxu1 %v8171_v27  ;;  %8605 = vmatpush.msrb.mxu2 %v8172_v54  ;;  %v15873_v20 = vpop.f32.mrf.mxu3  ;;  %v7622_v18 = vpop.f32.mrf.mxu0  ;;  %v7983_v27 = vmul.f32 0.01, %v15758_v14  ;;  %v8223_v54 = vmax.f32 %v15844_v28, %v8031_v24  ;;  %v17093_v28 = vld [vmem:[#allocation29_spill] sm:$0xff] }
 0x844   :  { %8625 = vmatpush.msrb.mxu3 %v8173_v11  ;;  %8566 = vmatpush.msrb.mxu0 %v8146_v10  ;;  %v7663_v52 = vpop.f32.mrf.mxu1  ;;  %v8054_v5 = vmul.f32 0.01, %v7622_v18  ;;  %v17091_v10 = vld [vmem:[#allocation30_spill] sm:$0xff] }
 0x845   :  { %8586 = vmatpush.msrb.mxu1 %v8147_v63  ;;  %8606 = vmatpush.msrb.mxu2 %v8148_v2  ;;  %v8055_v44 = vmul.f32 0.01, %v7663_v52  ;;  %v7958_v11 = vmul.f32 0.01, %v17091_v10  ;;  %v8198_v63 = vmax.f32 %v15795_v36, %v8006_v57 }
 0x846   :  { %8626 = vmatpush.msrb.mxu3 %v8149_v45  ;;  %8567 = vmatpush.msrb.mxu0 %v8122_v53  ;;  %v8246_v56 = vmax.f32 %v7622_v18, %v8054_v5  ;;  %v17092_v18 = vld [vmem:[#allocation38_spill] sm:$0xff]  ;;  %v8199_v45 = vmax.f32 %v15800_v51, %v8007_v1  ;;  %v8008_v51 = vmul.f32 0.01, %v15830_v55 }
 0x847   :  { %8587 = vmatpush.msrb.mxu1 %v8123_v13  ;;  %8607 = vmatpush.msrb.mxu2 %v8124_v33  ;;  %v8247_v38 = vmax.f32 %v7663_v52, %v8055_v44  ;;  %v7959_v53 = vmul.f32 0.01, %v17092_v18  ;;  %v8032_v52 = vmul.f32 0.01, %v15869_v41  ;;  %v7934_v33 = vmul.f32 0.01, %v17093_v28 }
 0x848   :  { %8627 = vmatpush.msrb.mxu3 %v8125_v39  ;;  %10206 = vmatmul.msk.f32.vlgmr.msrb.gmra.mxu0 %vm1586_vm3, %v15695_v4  ;;  %v8174_v39 = vmax.f32 %v15751_v62, %v7982_v7  ;;  %v8009_v62 = vmul.f32 0.01, %v15836_v48  ;;  %v7960_v44 = vmul.f32 0.01, %v15738_v0 }
 0x849   :  { %10207 = vmatmul.msk.f32.vlgmr.msrb.gmra.mxu1 %vm1586_vm3, %v15695_v4  ;;  %10208 = vmatmul.msk.f32.vlgmr.msrb.gmra.mxu2 %vm1586_vm3, %v15695_v4 }
 0x84a   :  { %10209 = vmatmul.msk.f32.vlgmr.msrb.gmra.mxu3 %vm1586_vm3, %v15695_v4  ;;  %v15888_v3 = vpop.f32.mrf.mxu2  ;;  %v8201_v6 = vmax.f32 %v15836_v48, %v8009_v62  ;;  %v8152_v48 = vmax.f32 %v15738_v0, %v7960_v44 }
 0x84b   :  { %v15890_v58 = vpop.f32.mrf.mxu3  ;;  %v7625_v30 = vpop.f32.mrf.mxu0  ;;  %v8056_v25 = vmul.f32 0.01, %v15888_v3 }
 0x84c   :  { %v7666_v8 = vpop.f32.mrf.mxu1  ;;  %v8078_v60 = vmul.f32 0.01, %v7625_v30  ;;  %v8057_v46 = vmul.f32 0.01, %v15890_v58 }
 0x84d   :  { %v8079_v29 = vmul.f32 0.01, %v7666_v8 }
 0x84e   :  { %v8270_v12 = vmax.f32 %v7625_v30, %v8078_v60  ;;  %v8033_v30 = vmul.f32 0.01, %v15873_v20 }
 0x84f   :  { %v8271_v15 = vmax.f32 %v7666_v8, %v8079_v29  ;;  %v17094_v8 = vld [vmem:[#allocation56_spill] sm:$0xff]  ;;  %v8175_v29 = vmax.f32 %v15758_v14, %v7983_v27  ;;  %v7984_v14 = vmul.f32 0.01, %v15789_v61 }
 0x850   :  { %v7935_v60 = vmul.f32 0.01, %v17094_v8 }
 0x852   :  { %v7707_v26 = vpop.f32.mrf.mxu2 }
 0x853   :  { %v15892_v21 = vpop.f32.mrf.mxu3  ;;  %v7628_v35 = vpop.f32.mrf.mxu0  ;;  %v8080_v37 = vmul.f32 0.01, %v7707_v26 }
 0x854   :  { %v8102_v19 = vmul.f32 0.01, %v7628_v35  ;;  %v7669_v34 = vpop.f32.mrf.mxu1  ;;  %v8081_v32 = vmul.f32 0.01, %v15892_v21 }
 0x855   :  { %v8103_v47 = vmul.f32 0.01, %v7669_v34  ;;  %v8272_v13 = vmax.f32 %v7707_v26, %v8080_v37  ;;  %v8248_v26 = vmax.f32 %v15888_v3, %v8056_v25  ;;  %v8126_v3 = vmax.f32 %v17093_v28, %v7934_v33 }
 0x856   :  { %v8294_v40 = vmax.f32 %v7628_v35, %v8102_v19  ;;  %v8273_v36 = vmax.f32 %v15892_v21, %v8081_v32  ;;  %v8150_v35 = vmax.f32 %v17091_v10, %v7958_v11  ;;  %v8249_v19 = vmax.f32 %v15890_v58, %v8057_v46 }
 0x857   :  { %v8295_v50 = vmax.f32 %v7669_v34, %v8103_v47  ;;  %v8151_v34 = vmax.f32 %v17092_v18, %v7959_v53  ;;  %v8224_v47 = vmax.f32 %v15869_v41, %v8032_v52  ;;  %v8225_v58 = vmax.f32 %v15873_v20, %v8033_v30  ;;  %v17095_v20 = vld [vmem:[#allocation35_spill] sm:$0xff] }
 0x858   :  { %8640 = vmatpush.msra.mxu0 %v8294_v40  ;;  %v8127_v40 = vmax.f32 %v17094_v8, %v7935_v60  ;;  %v7961_v41 = vmul.f32 0.01, %v15744_v42  ;;  %v7936_v57 = vmul.f32 0.01, %v17095_v20 }
 0x859   :  { %8660 = vmatpush.msra.mxu1 %v8295_v50 }
 0x85a   :  { %v7710_v43 = vpop.f32.mrf.mxu2  ;;  %8641 = vmatpush.msra.mxu0 %v8270_v12  ;;  %v7985_v12 = vmul.f32 0.01, %v15793_v9 }
 0x85b   :  { %v8104_v49 = vmul.f32 0.01, %v7710_v43  ;;  %v7751_v17 = vpop.f32.mrf.mxu3  ;;  %8661 = vmatpush.msra.mxu1 %v8271_v15  ;;  %v15898_v22 = vpop.f32.mrf.mxu0  ;;  %v8200_v15 = vmax.f32 %v15830_v55, %v8008_v51 }
 0x85c   :  { %v8105_v31 = vmul.f32 0.01, %v7751_v17  ;;  %v15903_v16 = vpop.f32.mrf.mxu1  ;;  %8642 = vmatpush.msra.mxu0 %v8246_v56  ;;  %v8176_v56 = vmax.f32 %v15789_v61, %v7984_v14  ;;  %v8177_v1 = vmax.f32 %v15793_v9, %v7985_v12  ;;  %v8128_v61 = vmax.f32 %v17095_v20, %v7936_v57 }
 0x85d   :  { %v8296_v23 = vmax.f32 %v7710_v43, %v8104_v49  ;;  %8662 = vmatpush.msra.mxu1 %v8247_v38  ;;  %v17096_v43 = vld [vmem:[#allocation52_spill] sm:$0xff]  ;;  %v8153_v38 = vmax.f32 %v15744_v42, %v7961_v41  ;;  %v16000_v30 = vmul.f32 0.01, %v15903_v16  ;;  %v16022_v41 = vpop.permute.xlu1 %8306 }
 0x85e   :  { %v8297_v2 = vmax.f32 %v7751_v17, %v8105_v31  ;;  %8643 = vmatpush.msra.mxu0 %v8222_v59  ;;  %v7937_v55 = vmul.f32 0.01, %v17096_v43 }
 0x85f   :  { %8663 = vmatpush.msra.mxu1 %v8223_v54  ;;  %8680 = vmatpush.msra.mxu2 %v8296_v23 }
 0x860   :  { %8700 = vmatpush.msra.mxu3 %v8297_v2  ;;  %8644 = vmatpush.msra.mxu0 %v8198_v63  ;;  %v8129_v37 = vmax.f32 %v17096_v43, %v7937_v55 }
 0x861   :  { %8664 = vmatpush.msra.mxu1 %v8199_v45  ;;  %8681 = vmatpush.msra.mxu2 %v8272_v13 }
 0x862   :  { %8701 = vmatpush.msra.mxu3 %v8273_v36  ;;  %v15925_v21 = vpop.f32.mrf.mxu2  ;;  %8645 = vmatpush.msra.mxu0 %v8174_v39  ;;  %v15997_v39 = vmul.f32 0.01, %v15898_v22 }
 0x863   :  { %v15930_v5 = vpop.f32.mrf.mxu3  ;;  %8665 = vmatpush.msra.mxu1 %v8175_v29  ;;  %8682 = vmatpush.msra.mxu2 %v8248_v26  ;;  %v16003_v60 = vmul.f32 0.01, %v15925_v21 }
 0x864   :  { %8702 = vmatpush.msra.mxu3 %v8249_v19  ;;  %8646 = vmatpush.msra.mxu0 %v8150_v35 }
 0x865   :  { %v15938_v50 = vpop.f32.mrf.mxu0  ;;  %8666 = vmatpush.msra.mxu1 %v8151_v34  ;;  %8683 = vmatpush.msra.mxu2 %v8224_v47  ;;  %v8130_v47 = vmax.f32 %v15898_v22, %v15997_v39 }
 0x866   :  { %v15942_v24 = vpop.f32.mrf.mxu1  ;;  %8703 = vmatpush.msra.mxu3 %v8225_v58  ;;  %8647 = vmatpush.msra.mxu0 %v8126_v3  ;;  %v8131_v3 = vmax.f32 %v15903_v16, %v16000_v30  ;;  %v8132_v58 = vmax.f32 %v15925_v21, %v16003_v60 }
 0x867   :  { %8667 = vmatpush.msra.mxu1 %v8127_v40  ;;  %8684 = vmatpush.msra.mxu2 %v8200_v15  ;;  %v16016_v40 = vmul.f32 0.01, %v15938_v50  ;;  %v16019_v44 = vmul.f32 0.01, %v15942_v24 }
 0x868   :  { %8704 = vmatpush.msra.mxu3 %v8201_v6  ;;  %10210 = vmatmul.msk.f32.vlgmr.msra.gmra.mxu0 %vm1586_vm3, %v15695_v4 }
 0x869   :  { %10211 = vmatmul.msk.f32.vlgmr.msra.gmra.mxu1 %vm1586_vm3, %v15695_v4  ;;  %8685 = vmatpush.msra.mxu2 %v8176_v56 }
 0x86a   :  { %8705 = vmatpush.msra.mxu3 %v8177_v1 }
 0x86b   :  { %8686 = vmatpush.msra.mxu2 %v8152_v48 }
 0x86c   :  { %v15956_v49 = vpop.f32.mrf.mxu2  ;;  %8706 = vmatpush.msra.mxu3 %v8153_v38 }
 0x86d   :  { %v15958_v9 = vpop.f32.mrf.mxu3  ;;  %8687 = vmatpush.msra.mxu2 %v8128_v61 }
 0x86e   :  { %8707 = vmatpush.msra.mxu3 %v8129_v37  ;;  %10212 = vmatmul.msk.f32.vlgmr.msra.gmra.mxu2 %vm1586_vm3, %v15695_v4 }
 0x86f   :  { %v15962_v0 = vpop.f32.mrf.mxu0  ;;  %10213 = vmatmul.msk.f32.vlgmr.msra.gmra.mxu3 %vm1586_vm3, %v15695_v4 }
 0x870   :  { %v15966_v42 = vpop.f32.mrf.mxu1  ;;  %v16006_v62 = vmul.f32 0.01, %v15962_v0 }
 0x871   :  { %v7987_v6 = vmul.f32 0.01, %v15966_v42 }
 0x872   :  { %v8178_v55 = vmax.f32 %v15962_v0, %v16006_v62 }
 0x876   :  { %v15968_v17 = vpop.f32.mrf.mxu2 }
 0x877   :  { %v15970_v7 = vpop.f32.mrf.mxu3  ;;  %v15972_v59 = vpop.f32.mrf.mxu0 }
 0x878   :  { %v15974_v32 = vpop.f32.mrf.mxu1  ;;  %v8010_v20 = vmul.f32 0.01, %v15972_v59 }
 0x879   :  { %v8011_v57 = vmul.f32 0.01, %v15974_v32 }
 0x87e   :  { %v15976_v31 = vpop.f32.mrf.mxu2 }
 0x87f   :  { %v15978_v27 = vpop.f32.mrf.mxu3  ;;  %v15980_v54 = vpop.f32.mrf.mxu0 }
 0x880   :  { %v15982_v25 = vpop.f32.mrf.mxu1  ;;  %v8034_v12 = vmul.f32 0.01, %v15980_v54 }
 0x881   :  { %v8035_v15 = vmul.f32 0.01, %v15982_v25 }
 0x886   :  { %v15984_v23 = vpop.f32.mrf.mxu2 }
 0x887   :  { %v15986_v10 = vpop.f32.mrf.mxu3  ;;  %v7786_v11 = vpop.f32.mrf.mxu0 }
 0x888   :  { %v7827_v63 = vpop.f32.mrf.mxu1  ;;  %v8058_v51 = vmul.f32 0.01, %v7786_v11 }
 0x889   :  { %v8059_v19 = vmul.f32 0.01, %v7827_v63 }
 0x88a   :  { %v8250_v56 = vmax.f32 %v7786_v11, %v8058_v51 }
 0x88b   :  { %v8251_v1 = vmax.f32 %v7827_v63, %v8059_v19  ;;  %v8179_v19 = vmax.f32 %v15966_v42, %v7987_v6  ;;  %v16054_v42 = vmul.f32 0.01, %v15930_v5  ;;  %v8154_v6 = vmax.f32 %v15938_v50, %v16016_v40 }
 0x88c   :  { %v7964_v50 = vmul.f32 0.01, %v15956_v49 }
 0x88e   :  { %v15988_v46 = vpop.f32.mrf.mxu2 }
 0x88f   :  { %v15990_v2 = vpop.f32.mrf.mxu3  ;;  %v7789_v18 = vpop.f32.mrf.mxu0  ;;  %v8060_v0 = vmul.f32 0.01, %v15988_v46 }
 0x890   :  { %v7830_v53 = vpop.f32.mrf.mxu1  ;;  %v8082_v45 = vmul.f32 0.01, %v7789_v18 }
 0x891   :  { %v8083_v13 = vmul.f32 0.01, %v7830_v53 }
 0x892   :  { %v8274_v26 = vmax.f32 %v7789_v18, %v8082_v45  ;;  %v8226_v18 = vmax.f32 %v15980_v54, %v8034_v12  ;;  %v8203_v54 = vmax.f32 %v15974_v32, %v8011_v57  ;;  %v8037_v32 = vmul.f32 0.01, %v15986_v10 }
 0x893   :  { %v8275_v34 = vmax.f32 %v7830_v53, %v8083_v13  ;;  %v8252_v12 = vmax.f32 %v15988_v46, %v8060_v0  ;;  %v7988_v46 = vmul.f32 0.01, %v15968_v17 }
 0x896   :  { %v15992_v52 = vpop.f32.mrf.mxu2 }
 0x897   :  { %v15994_v28 = vpop.f32.mrf.mxu3  ;;  %v7792_v33 = vpop.f32.mrf.mxu0  ;;  %v8084_v48 = vmul.f32 0.01, %v15992_v52 }
 0x898   :  { %v8106_v36 = vmul.f32 0.01, %v7792_v33  ;;  %v7833_v8 = vpop.f32.mrf.mxu1  ;;  %v8085_v53 = vmul.f32 0.01, %v15994_v28 }
 0x899   :  { %v8107_v29 = vmul.f32 0.01, %v7833_v8 }
 0x89a   :  { %v8298_v35 = vmax.f32 %v7792_v33, %v8106_v36  ;;  %v8227_v33 = vmax.f32 %v15982_v25, %v8035_v15  ;;  %v8276_v25 = vmax.f32 %v15992_v52, %v8084_v48  ;;  %v17098_v52 = vld [vmem:[#allocation37_spill] sm:$0xff] }
 0x89b   :  { %v8299_v14 = vmax.f32 %v7833_v8, %v8107_v29  ;;  %v8202_v8 = vmax.f32 %v15972_v59, %v8010_v20  ;;  %v8061_v29 = vmul.f32 0.01, %v15990_v2  ;;  %v8012_v59 = vmul.f32 0.01, %v15976_v31 }
 0x89c   :  { %8720 = vmatpush.msrb.mxu0 %v8298_v35  ;;  %v17097_v35 = vld [vmem:[#allocation63_spill] sm:$0xff] }
 0x89d   :  { %8740 = vmatpush.msrb.mxu1 %v8299_v14  ;;  %v8013_v14 = vmul.f32 0.01, %v15978_v27  ;;  %v8253_v57 = vmax.f32 %v15990_v2, %v8061_v29  ;;  %v8229_v2 = vmax.f32 %v15986_v10, %v8037_v32  ;;  %v17103_v32 = vld [vmem:[#allocation69_spill] sm:$0xff] }
 0x89e   :  { %v7874_v43 = vpop.f32.mrf.mxu2  ;;  %8721 = vmatpush.msrb.mxu0 %v8274_v26  ;;  %v8036_v26 = vmul.f32 0.01, %v15984_v23 }
 0x89f   :  { %v8108_v38 = vmul.f32 0.01, %v7874_v43  ;;  %v7915_v61 = vpop.f32.mrf.mxu3  ;;  %8741 = vmatpush.msrb.mxu1 %v8275_v34  ;;  %v8329_v37 = vpop.f32.mrf.mxu0  ;;  %v8277_v34 = vmax.f32 %v15994_v28, %v8085_v53  ;;  %v8155_v28 = vmax.f32 %v15942_v24, %v16019_v44  ;;  %v7989_v24 = vmul.f32 0.01, %v15970_v7 }
 0x8a0   :  { %v8109_v45 = vmul.f32 0.01, %v7915_v61  ;;  %v16033_v13 = vadd.f32 %v8329_v37, %v16022_v41  ;;  %v8349_v11 = vpop.f32.mrf.mxu1  ;;  %8722 = vmatpush.msrb.mxu0 %v8250_v56  ;;  %v8204_v44 = vmax.f32 %v15976_v31, %v8012_v59  ;;  %v8180_v31 = vmax.f32 %v15968_v17, %v7988_v46  ;;  %v17101_v17 = vld [vmem:[#allocation84_spill] sm:$0xff] }
 0x8a1   :  { %v8300_v63 = vmax.f32 %v7874_v43, %v8108_v38  ;;  %v8350_v36 = vadd.f32 %v8349_v11, %v16022_v41  ;;  %8742 = vmatpush.msrb.mxu1 %v8251_v1  ;;  %v8228_v43 = vmax.f32 %v15984_v23, %v8036_v26  ;;  %v8205_v23 = vmax.f32 %v15978_v27, %v8013_v14 }
 0x8a2   :  { %v8301_v51 = vmax.f32 %v7915_v61, %v8109_v45  ;;  %8936 = vst [vmem:[#allocation1] sm:$0xff] %v16033_v13  ;;  %8723 = vmatpush.msrb.mxu0 %v8226_v18  ;;  %v8970_v15 = vadd.f32 %v16033_v13, %v17098_v52  ;;  %v7965_v18 = vmul.f32 0.01, %v15958_v9  ;;  %v17100_v45 = vld [vmem:[#allocation83_spill] sm:$0xff]  ;;  %v8792_v21 = vmul.f32 1.442695, %v16033_v13 }
 0x8a3   :  { %8937 = vst [vmem:[#allocation1 + $0x9] sm:$0xff] %v8350_v36  ;;  %v8971_v62 = vadd.f32 %v8350_v36, %v17097_v35  ;;  %8743 = vmatpush.msrb.mxu1 %v8227_v33  ;;  %8760 = vmatpush.msrb.mxu2 %v8300_v63  ;;  %v8794_v53 = vmul.f32 1.442695, %v8350_v36  ;;  %v8156_v36 = vmax.f32 %v15956_v49, %v7964_v50 }
 0x8a4   :  { %8780 = vmatpush.msrb.mxu3 %v8301_v51  ;;  %8724 = vmatpush.msrb.mxu0 %v8202_v8  ;;  %v8181_v8 = vmax.f32 %v15970_v7, %v7989_v24  ;;  %v8157_v16 = vmax.f32 %v15958_v9, %v7965_v18 }
 0x8a5   :  { %v9186_v20 = vrot.slane %v8971_v62, 7  ;;  %8744 = vmatpush.msrb.mxu1 %v8203_v54  ;;  %8761 = vmatpush.msrb.mxu2 %v8276_v25  ;;  %10369 = vpow2.f32 %v8794_v53  ;;  %v8133_v25 = vmax.f32 %v15930_v5, %v16054_v42  ;;  %v10451_v5 = vld [vmem:[%s16286_s2 + $0x6] sm:$0x3]  ;;  %v17106_v53 = vld [vmem:[#allocation65_spill] sm:$0xff]  ;;  %s10479_s2 = smov [#allocation2]  }
 0x8a6   :  { %8781 = vmatpush.msrb.mxu3 %v8277_v34  ;;  %v8369_v56 = vpop.f32.mrf.mxu2  ;;  %8725 = vmatpush.msrb.mxu0 %v8178_v55  ;;  %v17099_v55 = vld [vmem:[#allocation64_spill] sm:$0xff]  ;;  %s9242_s15 = sshll.u32 %s10479_s2, 4  ;;  %s9243_s15 = int_to_ptr.vmem [resolvable:$true] %s9242_s15 }
 0x8a7   :  { %v9207_v1 = vsel %vm80_vm0, %v8970_v15, %v9186_v20  ;;  %v8370_v48 = vadd.f32 %v8369_v56, %v16022_v41  ;;  %v8389_v38 = vpop.f32.mrf.mxu3  ;;  %8745 = vmatpush.msrb.mxu1 %v8179_v19  ;;  %8762 = vmatpush.msrb.mxu2 %v8252_v12 }
 0x8a8   :  { %v8390_v40 = vadd.f32 %v8389_v38, %v16022_v41  ;;  %8782 = vmatpush.msrb.mxu3 %v8253_v57  ;;  %8726 = vmatpush.msrb.mxu0 %v8154_v6 }
 0x8a9   :  { %8938 = vst [vmem:[#allocation1 + $0x12] sm:$0xff] %v8370_v48  ;;  %v8972_v61 = vadd.f32 %v8370_v48, %v17099_v55  ;;  %v8409_v37 = vpop.f32.mrf.mxu0  ;;  %8746 = vmatpush.msrb.mxu1 %v8155_v28  ;;  %8763 = vmatpush.msrb.mxu2 %v8228_v43  ;;  %v8796_v27 = vmul.f32 1.442695, %v8370_v48 }
 0x8aa   :  { %8939 = vst [vmem:[#allocation1 + $0x1b] sm:$0xff] %v8390_v40  ;;  %v8973_v10 = vadd.f32 %v8390_v40, %v17100_v45  ;;  %v8410_v11 = vadd.f32 %v8409_v37, %v16022_v41  ;;  %v8429_v33 = vpop.f32.mrf.mxu1  ;;  %8783 = vmatpush.msrb.mxu3 %v8229_v2  ;;  %8727 = vmatpush.msrb.mxu0 %v8130_v47  ;;  %v8798_v54 = vmul.f32 1.442695, %v8390_v40  ;;  %v17102_v47 = vld [vmem:[#allocation71_spill] sm:$0xff]  ;;  %v17105_v2 = vld [vmem:[#allocation66_spill] sm:$0xff] }
 0x8ab   :  { %v9187_v0 = vrot.slane %v8972_v61, 6  ;;  %v8430_v63 = vadd.f32 %v8429_v33, %v16022_v41  ;;  %8747 = vmatpush.msrb.mxu1 %v8131_v3  ;;  %8764 = vmatpush.msrb.mxu2 %v8204_v44  ;;  %10371 = vpow2.f32 %v8796_v27  ;;  %v10370_v14 = vpop.eup %10369 }
 0x8ac   :  { %v9188_v29 = vrot.slane %v8973_v10, 5  ;;  %8940 = vst [vmem:[#allocation1 + $0x24] sm:$0xff] %v8410_v11  ;;  %8784 = vmatpush.msrb.mxu3 %v8205_v23  ;;  %10214 = vmatmul.msk.f32.vlgmr.msrb.gmra.mxu0 %vm1586_vm3, %v15695_v4  ;;  %v8800_v22 = vmul.f32 1.442695, %v8410_v11  ;;  %v8974_v39 = vadd.f32 %v8410_v11, %v17101_v17  ;;  %10373 = vpow2.f32 %v8798_v54  ;;  %v17107_v17 = vld [vmem:[#allocation73_spill] sm:$0xff] }
 0x8ad   :  { %8941 = vst [vmem:[#allocation1 + $0x2d] sm:$0xff] %v8430_v63  ;;  %v8975_v51 = vadd.f32 %v8430_v63, %v17102_v47  ;;  %10215 = vmatmul.msk.f32.vlgmr.msrb.gmra.mxu1 %vm1586_vm3, %v15695_v4  ;;  %8765 = vmatpush.msrb.mxu2 %v8180_v31  ;;  %v8802_v7 = vmul.f32 1.442695, %v8430_v63  ;;  %v8864_v50 = vrot.slane %v10370_v14, 7 }
 0x8ae   :  { %v9208_v49 = vsel %vm2164_vm4, %v9187_v0, %v9188_v29  ;;  %8785 = vmatpush.msrb.mxu3 %v8181_v8  ;;  %v9189_v3 = vrot.slane %v8974_v39, 4  ;;  %10375 = vpow2.f32 %v8800_v22 }
 0x8af   :  { %v9209_v30 = vsel %vm138_vm1, %v9207_v1, %v9208_v49  ;;  %v9190_v26 = vrot.slane %v8975_v51, 3  ;;  %8766 = vmatpush.msrb.mxu2 %v8156_v36  ;;  %10377 = vpow2.f32 %v8802_v7 }
 0x8b0   :  { %v8449_v35 = vpop.f32.mrf.mxu2  ;;  %8786 = vmatpush.msrb.mxu3 %v8157_v16  ;;  %v17108_v16 = vld [vmem:[#allocation74_spill] sm:$0xff] }
 0x8b1   :  { %v9210_v4 = vsel %vm2167_vm5, %v9189_v3, %v9190_v26  ;;  %v8450_v9 = vadd.f32 %v8449_v35, %v16022_v41  ;;  %v8469_v62 = vpop.f32.mrf.mxu3  ;;  %8767 = vmatpush.msrb.mxu2 %v8132_v58  ;;  %v17104_v58 = vld [vmem:[#allocation70_spill] sm:$0xff]  ;;  %v10372_v52 = vpop.eup %10371 }
 0x8b2   :  { %v8470_v19 = vadd.f32 %v8469_v62, %v16022_v41  ;;  %8787 = vmatpush.msrb.mxu3 %v8133_v25  ;;  %10216 = vmatmul.msk.f32.vlgmr.msrb.gmra.mxu2 %vm1586_vm3, %v10451_v5  ;;  %v10374_v42 = vpop.eup %10373  ;;  %v8865_v1 = vrot.slane %v10372_v52, 6  ;;  %v17109_v3 = vld [vmem:[#allocation50_spill] sm:$0xff]  ;;  %v17110_v62 = vld [vmem:[#allocation75_spill] sm:$0xff] }
 0x8b3   :  { %v8804_v59 = vmul.f32 1.442695, %v8450_v9  ;;  %8942 = vst [vmem:[#allocation1 + $0x36] sm:$0xff] %v8450_v9  ;;  %v8976_v34 = vadd.f32 %v8450_v9, %v17103_v32  ;;  %10217 = vmatmul.msk.f32.vlgmr.msrb.gmra.mxu3 %vm1586_vm3, %v10451_v5  ;;  %v8866_v48 = vrot.slane %v10374_v42, 5 }
 0x8b4   :  { %v8806_v60 = vmul.f32 1.442695, %v8470_v19  ;;  %8943 = vst [vmem:[#allocation1 + $0x3f] sm:$0xff] %v8470_v19  ;;  %v8977_v12 = vadd.f32 %v8470_v19, %v17104_v58  ;;  %v10376_v57 = vpop.eup %10375  ;;  %v8997_v19 = vmul.f32 %v17110_v62, %v17110_v62 }
 0x8b5   :  { %10379 = vpow2.f32 %v8804_v59  ;;  %v9191_v15 = vrot.slane %v8976_v34, 2  ;;  %v8489_v20 = vpop.f32.mrf.mxu0  ;;  %v10378_v46 = vpop.eup %10377  ;;  %v8867_v23 = vrot.slane %v10376_v57, 4  ;;  %v8886_v33 = vsel %vm2164_vm4, %v8865_v1, %v8866_v48 }
 0x8b6   :  { %10381 = vpow2.f32 %v8806_v60  ;;  %v9192_v6 = vrot.slane %v8977_v12, 1  ;;  %v8509_v28 = vpop.f32.mrf.mxu1  ;;  %v16113_v13 = vadd.f32 %v8489_v20, %v16022_v41  ;;  %v8868_v55 = vrot.slane %v10378_v46, 3 }
 0x8b7   :  { %v8510_v56 = vadd.f32 %v8509_v28, %v16022_v41  ;;  %10383 = vpow2.f32 %v8792_v21  ;;  %v17112_v57 = vperm.slane %v17110_v62, 0  ;;  %v17113_v46 = vperm.slane %v17110_v62, 3 }
 0x8b8   :  { %v9211_v43 = vsel %vm2169_vm6, %v9191_v15, %v9192_v6  ;;  %v8978_v45 = vadd.f32 %v16113_v13, %v17106_v53  ;;  %v8888_v29 = vsel %vm2167_vm5, %v8867_v23, %v8868_v55  ;;  %v17111_v6 = vperm.slane %v17110_v62, 1 }
 0x8b9   :  { %v9212_v38 = vsel %vm2171_vm7, %v9210_v4, %v9211_v43  ;;  %v8979_v40 = vadd.f32 %v8510_v56, %v17105_v2  ;;  %v8810_v5 = vmul.f32 1.442695, %v8510_v56  ;;  %v17114_v1 = vperm.slane %v17110_v62, 5 }
 0x8ba   :  { %v9213_v24 = vsel %vm2173_vm8, %v9209_v30, %v9212_v38 }
 0x8bb   :  { %v10380_v44 = vpop.eup %10379  ;;  %v8945_v61 = vld [vmem:[#allocation1 + $0x1] ss:$9 sm:$0xff]  ;;  %9232 = vst [vmem:[#allocation2 + $0x3] ss:$4 sm:$0xff] %v9213_v24  ;;  %v9193_v10 = vrot.slane %v8979_v40, 7  ;;  %v17115_v24 = vperm.slane %v17110_v62, 2 }
 0x8bc   :  { %v10382_v37 = vpop.eup %10381  ;;  %v8869_v18 = vrot.slane %v10380_v44, 2  ;;  %8946 = vst [vmem:[#allocation1] sm:$0xff] %v16113_v13  ;;  %v8529_v11 = vpop.f32.mrf.mxu2  ;;  %v17116_v40 = vperm.slane %v17110_v62, 7 }
 0x8bd   :  { %v8870_v31 = vrot.slane %v10382_v37, 1  ;;  %8947 = vst [vmem:[#allocation1 + $0x9] sm:$0xff] %v8510_v56  ;;  %v8530_v27 = vadd.f32 %v8529_v11, %v16022_v41  ;;  %v8549_v0 = vpop.f32.mrf.mxu3  ;;  %v10384_v63 = vpop.eup %10383  ;;  %v9214_v36 = vsel %vm80_vm0, %v8978_v45, %v9193_v10  ;;  %v17118_v11 = vperm.slane %v17110_v62, 6 }
 0x8be   :  { %v8550_v8 = vadd.f32 %v8549_v0, %v16022_v41  ;;  %v8885_v54 = vsel %vm80_vm0, %v10384_v63, %v8864_v50 }
 0x8bf   :  { %v8889_v22 = vsel %vm2169_vm6, %v8869_v18, %v8870_v31  ;;  %v8980_v39 = vadd.f32 %v8530_v27, %v17107_v17  ;;  %8948 = vst [vmem:[#allocation1 + $0x12] sm:$0xff] %v8530_v27  ;;  %v8887_v47 = vsel %vm138_vm1, %v8885_v54, %v8886_v33  ;;  %v8812_v35 = vmul.f32 1.442695, %v8530_v27 }
 0x8c0   :  { %v8890_v51 = vsel %vm2171_vm7, %v8888_v29, %v8889_v22  ;;  %v8981_v49 = vadd.f32 %v8550_v8, %v17108_v16  ;;  %8949 = vst [vmem:[#allocation1 + $0x1b] sm:$0xff] %v8550_v8  ;;  %v8814_v59 = vmul.f32 1.442695, %v8550_v8  ;;  %v8808_v17 = vmul.f32 1.442695, %v16113_v13 }
 0x8c1   :  { %v8891_v7 = vsel %vm2173_vm8, %v8887_v47, %v8890_v51  ;;  %v9194_v30 = vrot.slane %v8980_v39, 6  ;;  %10385 = vpow2.f32 %v8812_v35  ;;  %v17119_v47 = vld [vmem:[#allocation77_spill] sm:$0xff] }
 0x8c2   :  { %v8909_v26 = vmul.f32 %v8891_v7, %v17109_v3  ;;  %v9195_v25 = vrot.slane %v8981_v49, 5  ;;  %10387 = vpow2.f32 %v8814_v59 }
 0x8c3   :  { %10389 = vpow2.f32 %v8810_v5 }
 0x8c4   :  { %v8967_v4 = vadd.f32 %v8945_v61, %v8909_v26  ;;  %v9215_v9 = vsel %vm2164_vm4, %v9194_v30, %v9195_v25  ;;  %v17117_v61 = vperm.slane %v17110_v62, 4  ;;  %v17120_v30 = vld [vmem:[#allocation76_spill] sm:$0xff] }
 0x8c5   :  { %v16138_v32 = vsel %vm138_vm1, %v9214_v36, %v9215_v9  ;;  %v8569_v38 = vpop.f32.mrf.mxu0 }
 0x8c6   :  { %v8994_v34 = vmul.f32 %v8967_v4, %v8967_v4  ;;  %v9012_v14 = vperm.slane %v8967_v4, 0  ;;  %v9013_v21 = vperm.slane %v8967_v4, 1  ;;  %v9014_v60 = vperm.slane %v8967_v4, 2  ;;  %v8589_v55 = vpop.f32.mrf.mxu1 }
 0x8c7   :  { %v9015_v58 = vperm.slane %v8967_v4, 3  ;;  %v9016_v12 = vperm.slane %v8967_v4, 4  ;;  %v9017_v52 = vperm.slane %v8967_v4, 5  ;;  %v9018_v20 = vperm.slane %v8967_v4, 6  ;;  %v10386_v63 = vpop.eup %10385 }
 0x8c8   :  { %v9000_v15 = vadd.f32 %v8997_v19, %v8994_v34  ;;  %v9019_v42 = vperm.slane %v8967_v4, 7  ;;  %v9061_v28 = vsel %vm80_vm0, %v9013_v21, %v17111_v6  ;;  %v9060_v56 = vsel %vm80_vm0, %v9012_v14, %v17112_v57  ;;  %v10388_v49 = vpop.eup %10387  ;;  %v17121_v4 = vld [vmem:[#allocation78_spill] sm:$0xff]  ;;  %v17122_v19 = vld [vmem:[#allocation79_spill] sm:$0xff] }
 0x8c9   :  { %v9063_v43 = vsel %vm80_vm0, %v9015_v58, %v17113_v46  ;;  %v9065_v48 = vsel %vm80_vm0, %v9017_v52, %v17114_v1  ;;  %v9062_v2 = vsel %vm80_vm0, %v9014_v60, %v17115_v24  ;;  %v9108_v23 = vrot.slane %v9061_v28, 4  ;;  %v10390_v21 = vpop.eup %10389 }
 0x8ca   :  { %v9003_v50 = vmul.f32 -0.5, %v9000_v15  ;;  %v9067_v44 = vsel %vm80_vm0, %v9019_v42, %v17116_v40  ;;  %v9064_v37 = vsel %vm80_vm0, %v9016_v12, %v17117_v61  ;;  %v9109_v18 = vrot.slane %v9063_v43, 4 }
 0x8cb   :  { %v9110_v53 = vrot.slane %v9065_v48, 4  ;;  %v9111_v45 = vrot.slane %v9067_v44, 4  ;;  %v9066_v33 = vsel %vm80_vm0, %v9018_v20, %v17118_v11  ;;  %v9120_v31 = vsel %vm2173_vm8, %v9060_v56, %v9108_v23  ;;  %v17123_v23 = vld [vmem:[#allocation55_spill] sm:$0xff] }
 0x8cc   :  { %v10218_v10 = vadd.f32 -1.837877, %v9003_v50  ;;  %v8570_v27 = vadd.f32 %v8569_v38, %v16022_v41  ;;  %v8609_v0 = vpop.f32.mrf.mxu2  ;;  %v9121_v36 = vsel %vm2173_vm8, %v9062_v2, %v9109_v18  ;;  %9144 = vst [vmem:[#allocation2] sm:$0x33] %v9120_v31  ;;  %v8590_v29 = vadd.f32 %v8589_v55, %v16022_v41  ;;  %v17124_v18 = vld [vmem:[#allocation85_spill] sm:$0xff] }
 0x8cd   :  { %v9122_v8 = vsel %vm2173_vm8, %v9064_v37, %v9110_v53  ;;  %v9123_v54 = vsel %vm2173_vm8, %v9066_v33, %v9111_v45  ;;  %v8629_v22 = vpop.f32.mrf.mxu3  ;;  %9145 = vst [vmem:[#allocation2 + $0x8] sm:$0x33] %v9121_v36  ;;  %v8610_v16 = vadd.f32 %v8609_v0, %v16022_v41  ;;  %v8872_v12 = vrot.slane %v10386_v63, 6 }
 0x8ce   :  { %v8816_v39 = vmul.f32 1.442695, %v8570_v27  ;;  %v8982_v51 = vadd.f32 %v8570_v27, %v17119_v47  ;;  %9146 = vst [vmem:[#allocation2 + $0x10] sm:$0x33] %v9122_v8  ;;  %v8818_v7 = vmul.f32 1.442695, %v8590_v29  ;;  %v8983_v3 = vadd.f32 %v8590_v29, %v17120_v30 }
 0x8cf   :  { %v8630_v26 = vadd.f32 %v8629_v22, %v16022_v41  ;;  %9147 = vst [vmem:[#allocation2 + $0x18] sm:$0x33] %v9123_v54  ;;  %v8820_v35 = vmul.f32 1.442695, %v8610_v16  ;;  %v8984_v9 = vadd.f32 %v8610_v16, %v17121_v4  ;;  %v8873_v52 = vrot.slane %v10388_v49, 5 }
 0x8d0   :  { %10391 = vpow2.f32 %v8816_v39  ;;  %v9196_v25 = vrot.slane %v8982_v51, 4  ;;  %9157 = vst [vmem:[#allocation2 + $0x2] ss:$4 sm:$0xff] %v10218_v10  ;;  %v9197_v13 = vrot.slane %v8983_v3, 3  ;;  %v8871_v28 = vrot.slane %v10390_v21, 7 }
 0x8d1   :  { %10393 = vpow2.f32 %v8818_v7  ;;  %v8822_v62 = vmul.f32 1.442695, %v8630_v26  ;;  %v8985_v59 = vadd.f32 %v8630_v26, %v17122_v19  ;;  %8950 = vst [vmem:[#allocation1 + $0x24] sm:$0xff] %v8570_v27  ;;  %v9198_v5 = vrot.slane %v8984_v9, 2 }
 0x8d2   :  { %10395 = vpow2.f32 %v8820_v35  ;;  %v9217_v34 = vsel %vm2167_vm5, %v9196_v25, %v9197_v13  ;;  %8951 = vst [vmem:[#allocation1 + $0x2d] sm:$0xff] %v8590_v29  ;;  %v8893_v1 = vsel %vm2164_vm4, %v8872_v12, %v8873_v52  ;;  %v8998_v53 = vmul.f32 %v17124_v18, %v17124_v18 }
 0x8d3   :  { %10397 = vpow2.f32 %v8822_v62  ;;  %v9199_v14 = vrot.slane %v8985_v59, 1  ;;  %8952 = vst [vmem:[#allocation1 + $0x36] sm:$0xff] %v8610_v16  ;;  %v17125_v54 = vperm.slane %v17124_v18, 1  ;;  %v17127_v47 = vperm.slane %v17124_v18, 3 }
 0x8d4   :  { %10399 = vpow2.f32 %v8808_v17  ;;  %8953 = vst [vmem:[#allocation1 + $0x3f] sm:$0xff] %v8630_v26  ;;  %v17126_v17 = vperm.slane %v17124_v18, 0  ;;  %v17128_v16 = vperm.slane %v17124_v18, 5  ;;  %v17129_v3 = vperm.slane %v17124_v18, 2 }
 0x8d5   :  { %v9218_v60 = vsel %vm2169_vm6, %v9198_v5, %v9199_v14  ;;  %v17130_v25 = vperm.slane %v17124_v18, 7  ;;  %v17131_v59 = vperm.slane %v17124_v18, 4 }
 0x8d6   :  { %v10392_v58 = vpop.eup %10391  ;;  %v9219_v15 = vsel %vm2171_vm7, %v9217_v34, %v9218_v60  ;;  %v17132_v34 = vperm.slane %v17124_v18, 6 }
 0x8d7   :  { %v10394_v20 = vpop.eup %10393  ;;  %v9220_v42 = vsel %vm2173_vm8, %v16138_v32, %v9219_v15  ;;  %v8874_v57 = vrot.slane %v10392_v58, 4 }
 0x8d8   :  { %v10396_v6 = vpop.eup %10395  ;;  %v8875_v56 = vrot.slane %v10394_v20, 3  ;;  %9234 = vst [vmem:[#allocation2 + $0x23] ss:$4 sm:$0xff] %v9220_v42  ;;  %v17133_v42 = vld [vmem:[#allocation80_spill] sm:$0xff] }
 0x8d9   :  { %v10398_v46 = vpop.eup %10397  ;;  %v8876_v43 = vrot.slane %v10396_v6, 2 }
 0x8da   :  { %v8877_v48 = vrot.slane %v10398_v46, 1  ;;  %v10400_v38 = vpop.eup %10399  ;;  %v8895_v24 = vsel %vm2167_vm5, %v8874_v57, %v8875_v56  ;;  %v17134_v57 = vld [vmem:[#allocation86_spill] sm:$0xff] }
 0x8db   :  { %v8892_v50 = vsel %vm80_vm0, %v10400_v38, %v8871_v28  ;;  %v8954_v61 = vld [vmem:[#allocation1 + $0x1] ss:$9 sm:$0xff] }
 0x8dc   :  { %v8896_v2 = vsel %vm2169_vm6, %v8876_v43, %v8877_v48  ;;  %v8894_v40 = vsel %vm138_vm1, %v8892_v50, %v8893_v1 }
 0x8dd   :  { %v8897_v32 = vsel %vm2171_vm7, %v8895_v24, %v8896_v2 }
 0x8de   :  { %v8898_v44 = vsel %vm2173_vm8, %v8894_v40, %v8897_v32  ;;  %v17135_v32 = vld [vmem:[#allocation81_spill] sm:$0xff] }
 0x8df   :  { %v8910_v55 = vmul.f32 %v8898_v44, %v17123_v23 }
 0x8e1   :  { %v8968_v37 = vadd.f32 %v8954_v61, %v8910_v55  ;;  %v17136_v61 = vld [vmem:[#allocation82_spill] sm:$0xff] }
 0x8e3   :  { %v8995_v45 = vmul.f32 %v8968_v37, %v8968_v37  ;;  %v9020_v10 = vperm.slane %v8968_v37, 0  ;;  %v9021_v11 = vperm.slane %v8968_v37, 1  ;;  %v9022_v33 = vperm.slane %v8968_v37, 2 }
 0x8e4   :  { %v9023_v31 = vperm.slane %v8968_v37, 3  ;;  %v9024_v27 = vperm.slane %v8968_v37, 4  ;;  %v9025_v0 = vperm.slane %v8968_v37, 5  ;;  %v9026_v36 = vperm.slane %v8968_v37, 6 }
 0x8e5   :  { %v9001_v63 = vadd.f32 %v8998_v53, %v8995_v45  ;;  %v9027_v8 = vperm.slane %v8968_v37, 7  ;;  %v9069_v29 = vsel %vm80_vm0, %v9021_v11, %v17125_v54  ;;  %v8649_v22 = vpop.f32.mrf.mxu0  ;;  %v9068_v39 = vsel %vm80_vm0, %v9020_v10, %v17126_v17  ;;  %v17137_v17 = vld [vmem:[#allocation68_spill] sm:$0xff] }
 0x8e6   :  { %v9071_v51 = vsel %vm80_vm0, %v9023_v31, %v17127_v47  ;;  %v9073_v49 = vsel %vm80_vm0, %v9025_v0, %v17128_v16  ;;  %v8669_v7 = vpop.f32.mrf.mxu1  ;;  %v9070_v26 = vsel %vm80_vm0, %v9022_v33, %v17129_v3  ;;  %v9112_v4 = vrot.slane %v9069_v29, 4  ;;  %v17138_v47 = vld [vmem:[#allocation36_spill] sm:$0xff] }
 0x8e7   :  { %v9004_v30 = vmul.f32 -0.5, %v9001_v63  ;;  %v9075_v35 = vsel %vm80_vm0, %v9027_v8, %v17130_v25  ;;  %v9113_v9 = vrot.slane %v9071_v51, 4  ;;  %v9114_v13 = vrot.slane %v9073_v49, 4 }
 0x8e8   :  { %v9115_v62 = vrot.slane %v9075_v35, 4  ;;  %v8650_v19 = vadd.f32 %v8649_v22, %v16022_v41  ;;  %v9072_v5 = vsel %vm80_vm0, %v9024_v27, %v17131_v59  ;;  %v9074_v14 = vsel %vm80_vm0, %v9026_v36, %v17132_v34  ;;  %v17140_v59 = vld [vmem:[#allocation61_spill] sm:$0xff] }
 0x8e9   :  { %v9124_v21 = vsel %vm2173_vm8, %v9068_v39, %v9112_v4  ;;  %v8670_v60 = vadd.f32 %v8669_v7, %v16022_v41  ;;  %v10219_v58 = vadd.f32 -1.837877, %v9004_v30  ;;  %v9125_v12 = vsel %vm2173_vm8, %v9070_v26, %v9113_v9 }
 0x8ea   :  { %v9126_v52 = vsel %vm2173_vm8, %v9072_v5, %v9114_v13  ;;  %v9127_v15 = vsel %vm2173_vm8, %v9074_v14, %v9115_v62  ;;  %9148 = vst [vmem:[#allocation2 + $0x20] sm:$0x33] %v9124_v21  ;;  %v8824_v20 = vmul.f32 1.442695, %v8650_v19  ;;  %v8986_v6 = vadd.f32 %v8650_v19, %v17133_v42  ;;  %v17139_v13 = vld [vmem:[#allocation72_spill] sm:$0xff] }
 0x8eb   :  { %9149 = vst [vmem:[#allocation2 + $0x28] sm:$0x33] %v9125_v12  ;;  %v8826_v28 = vmul.f32 1.442695, %v8670_v60  ;;  %v8987_v56 = vadd.f32 %v8670_v60, %v17134_v57 }
 0x8ec   :  { %9150 = vst [vmem:[#allocation2 + $0x30] sm:$0x33] %v9126_v52 }
 0x8ed   :  { %9151 = vst [vmem:[#allocation2 + $0x38] sm:$0x33] %v9127_v15  ;;  %10401 = vpow2.f32 %v8826_v28  ;;  %v9200_v46 = vrot.slane %v8987_v56, 7 }
 0x8ee   :  { %9159 = vst [vmem:[#allocation2 + $0x22] ss:$4 sm:$0xff] %v10219_v58  ;;  %10403 = vpow2.f32 %v8824_v20 }
 0x8ef   :  { %8955 = vst [vmem:[#allocation1] sm:$0xff] %v8650_v19  ;;  %v9221_v43 = vsel %vm80_vm0, %v8986_v6, %v9200_v46 }
 0x8f0   :  { %8956 = vst [vmem:[#allocation1 + $0x9] sm:$0xff] %v8670_v60 }
 0x8f1   :  { %v8689_v1 = vpop.f32.mrf.mxu2 }
 0x8f2   :  { %v8690_v48 = vadd.f32 %v8689_v1, %v16022_v41  ;;  %v8709_v38 = vpop.f32.mrf.mxu3  ;;  %v17141_v1 = vld [vmem:[#allocation43_spill] sm:$0xff] }
 0x8f3   :  { %v10402_v50 = vpop.eup %10401  ;;  %v8710_v24 = vadd.f32 %v8709_v38, %v16022_v41 }
 0x8f4   :  { %v8878_v2 = vrot.slane %v10402_v50, 7  ;;  %v8828_v40 = vmul.f32 1.442695, %v8690_v48  ;;  %v8988_v44 = vadd.f32 %v8690_v48, %v17135_v32  ;;  %8957 = vst [vmem:[#allocation1 + $0x12] sm:$0xff] %v8690_v48  ;;  %v10404_v23 = vpop.eup %10403 }
 0x8f5   :  { %v8830_v55 = vmul.f32 1.442695, %v8710_v24  ;;  %v8989_v37 = vadd.f32 %v8710_v24, %v17136_v61  ;;  %8958 = vst [vmem:[#allocation1 + $0x1b] sm:$0xff] %v8710_v24  ;;  %v17142_v24 = vld [vmem:[#allocation62_spill] sm:$0xff] }
 0x8f6   :  { %v8899_v18 = vsel %vm80_vm0, %v10404_v23, %v8878_v2  ;;  %10405 = vpow2.f32 %v8828_v40  ;;  %v9201_v53 = vrot.slane %v8988_v44, 6  ;;  %v8999_v2 = vmul.f32 %v17142_v24, %v17142_v24 }
 0x8f7   :  { %10407 = vpow2.f32 %v8830_v55  ;;  %v9202_v45 = vrot.slane %v8989_v37, 5 }
 0x8f9   :  { %v9222_v10 = vsel %vm2164_vm4, %v9201_v53, %v9202_v45 }
 0x8fa   :  { %v9223_v11 = vsel %vm138_vm1, %v9221_v43, %v9222_v10  ;;  %v17143_v10 = vperm.slane %v17142_v24, 1 }
 0x8fc   :  { %v10406_v33 = vpop.eup %10405 }
 0x8fd   :  { %v10408_v31 = vpop.eup %10407  ;;  %v8879_v27 = vrot.slane %v10406_v33, 6  ;;  %v17144_v33 = vperm.slane %v17142_v24, 3 }
 0x8fe   :  { %v8880_v0 = vrot.slane %v10408_v31, 5 }
 0x900   :  { %v8900_v63 = vsel %vm2164_vm4, %v8879_v27, %v8880_v0  ;;  %v17145_v27 = vperm.slane %v17142_v24, 5 }
 0x901   :  { %v8901_v36 = vsel %vm138_vm1, %v8899_v18, %v8900_v63 }
 0x929   :  { %v8729_v8 = vpop.f32.mrf.mxu0 }
 0x92a   :  { %v8730_v54 = vadd.f32 %v8729_v8, %v16022_v41  ;;  %v8749_v29 = vpop.f32.mrf.mxu1 }
 0x92b   :  { %v8750_v22 = vadd.f32 %v8749_v29, %v16022_v41  ;;  %v17147_v29 = vperm.slane %v17142_v24, 0 }
 0x92c   :  { %v8990_v39 = vadd.f32 %v8730_v54, %v17137_v17  ;;  %8959 = vst [vmem:[#allocation1 + $0x24] sm:$0xff] %v8730_v54  ;;  %v8832_v30 = vmul.f32 1.442695, %v8730_v54 }
 0x92d   :  { %v8991_v51 = vadd.f32 %v8750_v22, %v17138_v47  ;;  %8960 = vst [vmem:[#allocation1 + $0x2d] sm:$0xff] %v8750_v22  ;;  %v8834_v3 = vmul.f32 1.442695, %v8750_v22 }
 0x92e   :  { %v9203_v16 = vrot.slane %v8990_v39, 4  ;;  %10409 = vpow2.f32 %v8832_v30  ;;  %v17150_v30 = vperm.slane %v17142_v24, 6 }
 0x92f   :  { %v9204_v49 = vrot.slane %v8991_v51, 3  ;;  %10411 = vpow2.f32 %v8834_v3  ;;  %v17148_v51 = vperm.slane %v17142_v24, 2 }
 0x931   :  { %v9224_v7 = vsel %vm2167_vm5, %v9203_v16, %v9204_v49  ;;  %v17149_v49 = vperm.slane %v17142_v24, 4 }
 0x934   :  { %v10410_v21 = vpop.eup %10409 }
 0x935   :  { %v8769_v26 = vpop.f32.mrf.mxu2  ;;  %v10412_v60 = vpop.eup %10411  ;;  %v8881_v15 = vrot.slane %v10410_v21, 4 }
 0x936   :  { %v8770_v25 = vadd.f32 %v8769_v26, %v16022_v41  ;;  %v8789_v35 = vpop.f32.mrf.mxu3  ;;  %v8882_v20 = vrot.slane %v10412_v60, 3 }
 0x937   :  { %v8790_v4 = vadd.f32 %v8789_v35, %v16022_v41 }
 0x938   :  { %v8836_v9 = vmul.f32 1.442695, %v8770_v25  ;;  %v8992_v62 = vadd.f32 %v8770_v25, %v17139_v13  ;;  %8961 = vst [vmem:[#allocation1 + $0x36] sm:$0xff] %v8770_v25  ;;  %v8902_v57 = vsel %vm2167_vm5, %v8881_v15, %v8882_v20 }
 0x939   :  { %v8838_v19 = vmul.f32 1.442695, %v8790_v4  ;;  %8962 = vst [vmem:[#allocation1 + $0x3f] sm:$0xff] %v8790_v4  ;;  %v8993_v5 = vadd.f32 %v8790_v4, %v17140_v59 }
 0x93a   :  { %10413 = vpow2.f32 %v8836_v9  ;;  %v9205_v34 = vrot.slane %v8992_v62, 2 }
 0x93b   :  { %10415 = vpow2.f32 %v8838_v19  ;;  %v9206_v14 = vrot.slane %v8993_v5, 1 }
 0x93d   :  { %v9225_v58 = vsel %vm2169_vm6, %v9205_v34, %v9206_v14 }
 0x93e   :  { %v9226_v12 = vsel %vm2171_vm7, %v9224_v7, %v9225_v58 }
 0x93f   :  { %v9227_v41 = vsel %vm2173_vm8, %v9223_v11, %v9226_v12 }
 0x940   :  { %v10414_v52 = vpop.eup %10413  ;;  %9236 = vst [vmem:[#allocation2 + $0x43] ss:$4 sm:$0xff] %v9227_v41  ;;  %v8963_v38 = vld [vmem:[#allocation1 + $0x1] ss:$9 sm:$0xff] }
 0x941   :  { %v10416_v42 = vpop.eup %10415  ;;  %v8883_v6 = vrot.slane %v10414_v52, 2 }
 0x942   :  { %v8884_v28 = vrot.slane %v10416_v42, 1 }
 0x944   :  { %v8903_v56 = vsel %vm2169_vm6, %v8883_v6, %v8884_v28 }
 0x945   :  { %v8904_v46 = vsel %vm2171_vm7, %v8902_v57, %v8903_v56 }
 0x946   :  { %v8905_v43 = vsel %vm2173_vm8, %v8901_v36, %v8904_v46  ;;  %v17146_v36 = vperm.slane %v17142_v24, 7 }
 0x947   :  { %v8911_v48 = vmul.f32 %v8905_v43, %v17141_v1 }
 0x949   :  { %v8969_v50 = vadd.f32 %v8963_v38, %v8911_v48 }
 0x94b   :  { %v8996_v40 = vmul.f32 %v8969_v50, %v8969_v50  ;;  %v9028_v32 = vperm.slane %v8969_v50, 0  ;;  %v9029_v44 = vperm.slane %v8969_v50, 1  ;;  %v9030_v23 = vperm.slane %v8969_v50, 2 }
 0x94c   :  { %v9031_v55 = vperm.slane %v8969_v50, 3  ;;  %v9032_v61 = vperm.slane %v8969_v50, 4  ;;  %v9033_v37 = vperm.slane %v8969_v50, 5  ;;  %v9034_v53 = vperm.slane %v8969_v50, 6 }
 0x94d   :  { %v9002_v18 = vadd.f32 %v8999_v2, %v8996_v40  ;;  %v9035_v45 = vperm.slane %v8969_v50, 7  ;;  %v9077_v11 = vsel %vm80_vm0, %v9029_v44, %v17143_v10  ;;  %v9076_v22 = vsel %vm80_vm0, %v9028_v32, %v17147_v29 }
 0x94e   :  { %v9079_v31 = vsel %vm80_vm0, %v9031_v55, %v17144_v33  ;;  %v9081_v0 = vsel %vm80_vm0, %v9033_v37, %v17145_v27  ;;  %v9116_v54 = vrot.slane %v9077_v11, 4  ;;  %v9078_v16 = vsel %vm80_vm0, %v9030_v23, %v17148_v51 }
 0x94f   :  { %v9005_v63 = vmul.f32 -0.5, %v9002_v18  ;;  %v9083_v8 = vsel %vm80_vm0, %v9035_v45, %v17146_v36  ;;  %v9117_v17 = vrot.slane %v9079_v31, 4  ;;  %v9118_v39 = vrot.slane %v9081_v0, 4 }
 0x950   :  { %v9119_v47 = vrot.slane %v9083_v8, 4  ;;  %v9080_v7 = vsel %vm80_vm0, %v9032_v61, %v17149_v49  ;;  %v9082_v3 = vsel %vm80_vm0, %v9034_v53, %v17150_v30  ;;  %v9128_v26 = vsel %vm2173_vm8, %v9076_v22, %v9116_v54 }
 0x951   :  { %v10220_v25 = vadd.f32 -1.837877, %v9005_v63  ;;  %v9129_v35 = vsel %vm2173_vm8, %v9078_v16, %v9117_v17  ;;  %v9130_v4 = vsel %vm2173_vm8, %v9080_v7, %v9118_v39  ;;  %9152 = vst [vmem:[#allocation2 + $0x40] sm:$0x33] %v9128_v26 }
 0x952   :  { %v9131_v9 = vsel %vm2173_vm8, %v9082_v3, %v9119_v47  ;;  %9153 = vst [vmem:[#allocation2 + $0x48] sm:$0x33] %v9129_v35 }
 0x953   :  { %9154 = vst [vmem:[#allocation2 + $0x50] sm:$0x33] %v9130_v4 }
 0x954   :  { %9155 = vst [vmem:[#allocation2 + $0x58] sm:$0x33] %v9131_v9 }
 0x955   :  { %9161 = vst [vmem:[#allocation2 + $0x42] ss:$4 sm:$0xff] %v10220_v25 }
 0x956   :  { %9247 = dma.vmem_to_hbm [thread:$0]  %s9243_s15, 1536, %s9245_s18, [#allocation3]  }
 0x957   :  { %10476 = dma.done.wait [#allocation3], 1536  }
 0x958   :  { %10477 = vsyncadd [#allocation3], 4294965760 }
 0x959   :  { %9252 = vsyncpa [#allocation3], 1 }

</bundles_post_ra>
